<compile_context>
chip_gen: v6e
topology: v6e:2x2x1
jax: 0.10.0
libtpu: 0.0.40
codegen_flags: <defaults>
</compile_context>

<pallas_src>
import functools

import jax
import jax.numpy as jnp
import numpy as np
from jax.experimental import pallas as pl
from jax.experimental.pallas import tpu as pltpu

NUM_CLASSES = 10
IMG_SHAPE = (3, 32, 32)          # (C, H, W) — Linear(256*4*4) pins the spatial size to 32
BN_EPS = 0.8                     # nn.BatchNorm2d(ch, 0.8): second positional arg is eps
LRELU_SLOPE = 0.2
FC_N_PAD = 128                   # Linear(4096 -> 1) padded to 128 output lanes


# ----------------------------------------------------------------------------
# Small helpers
# ----------------------------------------------------------------------------
def _round_up(x, m):
    return (x + m - 1) // m * m


def _padded_block_bytes(shape, dtype):
    """Approximate VMEM bytes of one buffer of this block after (sublane, lane)
    tiling (f32 -> 8 sublanes, bf16 -> 16 sublanes, lanes -> 128)."""
    itemsize = jnp.dtype(dtype).itemsize
    if len(shape) == 0:
        return itemsize
    lane = _round_up(shape[-1], 128)
    sub_mult = max(8 * 4 // itemsize, 8)
    sub = _round_up(shape[-2], sub_mult) if len(shape) >= 2 else 1
    lead = 1
    for d in shape[:-2]:
        lead *= d
    return lead * sub * lane * itemsize


def _vmem_limit_bytes(blocks):
    """blocks: list of (block_shape, dtype).  Double-buffered working set plus
    headroom, kept <= 48 MiB so it is safe on v7x (64 MiB physical VMEM) while
    still generous on v5e/v6e (128 MiB)."""
    working = sum(_padded_block_bytes(s, d) for s, d in blocks)
    return int(min(max(2 * working + (4 << 20), 16 << 20), 48 << 20))


def _pick_batch_tile(batch, cap):
    """Largest divisor of batch <= cap that leaves >= 2 grid steps when B >= 2,
    so the "parallel" grid axis can be split across v7x's two TensorCores."""
    target = min(cap, max(batch // 2, 1))
    for t in range(target, 0, -1):
        if batch % t == 0:
            return t
    return 1


def _pick_row_tile(m, cap=512):
    """Row tile for 2-D matmul inputs: multiple of 8, divisor of m, >=2 steps."""
    target = min(cap, max(m // 2, 1))
    for t in range(target, 7, -1):
        if t % 8 == 0 and m % t == 0:
            return t
    return m


def _pick_fc_tile(batch, cap=64):
    """x_fc is 2-D with batch on the sublane dim: tile must be a multiple of 8
    (or the full batch)."""
    target = min(cap, max(batch // 2, 1))
    for t in range(target, 7, -1):
        if t % 8 == 0 and batch % t == 0:
            return t
    return batch


# ----------------------------------------------------------------------------
# Parity-plane layout (wrapper-side, XLA): (B, H, W, C) ->
#   (B, 4, H/2+1, W/2+1, C) with plane p = 2*pi + pj holding
#   out[b, p, i, j] = pad(x, 1)[b, 2*i + pi, 2*j + pj]
# Every 3x3 / stride-2 tap then becomes a unit-stride window of one plane.
# ----------------------------------------------------------------------------
def to_parity_planes(x_nhwc):
    b, h, w, c = x_nhwc.shape
    xp = jnp.pad(x_nhwc, ((0, 0), (1, 1), (1, 1), (0, 0)))
    hp, wp = (h + 2) // 2, (w + 2) // 2
    xr = xp.reshape(b, hp, 2, wp, 2, c)
    xr = jnp.transpose(xr, (0, 2, 4, 1, 3, 5))          # (B, 2, 2, hp, wp, C)
    return xr.reshape(b, 4, hp, wp, c).astype(jnp.float32)


def conv_weight_taps(w_oihw):
    # (Cout, Cin, kh, kw) -> (9, Cin, Cout), tap index = kh*3 + kw.
    cout, cin, kh, kw = w_oihw.shape
    return jnp.transpose(w_oihw, (2, 3, 1, 0)).reshape(kh * kw, cin, cout)


def conv_weight_matrix(w_oihw):
    # (Cout, Cin, kh, kw) -> (9*Cin, Cout) matching im2col (kh, kw, Cin) columns.
    cout, cin, kh, kw = w_oihw.shape
    return jnp.transpose(w_oihw, (2, 3, 1, 0)).reshape(kh * kw * cin, cout)


def im2col(x_nhwc, ksize=3, stride=2, pad=1):
    # Used only for conv3 (tiny (B*16, 1152) bf16 patch) — see TODO(synk) above.
    b, h, w, c = x_nhwc.shape
    xp = jnp.pad(x_nhwc, ((0, 0), (pad, pad), (pad, pad), (0, 0)))
    ho = (h + 2 * pad - ksize) // stride + 1
    wo = (w + 2 * pad - ksize) // stride + 1
    cols = []
    for kh in range(ksize):
        for kw in range(ksize):
            cols.append(xp[:, kh:kh + stride * (ho - 1) + 1:stride,
                            kw:kw + stride * (wo - 1) + 1:stride, :])
    patches = jnp.stack(cols, axis=3)                    # (B, Ho, Wo, 9, C)
    return patches.reshape(b * ho * wo, ksize * ksize * c), ho, wo


# ----------------------------------------------------------------------------
# Implicit-GEMM conv kernel (3x3, stride 2, pad 1) from parity planes.
#   out = [lrelu](patches @ W [+ b]) ; optional per-tile BN partial sums.
# ----------------------------------------------------------------------------
def _conv_kernel(*refs, ho, wo, add_bias, act, emit_stats):
    if add_bias:
        x_ref, w_ref, b_ref, *outs = refs
    else:
        x_ref, w_ref, *outs = refs
        b_ref = None
    if emit_stats:
        o_ref, sum_ref, sq_ref = outs
    else:
        (o_ref,) = outs

    tb = x_ref.shape[0]
    cin = x_ref.shape[-1]
    cout = o_ref.shape[-1]
    rows = tb * ho * wo

    acc = jnp.zeros((rows, cout), jnp.float32)
    tap = 0
    for kh in range(3):
        for kw in range(3):
            plane = (kh % 2) * 2 + (kw % 2)
            di, dj = kh // 2, kw // 2
            patch = x_ref[:, plane, di:di + ho, dj:dj + wo, :]   # (tb, ho, wo, cin)
            patch = patch.reshape(rows, cin)                     # layout no-op (wo % 8 == 0)
            acc = acc + jnp.dot(patch, w_ref[tap],
                                preferred_element_type=jnp.float32)
            tap += 1

    if add_bias:
        acc = acc + b_ref[...]
    if emit_stats:
        sum_ref[...] = jnp.sum(acc, axis=0).reshape(1, 1, -1)
        sq_ref[...] = jnp.sum(acc * acc, axis=0).reshape(1, 1, -1)
    if act == "lrelu":
        acc = jnp.where(acc >= 0.0, acc, LRELU_SLOPE * acc)
    o_ref[...] = acc.astype(o_ref.dtype)


def conv2d_s2(x_planes, w_taps, bias=None, *, act="none", emit_stats=False,
              out_dtype=jnp.bfloat16, tile_cap=8):
    b = x_planes.shape[0]
    hp, wp = x_planes.shape[2], x_planes.shape[3]
    ho, wo = hp - 1, wp - 1
    cout = w_taps.shape[-1]
    tb = _pick_batch_tile(b, tile_cap)
    grid = (b // tb,)
    s = ho * wo

    x_block = (tb,) + x_planes.shape[1:]
    in_specs = [pl.BlockSpec(x_block, lambda i: (i, 0, 0, 0, 0)),
                pl.BlockSpec(w_taps.shape, lambda i: (0, 0, 0))]
    args = [x_planes, w_taps]
    blocks = [(x_block, x_planes.dtype), (w_taps.shape, w_taps.dtype)]
    if bias is not None:
        bias2d = bias.reshape(1, cout).astype(jnp.float32)
        in_specs.append(pl.BlockSpec((1, cout), lambda i: (0, 0)))
        args.append(bias2d)
        blocks.append(((1, cout), jnp.float32))

    out_shape = [jax.ShapeDtypeStruct((b * s, cout), out_dtype)]
    out_specs = [pl.BlockSpec((tb * s, cout), lambda i: (i, 0))]
    blocks.append(((tb * s, cout), out_dtype))
    if emit_stats:
        out_shape += [jax.ShapeDtypeStruct((grid[0], 1, cout), jnp.float32)] * 2
        out_specs += [pl.BlockSpec((1, 1, cout), lambda i: (i, 0, 0)),
                      pl.BlockSpec((1, 1, cout), lambda i: (i, 0, 0))]
        blocks += [((1, 1, cout), jnp.float32)] * 2

    kernel = functools.partial(_conv_kernel, ho=ho, wo=wo,
                               add_bias=bias is not None, act=act,
                               emit_stats=emit_stats)
    return pl.pallas_call(
        kernel,
        grid=grid,
        in_specs=in_specs,
        out_specs=tuple(out_specs) if emit_stats else out_specs[0],
        out_shape=tuple(out_shape) if emit_stats else out_shape[0],
        compiler_params=pltpu.CompilerParams(
            dimension_semantics=("parallel",),
            vmem_limit_bytes=_vmem_limit_bytes(blocks)),
    )(*args)


# ----------------------------------------------------------------------------
# Plain 2-D matmul + BN partial sums (used for conv3's small patch matrix)
# ----------------------------------------------------------------------------
def _matmul_stats_kernel(x_ref, w_ref, o_ref, sum_ref, sq_ref):
    y = jnp.dot(x_ref[...], w_ref[...], preferred_element_type=jnp.float32)
    sum_ref[...] = jnp.sum(y, axis=0).reshape(1, 1, -1)
    sq_ref[...] = jnp.sum(y * y, axis=0).reshape(1, 1, -1)
    o_ref[...] = y.astype(o_ref.dtype)


def matmul_stats(x, w, *, out_dtype=jnp.bfloat16, tile_cap=512):
    m, k = x.shape
    n = w.shape[1]
    tm = _pick_row_tile(m, tile_cap)
    grid = (m // tm,)
    blocks = [((tm, k), x.dtype), ((k, n), w.dtype), ((tm, n), out_dtype),
              ((1, 1, n), jnp.float32), ((1, 1, n), jnp.float32)]
    return pl.pallas_call(
        _matmul_stats_kernel,
        grid=grid,
        in_specs=[pl.BlockSpec((tm, k), lambda i: (i, 0)),
                  pl.BlockSpec((k, n), lambda i: (0, 0))],
        out_specs=(pl.BlockSpec((tm, n), lambda i: (i, 0)),
                   pl.BlockSpec((1, 1, n), lambda i: (i, 0, 0)),
                   pl.BlockSpec((1, 1, n), lambda i: (i, 0, 0))),
        out_shape=(jax.ShapeDtypeStruct((m, n), out_dtype),
                   jax.ShapeDtypeStruct((grid[0], 1, n), jnp.float32),
                   jax.ShapeDtypeStruct((grid[0], 1, n), jnp.float32)),
        compiler_params=pltpu.CompilerParams(
            dimension_semantics=("parallel",),
            vmem_limit_bytes=_vmem_limit_bytes(blocks)),
    )(x, w)


# ----------------------------------------------------------------------------
# FC head: conv3 BN + LeakyReLU + Linear(4096 -> 1, padded to 128 lanes) + Sigmoid
# ----------------------------------------------------------------------------
def _fc_kernel(x_ref, scale_ref, shift_ref, w_ref, b_ref, o_ref):
    x = x_ref[...].astype(jnp.float32)
    x = x * scale_ref[...] + shift_ref[...]              # conv3 BN folded in
    x = jnp.where(x >= 0.0, x, LRELU_SLOPE * x)          # conv3 LeakyReLU
    y = jnp.dot(x.astype(jnp.bfloat16), w_ref[...],
                preferred_element_type=jnp.float32)
    y = y + b_ref[...]
    o_ref[...] = 1.0 / (1.0 + jnp.exp(-y))


def fc_head(x_fc, scale_cols, shift_cols, w_fc, b_fc):
    b, k = x_fc.shape
    n = w_fc.shape[1]
    tb = _pick_fc_tile(b)
    grid = (b // tb,)
    blocks = [((tb, k), x_fc.dtype), ((1, k), jnp.float32), ((1, k), jnp.float32),
              ((k, n), w_fc.dtype), ((1, n), jnp.float32), ((tb, n), jnp.float32)]
    return pl.pallas_call(
        _fc_kernel,
        grid=grid,
        in_specs=[pl.BlockSpec((tb, k), lambda i: (i, 0)),
                  pl.BlockSpec((1, k), lambda i: (0, 0)),
                  pl.BlockSpec((1, k), lambda i: (0, 0)),
                  pl.BlockSpec((k, n), lambda i: (0, 0)),
                  pl.BlockSpec((1, n), lambda i: (0, 0))],
        out_specs=pl.BlockSpec((tb, n), lambda i: (i, 0)),
        out_shape=jax.ShapeDtypeStruct((b, n), jnp.float32),
        compiler_params=pltpu.CompilerParams(
            dimension_semantics=("parallel",),
            vmem_limit_bytes=_vmem_limit_bytes(blocks)),
    )(x_fc, scale_cols.reshape(1, k).astype(jnp.float32),
      shift_cols.reshape(1, k).astype(jnp.float32), w_fc,
      b_fc.reshape(1, n).astype(jnp.float32))


# ----------------------------------------------------------------------------
# Cross-tile BatchNorm finalize (tiny: num_tiles x N)
# ----------------------------------------------------------------------------
def finalize_batchnorm(sums, sqs, count, gamma, beta, eps=BN_EPS):
    total = jnp.sum(sums[:, 0, :], axis=0)
    total_sq = jnp.sum(sqs[:, 0, :], axis=0)
    mean = total / count
    var = total_sq / count - mean * mean        # biased variance (training-mode fwd);
    scale = gamma * jax.lax.rsqrt(var + eps)    # eps = 0.8 masks f32 cancellation error
    shift = beta - mean * scale
    return scale, shift


# ----------------------------------------------------------------------------
# Discriminator forward (Pallas pipeline)
# ----------------------------------------------------------------------------
def discriminator_pallas(img_nchw, labels, params):
    b = img_nchw.shape[0]
    _, h, w = IMG_SHAPE

    # Label conditioning: one-hot broadcast over the image plane, channel concat.
    img = jnp.transpose(img_nchw, (0, 2, 3, 1))                         # NHWC
    onehot = jax.nn.one_hot(labels, NUM_CLASSES, dtype=jnp.float32)
    onehot_map = jnp.broadcast_to(onehot[:, None, None, :], (b, h, w, NUM_CLASSES))
    x = jnp.concatenate([img, onehot_map], axis=-1)                     # (B, 32, 32, 13)

    w1 = conv_weight_taps(params["w1"]).astype(jnp.float32)
    w2 = conv_weight_taps(params["w2"]).astype(jnp.float32)
    w3 = conv_weight_matrix(params["w3"]).astype(jnp.bfloat16)

    # conv1: implicit GEMM from parity planes, bias + LeakyReLU fused in-kernel.
    h1 = conv2d_s2(to_parity_planes(x), w1, bias=params["b1"],
                   act="lrelu", tile_cap=4)                             # (B*256, 64) bf16
    h1 = h1.reshape(b, 16, 16, 64)

    # conv2 (bias dropped: cancelled by BN) + per-tile BN partial sums.
    y2, s2, q2 = conv2d_s2(to_parity_planes(h1), w2,
                           emit_stats=True, tile_cap=8)                 # (B*64, 128) bf16
    scale2, shift2 = finalize_batchnorm(s2, q2, float(b * 64),
                                        params["g2"], params["be2"])
    h2 = y2.astype(jnp.float32) * scale2 + shift2                       # BN2 + LeakyReLU
    h2 = jnp.where(h2 >= 0.0, h2, LRELU_SLOPE * h2).astype(jnp.bfloat16)
    h2 = h2.reshape(b, 8, 8, 128)

    # conv3 (bias dropped) + BN partials; its BN/LeakyReLU is deferred to the FC kernel.
    p3, ho, wo = im2col(h2)                                             # (B*16, 1152) bf16
    y3, s3, q3 = matmul_stats(p3, w3)                                   # (B*16, 256) bf16
    scale3, shift3 = finalize_batchnorm(s3, q3, float(b * 16),
                                        params["g3"], params["be3"])

    # FC head: conv3 BN + LeakyReLU + Linear + Sigmoid fused; the PyTorch NCHW
    # flatten permutation is folded into the weight columns; N=1 padded to 128 lanes.
    spatial = ho * wo                                                   # 16
    x_fc = y3.reshape(b, spatial * 256)                                 # cols = (oh, ow, c)
    scale_cols = jnp.tile(scale3, spatial)
    shift_cols = jnp.tile(shift3, spatial)
    w_col = params["wfc"].reshape(256, spatial).T.reshape(spatial * 256)
    w_fc = jnp.zeros((spatial * 256, FC_N_PAD), jnp.float32).at[:, 0].set(w_col)
    b_fc = jnp.zeros((FC_N_PAD,), jnp.float32).at[0].set(params["bfc"][0])
    out = fc_head(x_fc, scale_cols, shift_cols, w_fc.astype(jnp.bfloat16), b_fc)
    return out[:, :1]                                                   # (B, 1)


# ----------------------------------------------------------------------------
# Pure-JAX reference (NCHW, lax.conv, f32) used to verify the Pallas path
# ----------------------------------------------------------------------------
def discriminator_reference(img_nchw, labels, params):
    b = img_nchw.shape[0]
    _, h, w = IMG_SHAPE
    onehot = jax.nn.one_hot(labels, NUM_CLASSES, dtype=img_nchw.dtype)
    onehot = jnp.broadcast_to(onehot[:, :, None, None], (b, NUM_CLASSES, h, w))
    x = jnp.concatenate([img_nchw, onehot], axis=1)

    def conv(x, wgt, bias):
        y = jax.lax.conv_general_dilated(
            x, wgt, (2, 2), ((1, 1), (1, 1)),
            dimension_numbers=("NCHW", "OIHW", "NCHW"))
        return y + bias[None, :, None, None]

    def bn(x, g, bta):
        m = jnp.mean(x, axis=(0, 2, 3), keepdims=True)
        v = jnp.mean((x - m) ** 2, axis=(0, 2, 3), keepdims=True)
        return (x - m) * jax.lax.rsqrt(v + BN_EPS) * g[None, :, None, None] + bta[None, :, None, None]

    lrelu = lambda z: jnp.where(z >= 0, z, LRELU_SLOPE * z)

    hh = lrelu(conv(x, params["w1"], params["b1"]))
    hh = lrelu(bn(conv(hh, params["w2"], params["b2"]), params["g2"], params["be2"]))
    hh = lrelu(bn(conv(hh, params["w3"], params["b3"]), params["g3"], params["be3"]))
    flat = hh.reshape(b, -1)
    return jax.nn.sigmoid(flat @ params["wfc"].T + params["bfc"])


def init_params(key):
    ks = jax.random.split(key, 12)
    s = 0.05
    return {
        "w1": s * jax.random.normal(ks[0], (64, 13, 3, 3), jnp.float32),
        "b1": s * jax.random.normal(ks[1], (64,), jnp.float32),
        "w2": s * jax.random.normal(ks[2], (128, 64, 3, 3), jnp.float32),
        "b2": s * jax.random.normal(ks[3], (128,), jnp.float32),
        "g2": 1.0 + s * jax.random.normal(ks[4], (128,), jnp.float32),
        "be2": s * jax.random.normal(ks[5], (128,), jnp.float32),
        "w3": s * jax.random.normal(ks[6], (256, 128, 3, 3), jnp.float32),
        "b3": s * jax.random.normal(ks[7], (256,), jnp.float32),
        "g3": 1.0 + s * jax.random.normal(ks[8], (256,), jnp.float32),
        "be3": s * jax.random.normal(ks[9], (256,), jnp.float32),
        "wfc": s * jax.random.normal(ks[10], (1, 256 * 4 * 4), jnp.float32),
        "bfc": s * jax.random.normal(ks[11], (1,), jnp.float32),
    }


if __name__ == "__main__":
    key = jax.random.PRNGKey(0)
    k_img, k_lab, k_par = jax.random.split(key, 3)

    B = 2
    img = jax.random.normal(k_img, (B,) + IMG_SHAPE, jnp.float32)     # (2, 3, 32, 32)
    labels = jax.random.randint(k_lab, (B,), 0, NUM_CLASSES)          # (2,)
    params = init_params(k_par)

    validity = jax.jit(discriminator_pallas)(img, labels, params)
    validity = jax.block_until_ready(validity)

    ref = jax.block_until_ready(discriminator_reference(img, labels, params))
    assert validity.shape == (B, 1)
    # bf16 inter-layer activations / bf16 conv3+FC matmul operands vs. the f32 reference.
    np.testing.assert_allclose(np.asarray(validity), np.asarray(ref), atol=2e-2, rtol=2e-2)

    print("KERNEL_OK")
</pallas_src>

<mosaic_0001>
module attributes {stable_mosaic.version = 11 : i64} {
  func.func @_conv_kernel(%arg0: i32, %arg1: memref<1x4x17x17x13xf32, #tpu.memory_space<vmem>>, %arg2: memref<9x13x64xf32, #tpu.memory_space<vmem>>, %arg3: memref<1x64xf32, #tpu.memory_space<vmem>>, %arg4: memref<256x64xbf16, #tpu.memory_space<vmem>>) attributes {dimension_semantics = [#tpu.dimension_semantics<parallel>], iteration_bounds = array<i64: 2>, scalar_prefetch = 0 : i64, scratch_operands = 0 : i64, tpu.core_type = #tpu.core_type<tc>, window_params = [{transform_indices = @transform_0, window_bounds = array<i64: 1, 4, 17, 17, 13>}, {pipeline_mode = #tpu.pipeline_mode<synchronous>, transform_indices = @transform_1, window_bounds = array<i64: 9, 13, 64>}, {pipeline_mode = #tpu.pipeline_mode<synchronous>, transform_indices = @transform_2, window_bounds = array<i64: 1, 64>}, {transform_indices = @transform_3, window_bounds = array<i64: 256, 64>}]} {
    %cst = arith.constant 0.000000e+00 : f32
    %0 = vector.broadcast %cst : f32 to vector<256x64xf32>
    %c0 = arith.constant 0 : index
    %c0_0 = arith.constant 0 : index
    %c0_1 = arith.constant 0 : index
    %c0_2 = arith.constant 0 : index
    %c0_3 = arith.constant 0 : index
    %1 = vector.load %arg1[%c0, %c0_0, %c0_1, %c0_2, %c0_3] : memref<1x4x17x17x13xf32, #tpu.memory_space<vmem>>, vector<1x1x16x16x13xf32>
    %2 = vector.shape_cast %1 : vector<1x1x16x16x13xf32> to vector<1x16x16x13xf32>
    %3 = vector.shape_cast %2 : vector<1x16x16x13xf32> to vector<256x13xf32>
    %c0_4 = arith.constant 0 : index
    %c0_5 = arith.constant 0 : index
    %c0_6 = arith.constant 0 : index
    %4 = vector.load %arg2[%c0_4, %c0_5, %c0_6] : memref<9x13x64xf32, #tpu.memory_space<vmem>>, vector<1x13x64xf32>
    %5 = vector.shape_cast %4 : vector<1x13x64xf32> to vector<13x64xf32>
    %cst_7 = arith.constant dense<0.000000e+00> : vector<256x64xf32>
    %6 = tpu.matmul %3, %5, %cst_7 {dimension_numbers = #tpu.dot_dimension_numbers<[1], [0], [0], [1], [0, 0, 1, 1], [], []>} : vector<256x13xf32>, vector<13x64xf32>, vector<256x64xf32> -> vector<256x64xf32>
    %7 = arith.addf %0, %6 : vector<256x64xf32>
    %c0_8 = arith.constant 0 : index
    %c1 = arith.constant 1 : index
    %c0_9 = arith.constant 0 : index
    %c0_10 = arith.constant 0 : index
    %c0_11 = arith.constant 0 : index
    %8 = vector.load %arg1[%c0_8, %c1, %c0_9, %c0_10, %c0_11] : memref<1x4x17x17x13xf32, #tpu.memory_space<vmem>>, vector<1x1x16x16x13xf32>
    %9 = vector.shape_cast %8 : vector<1x1x16x16x13xf32> to vector<1x16x16x13xf32>
    %10 = vector.shape_cast %9 : vector<1x16x16x13xf32> to vector<256x13xf32>
    %c1_12 = arith.constant 1 : index
    %c0_13 = arith.constant 0 : index
    %c0_14 = arith.constant 0 : index
    %11 = vector.load %arg2[%c1_12, %c0_13, %c0_14] : memref<9x13x64xf32, #tpu.memory_space<vmem>>, vector<1x13x64xf32>
    %12 = vector.shape_cast %11 : vector<1x13x64xf32> to vector<13x64xf32>
    %cst_15 = arith.constant dense<0.000000e+00> : vector<256x64xf32>
    %13 = tpu.matmul %10, %12, %cst_15 {dimension_numbers = #tpu.dot_dimension_numbers<[1], [0], [0], [1], [0, 0, 1, 1], [], []>} : vector<256x13xf32>, vector<13x64xf32>, vector<256x64xf32> -> vector<256x64xf32>
    %14 = arith.addf %7, %13 : vector<256x64xf32>
    %c0_16 = arith.constant 0 : index
    %c0_17 = arith.constant 0 : index
    %c0_18 = arith.constant 0 : index
    %c1_19 = arith.constant 1 : index
    %c0_20 = arith.constant 0 : index
    %15 = vector.load %arg1[%c0_16, %c0_17, %c0_18, %c1_19, %c0_20] : memref<1x4x17x17x13xf32, #tpu.memory_space<vmem>>, vector<1x1x16x16x13xf32>
    %16 = vector.shape_cast %15 : vector<1x1x16x16x13xf32> to vector<1x16x16x13xf32>
    %17 = vector.shape_cast %16 : vector<1x16x16x13xf32> to vector<256x13xf32>
    %c2 = arith.constant 2 : index
    %c0_21 = arith.constant 0 : index
    %c0_22 = arith.constant 0 : index
    %18 = vector.load %arg2[%c2, %c0_21, %c0_22] : memref<9x13x64xf32, #tpu.memory_space<vmem>>, vector<1x13x64xf32>
    %19 = vector.shape_cast %18 : vector<1x13x64xf32> to vector<13x64xf32>
    %cst_23 = arith.constant dense<0.000000e+00> : vector<256x64xf32>
    %20 = tpu.matmul %17, %19, %cst_23 {dimension_numbers = #tpu.dot_dimension_numbers<[1], [0], [0], [1], [0, 0, 1, 1], [], []>} : vector<256x13xf32>, vector<13x64xf32>, vector<256x64xf32> -> vector<256x64xf32>
    %21 = arith.addf %14, %20 : vector<256x64xf32>
    %c0_24 = arith.constant 0 : index
    %c2_25 = arith.constant 2 : index
    %c0_26 = arith.constant 0 : index
    %c0_27 = arith.constant 0 : index
    %c0_28 = arith.constant 0 : index
    %22 = vector.load %arg1[%c0_24, %c2_25, %c0_26, %c0_27, %c0_28] : memref<1x4x17x17x13xf32, #tpu.memory_space<vmem>>, vector<1x1x16x16x13xf32>
    %23 = vector.shape_cast %22 : vector<1x1x16x16x13xf32> to vector<1x16x16x13xf32>
    %24 = vector.shape_cast %23 : vector<1x16x16x13xf32> to vector<256x13xf32>
    %c3 = arith.constant 3 : index
    %c0_29 = arith.constant 0 : index
    %c0_30 = arith.constant 0 : index
    %25 = vector.load %arg2[%c3, %c0_29, %c0_30] : memref<9x13x64xf32, #tpu.memory_space<vmem>>, vector<1x13x64xf32>
    %26 = vector.shape_cast %25 : vector<1x13x64xf32> to vector<13x64xf32>
    %cst_31 = arith.constant dense<0.000000e+00> : vector<256x64xf32>
    %27 = tpu.matmul %24, %26, %cst_31 {dimension_numbers = #tpu.dot_dimension_numbers<[1], [0], [0], [1], [0, 0, 1, 1], [], []>} : vector<256x13xf32>, vector<13x64xf32>, vector<256x64xf32> -> vector<256x64xf32>
    %28 = arith.addf %21, %27 : vector<256x64xf32>
    %c0_32 = arith.constant 0 : index
    %c3_33 = arith.constant 3 : index
    %c0_34 = arith.constant 0 : index
    %c0_35 = arith.constant 0 : index
    %c0_36 = arith.constant 0 : index
    %29 = vector.load %arg1[%c0_32, %c3_33, %c0_34, %c0_35, %c0_36] : memref<1x4x17x17x13xf32, #tpu.memory_space<vmem>>, vector<1x1x16x16x13xf32>
    %30 = vector.shape_cast %29 : vector<1x1x16x16x13xf32> to vector<1x16x16x13xf32>
    %31 = vector.shape_cast %30 : vector<1x16x16x13xf32> to vector<256x13xf32>
    %c4 = arith.constant 4 : index
    %c0_37 = arith.constant 0 : index
    %c0_38 = arith.constant 0 : index
    %32 = vector.load %arg2[%c4, %c0_37, %c0_38] : memref<9x13x64xf32, #tpu.memory_space<vmem>>, vector<1x13x64xf32>
    %33 = vector.shape_cast %32 : vector<1x13x64xf32> to vector<13x64xf32>
    %cst_39 = arith.constant dense<0.000000e+00> : vector<256x64xf32>
    %34 = tpu.matmul %31, %33, %cst_39 {dimension_numbers = #tpu.dot_dimension_numbers<[1], [0], [0], [1], [0, 0, 1, 1], [], []>} : vector<256x13xf32>, vector<13x64xf32>, vector<256x64xf32> -> vector<256x64xf32>
    %35 = arith.addf %28, %34 : vector<256x64xf32>
    %c0_40 = arith.constant 0 : index
    %c2_41 = arith.constant 2 : index
    %c0_42 = arith.constant 0 : index
    %c1_43 = arith.constant 1 : index
    %c0_44 = arith.constant 0 : index
    %36 = vector.load %arg1[%c0_40, %c2_41, %c0_42, %c1_43, %c0_44] : memref<1x4x17x17x13xf32, #tpu.memory_space<vmem>>, vector<1x1x16x16x13xf32>
    %37 = vector.shape_cast %36 : vector<1x1x16x16x13xf32> to vector<1x16x16x13xf32>
    %38 = vector.shape_cast %37 : vector<1x16x16x13xf32> to vector<256x13xf32>
    %c5 = arith.constant 5 : index
    %c0_45 = arith.constant 0 : index
    %c0_46 = arith.constant 0 : index
    %39 = vector.load %arg2[%c5, %c0_45, %c0_46] : memref<9x13x64xf32, #tpu.memory_space<vmem>>, vector<1x13x64xf32>
    %40 = vector.shape_cast %39 : vector<1x13x64xf32> to vector<13x64xf32>
    %cst_47 = arith.constant dense<0.000000e+00> : vector<256x64xf32>
    %41 = tpu.matmul %38, %40, %cst_47 {dimension_numbers = #tpu.dot_dimension_numbers<[1], [0], [0], [1], [0, 0, 1, 1], [], []>} : vector<256x13xf32>, vector<13x64xf32>, vector<256x64xf32> -> vector<256x64xf32>
    %42 = arith.addf %35, %41 : vector<256x64xf32>
    %c0_48 = arith.constant 0 : index
    %c0_49 = arith.constant 0 : index
    %c1_50 = arith.constant 1 : index
    %c0_51 = arith.constant 0 : index
    %c0_52 = arith.constant 0 : index
    %43 = vector.load %arg1[%c0_48, %c0_49, %c1_50, %c0_51, %c0_52] : memref<1x4x17x17x13xf32, #tpu.memory_space<vmem>>, vector<1x1x16x16x13xf32>
    %44 = vector.shape_cast %43 : vector<1x1x16x16x13xf32> to vector<1x16x16x13xf32>
    %45 = vector.shape_cast %44 : vector<1x16x16x13xf32> to vector<256x13xf32>
    %c6 = arith.constant 6 : index
    %c0_53 = arith.constant 0 : index
    %c0_54 = arith.constant 0 : index
    %46 = vector.load %arg2[%c6, %c0_53, %c0_54] : memref<9x13x64xf32, #tpu.memory_space<vmem>>, vector<1x13x64xf32>
    %47 = vector.shape_cast %46 : vector<1x13x64xf32> to vector<13x64xf32>
    %cst_55 = arith.constant dense<0.000000e+00> : vector<256x64xf32>
    %48 = tpu.matmul %45, %47, %cst_55 {dimension_numbers = #tpu.dot_dimension_numbers<[1], [0], [0], [1], [0, 0, 1, 1], [], []>} : vector<256x13xf32>, vector<13x64xf32>, vector<256x64xf32> -> vector<256x64xf32>
    %49 = arith.addf %42, %48 : vector<256x64xf32>
    %c0_56 = arith.constant 0 : index
    %c1_57 = arith.constant 1 : index
    %c1_58 = arith.constant 1 : index
    %c0_59 = arith.constant 0 : index
    %c0_60 = arith.constant 0 : index
    %50 = vector.load %arg1[%c0_56, %c1_57, %c1_58, %c0_59, %c0_60] : memref<1x4x17x17x13xf32, #tpu.memory_space<vmem>>, vector<1x1x16x16x13xf32>
    %51 = vector.shape_cast %50 : vector<1x1x16x16x13xf32> to vector<1x16x16x13xf32>
    %52 = vector.shape_cast %51 : vector<1x16x16x13xf32> to vector<256x13xf32>
    %c7 = arith.constant 7 : index
    %c0_61 = arith.constant 0 : index
    %c0_62 = arith.constant 0 : index
    %53 = vector.load %arg2[%c7, %c0_61, %c0_62] : memref<9x13x64xf32, #tpu.memory_space<vmem>>, vector<1x13x64xf32>
    %54 = vector.shape_cast %53 : vector<1x13x64xf32> to vector<13x64xf32>
    %cst_63 = arith.constant dense<0.000000e+00> : vector<256x64xf32>
    %55 = tpu.matmul %52, %54, %cst_63 {dimension_numbers = #tpu.dot_dimension_numbers<[1], [0], [0], [1], [0, 0, 1, 1], [], []>} : vector<256x13xf32>, vector<13x64xf32>, vector<256x64xf32> -> vector<256x64xf32>
    %56 = arith.addf %49, %55 : vector<256x64xf32>
    %c0_64 = arith.constant 0 : index
    %c0_65 = arith.constant 0 : index
    %c1_66 = arith.constant 1 : index
    %c1_67 = arith.constant 1 : index
    %c0_68 = arith.constant 0 : index
    %57 = vector.load %arg1[%c0_64, %c0_65, %c1_66, %c1_67, %c0_68] : memref<1x4x17x17x13xf32, #tpu.memory_space<vmem>>, vector<1x1x16x16x13xf32>
    %58 = vector.shape_cast %57 : vector<1x1x16x16x13xf32> to vector<1x16x16x13xf32>
    %59 = vector.shape_cast %58 : vector<1x16x16x13xf32> to vector<256x13xf32>
    %c8 = arith.constant 8 : index
    %c0_69 = arith.constant 0 : index
    %c0_70 = arith.constant 0 : index
    %60 = vector.load %arg2[%c8, %c0_69, %c0_70] : memref<9x13x64xf32, #tpu.memory_space<vmem>>, vector<1x13x64xf32>
    %61 = vector.shape_cast %60 : vector<1x13x64xf32> to vector<13x64xf32>
    %cst_71 = arith.constant dense<0.000000e+00> : vector<256x64xf32>
    %62 = tpu.matmul %59, %61, %cst_71 {dimension_numbers = #tpu.dot_dimension_numbers<[1], [0], [0], [1], [0, 0, 1, 1], [], []>} : vector<256x13xf32>, vector<13x64xf32>, vector<256x64xf32> -> vector<256x64xf32>
    %63 = arith.addf %56, %62 : vector<256x64xf32>
    %c0_72 = arith.constant 0 : index
    %c0_73 = arith.constant 0 : index
    %64 = vector.load %arg3[%c0_72, %c0_73] : memref<1x64xf32, #tpu.memory_space<vmem>>, vector<1x64xf32>
    %65 = vector.broadcast %64 : vector<1x64xf32> to vector<256x64xf32>
    %66 = arith.addf %63, %65 : vector<256x64xf32>
    %cst_74 = arith.constant 0.000000e+00 : f32
    %67 = vector.broadcast %cst_74 : f32 to vector<256x64xf32>
    %68 = arith.cmpf oge, %66, %67 : vector<256x64xf32>
    %cst_75 = arith.constant 2.000000e-01 : f32
    %69 = vector.broadcast %cst_75 : f32 to vector<256x64xf32>
    %70 = arith.mulf %69, %66 : vector<256x64xf32>
    %71 = arith.select %68, %66, %70 : vector<256x64xi1>, vector<256x64xf32>
    %72 = arith.truncf %71 : vector<256x64xf32> to vector<256x64xbf16>
    %c0_76 = arith.constant 0 : index
    %c0_77 = arith.constant 0 : index
    %73 = vector.load %arg4[%c0_76, %c0_77] : memref<256x64xbf16, #tpu.memory_space<vmem>>, vector<256x64xbf16>
    tpu.vector_store %arg4[%c0_76, %c0_77], %72 {strides = array<i32>} : memref<256x64xbf16, #tpu.memory_space<vmem>>, vector<256x64xbf16>,
    return
  }
  func.func @transform_0(%arg0: i32) -> (i32, i32, i32, i32, i32) {
    %c0_i32 = arith.constant 0 : i32
    %c0_i32_0 = arith.constant 0 : i32
    %c0_i32_1 = arith.constant 0 : i32
    %c0_i32_2 = arith.constant 0 : i32
    %c0_i32_3 = arith.constant 0 : i32
    return %arg0, %c0_i32, %c0_i32_0, %c0_i32_1, %c0_i32_2 : i32, i32, i32, i32, i32
  }
  func.func @transform_1(%arg0: i32) -> (i32, i32, i32) {
    %c0_i32 = arith.constant 0 : i32
    %c0_i32_0 = arith.constant 0 : i32
    %c0_i32_1 = arith.constant 0 : i32
    %c0_i32_2 = arith.constant 0 : i32
    return %c0_i32, %c0_i32_0, %c0_i32_1 : i32, i32, i32
  }
  func.func @transform_2(%arg0: i32) -> (i32, i32) {
    %c0_i32 = arith.constant 0 : i32
    %c0_i32_0 = arith.constant 0 : i32
    %c0_i32_1 = arith.constant 0 : i32
    return %c0_i32, %c0_i32_0 : i32, i32
  }
  func.func @transform_3(%arg0: i32) -> (i32, i32) {
    %c0_i32 = arith.constant 0 : i32
    %c0_i32_0 = arith.constant 0 : i32
    return %arg0, %c0_i32 : i32, i32
  }
}

module attributes {stable_mosaic.version = 11 : i64} {
  func.func @_conv_kernel(%arg0: i32, %arg1: memref<1x4x9x9x64xf32, #tpu.memory_space<vmem>>, %arg2: memref<9x64x128xf32, #tpu.memory_space<vmem>>, %arg3: memref<64x128xbf16, #tpu.memory_space<vmem>>, %arg4: memref<1x1x128xf32, #tpu.memory_space<vmem>>, %arg5: memref<1x1x128xf32, #tpu.memory_space<vmem>>) attributes {dimension_semantics = [#tpu.dimension_semantics<parallel>], iteration_bounds = array<i64: 2>, scalar_prefetch = 0 : i64, scratch_operands = 0 : i64, tpu.core_type = #tpu.core_type<tc>, window_params = [{transform_indices = @transform_0, window_bounds = array<i64: 1, 4, 9, 9, 64>}, {pipeline_mode = #tpu.pipeline_mode<synchronous>, transform_indices = @transform_1, window_bounds = array<i64: 9, 64, 128>}, {transform_indices = @transform_2, window_bounds = array<i64: 64, 128>}, {transform_indices = @transform_3, window_bounds = array<i64: 1, 1, 128>}, {transform_indices = @transform_4, window_bounds = array<i64: 1, 1, 128>}]} {
    %cst = arith.constant 0.000000e+00 : f32
    %0 = vector.broadcast %cst : f32 to vector<64x128xf32>
    %c0 = arith.constant 0 : index
    %c0_0 = arith.constant 0 : index
    %c0_1 = arith.constant 0 : index
    %c0_2 = arith.constant 0 : index
    %c0_3 = arith.constant 0 : index
    %1 = vector.load %arg1[%c0, %c0_0, %c0_1, %c0_2, %c0_3] : memref<1x4x9x9x64xf32, #tpu.memory_space<vmem>>, vector<1x1x8x8x64xf32>
    %2 = vector.shape_cast %1 : vector<1x1x8x8x64xf32> to vector<1x8x8x64xf32>
    %3 = vector.shape_cast %2 : vector<1x8x8x64xf32> to vector<64x64xf32>
    %c0_4 = arith.constant 0 : index
    %c0_5 = arith.constant 0 : index
    %c0_6 = arith.constant 0 : index
    %4 = vector.load %arg2[%c0_4, %c0_5, %c0_6] : memref<9x64x128xf32, #tpu.memory_space<vmem>>, vector<1x64x128xf32>
    %5 = vector.shape_cast %4 : vector<1x64x128xf32> to vector<64x128xf32>
    %cst_7 = arith.constant dense<0.000000e+00> : vector<64x128xf32>
    %6 = tpu.matmul %3, %5, %cst_7 {dimension_numbers = #tpu.dot_dimension_numbers<[1], [0], [0], [1], [0, 0, 1, 1], [], []>} : vector<64x64xf32>, vector<64x128xf32>, vector<64x128xf32> -> vector<64x128xf32>
    %7 = arith.addf %0, %6 : vector<64x128xf32>
    %c0_8 = arith.constant 0 : index
    %c1 = arith.constant 1 : index
    %c0_9 = arith.constant 0 : index
    %c0_10 = arith.constant 0 : index
    %c0_11 = arith.constant 0 : index
    %8 = vector.load %arg1[%c0_8, %c1, %c0_9, %c0_10, %c0_11] : memref<1x4x9x9x64xf32, #tpu.memory_space<vmem>>, vector<1x1x8x8x64xf32>
    %9 = vector.shape_cast %8 : vector<1x1x8x8x64xf32> to vector<1x8x8x64xf32>
    %10 = vector.shape_cast %9 : vector<1x8x8x64xf32> to vector<64x64xf32>
    %c1_12 = arith.constant 1 : index
    %c0_13 = arith.constant 0 : index
    %c0_14 = arith.constant 0 : index
    %11 = vector.load %arg2[%c1_12, %c0_13, %c0_14] : memref<9x64x128xf32, #tpu.memory_space<vmem>>, vector<1x64x128xf32>
    %12 = vector.shape_cast %11 : vector<1x64x128xf32> to vector<64x128xf32>
    %cst_15 = arith.constant dense<0.000000e+00> : vector<64x128xf32>
    %13 = tpu.matmul %10, %12, %cst_15 {dimension_numbers = #tpu.dot_dimension_numbers<[1], [0], [0], [1], [0, 0, 1, 1], [], []>} : vector<64x64xf32>, vector<64x128xf32>, vector<64x128xf32> -> vector<64x128xf32>
    %14 = arith.addf %7, %13 : vector<64x128xf32>
    %c0_16 = arith.constant 0 : index
    %c0_17 = arith.constant 0 : index
    %c0_18 = arith.constant 0 : index
    %c1_19 = arith.constant 1 : index
    %c0_20 = arith.constant 0 : index
    %15 = vector.load %arg1[%c0_16, %c0_17, %c0_18, %c1_19, %c0_20] : memref<1x4x9x9x64xf32, #tpu.memory_space<vmem>>, vector<1x1x8x8x64xf32>
    %16 = vector.shape_cast %15 : vector<1x1x8x8x64xf32> to vector<1x8x8x64xf32>
    %17 = vector.shape_cast %16 : vector<1x8x8x64xf32> to vector<64x64xf32>
    %c2 = arith.constant 2 : index
    %c0_21 = arith.constant 0 : index
    %c0_22 = arith.constant 0 : index
    %18 = vector.load %arg2[%c2, %c0_21, %c0_22] : memref<9x64x128xf32, #tpu.memory_space<vmem>>, vector<1x64x128xf32>
    %19 = vector.shape_cast %18 : vector<1x64x128xf32> to vector<64x128xf32>
    %cst_23 = arith.constant dense<0.000000e+00> : vector<64x128xf32>
    %20 = tpu.matmul %17, %19, %cst_23 {dimension_numbers = #tpu.dot_dimension_numbers<[1], [0], [0], [1], [0, 0, 1, 1], [], []>} : vector<64x64xf32>, vector<64x128xf32>, vector<64x128xf32> -> vector<64x128xf32>
    %21 = arith.addf %14, %20 : vector<64x128xf32>
    %c0_24 = arith.constant 0 : index
    %c2_25 = arith.constant 2 : index
    %c0_26 = arith.constant 0 : index
    %c0_27 = arith.constant 0 : index
    %c0_28 = arith.constant 0 : index
    %22 = vector.load %arg1[%c0_24, %c2_25, %c0_26, %c0_27, %c0_28] : memref<1x4x9x9x64xf32, #tpu.memory_space<vmem>>, vector<1x1x8x8x64xf32>
    %23 = vector.shape_cast %22 : vector<1x1x8x8x64xf32> to vector<1x8x8x64xf32>
    %24 = vector.shape_cast %23 : vector<1x8x8x64xf32> to vector<64x64xf32>
    %c3 = arith.constant 3 : index
    %c0_29 = arith.constant 0 : index
    %c0_30 = arith.constant 0 : index
    %25 = vector.load %arg2[%c3, %c0_29, %c0_30] : memref<9x64x128xf32, #tpu.memory_space<vmem>>, vector<1x64x128xf32>
    %26 = vector.shape_cast %25 : vector<1x64x128xf32> to vector<64x128xf32>
    %cst_31 = arith.constant dense<0.000000e+00> : vector<64x128xf32>
    %27 = tpu.matmul %24, %26, %cst_31 {dimension_numbers = #tpu.dot_dimension_numbers<[1], [0], [0], [1], [0, 0, 1, 1], [], []>} : vector<64x64xf32>, vector<64x128xf32>, vector<64x128xf32> -> vector<64x128xf32>
    %28 = arith.addf %21, %27 : vector<64x128xf32>
    %c0_32 = arith.constant 0 : index
    %c3_33 = arith.constant 3 : index
    %c0_34 = arith.constant 0 : index
    %c0_35 = arith.constant 0 : index
    %c0_36 = arith.constant 0 : index
    %29 = vector.load %arg1[%c0_32, %c3_33, %c0_34, %c0_35, %c0_36] : memref<1x4x9x9x64xf32, #tpu.memory_space<vmem>>, vector<1x1x8x8x64xf32>
    %30 = vector.shape_cast %29 : vector<1x1x8x8x64xf32> to vector<1x8x8x64xf32>
    %31 = vector.shape_cast %30 : vector<1x8x8x64xf32> to vector<64x64xf32>
    %c4 = arith.constant 4 : index
    %c0_37 = arith.constant 0 : index
    %c0_38 = arith.constant 0 : index
    %32 = vector.load %arg2[%c4, %c0_37, %c0_38] : memref<9x64x128xf32, #tpu.memory_space<vmem>>, vector<1x64x128xf32>
    %33 = vector.shape_cast %32 : vector<1x64x128xf32> to vector<64x128xf32>
    %cst_39 = arith.constant dense<0.000000e+00> : vector<64x128xf32>
    %34 = tpu.matmul %31, %33, %cst_39 {dimension_numbers = #tpu.dot_dimension_numbers<[1], [0], [0], [1], [0, 0, 1, 1], [], []>} : vector<64x64xf32>, vector<64x128xf32>, vector<64x128xf32> -> vector<64x128xf32>
    %35 = arith.addf %28, %34 : vector<64x128xf32>
    %c0_40 = arith.constant 0 : index
    %c2_41 = arith.constant 2 : index
    %c0_42 = arith.constant 0 : index
    %c1_43 = arith.constant 1 : index
    %c0_44 = arith.constant 0 : index
    %36 = vector.load %arg1[%c0_40, %c2_41, %c0_42, %c1_43, %c0_44] : memref<1x4x9x9x64xf32, #tpu.memory_space<vmem>>, vector<1x1x8x8x64xf32>
    %37 = vector.shape_cast %36 : vector<1x1x8x8x64xf32> to vector<1x8x8x64xf32>
    %38 = vector.shape_cast %37 : vector<1x8x8x64xf32> to vector<64x64xf32>
    %c5 = arith.constant 5 : index
    %c0_45 = arith.constant 0 : index
    %c0_46 = arith.constant 0 : index
    %39 = vector.load %arg2[%c5, %c0_45, %c0_46] : memref<9x64x128xf32, #tpu.memory_space<vmem>>, vector<1x64x128xf32>
    %40 = vector.shape_cast %39 : vector<1x64x128xf32> to vector<64x128xf32>
    %cst_47 = arith.constant dense<0.000000e+00> : vector<64x128xf32>
    %41 = tpu.matmul %38, %40, %cst_47 {dimension_numbers = #tpu.dot_dimension_numbers<[1], [0], [0], [1], [0, 0, 1, 1], [], []>} : vector<64x64xf32>, vector<64x128xf32>, vector<64x128xf32> -> vector<64x128xf32>
    %42 = arith.addf %35, %41 : vector<64x128xf32>
    %c0_48 = arith.constant 0 : index
    %c0_49 = arith.constant 0 : index
    %c1_50 = arith.constant 1 : index
    %c0_51 = arith.constant 0 : index
    %c0_52 = arith.constant 0 : index
    %43 = vector.load %arg1[%c0_48, %c0_49, %c1_50, %c0_51, %c0_52] : memref<1x4x9x9x64xf32, #tpu.memory_space<vmem>>, vector<1x1x8x8x64xf32>
    %44 = vector.shape_cast %43 : vector<1x1x8x8x64xf32> to vector<1x8x8x64xf32>
    %45 = vector.shape_cast %44 : vector<1x8x8x64xf32> to vector<64x64xf32>
    %c6 = arith.constant 6 : index
    %c0_53 = arith.constant 0 : index
    %c0_54 = arith.constant 0 : index
    %46 = vector.load %arg2[%c6, %c0_53, %c0_54] : memref<9x64x128xf32, #tpu.memory_space<vmem>>, vector<1x64x128xf32>
    %47 = vector.shape_cast %46 : vector<1x64x128xf32> to vector<64x128xf32>
    %cst_55 = arith.constant dense<0.000000e+00> : vector<64x128xf32>
    %48 = tpu.matmul %45, %47, %cst_55 {dimension_numbers = #tpu.dot_dimension_numbers<[1], [0], [0], [1], [0, 0, 1, 1], [], []>} : vector<64x64xf32>, vector<64x128xf32>, vector<64x128xf32> -> vector<64x128xf32>
    %49 = arith.addf %42, %48 : vector<64x128xf32>
    %c0_56 = arith.constant 0 : index
    %c1_57 = arith.constant 1 : index
    %c1_58 = arith.constant 1 : index
    %c0_59 = arith.constant 0 : index
    %c0_60 = arith.constant 0 : index
    %50 = vector.load %arg1[%c0_56, %c1_57, %c1_58, %c0_59, %c0_60] : memref<1x4x9x9x64xf32, #tpu.memory_space<vmem>>, vector<1x1x8x8x64xf32>
    %51 = vector.shape_cast %50 : vector<1x1x8x8x64xf32> to vector<1x8x8x64xf32>
    %52 = vector.shape_cast %51 : vector<1x8x8x64xf32> to vector<64x64xf32>
    %c7 = arith.constant 7 : index
    %c0_61 = arith.constant 0 : index
    %c0_62 = arith.constant 0 : index
    %53 = vector.load %arg2[%c7, %c0_61, %c0_62] : memref<9x64x128xf32, #tpu.memory_space<vmem>>, vector<1x64x128xf32>
    %54 = vector.shape_cast %53 : vector<1x64x128xf32> to vector<64x128xf32>
    %cst_63 = arith.constant dense<0.000000e+00> : vector<64x128xf32>
    %55 = tpu.matmul %52, %54, %cst_63 {dimension_numbers = #tpu.dot_dimension_numbers<[1], [0], [0], [1], [0, 0, 1, 1], [], []>} : vector<64x64xf32>, vector<64x128xf32>, vector<64x128xf32> -> vector<64x128xf32>
    %56 = arith.addf %49, %55 : vector<64x128xf32>
    %c0_64 = arith.constant 0 : index
    %c0_65 = arith.constant 0 : index
    %c1_66 = arith.constant 1 : index
    %c1_67 = arith.constant 1 : index
    %c0_68 = arith.constant 0 : index
    %57 = vector.load %arg1[%c0_64, %c0_65, %c1_66, %c1_67, %c0_68] : memref<1x4x9x9x64xf32, #tpu.memory_space<vmem>>, vector<1x1x8x8x64xf32>
    %58 = vector.shape_cast %57 : vector<1x1x8x8x64xf32> to vector<1x8x8x64xf32>
    %59 = vector.shape_cast %58 : vector<1x8x8x64xf32> to vector<64x64xf32>
    %c8 = arith.constant 8 : index
    %c0_69 = arith.constant 0 : index
    %c0_70 = arith.constant 0 : index
    %60 = vector.load %arg2[%c8, %c0_69, %c0_70] : memref<9x64x128xf32, #tpu.memory_space<vmem>>, vector<1x64x128xf32>
    %61 = vector.shape_cast %60 : vector<1x64x128xf32> to vector<64x128xf32>
    %cst_71 = arith.constant dense<0.000000e+00> : vector<64x128xf32>
    %62 = tpu.matmul %59, %61, %cst_71 {dimension_numbers = #tpu.dot_dimension_numbers<[1], [0], [0], [1], [0, 0, 1, 1], [], []>} : vector<64x64xf32>, vector<64x128xf32>, vector<64x128xf32> -> vector<64x128xf32>
    %63 = arith.addf %56, %62 : vector<64x128xf32>
    %cst_72 = arith.constant dense<0.000000e+00> : vector<128xf32>
    %64 = vector.multi_reduction <add>, %63, %cst_72 [0] : vector<64x128xf32> to vector<128xf32>
    %65 = vector.shape_cast %64 : vector<128xf32> to vector<1x1x128xf32>
    %c0_73 = arith.constant 0 : index
    %c0_74 = arith.constant 0 : index
    %c0_75 = arith.constant 0 : index
    %66 = vector.load %arg4[%c0_73, %c0_74, %c0_75] : memref<1x1x128xf32, #tpu.memory_space<vmem>>, vector<1x1x128xf32>
    tpu.vector_store %arg4[%c0_73, %c0_74, %c0_75], %65 {strides = array<i32>} : memref<1x1x128xf32, #tpu.memory_space<vmem>>, vector<1x1x128xf32>,
    %67 = arith.mulf %63, %63 : vector<64x128xf32>
    %cst_76 = arith.constant dense<0.000000e+00> : vector<128xf32>
    %68 = vector.multi_reduction <add>, %67, %cst_76 [0] : vector<64x128xf32> to vector<128xf32>
    %69 = vector.shape_cast %68 : vector<128xf32> to vector<1x1x128xf32>
    %c0_77 = arith.constant 0 : index
    %c0_78 = arith.constant 0 : index
    %c0_79 = arith.constant 0 : index
    %70 = vector.load %arg5[%c0_77, %c0_78, %c0_79] : memref<1x1x128xf32, #tpu.memory_space<vmem>>, vector<1x1x128xf32>
    tpu.vector_store %arg5[%c0_77, %c0_78, %c0_79], %69 {strides = array<i32>} : memref<1x1x128xf32, #tpu.memory_space<vmem>>, vector<1x1x128xf32>,
    %71 = arith.truncf %63 : vector<64x128xf32> to vector<64x128xbf16>
    %c0_80 = arith.constant 0 : index
    %c0_81 = arith.constant 0 : index
    %72 = vector.load %arg3[%c0_80, %c0_81] : memref<64x128xbf16, #tpu.memory_space<vmem>>, vector<64x128xbf16>
    tpu.vector_store %arg3[%c0_80, %c0_81], %71 {strides = array<i32>} : memref<64x128xbf16, #tpu.memory_space<vmem>>, vector<64x128xbf16>,
    return
  }
  func.func @transform_0(%arg0: i32) -> (i32, i32, i32, i32, i32) {
    %c0_i32 = arith.constant 0 : i32
    %c0_i32_0 = arith.constant 0 : i32
    %c0_i32_1 = arith.constant 0 : i32
    %c0_i32_2 = arith.constant 0 : i32
    %c0_i32_3 = arith.constant 0 : i32
    return %arg0, %c0_i32, %c0_i32_0, %c0_i32_1, %c0_i32_2 : i32, i32, i32, i32, i32
  }
  func.func @transform_1(%arg0: i32) -> (i32, i32, i32) {
    %c0_i32 = arith.constant 0 : i32
    %c0_i32_0 = arith.constant 0 : i32
    %c0_i32_1 = arith.constant 0 : i32
    %c0_i32_2 = arith.constant 0 : i32
    return %c0_i32, %c0_i32_0, %c0_i32_1 : i32, i32, i32
  }
  func.func @transform_2(%arg0: i32) -> (i32, i32) {
    %c0_i32 = arith.constant 0 : i32
    %c0_i32_0 = arith.constant 0 : i32
    return %arg0, %c0_i32 : i32, i32
  }
  func.func @transform_3(%arg0: i32) -> (i32, i32, i32) {
    %c0_i32 = arith.constant 0 : i32
    %c0_i32_0 = arith.constant 0 : i32
    %c0_i32_1 = arith.constant 0 : i32
    return %arg0, %c0_i32, %c0_i32_0 : i32, i32, i32
  }
  func.func @transform_4(%arg0: i32) -> (i32, i32, i32) {
    %c0_i32 = arith.constant 0 : i32
    %c0_i32_0 = arith.constant 0 : i32
    %c0_i32_1 = arith.constant 0 : i32
    return %arg0, %c0_i32, %c0_i32_0 : i32, i32, i32
  }
}

module attributes {stable_mosaic.version = 11 : i64} {
  func.func @_matmul_stats_kernel(%arg0: i32, %arg1: memref<16x1152xbf16, #tpu.memory_space<vmem>>, %arg2: memref<1152x256xbf16, #tpu.memory_space<vmem>>, %arg3: memref<16x256xbf16, #tpu.memory_space<vmem>>, %arg4: memref<1x1x256xf32, #tpu.memory_space<vmem>>, %arg5: memref<1x1x256xf32, #tpu.memory_space<vmem>>) attributes {dimension_semantics = [#tpu.dimension_semantics<parallel>], iteration_bounds = array<i64: 2>, scalar_prefetch = 0 : i64, scratch_operands = 0 : i64, tpu.core_type = #tpu.core_type<tc>, window_params = [{transform_indices = @transform_0, window_bounds = array<i64: 16, 1152>}, {pipeline_mode = #tpu.pipeline_mode<synchronous>, transform_indices = @transform_1, window_bounds = array<i64: 1152, 256>}, {transform_indices = @transform_2, window_bounds = array<i64: 16, 256>}, {transform_indices = @transform_3, window_bounds = array<i64: 1, 1, 256>}, {transform_indices = @transform_4, window_bounds = array<i64: 1, 1, 256>}]} {
    %c0 = arith.constant 0 : index
    %c0_0 = arith.constant 0 : index
    %0 = vector.load %arg1[%c0, %c0_0] : memref<16x1152xbf16, #tpu.memory_space<vmem>>, vector<16x1152xbf16>
    %c0_1 = arith.constant 0 : index
    %c0_2 = arith.constant 0 : index
    %1 = vector.load %arg2[%c0_1, %c0_2] : memref<1152x256xbf16, #tpu.memory_space<vmem>>, vector<1152x256xbf16>
    %cst = arith.constant dense<0.000000e+00> : vector<16x256xf32>
    %2 = tpu.matmul %0, %1, %cst {dimension_numbers = #tpu.dot_dimension_numbers<[1], [0], [0], [1], [0, 0, 1, 1], [], []>} : vector<16x1152xbf16>, vector<1152x256xbf16>, vector<16x256xf32> -> vector<16x256xf32>
    %cst_3 = arith.constant dense<0.000000e+00> : vector<256xf32>
    %3 = vector.multi_reduction <add>, %2, %cst_3 [0] : vector<16x256xf32> to vector<256xf32>
    %4 = vector.shape_cast %3 : vector<256xf32> to vector<1x1x256xf32>
    %c0_4 = arith.constant 0 : index
    %c0_5 = arith.constant 0 : index
    %c0_6 = arith.constant 0 : index
    %5 = vector.load %arg4[%c0_4, %c0_5, %c0_6] : memref<1x1x256xf32, #tpu.memory_space<vmem>>, vector<1x1x256xf32>
    tpu.vector_store %arg4[%c0_4, %c0_5, %c0_6], %4 {strides = array<i32>} : memref<1x1x256xf32, #tpu.memory_space<vmem>>, vector<1x1x256xf32>,
    %6 = arith.mulf %2, %2 : vector<16x256xf32>
    %cst_7 = arith.constant dense<0.000000e+00> : vector<256xf32>
    %7 = vector.multi_reduction <add>, %6, %cst_7 [0] : vector<16x256xf32> to vector<256xf32>
    %8 = vector.shape_cast %7 : vector<256xf32> to vector<1x1x256xf32>
    %c0_8 = arith.constant 0 : index
    %c0_9 = arith.constant 0 : index
    %c0_10 = arith.constant 0 : index
    %9 = vector.load %arg5[%c0_8, %c0_9, %c0_10] : memref<1x1x256xf32, #tpu.memory_space<vmem>>, vector<1x1x256xf32>
    tpu.vector_store %arg5[%c0_8, %c0_9, %c0_10], %8 {strides = array<i32>} : memref<1x1x256xf32, #tpu.memory_space<vmem>>, vector<1x1x256xf32>,
    %10 = arith.truncf %2 : vector<16x256xf32> to vector<16x256xbf16>
    %c0_11 = arith.constant 0 : index
    %c0_12 = arith.constant 0 : index
    %11 = vector.load %arg3[%c0_11, %c0_12] : memref<16x256xbf16, #tpu.memory_space<vmem>>, vector<16x256xbf16>
    tpu.vector_store %arg3[%c0_11, %c0_12], %10 {strides = array<i32>} : memref<16x256xbf16, #tpu.memory_space<vmem>>, vector<16x256xbf16>,
    return
  }
  func.func @transform_0(%arg0: i32) -> (i32, i32) {
    %c0_i32 = arith.constant 0 : i32
    %c0_i32_0 = arith.constant 0 : i32
    return %arg0, %c0_i32 : i32, i32
  }
  func.func @transform_1(%arg0: i32) -> (i32, i32) {
    %c0_i32 = arith.constant 0 : i32
    %c0_i32_0 = arith.constant 0 : i32
    %c0_i32_1 = arith.constant 0 : i32
    return %c0_i32, %c0_i32_0 : i32, i32
  }
  func.func @transform_2(%arg0: i32) -> (i32, i32) {
    %c0_i32 = arith.constant 0 : i32
    %c0_i32_0 = arith.constant 0 : i32
    return %arg0, %c0_i32 : i32, i32
  }
  func.func @transform_3(%arg0: i32) -> (i32, i32, i32) {
    %c0_i32 = arith.constant 0 : i32
    %c0_i32_0 = arith.constant 0 : i32
    %c0_i32_1 = arith.constant 0 : i32
    return %arg0, %c0_i32, %c0_i32_0 : i32, i32, i32
  }
  func.func @transform_4(%arg0: i32) -> (i32, i32, i32) {
    %c0_i32 = arith.constant 0 : i32
    %c0_i32_0 = arith.constant 0 : i32
    %c0_i32_1 = arith.constant 0 : i32
    return %arg0, %c0_i32, %c0_i32_0 : i32, i32, i32
  }
}

module attributes {stable_mosaic.version = 11 : i64} {
  func.func @_fc_kernel(%arg0: i32, %arg1: memref<2x4096xbf16, #tpu.memory_space<vmem>>, %arg2: memref<1x4096xf32, #tpu.memory_space<vmem>>, %arg3: memref<1x4096xf32, #tpu.memory_space<vmem>>, %arg4: memref<4096x128xbf16, #tpu.memory_space<vmem>>, %arg5: memref<1x128xf32, #tpu.memory_space<vmem>>, %arg6: memref<2x128xf32, #tpu.memory_space<vmem>>) attributes {dimension_semantics = [#tpu.dimension_semantics<parallel>], iteration_bounds = array<i64: 1>, scalar_prefetch = 0 : i64, scratch_operands = 0 : i64, tpu.core_type = #tpu.core_type<tc>, window_params = [{transform_indices = @transform_0, window_bounds = array<i64: 2, 4096>}, {pipeline_mode = #tpu.pipeline_mode<synchronous>, transform_indices = @transform_1, window_bounds = array<i64: 1, 4096>}, {pipeline_mode = #tpu.pipeline_mode<synchronous>, transform_indices = @transform_2, window_bounds = array<i64: 1, 4096>}, {pipeline_mode = #tpu.pipeline_mode<synchronous>, transform_indices = @transform_3, window_bounds = array<i64: 4096, 128>}, {pipeline_mode = #tpu.pipeline_mode<synchronous>, transform_indices = @transform_4, window_bounds = array<i64: 1, 128>}, {transform_indices = @transform_5, window_bounds = array<i64: 2, 128>}]} {
    %c0 = arith.constant 0 : index
    %c0_0 = arith.constant 0 : index
    %0 = vector.load %arg1[%c0, %c0_0] : memref<2x4096xbf16, #tpu.memory_space<vmem>>, vector<2x4096xbf16>
    %1 = arith.extf %0 : vector<2x4096xbf16> to vector<2x4096xf32>
    %c0_1 = arith.constant 0 : index
    %c0_2 = arith.constant 0 : index
    %2 = vector.load %arg2[%c0_1, %c0_2] : memref<1x4096xf32, #tpu.memory_space<vmem>>, vector<1x4096xf32>
    %3 = vector.broadcast %2 : vector<1x4096xf32> to vector<2x4096xf32>
    %4 = arith.mulf %1, %3 : vector<2x4096xf32>
    %c0_3 = arith.constant 0 : index
    %c0_4 = arith.constant 0 : index
    %5 = vector.load %arg3[%c0_3, %c0_4] : memref<1x4096xf32, #tpu.memory_space<vmem>>, vector<1x4096xf32>
    %6 = vector.broadcast %5 : vector<1x4096xf32> to vector<2x4096xf32>
    %7 = arith.addf %4, %6 : vector<2x4096xf32>
    %cst = arith.constant 0.000000e+00 : f32
    %8 = vector.broadcast %cst : f32 to vector<2x4096xf32>
    %9 = arith.cmpf oge, %7, %8 : vector<2x4096xf32>
    %cst_5 = arith.constant 2.000000e-01 : f32
    %10 = vector.broadcast %cst_5 : f32 to vector<2x4096xf32>
    %11 = arith.mulf %10, %7 : vector<2x4096xf32>
    %12 = arith.select %9, %7, %11 : vector<2x4096xi1>, vector<2x4096xf32>
    %13 = arith.truncf %12 : vector<2x4096xf32> to vector<2x4096xbf16>
    %c0_6 = arith.constant 0 : index
    %c0_7 = arith.constant 0 : index
    %14 = vector.load %arg4[%c0_6, %c0_7] : memref<4096x128xbf16, #tpu.memory_space<vmem>>, vector<4096x128xbf16>
    %cst_8 = arith.constant dense<0.000000e+00> : vector<2x128xf32>
    %15 = tpu.matmul %13, %14, %cst_8 {dimension_numbers = #tpu.dot_dimension_numbers<[1], [0], [0], [1], [0, 0, 1, 1], [], []>} : vector<2x4096xbf16>, vector<4096x128xbf16>, vector<2x128xf32> -> vector<2x128xf32>
    %c0_9 = arith.constant 0 : index
    %c0_10 = arith.constant 0 : index
    %16 = vector.load %arg5[%c0_9, %c0_10] : memref<1x128xf32, #tpu.memory_space<vmem>>, vector<1x128xf32>
    %17 = vector.broadcast %16 : vector<1x128xf32> to vector<2x128xf32>
    %18 = arith.addf %15, %17 : vector<2x128xf32>
    %cst_11 = arith.constant 0.000000e+00 : f32
    %19 = vector.broadcast %cst_11 : f32 to vector<2x128xf32>
    %20 = arith.subf %19, %18 : vector<2x128xf32>
    %21 = math.exp %20 : vector<2x128xf32>
    %cst_12 = arith.constant 1.000000e+00 : f32
    %22 = vector.broadcast %cst_12 : f32 to vector<2x128xf32>
    %23 = arith.addf %22, %21 : vector<2x128xf32>
    %cst_13 = arith.constant 1.000000e+00 : f32
    %24 = vector.broadcast %cst_13 : f32 to vector<2x128xf32>
    %25 = arith.divf %24, %23 : vector<2x128xf32>
    %c0_14 = arith.constant 0 : index
    %c0_15 = arith.constant 0 : index
    %26 = vector.load %arg6[%c0_14, %c0_15] : memref<2x128xf32, #tpu.memory_space<vmem>>, vector<2x128xf32>
    tpu.vector_store %arg6[%c0_14, %c0_15], %25 {strides = array<i32>} : memref<2x128xf32, #tpu.memory_space<vmem>>, vector<2x128xf32>,
    return
  }
  func.func @transform_0(%arg0: i32) -> (i32, i32) {
    %c0_i32 = arith.constant 0 : i32
    %c0_i32_0 = arith.constant 0 : i32
    return %arg0, %c0_i32 : i32, i32
  }
  func.func @transform_1(%arg0: i32) -> (i32, i32) {
    %c0_i32 = arith.constant 0 : i32
    %c0_i32_0 = arith.constant 0 : i32
    %c0_i32_1 = arith.constant 0 : i32
    return %c0_i32, %c0_i32_0 : i32, i32
  }
  func.func @transform_2(%arg0: i32) -> (i32, i32) {
    %c0_i32 = arith.constant 0 : i32
    %c0_i32_0 = arith.constant 0 : i32
    %c0_i32_1 = arith.constant 0 : i32
    return %c0_i32, %c0_i32_0 : i32, i32
  }
  func.func @transform_3(%arg0: i32) -> (i32, i32) {
    %c0_i32 = arith.constant 0 : i32
    %c0_i32_0 = arith.constant 0 : i32
    %c0_i32_1 = arith.constant 0 : i32
    return %c0_i32, %c0_i32_0 : i32, i32
  }
  func.func @transform_4(%arg0: i32) -> (i32, i32) {
    %c0_i32 = arith.constant 0 : i32
    %c0_i32_0 = arith.constant 0 : i32
    %c0_i32_1 = arith.constant 0 : i32
    return %c0_i32, %c0_i32_0 : i32, i32
  }
  func.func @transform_5(%arg0: i32) -> (i32, i32) {
    %c0_i32 = arith.constant 0 : i32
    %c0_i32_0 = arith.constant 0 : i32
    return %arg0, %c0_i32 : i32, i32
  }
}

</mosaic_0001>

<bundles_post_ra>
// kernel: discriminator_pallas.4
= control target key start
LH: loop header
LB: loop body
LE: loop exit
PB: predicated region body
PF: predicated region fallthrough
CT: control target
= control target key end

     0   :  { %s5412_s12 = smov 0   ;;  %s6882_s0 = inlined_call_operand.vmem [shape: f32[2,4,17,17,13], index: 0, kind: input, shape index: {}]   ;;  %s6883_s1 = inlined_call_operand.vmem [shape: f32[9,13,64], index: 1, kind: input, shape index: {}]   ;;  %s6884_s2 = inlined_call_operand.vmem [shape: f32[1,64], index: 2, kind: input, shape index: {}]   ;;  %s6885_s3 = inlined_call_operand.vmem [shape: bf16[512,64], index: 3, kind: output, shape index: {}]  }
   0x1 LB: > { %s5418_s13 = sadd.s32 4294967295, %s5390_s12   ;;  %p3989_p0 = scmp.ge.s32.totalorder %s5390_s12, 1  ;;  %s5390_s12 = sphi %s5412_s12, %s13_s12  }
   0x2   : > { %p137_p1 = scmp.lt.s32.totalorder %s5390_s12, 3 }
   0x4   : > { %p138_p2 = pnand %p3989_p0, %p137_p1 }
   0x6   : > { %141 = sbr.rel (%p138_p2) target bundleno = 513 (0x201), region = 32 }
   0xb   : > { %v4026_v0 = vld [vmem:[%s6883_s1 + $0x18] sm:$0x1f]  ;;  %vm339_vm0 = vcmask 1044480   ;;  %v4025_v1 = vld [vmem:[%s6883_s1 + $0x10] sm:$0xff]  ;;  %p161_p3 = scmp.lt.s32.totalorder %s5418_s13, 1  ;;  %vm242_vm1 = vcmask 105472  }
   0xc   : > { %5371 = vmatprep.subr.msk.mxu1 %vm339_vm0, %v4026_v0  ;;  %4903 = vmatprep.subr.msk.mxu0 %vm339_vm0, %v4026_v0  ;;  %v205_v2 = vld [vmem:[%s6883_s1 + $0x8] sm:$0x1f]  ;;  %v204_v10 = vld [vmem:[%s6883_s1] sm:$0xff]  ;;  %v5476_v16 = vld [vmem:[%s6883_s1 + $0x38] sm:$0x1f]  ;;  %vm3896_vm2 = vcmask 519168  }
   0xd   : > { %5373 = vmatpush3.msk.msra.mxu1 %vm339_vm0, %v4026_v0  ;;  %4904 = vmatpush3.msk.msra.mxu0 %vm339_vm0, %v4026_v0  ;;  %s162_s18 = scalar_select %p161_p3, %s5418_s13, 1  ;;  %v4094_v3 = vld [vmem:[%s6883_s1 + $0x28] sm:$0x1f]  ;;  %v4093_v11 = vld [vmem:[%s6883_s1 + $0x20] sm:$0xff]  ;;  %v4160_v46 = vld [vmem:[%s6883_s1 + $0x30] sm:$0xff] }
   0xe   : > { %5372 = vmatprep.subr.mxu1 %v4025_v1  ;;  %4905 = vmatprep.subr.mxu0 %v4025_v1  ;;  %v5481_v17 = vld [vmem:[%s6883_s1 + $0x48] sm:$0x1f]  ;;  %v4227_v47 = vld [vmem:[%s6883_s1 + $0x40] sm:$0xff]  ;;  %v5580_v52 = vld [vmem:[%s6883_s1 + $0x58] sm:$0x1f] }
   0xf   : > { %5374 = vmatpush3.msra.mxu1 %v4025_v1  ;;  %4906 = vmatpush3.msra.mxu0 %v4025_v1  ;;  %s5375_s23 = smul.u32 1632, %s162_s18  ;;  %v5585_v53 = vld [vmem:[%s6883_s1 + $0x68] sm:$0x1f] }
  0x10   : > { %4955 = vmatprep.subr.msk.mxu1 %vm339_vm0, %v205_v2  ;;  %5007 = vmatprep.subr.msk.mxu0 %vm339_vm0, %v4094_v3 }
  0x11   : > { %s5445_s26 = scalar_lea.vmem %s6882_s0, %s5375_s23 }
  0x12   : > { %v3993_v4 = vld [vmem:[%s5445_s26 + $0x198] sm:$0xff]  ;;  %v3994_v6 = vld [vmem:[%s5445_s26 + $0x1a0] sm:$0xff]  ;;  %v3995_v8 = vld [vmem:[%s5445_s26 + $0x1b0] sm:$0xff] }
  0x13   : > { %v4009_v5 = vld [vmem:[%s5445_s26 + $0x258] sm:$0xff]  ;;  %4907 = vmatprep.mubr.msk.f32.mxu0 %vm242_vm1, %v3993_v4  ;;  %v4010_v7 = vld [vmem:[%s5445_s26 + $0x260] sm:$0xff]  ;;  %v4011_v9 = vld [vmem:[%s5445_s26 + $0x270] sm:$0xff] }
  0x14   : > { %4931 = vmatprep.mubr.msk.f32.mxu1 %vm242_vm1, %v4009_v5  ;;  %4908 = vmatmul.mubr.msk.f32.vlgmr.msra.gmra.mxu0 %vm242_vm1, %v3994_v6  ;;  %v3996_v12 = vld [vmem:[%s5445_s26 + $0x1b8] sm:$0xff]  ;;  %v3997_v14 = vld [vmem:[%s5445_s26 + $0x1c8] sm:$0xff]  ;;  %v3998_v18 = vld [vmem:[%s5445_s26 + $0x1d0] sm:$0xff] }
  0x15   : > { %4932 = vmatmul.mubr.msk.f32.vlgmr.msra.gmra.mxu1 %vm242_vm1, %v4010_v7  ;;  %5008 = vmatpush3.msk.msra.mxu0 %vm339_vm0, %v4094_v3  ;;  %v4012_v13 = vld [vmem:[%s5445_s26 + $0x278] sm:$0xff]  ;;  %v4013_v15 = vld [vmem:[%s5445_s26 + $0x288] sm:$0xff]  ;;  %v4014_v19 = vld [vmem:[%s5445_s26 + $0x290] sm:$0xff] }
  0x16   : > { %4956 = vmatpush3.msk.msra.mxu1 %vm339_vm0, %v205_v2  ;;  %4910 = vmatprep.mubr.msk.f32.mxu0 %vm242_vm1, %v3995_v8  ;;  %v3999_v20 = vld [vmem:[%s5445_s26 + $0x1e0] sm:$0xff]  ;;  %v4000_v22 = vld [vmem:[%s5445_s26 + $0x1e8] sm:$0xff]  ;;  %v4001_v24 = vld [vmem:[%s5445_s26 + $0x1f8] sm:$0xff] }
  0x17   : > { %4934 = vmatprep.mubr.msk.f32.mxu1 %vm242_vm1, %v4011_v9  ;;  %4957 = vmatprep.subr.mxu1 %v204_v10  ;;  %v4015_v21 = vld [vmem:[%s5445_s26 + $0x2a0] sm:$0xff]  ;;  %v4016_v23 = vld [vmem:[%s5445_s26 + $0x2a8] sm:$0xff]  ;;  %v4017_v25 = vld [vmem:[%s5445_s26 + $0x2b8] sm:$0xff] }
  0x18   : > { %5009 = vmatprep.subr.mxu0 %v4093_v11  ;;  %4911 = vmatmul.mubr.msk.f32.gmra.mxu0 %vm242_vm1, %v3996_v12  ;;  %v4002_v26 = vld [vmem:[%s5445_s26 + $0x200] sm:$0xff]  ;;  %v4003_v28 = vld [vmem:[%s5445_s26 + $0x210] sm:$0xff]  ;;  %v4004_v30 = vld [vmem:[%s5445_s26 + $0x218] sm:$0xff] }
  0x19   : > { %4935 = vmatmul.mubr.msk.f32.gmra.mxu1 %vm242_vm1, %v4012_v13  ;;  %4913 = vmatprep.mubr.msk.f32.mxu0 %vm242_vm1, %v3997_v14  ;;  %v4018_v27 = vld [vmem:[%s5445_s26 + $0x2c0] sm:$0xff]  ;;  %v4019_v29 = vld [vmem:[%s5445_s26 + $0x2d0] sm:$0xff]  ;;  %v4020_v31 = vld [vmem:[%s5445_s26 + $0x2d8] sm:$0xff] }
  0x1a   : > { %4937 = vmatprep.mubr.msk.f32.mxu1 %vm242_vm1, %v4013_v15  ;;  %4958 = vmatpush3.msra.mxu1 %v204_v10  ;;  %v4005_v32 = vld [vmem:[%s5445_s26 + $0x228] sm:$0xff]  ;;  %v4006_v34 = vld [vmem:[%s5445_s26 + $0x230] sm:$0xff]  ;;  %v4007_v36 = vld [vmem:[%s5445_s26 + $0x240] sm:$0xff] }
  0x1b   : > { %5010 = vmatpush3.msra.mxu0 %v4093_v11  ;;  %5059 = vmatprep.subr.msk.mxu1 %vm339_vm0, %v5476_v16  ;;  %v4021_v33 = vld [vmem:[%s5445_s26 + $0x2e8] sm:$0xff]  ;;  %v4022_v35 = vld [vmem:[%s5445_s26 + $0x2f0] sm:$0xff]  ;;  %v4023_v37 = vld [vmem:[%s5445_s26 + $0x300] sm:$0xff] }
  0x1c   : > { %5111 = vmatprep.subr.msk.mxu0 %vm339_vm0, %v5481_v17  ;;  %4914 = vmatmul.mubr.msk.f32.gmra.mxu0 %vm242_vm1, %v3998_v18  ;;  %v4008_v38 = vld [vmem:[%s5445_s26 + $0x248] sm:$0xff]  ;;  %v172_v40 = vld [vmem:[%s5445_s26] sm:$0xff]  ;;  %v5540_v44 = vld [vmem:[%s5445_s26 + $0x18] sm:$0xff] }
  0x1d   : > { %4938 = vmatmul.mubr.msk.f32.gmra.mxu1 %vm242_vm1, %v4014_v19  ;;  %4916 = vmatprep.mubr.msk.f32.mxu0 %vm242_vm1, %v3999_v20  ;;  %v4024_v39 = vld [vmem:[%s5445_s26 + $0x308] sm:$0xff]  ;;  %v5543_v45 = vld [vmem:[%s5445_s26 + $0x19] sm:$0xff]  ;;  %v5568_v50 = vld [vmem:[%s5445_s26 + $0x30] sm:$0xff] }
  0x1e   : > { %4940 = vmatprep.mubr.msk.f32.mxu1 %vm242_vm1, %v4015_v21  ;;  %v892_v41 = vld [vmem:[%s5445_s26 + $0x1] sm:$0xff]  ;;  %v893_v43 = vld [vmem:[%s5445_s26 + $0x9] sm:$0xff]  ;;  %v5571_v51 = vld [vmem:[%s5445_s26 + $0x31] sm:$0xff] }
  0x1f   : > { %v173_v42 = vld [vmem:[%s5445_s26 + $0x8] sm:$0xff]  ;;  %v5558_v48 = vld [vmem:[%s5445_s26 + $0x20] sm:$0xff]  ;;  %v5592_v54 = vld [vmem:[%s5445_s26 + $0x38] sm:$0xff] }
  0x20   : > { %4917 = vmatmul.mubr.msk.f32.gmra.mxu0 %vm242_vm1, %v4000_v22  ;;  %v5561_v49 = vld [vmem:[%s5445_s26 + $0x21] sm:$0xff]  ;;  %v5595_v55 = vld [vmem:[%s5445_s26 + $0x39] sm:$0xff]  ;;  %v5601_v57 = vld [vmem:[%s5445_s26 + $0x49] sm:$0xff] }
  0x21   : > { %4941 = vmatmul.mubr.msk.f32.gmra.mxu1 %vm242_vm1, %v4016_v23  ;;  %4919 = vmatprep.mubr.msk.f32.mxu0 %vm242_vm1, %v4001_v24  ;;  %v5598_v56 = vld [vmem:[%s5445_s26 + $0x48] sm:$0xff]  ;;  %v5616_v58 = vld [vmem:[%s5445_s26 + $0x50] sm:$0xff]  ;;  %v5622_v60 = vld [vmem:[%s5445_s26 + $0x60] sm:$0xff] }
  0x22   : > { %4943 = vmatprep.mubr.msk.f32.mxu1 %vm242_vm1, %v4017_v25  ;;  %v5619_v59 = vld [vmem:[%s5445_s26 + $0x51] sm:$0xff]  ;;  %v5625_v61 = vld [vmem:[%s5445_s26 + $0x61] sm:$0xff]  ;;  %v5639_v63 = vld [vmem:[%s5445_s26 + $0x69] sm:$0xff] }
  0x23   : > { %v5636_v62 = vld [vmem:[%s5445_s26 + $0x68] sm:$0xff]  ;;  %v5642_v0 = vld [vmem:[%s5445_s26 + $0x78] sm:$0xff]  ;;  %v5656_v2 = vld [vmem:[%s5445_s26 + $0x80] sm:$0xff] }
  0x24   : > { %4920 = vmatmul.mubr.msk.f32.gmra.mxu0 %vm242_vm1, %v4002_v26  ;;  %v5645_v1 = vld [vmem:[%s5445_s26 + $0x79] sm:$0xff]  ;;  %v5659_v3 = vld [vmem:[%s5445_s26 + $0x81] sm:$0xff]  ;;  %v5662_v4 = vld [vmem:[%s5445_s26 + $0x90] sm:$0xff] }
  0x25   : > { %4944 = vmatmul.mubr.msk.f32.gmra.mxu1 %vm242_vm1, %v4018_v27  ;;  %4922 = vmatprep.mubr.msk.f32.mxu0 %vm242_vm1, %v4003_v28  ;;  %v5665_v5 = vld [vmem:[%s5445_s26 + $0x91] sm:$0xff]  ;;  %v5679_v7 = vld [vmem:[%s5445_s26 + $0x99] sm:$0xff]  ;;  %v5682_v8 = vld [vmem:[%s5445_s26 + $0xa8] sm:$0xff] }
  0x26   : > { %4946 = vmatprep.mubr.msk.f32.mxu1 %vm242_vm1, %v4019_v29  ;;  %v5676_v6 = vld [vmem:[%s5445_s26 + $0x98] sm:$0xff]  ;;  %v5685_v9 = vld [vmem:[%s5445_s26 + $0xa9] sm:$0xff]  ;;  %v5702_v12 = vld [vmem:[%s5445_s26 + $0xc0] sm:$0xff] }
  0x27   : > { %v5696_v10 = vld [vmem:[%s5445_s26 + $0xb0] sm:$0xff]  ;;  %v5705_v13 = vld [vmem:[%s5445_s26 + $0xc1] sm:$0xff]  ;;  %v5756_v22 = vld [vmem:[%s5445_s26 + $0xf8] sm:$0xff] }
  0x28   : > { %4923 = vmatmul.mubr.msk.f32.gmra.mxu0 %vm242_vm1, %v4004_v30  ;;  %v5699_v11 = vld [vmem:[%s5445_s26 + $0xb1] sm:$0xff]  ;;  %v5716_v14 = vld [vmem:[%s5445_s26 + $0xc8] sm:$0xff]  ;;  %v5736_v18 = vld [vmem:[%s5445_s26 + $0xe0] sm:$0xff] }
  0x29   : > { %4947 = vmatmul.mubr.msk.f32.gmra.mxu1 %vm242_vm1, %v4020_v31  ;;  %4925 = vmatprep.mubr.msk.f32.mxu0 %vm242_vm1, %v4005_v32  ;;  %v5719_v15 = vld [vmem:[%s5445_s26 + $0xc9] sm:$0xff]  ;;  %v5739_v19 = vld [vmem:[%s5445_s26 + $0xe1] sm:$0xff]  ;;  %v5745_v21 = vld [vmem:[%s5445_s26 + $0xf1] sm:$0xff] }
  0x2a   : > { %4949 = vmatprep.mubr.msk.f32.mxu1 %vm242_vm1, %v4021_v33  ;;  %v5742_v20 = vld [vmem:[%s5445_s26 + $0xf0] sm:$0xff]  ;;  %v5759_v23 = vld [vmem:[%s5445_s26 + $0xf9] sm:$0xff]  ;;  %v5762_v24 = vld [vmem:[%s5445_s26 + $0x108] sm:$0xff] }
  0x2b   : > { %v5765_v25 = vld [vmem:[%s5445_s26 + $0x109] sm:$0xff]  ;;  %v915_v27 = vld [vmem:[%s5445_s26 + $0x111] sm:$0xff]  ;;  %v5780_v28 = vld [vmem:[%s5445_s26 + $0x120] sm:$0xff] }
  0x2c   : > { %4926 = vmatmul.mubr.msk.f32.gmra.mxu0 %vm242_vm1, %v4006_v34  ;;  %v5776_v26 = vld [vmem:[%s5445_s26 + $0x110] sm:$0xff]  ;;  %v916_v29 = vld [vmem:[%s5445_s26 + $0x121] sm:$0xff]  ;;  %v5794_v32 = vld [vmem:[%s5445_s26 + $0x138] sm:$0xff] }
  0x2d   : > { %4950 = vmatmul.mubr.msk.f32.gmra.mxu1 %vm242_vm1, %v4022_v35  ;;  %4928 = vmatprep.mubr.msk.f32.mxu0 %vm242_vm1, %v4007_v36  ;;  %v5790_v30 = vld [vmem:[%s5445_s26 + $0x128] sm:$0xff]  ;;  %v918_v33 = vld [vmem:[%s5445_s26 + $0x139] sm:$0xff]  ;;  %v5808_v36 = vld [vmem:[%s5445_s26 + $0x150] sm:$0xff] }
  0x2e   : > { %4952 = vmatprep.mubr.msk.f32.mxu1 %vm242_vm1, %v4023_v37  ;;  %v917_v31 = vld [vmem:[%s5445_s26 + $0x129] sm:$0xff]  ;;  %v5804_v34 = vld [vmem:[%s5445_s26 + $0x140] sm:$0xff]  ;;  %v920_v37 = vld [vmem:[%s5445_s26 + $0x151] sm:$0xff] }
  0x2f   : > { %v919_v35 = vld [vmem:[%s5445_s26 + $0x141] sm:$0xff] }
  0x30   : > { %4929 = vmatmul.mubr.msk.f32.gmra.mxu0 %vm242_vm1, %v4008_v38  ;;  %v5818_v38 = vld [vmem:[%s5445_s26 + $0x158] sm:$0xff] }
  0x31   : > { %4953 = vmatmul.mubr.msk.f32.gmra.mxu1 %vm242_vm1, %v4024_v39  ;;  %5011 = vmatprep.mubr.msk.f32.mxu0 %vm242_vm1, %v892_v41  ;;  %v921_v39 = vld [vmem:[%s5445_s26 + $0x159] sm:$0xff]  ;;  %v922_v41 = vld [vmem:[%s5445_s26 + $0x169] sm:$0xff] }
  0x32   : > { %4959 = vmatprep.mubr.msk.f32.mxu1 %vm242_vm1, %v172_v40  ;;  %v5822_v40 = vld [vmem:[%s5445_s26 + $0x168] sm:$0xff] }
  0x34   : > { %5012 = vmatmul.mubr.msk.f32.vlgmr.msra.gmra.mxu0 %vm242_vm1, %v893_v43  ;;  %v923_v43 = vld [vmem:[%s5445_s26 + $0x171] sm:$0xff] }
  0x35   : > { %4960 = vmatmul.mubr.msk.f32.vlgmr.msra.gmra.mxu1 %vm242_vm1, %v173_v42  ;;  %5112 = vmatpush3.msk.msra.mxu0 %vm339_vm0, %v5481_v17  ;;  %v5725_v17 = vld [vmem:[%s5445_s26 + $0xd9] sm:$0xff]  ;;  %v5832_v42 = vld [vmem:[%s5445_s26 + $0x170] sm:$0xff] }
  0x36   : > { %5060 = vmatpush3.msk.msra.mxu1 %vm339_vm0, %v5476_v16  ;;  %4962 = vmatprep.mubr.msk.f32.mxu1 %vm242_vm1, %v5540_v44  ;;  %v5722_v16 = vld [vmem:[%s5445_s26 + $0xd8] sm:$0xff] }
  0x37   : > { %5014 = vmatprep.mubr.msk.f32.mxu0 %vm242_vm1, %v5543_v45  ;;  %5061 = vmatprep.subr.mxu1 %v4160_v46 }
  0x38   : > { %5113 = vmatprep.subr.mxu0 %v4227_v47  ;;  %5015 = vmatmul.mubr.msk.f32.gmra.mxu0 %vm242_vm1, %v5561_v49 }
  0x39   : > { %4963 = vmatmul.mubr.msk.f32.gmra.mxu1 %vm242_vm1, %v5558_v48  ;;  %5017 = vmatprep.mubr.msk.f32.mxu0 %vm242_vm1, %v5571_v51 }
  0x3a   : > { %4965 = vmatprep.mubr.msk.f32.mxu1 %vm242_vm1, %v5568_v50  ;;  %5062 = vmatpush3.msra.mxu1 %v4160_v46  ;;  %v4128_v46 = vld [vmem:[%s5445_s26 + $0x330] sm:$0xff] }
  0x3b   : > { %5114 = vmatpush3.msra.mxu0 %v4227_v47  ;;  %5163 = vmatprep.subr.msk.mxu1 %vm339_vm0, %v5580_v52  ;;  %v4195_v47 = vld [vmem:[%s5445_s26 + $0x4c8] sm:$0xff] }
  0x3c   : > { %5215 = vmatprep.subr.msk.mxu0 %vm339_vm0, %v5585_v53  ;;  %5018 = vmatmul.mubr.msk.f32.gmra.mxu0 %vm242_vm1, %v5595_v55 }
  0x3d   : > { %4966 = vmatmul.mubr.msk.f32.gmra.mxu1 %vm242_vm1, %v5592_v54  ;;  %5020 = vmatprep.mubr.msk.f32.mxu0 %vm242_vm1, %v5601_v57 }
  0x3e   : > { %4968 = vmatprep.mubr.msk.f32.mxu1 %vm242_vm1, %v5598_v56 }
  0x40   : > { %5021 = vmatmul.mubr.msk.f32.gmra.mxu0 %vm242_vm1, %v5619_v59 }
  0x41   : > { %4969 = vmatmul.mubr.msk.f32.gmra.mxu1 %vm242_vm1, %v5616_v58  ;;  %5023 = vmatprep.mubr.msk.f32.mxu0 %vm242_vm1, %v5625_v61 }
  0x42   : > { %4971 = vmatprep.mubr.msk.f32.mxu1 %vm242_vm1, %v5622_v60 }
  0x44   : > { %5024 = vmatmul.mubr.msk.f32.gmra.mxu0 %vm242_vm1, %v5639_v63 }
  0x45   : > { %4972 = vmatmul.mubr.msk.f32.gmra.mxu1 %vm242_vm1, %v5636_v62  ;;  %5026 = vmatprep.mubr.msk.f32.mxu0 %vm242_vm1, %v5645_v1 }
  0x46   : > { %4974 = vmatprep.mubr.msk.f32.mxu1 %vm242_vm1, %v5642_v0 }
  0x48   : > { %5027 = vmatmul.mubr.msk.f32.gmra.mxu0 %vm242_vm1, %v5659_v3 }
  0x49   : > { %4975 = vmatmul.mubr.msk.f32.gmra.mxu1 %vm242_vm1, %v5656_v2  ;;  %5029 = vmatprep.mubr.msk.f32.mxu0 %vm242_vm1, %v5665_v5 }
  0x4a   : > { %4977 = vmatprep.mubr.msk.f32.mxu1 %vm242_vm1, %v5662_v4 }
  0x4c   : > { %5030 = vmatmul.mubr.msk.f32.gmra.mxu0 %vm242_vm1, %v5679_v7 }
  0x4d   : > { %4978 = vmatmul.mubr.msk.f32.gmra.mxu1 %vm242_vm1, %v5676_v6  ;;  %5032 = vmatprep.mubr.msk.f32.mxu0 %vm242_vm1, %v5685_v9 }
  0x4e   : > { %4980 = vmatprep.mubr.msk.f32.mxu1 %vm242_vm1, %v5682_v8 }
  0x50   : > { %5033 = vmatmul.mubr.msk.f32.gmra.mxu0 %vm242_vm1, %v5699_v11 }
  0x51   : > { %4981 = vmatmul.mubr.msk.f32.gmra.mxu1 %vm242_vm1, %v5696_v10  ;;  %5035 = vmatprep.mubr.msk.f32.mxu0 %vm242_vm1, %v5705_v13 }
  0x52   : > { %4983 = vmatprep.mubr.msk.f32.mxu1 %vm242_vm1, %v5702_v12 }
  0x54   : > { %5036 = vmatmul.mubr.msk.f32.gmra.mxu0 %vm242_vm1, %v5719_v15 }
  0x55   : > { %4984 = vmatmul.mubr.msk.f32.gmra.mxu1 %vm242_vm1, %v5716_v14  ;;  %5038 = vmatprep.mubr.msk.f32.mxu0 %vm242_vm1, %v5725_v17 }
  0x56   : > { %4986 = vmatprep.mubr.msk.f32.mxu1 %vm242_vm1, %v5722_v16 }
  0x58   : > { %5039 = vmatmul.mubr.msk.f32.gmra.mxu0 %vm242_vm1, %v5739_v19 }
  0x59   : > { %4987 = vmatmul.mubr.msk.f32.gmra.mxu1 %vm242_vm1, %v5736_v18  ;;  %5041 = vmatprep.mubr.msk.f32.mxu0 %vm242_vm1, %v5745_v21 }
  0x5a   : > { %4989 = vmatprep.mubr.msk.f32.mxu1 %vm242_vm1, %v5742_v20 }
  0x5c   : > { %5042 = vmatmul.mubr.msk.f32.gmra.mxu0 %vm242_vm1, %v5759_v23 }
  0x5d   : > { %4990 = vmatmul.mubr.msk.f32.gmra.mxu1 %vm242_vm1, %v5756_v22  ;;  %5044 = vmatprep.mubr.msk.f32.mxu0 %vm242_vm1, %v5765_v25 }
  0x5e   : > { %4992 = vmatprep.mubr.msk.f32.mxu1 %vm242_vm1, %v5762_v24 }
  0x60   : > { %5045 = vmatmul.mubr.msk.f32.gmra.mxu0 %vm242_vm1, %v915_v27  ;;  %v4129_v27 = vld [vmem:[%s5445_s26 + $0x338] sm:$0xff] }
  0x61   : > { %4993 = vmatmul.mubr.msk.f32.gmra.mxu1 %vm242_vm1, %v5776_v26  ;;  %5047 = vmatprep.mubr.msk.f32.mxu0 %vm242_vm1, %v916_v29  ;;  %v4196_v29 = vld [vmem:[%s5445_s26 + $0x4d0] sm:$0xff] }
  0x62   : > { %4995 = vmatprep.mubr.msk.f32.mxu1 %vm242_vm1, %v5780_v28 }
  0x64   : > { %5048 = vmatmul.mubr.msk.f32.gmra.mxu0 %vm242_vm1, %v917_v31  ;;  %v4130_v31 = vld [vmem:[%s5445_s26 + $0x348] sm:$0xff] }
  0x65   : > { %4996 = vmatmul.mubr.msk.f32.gmra.mxu1 %vm242_vm1, %v5790_v30  ;;  %5050 = vmatprep.mubr.msk.f32.mxu0 %vm242_vm1, %v918_v33  ;;  %v4197_v33 = vld [vmem:[%s5445_s26 + $0x4e0] sm:$0xff] }
  0x66   : > { %4998 = vmatprep.mubr.msk.f32.mxu1 %vm242_vm1, %v5794_v32 }
  0x68   : > { %5051 = vmatmul.mubr.msk.f32.gmra.mxu0 %vm242_vm1, %v919_v35  ;;  %v4294_v35 = vld [vmem:[%s6883_s1 + $0x50] sm:$0xff] }
  0x69   : > { %4999 = vmatmul.mubr.msk.f32.gmra.mxu1 %vm242_vm1, %v5804_v34  ;;  %5053 = vmatprep.mubr.msk.f32.mxu0 %vm242_vm1, %v920_v37  ;;  %v4361_v37 = vld [vmem:[%s6883_s1 + $0x60] sm:$0xff] }
  0x6a   : > { %5001 = vmatprep.mubr.msk.f32.mxu1 %vm242_vm1, %v5808_v36 }
  0x6c   : > { %5054 = vmatmul.mubr.msk.f32.gmra.mxu0 %vm242_vm1, %v921_v39  ;;  %v4131_v39 = vld [vmem:[%s5445_s26 + $0x350] sm:$0xff] }
  0x6d   : > { %5002 = vmatmul.mubr.msk.f32.gmra.mxu1 %vm242_vm1, %v5818_v38  ;;  %5056 = vmatprep.mubr.msk.f32.mxu0 %vm242_vm1, %v922_v41  ;;  %v4198_v41 = vld [vmem:[%s5445_s26 + $0x4e8] sm:$0xff] }
  0x6e   : > { %5004 = vmatprep.mubr.msk.f32.mxu1 %vm242_vm1, %v5822_v40 }
  0x70   : > { %5057 = vmatmul.mubr.msk.f32.gmra.mxu0 %vm242_vm1, %v923_v43  ;;  %v4132_v43 = vld [vmem:[%s5445_s26 + $0x360] sm:$0xff] }
  0x71   : > { %5005 = vmatmul.mubr.msk.f32.gmra.mxu1 %vm242_vm1, %v5832_v42  ;;  %5115 = vmatprep.mubr.msk.f32.mxu0 %vm242_vm1, %v4195_v47  ;;  %v4133_v47 = vld [vmem:[%s5445_s26 + $0x368] sm:$0xff] }
  0x72   : > { %5063 = vmatprep.mubr.msk.f32.mxu1 %vm242_vm1, %v4128_v46  ;;  %v4199_v46 = vld [vmem:[%s5445_s26 + $0x4f8] sm:$0xff] }
  0x74   : > { %5116 = vmatmul.mubr.msk.f32.vlgmr.msra.gmra.mxu0 %vm242_vm1, %v4196_v29  ;;  %v4134_v29 = vld [vmem:[%s5445_s26 + $0x378] sm:$0xff] }
  0x75   : > { %5064 = vmatmul.mubr.msk.f32.vlgmr.msra.gmra.mxu1 %vm242_vm1, %v4129_v27  ;;  %5216 = vmatpush3.msk.msra.mxu0 %vm339_vm0, %v5585_v53  ;;  %v5874_v53 = vld [vmem:[%s6883_s1 + $0x88] sm:$0x1f]  ;;  %v4200_v27 = vld [vmem:[%s5445_s26 + $0x500] sm:$0xff] }
  0x76   : > { %5164 = vmatpush3.msk.msra.mxu1 %vm339_vm0, %v5580_v52  ;;  %5066 = vmatprep.mubr.msk.f32.mxu1 %vm242_vm1, %v4130_v31  ;;  %v5869_v52 = vld [vmem:[%s6883_s1 + $0x78] sm:$0x1f]  ;;  %v4201_v31 = vld [vmem:[%s5445_s26 + $0x510] sm:$0xff] }
  0x77   : > { %5118 = vmatprep.mubr.msk.f32.mxu0 %vm242_vm1, %v4197_v33  ;;  %5165 = vmatprep.subr.mxu1 %v4294_v35  ;;  %v4135_v33 = vld [vmem:[%s5445_s26 + $0x380] sm:$0xff] }
  0x78   : > { %5217 = vmatprep.subr.mxu0 %v4361_v37  ;;  %5119 = vmatmul.mubr.msk.f32.gmra.mxu0 %vm242_vm1, %v4198_v41  ;;  %v4137_v41 = vld [vmem:[%s5445_s26 + $0x398] sm:$0xff] }
  0x79   : > { %5067 = vmatmul.mubr.msk.f32.gmra.mxu1 %vm242_vm1, %v4131_v39  ;;  %5121 = vmatprep.mubr.msk.f32.mxu0 %vm242_vm1, %v4199_v46  ;;  %v4203_v39 = vld [vmem:[%s5445_s26 + $0x528] sm:$0xff] }
  0x7a   : > { %5069 = vmatprep.mubr.msk.f32.mxu1 %vm242_vm1, %v4132_v43  ;;  %5166 = vmatpush3.msra.mxu1 %v4294_v35  ;;  %v4202_v35 = vld [vmem:[%s5445_s26 + $0x518] sm:$0xff]  ;;  %v4204_v43 = vld [vmem:[%s5445_s26 + $0x530] sm:$0xff]  ;;  %v4138_v46 = vld [vmem:[%s5445_s26 + $0x3a8] sm:$0xff] }
  0x7b   : > { %5218 = vmatpush3.msra.mxu0 %v4361_v37  ;;  %5267 = vmatprep.subr.msk.mxu1 %vm339_vm0, %v5869_v52  ;;  %v4136_v37 = vld [vmem:[%s5445_s26 + $0x390] sm:$0xff] }
  0x7c   : > { %5319 = vmatprep.subr.msk.mxu0 %vm339_vm0, %v5874_v53  ;;  %5122 = vmatmul.mubr.msk.f32.gmra.mxu0 %vm242_vm1, %v4200_v27  ;;  %v4139_v27 = vld [vmem:[%s5445_s26 + $0x3b0] sm:$0xff] }
  0x7d   : > { %5070 = vmatmul.mubr.msk.f32.gmra.mxu1 %vm242_vm1, %v4133_v47  ;;  %5124 = vmatprep.mubr.msk.f32.mxu0 %vm242_vm1, %v4201_v31  ;;  %v4205_v47 = vld [vmem:[%s5445_s26 + $0x540] sm:$0xff] }
  0x7e   : > { %5072 = vmatprep.mubr.msk.f32.mxu1 %vm242_vm1, %v4134_v29  ;;  %v4206_v29 = vld [vmem:[%s5445_s26 + $0x548] sm:$0xff]  ;;  %v4140_v31 = vld [vmem:[%s5445_s26 + $0x3c0] sm:$0xff] }
  0x80   : > { %5125 = vmatmul.mubr.msk.f32.gmra.mxu0 %vm242_vm1, %v4202_v35  ;;  %v4141_v35 = vld [vmem:[%s5445_s26 + $0x3c8] sm:$0xff] }
  0x81   : > { %5073 = vmatmul.mubr.msk.f32.gmra.mxu1 %vm242_vm1, %v4135_v33  ;;  %5127 = vmatprep.mubr.msk.f32.mxu0 %vm242_vm1, %v4203_v39  ;;  %v4207_v33 = vld [vmem:[%s5445_s26 + $0x558] sm:$0xff] }
  0x82   : > { %5075 = vmatprep.mubr.msk.f32.mxu1 %vm242_vm1, %v4136_v37  ;;  %v4208_v37 = vld [vmem:[%s5445_s26 + $0x560] sm:$0xff]  ;;  %v4142_v39 = vld [vmem:[%s5445_s26 + $0x3d8] sm:$0xff] }
  0x84   : > { %5128 = vmatmul.mubr.msk.f32.gmra.mxu0 %vm242_vm1, %v4204_v43  ;;  %v4143_v43 = vld [vmem:[%s5445_s26 + $0x3e0] sm:$0xff] }
  0x85   : > { %5076 = vmatmul.mubr.msk.f32.gmra.mxu1 %vm242_vm1, %v4137_v41  ;;  %5130 = vmatprep.mubr.msk.f32.mxu0 %vm242_vm1, %v4205_v47  ;;  %v4209_v41 = vld [vmem:[%s5445_s26 + $0x570] sm:$0xff] }
  0x86   : > { %5078 = vmatprep.mubr.msk.f32.mxu1 %vm242_vm1, %v4138_v46  ;;  %v4210_v46 = vld [vmem:[%s5445_s26 + $0x578] sm:$0xff]  ;;  %v4144_v47 = vld [vmem:[%s5445_s26 + $0x3f0] sm:$0xff] }
  0x88   : > { %5131 = vmatmul.mubr.msk.f32.gmra.mxu0 %vm242_vm1, %v4206_v29  ;;  %v4145_v29 = vld [vmem:[%s5445_s26 + $0x3f8] sm:$0xff] }
  0x89   : > { %5079 = vmatmul.mubr.msk.f32.gmra.mxu1 %vm242_vm1, %v4139_v27  ;;  %5133 = vmatprep.mubr.msk.f32.mxu0 %vm242_vm1, %v4207_v33  ;;  %v4211_v27 = vld [vmem:[%s5445_s26 + $0x588] sm:$0xff] }
  0x8a   : > { %5081 = vmatprep.mubr.msk.f32.mxu1 %vm242_vm1, %v4140_v31  ;;  %v4212_v31 = vld [vmem:[%s5445_s26 + $0x590] sm:$0xff]  ;;  %v4146_v33 = vld [vmem:[%s5445_s26 + $0x408] sm:$0xff] }
  0x8c   : > { %5134 = vmatmul.mubr.msk.f32.gmra.mxu0 %vm242_vm1, %v4208_v37  ;;  %v4147_v37 = vld [vmem:[%s5445_s26 + $0x410] sm:$0xff] }
  0x8d   : > { %5082 = vmatmul.mubr.msk.f32.gmra.mxu1 %vm242_vm1, %v4141_v35  ;;  %5136 = vmatprep.mubr.msk.f32.mxu0 %vm242_vm1, %v4209_v41  ;;  %v4213_v35 = vld [vmem:[%s5445_s26 + $0x5a0] sm:$0xff] }
  0x8e   : > { %5084 = vmatprep.mubr.msk.f32.mxu1 %vm242_vm1, %v4142_v39  ;;  %v4214_v39 = vld [vmem:[%s5445_s26 + $0x5a8] sm:$0xff]  ;;  %v4148_v41 = vld [vmem:[%s5445_s26 + $0x420] sm:$0xff] }
  0x90   : > { %5137 = vmatmul.mubr.msk.f32.gmra.mxu0 %vm242_vm1, %v4210_v46  ;;  %v4149_v46 = vld [vmem:[%s5445_s26 + $0x428] sm:$0xff] }
  0x91   : > { %5085 = vmatmul.mubr.msk.f32.gmra.mxu1 %vm242_vm1, %v4143_v43  ;;  %5139 = vmatprep.mubr.msk.f32.mxu0 %vm242_vm1, %v4211_v27  ;;  %v4215_v43 = vld [vmem:[%s5445_s26 + $0x5b8] sm:$0xff] }
  0x92   : > { %5087 = vmatprep.mubr.msk.f32.mxu1 %vm242_vm1, %v4144_v47  ;;  %v4216_v47 = vld [vmem:[%s5445_s26 + $0x5c0] sm:$0xff]  ;;  %v4150_v27 = vld [vmem:[%s5445_s26 + $0x438] sm:$0xff] }
  0x94   : > { %5140 = vmatmul.mubr.msk.f32.gmra.mxu0 %vm242_vm1, %v4212_v31  ;;  %v4151_v31 = vld [vmem:[%s5445_s26 + $0x440] sm:$0xff] }
  0x95   : > { %5088 = vmatmul.mubr.msk.f32.gmra.mxu1 %vm242_vm1, %v4145_v29  ;;  %5142 = vmatprep.mubr.msk.f32.mxu0 %vm242_vm1, %v4213_v35  ;;  %v4217_v29 = vld [vmem:[%s5445_s26 + $0x5d0] sm:$0xff] }
  0x96   : > { %5090 = vmatprep.mubr.msk.f32.mxu1 %vm242_vm1, %v4146_v33  ;;  %v4218_v33 = vld [vmem:[%s5445_s26 + $0x5d8] sm:$0xff]  ;;  %v4152_v35 = vld [vmem:[%s5445_s26 + $0x450] sm:$0xff] }
  0x98   : > { %5143 = vmatmul.mubr.msk.f32.gmra.mxu0 %vm242_vm1, %v4214_v39  ;;  %v4153_v39 = vld [vmem:[%s5445_s26 + $0x458] sm:$0xff] }
  0x99   : > { %5091 = vmatmul.mubr.msk.f32.gmra.mxu1 %vm242_vm1, %v4147_v37  ;;  %5145 = vmatprep.mubr.msk.f32.mxu0 %vm242_vm1, %v4215_v43  ;;  %v4219_v37 = vld [vmem:[%s5445_s26 + $0x5e8] sm:$0xff] }
  0x9a   : > { %5093 = vmatprep.mubr.msk.f32.mxu1 %vm242_vm1, %v4148_v41  ;;  %v4220_v41 = vld [vmem:[%s5445_s26 + $0x5f0] sm:$0xff]  ;;  %v4154_v43 = vld [vmem:[%s5445_s26 + $0x468] sm:$0xff] }
  0x9c   : > { %5146 = vmatmul.mubr.msk.f32.gmra.mxu0 %vm242_vm1, %v4216_v47  ;;  %v4155_v47 = vld [vmem:[%s5445_s26 + $0x470] sm:$0xff] }
  0x9d   : > { %5094 = vmatmul.mubr.msk.f32.gmra.mxu1 %vm242_vm1, %v4149_v46  ;;  %5148 = vmatprep.mubr.msk.f32.mxu0 %vm242_vm1, %v4217_v29  ;;  %v4221_v46 = vld [vmem:[%s5445_s26 + $0x600] sm:$0xff] }
  0x9e   : > { %5096 = vmatprep.mubr.msk.f32.mxu1 %vm242_vm1, %v4150_v27  ;;  %v4222_v27 = vld [vmem:[%s5445_s26 + $0x608] sm:$0xff]  ;;  %v4156_v29 = vld [vmem:[%s5445_s26 + $0x480] sm:$0xff] }
  0xa0   : > { %5149 = vmatmul.mubr.msk.f32.gmra.mxu0 %vm242_vm1, %v4218_v33  ;;  %v4157_v33 = vld [vmem:[%s5445_s26 + $0x488] sm:$0xff] }
  0xa1   : > { %5097 = vmatmul.mubr.msk.f32.gmra.mxu1 %vm242_vm1, %v4151_v31  ;;  %5151 = vmatprep.mubr.msk.f32.mxu0 %vm242_vm1, %v4219_v37  ;;  %v4223_v31 = vld [vmem:[%s5445_s26 + $0x618] sm:$0xff] }
  0xa2   : > { %5099 = vmatprep.mubr.msk.f32.mxu1 %vm242_vm1, %v4152_v35  ;;  %v4224_v35 = vld [vmem:[%s5445_s26 + $0x620] sm:$0xff]  ;;  %v4158_v37 = vld [vmem:[%s5445_s26 + $0x498] sm:$0xff] }
  0xa4   : > { %5152 = vmatmul.mubr.msk.f32.gmra.mxu0 %vm242_vm1, %v4220_v41  ;;  %v4159_v41 = vld [vmem:[%s5445_s26 + $0x4a0] sm:$0xff] }
  0xa5   : > { %5100 = vmatmul.mubr.msk.f32.gmra.mxu1 %vm242_vm1, %v4153_v39  ;;  %5154 = vmatprep.mubr.msk.f32.mxu0 %vm242_vm1, %v4221_v46  ;;  %v4225_v39 = vld [vmem:[%s5445_s26 + $0x630] sm:$0xff] }
  0xa6   : > { %5102 = vmatprep.mubr.msk.f32.mxu1 %vm242_vm1, %v4154_v43  ;;  %v4226_v43 = vld [vmem:[%s5445_s26 + $0x638] sm:$0xff] }
  0xa7   : > { %v4262_v46 = vld [vmem:[%s5445_s26 + $0x331] sm:$0xff] }
  0xa8   : > { %5155 = vmatmul.mubr.msk.f32.gmra.mxu0 %vm242_vm1, %v4222_v27  ;;  %v4264_v27 = vld [vmem:[%s5445_s26 + $0x349] sm:$0xff] }
  0xa9   : > { %5103 = vmatmul.mubr.msk.f32.gmra.mxu1 %vm242_vm1, %v4155_v47  ;;  %5157 = vmatprep.mubr.msk.f32.mxu0 %vm242_vm1, %v4223_v31  ;;  %v4263_v47 = vld [vmem:[%s5445_s26 + $0x339] sm:$0xff] }
  0xaa   : > { %5105 = vmatprep.mubr.msk.f32.mxu1 %vm242_vm1, %v4156_v29  ;;  %v4428_v29 = vld [vmem:[%s6883_s1 + $0x70] sm:$0xff]  ;;  %v4495_v31 = vld [vmem:[%s6883_s1 + $0x80] sm:$0xff] }
  0xac   : > { %5158 = vmatmul.mubr.msk.f32.gmra.mxu0 %vm242_vm1, %v4224_v35 }
  0xad   : > { %5106 = vmatmul.mubr.msk.f32.gmra.mxu1 %vm242_vm1, %v4157_v33  ;;  %5160 = vmatprep.mubr.msk.f32.mxu0 %vm242_vm1, %v4225_v39 }
  0xae   : > { %5108 = vmatprep.mubr.msk.f32.mxu1 %vm242_vm1, %v4158_v37  ;;  %v4282_v37 = vld [vmem:[%s5445_s26 + $0x421] sm:$0xff] }
  0xb0   : > { %5161 = vmatmul.mubr.msk.f32.gmra.mxu0 %vm242_vm1, %v4226_v43 }
  0xb1   : > { %5109 = vmatmul.mubr.msk.f32.gmra.mxu1 %vm242_vm1, %v4159_v41  ;;  %5219 = vmatprep.mubr.msk.f32.mxu0 %vm242_vm1, %v5540_v44  ;;  %v4265_v44 = vld [vmem:[%s5445_s26 + $0x351] sm:$0xff] }
  0xb2   : > { %5167 = vmatprep.mubr.msk.f32.mxu1 %vm242_vm1, %v4262_v46  ;;  %v4284_v46 = vld [vmem:[%s5445_s26 + $0x439] sm:$0xff] }
  0xb4   : > { %5220 = vmatmul.mubr.msk.f32.vlgmr.msra.gmra.mxu0 %vm242_vm1, %v5558_v48  ;;  %v4266_v48 = vld [vmem:[%s5445_s26 + $0x361] sm:$0xff] }
  0xb5   : > { %5168 = vmatmul.mubr.msk.f32.vlgmr.msra.gmra.mxu1 %vm242_vm1, %v4263_v47  ;;  %5320 = vmatpush3.msk.msra.mxu0 %vm339_vm0, %v5874_v53  ;;  %v4268_v53 = vld [vmem:[%s5445_s26 + $0x379] sm:$0xff] }
  0xb6   : > { %5268 = vmatpush3.msk.msra.mxu1 %vm339_vm0, %v5869_v52  ;;  %5170 = vmatprep.mubr.msk.f32.mxu1 %vm242_vm1, %v4264_v27  ;;  %v4267_v52 = vld [vmem:[%s5445_s26 + $0x369] sm:$0xff] }
  0xb7   : > { %5222 = vmatprep.mubr.msk.f32.mxu0 %vm242_vm1, %v5568_v50  ;;  %5269 = vmatprep.subr.mxu1 %v4428_v29  ;;  %v4269_v50 = vld [vmem:[%s5445_s26 + $0x381] sm:$0xff] }
  0xb8   : > { %5321 = vmatprep.subr.mxu0 %v4495_v31  ;;  %5223 = vmatmul.mubr.msk.f32.gmra.mxu0 %vm242_vm1, %v5592_v54  ;;  %v4270_v54 = vld [vmem:[%s5445_s26 + $0x391] sm:$0xff] }
  0xb9   : > { %5171 = vmatmul.mubr.msk.f32.gmra.mxu1 %vm242_vm1, %v4265_v44  ;;  %5225 = vmatprep.mubr.msk.f32.mxu0 %vm242_vm1, %v5598_v56  ;;  %v4271_v56 = vld [vmem:[%s5445_s26 + $0x399] sm:$0xff] }
  0xba   : > { %5173 = vmatprep.mubr.msk.f32.mxu1 %vm242_vm1, %v4266_v48  ;;  %5270 = vmatpush3.msra.mxu1 %v4428_v29 }
  0xbb   : > { %5322 = vmatpush3.msra.mxu0 %v4495_v31  ;;  %v4286_v31 = vld [vmem:[%s5445_s26 + $0x451] sm:$0xff] }
  0xbc   : > { %5226 = vmatmul.mubr.msk.f32.gmra.mxu0 %vm242_vm1, %v5616_v58  ;;  %v4272_v58 = vld [vmem:[%s5445_s26 + $0x3a9] sm:$0xff] }
  0xbd   : > { %5174 = vmatmul.mubr.msk.f32.gmra.mxu1 %vm242_vm1, %v4267_v52  ;;  %5228 = vmatprep.mubr.msk.f32.mxu0 %vm242_vm1, %v5622_v60  ;;  %v4273_v60 = vld [vmem:[%s5445_s26 + $0x3b1] sm:$0xff] }
  0xbe   : > { %5176 = vmatprep.mubr.msk.f32.mxu1 %vm242_vm1, %v4268_v53  ;;  %v4288_v53 = vld [vmem:[%s5445_s26 + $0x469] sm:$0xff] }
  0xc0   : > { %5229 = vmatmul.mubr.msk.f32.gmra.mxu0 %vm242_vm1, %v5636_v62  ;;  %v4274_v62 = vld [vmem:[%s5445_s26 + $0x3c1] sm:$0xff] }
  0xc1   : > { %5177 = vmatmul.mubr.msk.f32.gmra.mxu1 %vm242_vm1, %v4269_v50  ;;  %5231 = vmatprep.mubr.msk.f32.mxu0 %vm242_vm1, %v5642_v0  ;;  %v4275_v0 = vld [vmem:[%s5445_s26 + $0x3c9] sm:$0xff] }
  0xc2   : > { %5179 = vmatprep.mubr.msk.f32.mxu1 %vm242_vm1, %v4270_v54 }
  0xc4   : > { %5232 = vmatmul.mubr.msk.f32.gmra.mxu0 %vm242_vm1, %v5656_v2  ;;  %v4276_v2 = vld [vmem:[%s5445_s26 + $0x3d9] sm:$0xff] }
  0xc5   : > { %5180 = vmatmul.mubr.msk.f32.gmra.mxu1 %vm242_vm1, %v4271_v56  ;;  %5234 = vmatprep.mubr.msk.f32.mxu0 %vm242_vm1, %v5662_v4  ;;  %v4277_v4 = vld [vmem:[%s5445_s26 + $0x3e1] sm:$0xff] }
  0xc6   : > { %5182 = vmatprep.mubr.msk.f32.mxu1 %vm242_vm1, %v4272_v58  ;;  %v4290_v58 = vld [vmem:[%s5445_s26 + $0x481] sm:$0xff] }
  0xc8   : > { %5235 = vmatmul.mubr.msk.f32.gmra.mxu0 %vm242_vm1, %v5676_v6  ;;  %v4278_v6 = vld [vmem:[%s5445_s26 + $0x3f1] sm:$0xff] }
  0xc9   : > { %5183 = vmatmul.mubr.msk.f32.gmra.mxu1 %vm242_vm1, %v4273_v60  ;;  %5237 = vmatprep.mubr.msk.f32.mxu0 %vm242_vm1, %v5682_v8  ;;  %v4279_v8 = vld [vmem:[%s5445_s26 + $0x3f9] sm:$0xff] }
  0xca   : > { %5185 = vmatprep.mubr.msk.f32.mxu1 %vm242_vm1, %v4274_v62 }
  0xcc   : > { %5238 = vmatmul.mubr.msk.f32.gmra.mxu0 %vm242_vm1, %v5696_v10  ;;  %v4280_v10 = vld [vmem:[%s5445_s26 + $0x409] sm:$0xff] }
  0xcd   : > { %5186 = vmatmul.mubr.msk.f32.gmra.mxu1 %vm242_vm1, %v4275_v0  ;;  %5240 = vmatprep.mubr.msk.f32.mxu0 %vm242_vm1, %v5702_v12  ;;  %v4281_v12 = vld [vmem:[%s5445_s26 + $0x411] sm:$0xff] }
  0xce   : > { %5188 = vmatprep.mubr.msk.f32.mxu1 %vm242_vm1, %v4276_v2  ;;  %v4292_v2 = vld [vmem:[%s5445_s26 + $0x499] sm:$0xff] }
  0xd0   : > { %5241 = vmatmul.mubr.msk.f32.gmra.mxu0 %vm242_vm1, %v5716_v14 }
  0xd1   : > { %5189 = vmatmul.mubr.msk.f32.gmra.mxu1 %vm242_vm1, %v4277_v4  ;;  %5243 = vmatprep.mubr.msk.f32.mxu0 %vm242_vm1, %v5722_v16  ;;  %v4359_v4 = vld [vmem:[%s5445_s26 + $0x180] sm:$0xff] }
  0xd2   : > { %5191 = vmatprep.mubr.msk.f32.mxu1 %vm242_vm1, %v4278_v6 }
  0xd4   : > { %v6070_v33 = vpop.f32.mrf.mxu0  ;;  %5244 = vmatmul.mubr.msk.f32.gmra.mxu0 %vm242_vm1, %v5736_v18  ;;  %v4283_v18 = vld [vmem:[%s5445_s26 + $0x429] sm:$0xff] }
  0xd5   : > { %v6072_v35 = vpop.f32.mrf.mxu1  ;;  %5192 = vmatmul.mubr.msk.f32.gmra.mxu1 %vm242_vm1, %v4279_v8  ;;  %5246 = vmatprep.mubr.msk.f32.mxu0 %vm242_vm1, %v5742_v20 }
  0xd6   : > { %5194 = vmatprep.mubr.msk.f32.mxu1 %vm242_vm1, %v4280_v10  ;;  %v6081_v14 = vpop.f32.mrf.mxu0 }
  0xd7   : > { %v6083_v16 = vpop.f32.mrf.mxu1 }
  0xd8   : > { %v6086_v39 = vpop.f32.mrf.mxu0  ;;  %5247 = vmatmul.mubr.msk.f32.gmra.mxu0 %vm242_vm1, %v5756_v22  ;;  %v4285_v22 = vld [vmem:[%s5445_s26 + $0x441] sm:$0xff] }
  0xd9   : > { %v6088_v41 = vpop.f32.mrf.mxu1  ;;  %5195 = vmatmul.mubr.msk.f32.gmra.mxu1 %vm242_vm1, %v4281_v12  ;;  %5249 = vmatprep.mubr.msk.f32.mxu0 %vm242_vm1, %v5762_v24 }
  0xda   : > { %5197 = vmatprep.mubr.msk.f32.mxu1 %vm242_vm1, %v4282_v37  ;;  %v6097_v20 = vpop.f32.mrf.mxu0  ;;  %v4396_v37 = vld [vmem:[%s5445_s26 + $0x1b0] sm:$0xff] }
  0xdb   : > { %v6099_v43 = vpop.f32.mrf.mxu1 }
  0xdc   : > { %v6102_v47 = vpop.f32.mrf.mxu0  ;;  %5250 = vmatmul.mubr.msk.f32.gmra.mxu0 %vm242_vm1, %v5776_v26  ;;  %v4287_v26 = vld [vmem:[%s5445_s26 + $0x459] sm:$0xff] }
  0xdd   : > { %v6104_v27 = vpop.f32.mrf.mxu1  ;;  %5198 = vmatmul.mubr.msk.f32.gmra.mxu1 %vm242_vm1, %v4283_v18  ;;  %5252 = vmatprep.mubr.msk.f32.mxu0 %vm242_vm1, %v5780_v28 }
  0xde   : > { %5200 = vmatprep.mubr.msk.f32.mxu1 %vm242_vm1, %v4284_v46  ;;  %v6113_v24 = vpop.f32.mrf.mxu0 }
  0xdf   : > { %v6115_v29 = vpop.f32.mrf.mxu1 }
  0xe0   : > { %v6118_v44 = vpop.f32.mrf.mxu0  ;;  %5253 = vmatmul.mubr.msk.f32.gmra.mxu0 %vm242_vm1, %v5790_v30  ;;  %v4289_v30 = vld [vmem:[%s5445_s26 + $0x471] sm:$0xff] }
  0xe1   : > { %v6120_v48 = vpop.f32.mrf.mxu1  ;;  %5201 = vmatmul.mubr.msk.f32.gmra.mxu1 %vm242_vm1, %v4285_v22  ;;  %5255 = vmatprep.mubr.msk.f32.mxu0 %vm242_vm1, %v5794_v32 }
  0xe2   : > { %5203 = vmatprep.mubr.msk.f32.mxu1 %vm242_vm1, %v4286_v31  ;;  %v6129_v28 = vpop.f32.mrf.mxu0 }
  0xe3   : > { %v6131_v52 = vpop.f32.mrf.mxu1 }
  0xe4   : > { %v6134_v50 = vpop.f32.mrf.mxu0  ;;  %5256 = vmatmul.mubr.msk.f32.gmra.mxu0 %vm242_vm1, %v5804_v34  ;;  %v4291_v34 = vld [vmem:[%s5445_s26 + $0x489] sm:$0xff] }
  0xe5   : > { %v6136_v54 = vpop.f32.mrf.mxu1  ;;  %5204 = vmatmul.mubr.msk.f32.gmra.mxu1 %vm242_vm1, %v4287_v26  ;;  %5258 = vmatprep.mubr.msk.f32.mxu0 %vm242_vm1, %v5808_v36  ;;  %v4398_v26 = vld [vmem:[%s5445_s26 + $0x1c8] sm:$0xff] }
  0xe6   : > { %5206 = vmatprep.mubr.msk.f32.mxu1 %vm242_vm1, %v4288_v53  ;;  %v6145_v32 = vpop.f32.mrf.mxu0 }
  0xe7   : > { %v6147_v56 = vpop.f32.mrf.mxu1 }
  0xe8   : > { %v6150_v60 = vpop.f32.mrf.mxu0  ;;  %5259 = vmatmul.mubr.msk.f32.gmra.mxu0 %vm242_vm1, %v5818_v38  ;;  %v4293_v38 = vld [vmem:[%s5445_s26 + $0x4a1] sm:$0xff] }
  0xe9   : > { %v6152_v62 = vpop.f32.mrf.mxu1  ;;  %5207 = vmatmul.mubr.msk.f32.gmra.mxu1 %vm242_vm1, %v4289_v30  ;;  %5261 = vmatprep.mubr.msk.f32.mxu0 %vm242_vm1, %v5822_v40  ;;  %v4360_v40 = vld [vmem:[%s5445_s26 + $0x188] sm:$0xff] }
  0xea   : > { %5209 = vmatprep.mubr.msk.f32.mxu1 %vm242_vm1, %v4290_v58  ;;  %v6161_v36 = vpop.f32.mrf.mxu0 }
  0xeb   : > { %v6163_v0 = vpop.f32.mrf.mxu1 }
  0xec   : > { %v6167_v6 = vpop.f32.mrf.mxu0  ;;  %5262 = vmatmul.mubr.msk.f32.gmra.mxu0 %vm242_vm1, %v5832_v42  ;;  %v4397_v42 = vld [vmem:[%s5445_s26 + $0x1b8] sm:$0xff] }
  0xed   : > { %v6169_v8 = vpop.f32.mrf.mxu1  ;;  %5210 = vmatmul.mubr.msk.f32.gmra.mxu1 %vm242_vm1, %v4291_v34  ;;  %5264 = vmatprep.mubr.msk.f32.mxu0 %vm242_vm1, %v4359_v4  ;;  %v4400_v4 = vld [vmem:[%s5445_s26 + $0x1e0] sm:$0xff] }
  0xee   : > { %5212 = vmatprep.mubr.msk.f32.mxu1 %vm242_vm1, %v4292_v2  ;;  %v6178_v10 = vpop.f32.mrf.mxu0 }
  0xef   : > { %v6180_v12 = vpop.f32.mrf.mxu1 }
  0xf0   : > { %v6183_v18 = vpop.f32.mrf.mxu0  ;;  %5265 = vmatmul.mubr.msk.f32.gmra.mxu0 %vm242_vm1, %v4360_v40 }
  0xf1   : > { %v6185_v46 = vpop.f32.mrf.mxu1  ;;  %5213 = vmatmul.mubr.msk.f32.gmra.mxu1 %vm242_vm1, %v4293_v38  ;;  %5323 = vmatprep.mubr.msk.f32.mxu0 %vm242_vm1, %v5543_v45  ;;  %v4399_v45 = vld [vmem:[%s5445_s26 + $0x1d0] sm:$0xff] }
  0xf2   : > { %5271 = vmatprep.mubr.msk.f32.mxu1 %vm242_vm1, %v4396_v37  ;;  %v6193_v22 = vpop.f32.mrf.mxu0 }
  0xf3   : > { %v6195_v31 = vpop.f32.mrf.mxu1 }
  0xf4   : > { %v5013_v30 = vpop.f32.mrf.mxu0  ;;  %5324 = vmatmul.mubr.msk.f32.vlgmr.msra.gmra.mxu0 %vm242_vm1, %v5561_v49 }
  0xf5   : > { %v4961_v53 = vpop.f32.mrf.mxu1  ;;  %5272 = vmatmul.mubr.msk.f32.vlgmr.msra.gmra.mxu1 %vm242_vm1, %v4397_v42  ;;  %5326 = vmatprep.mubr.msk.f32.mxu0 %vm242_vm1, %v5571_v51 }
  0xf6   : > { %v739_v58 = vadd.f32 %v4961_v53, %v6070_v33  ;;  %5274 = vmatprep.mubr.msk.f32.mxu1 %vm242_vm1, %v4398_v26  ;;  %v1092_v2 = vpop.f32.mrf.mxu0  ;;  %v4401_v33 = vld [vmem:[%s5445_s26 + $0x1e8] sm:$0xff]  ;;  %v4402_v53 = vld [vmem:[%s5445_s26 + $0x1f8] sm:$0xff] }
  0xf7   : > { %v733_v34 = vpop.f32.mrf.mxu1 }
  0xf8   : > { %v6207_v38 = vadd.f32 %v5013_v30, %v739_v58  ;;  %v734_v40 = vadd.f32 %v733_v34, %v6081_v14  ;;  %v5016_v42 = vpop.f32.mrf.mxu0  ;;  %5327 = vmatmul.mubr.msk.f32.gmra.mxu0 %vm242_vm1, %v5595_v55  ;;  %v4403_v34 = vld [vmem:[%s5445_s26 + $0x200] sm:$0xff] }
  0xf9   : > { %v4964_v37 = vpop.f32.mrf.mxu1  ;;  %5275 = vmatmul.mubr.msk.f32.gmra.mxu1 %vm242_vm1, %v4399_v45  ;;  %5329 = vmatprep.mubr.msk.f32.mxu0 %vm242_vm1, %v5601_v57 }
  0xfa   : > { %v6213_v49 = vadd.f32 %v1092_v2, %v734_v40  ;;  %v749_v51 = vadd.f32 %v4964_v37, %v6086_v39  ;;  %5277 = vmatprep.mubr.msk.f32.mxu1 %vm242_vm1, %v4400_v4  ;;  %v1102_v14 = vpop.f32.mrf.mxu0  ;;  %v4404_v4 = vld [vmem:[%s5445_s26 + $0x210] sm:$0xff] }
  0xfb   : > { %v743_v26 = vpop.f32.mrf.mxu1 }
  0xfc   : > { %v6221_v30 = vadd.f32 %v5016_v42, %v749_v51  ;;  %v744_v58 = vadd.f32 %v743_v26, %v6097_v20  ;;  %v5019_v45 = vpop.f32.mrf.mxu0  ;;  %5330 = vmatmul.mubr.msk.f32.gmra.mxu0 %vm242_vm1, %v5619_v59  ;;  %v4405_v51 = vld [vmem:[%s5445_s26 + $0x218] sm:$0xff]  ;;  %v4406_v26 = vld [vmem:[%s5445_s26 + $0x228] sm:$0xff] }
  0xfd   : > { %v4967_v55 = vpop.f32.mrf.mxu1  ;;  %5278 = vmatmul.mubr.msk.f32.gmra.mxu1 %vm242_vm1, %v4401_v33  ;;  %5332 = vmatprep.mubr.msk.f32.mxu0 %vm242_vm1, %v5625_v61 }
  0xfe   : > { %v6227_v39 = vadd.f32 %v1102_v14, %v744_v58  ;;  %v759_v57 = vadd.f32 %v4967_v55, %v6102_v47  ;;  %5280 = vmatprep.mubr.msk.f32.mxu1 %vm242_vm1, %v4402_v53  ;;  %v1112_v20 = vpop.f32.mrf.mxu0  ;;  %v4407_v55 = vld [vmem:[%s5445_s26 + $0x230] sm:$0xff] }
  0xff   : > { %v753_v2 = vpop.f32.mrf.mxu1 }
 0x100   : > { %v6235_v40 = vadd.f32 %v5019_v45, %v759_v57  ;;  %v754_v37 = vadd.f32 %v753_v2, %v6113_v24  ;;  %v5022_v42 = vpop.f32.mrf.mxu0  ;;  %5333 = vmatmul.mubr.msk.f32.gmra.mxu0 %vm242_vm1, %v5639_v63  ;;  %v4408_v57 = vld [vmem:[%s5445_s26 + $0x240] sm:$0xff] }
 0x101   : > { %v4970_v59 = vpop.f32.mrf.mxu1  ;;  %5281 = vmatmul.mubr.msk.f32.gmra.mxu1 %vm242_vm1, %v4403_v34  ;;  %5335 = vmatprep.mubr.msk.f32.mxu0 %vm242_vm1, %v5645_v1 }
 0x102   : > { %v6241_v47 = vadd.f32 %v1112_v20, %v754_v37  ;;  %v769_v61 = vadd.f32 %v4970_v59, %v6118_v44  ;;  %5283 = vmatprep.mubr.msk.f32.mxu1 %vm242_vm1, %v4404_v4  ;;  %v1122_v24 = vpop.f32.mrf.mxu0  ;;  %v4409_v4 = vld [vmem:[%s5445_s26 + $0x248] sm:$0xff]  ;;  %v4410_v59 = vld [vmem:[%s5445_s26 + $0x258] sm:$0xff] }
 0x103   : > { %v763_v33 = vpop.f32.mrf.mxu1 }
 0x104   : > { %v6249_v14 = vadd.f32 %v5022_v42, %v769_v61  ;;  %v764_v53 = vadd.f32 %v763_v33, %v6129_v28  ;;  %v5025_v58 = vpop.f32.mrf.mxu0  ;;  %5336 = vmatmul.mubr.msk.f32.gmra.mxu0 %vm242_vm1, %v5659_v3  ;;  %v4411_v33 = vld [vmem:[%s5445_s26 + $0x260] sm:$0xff] }
 0x105   : > { %v4973_v63 = vpop.f32.mrf.mxu1  ;;  %5284 = vmatmul.mubr.msk.f32.gmra.mxu1 %vm242_vm1, %v4405_v51  ;;  %5338 = vmatprep.mubr.msk.f32.mxu0 %vm242_vm1, %v5665_v5 }
 0x106   : > { %v6255_v44 = vadd.f32 %v1122_v24, %v764_v53  ;;  %v779_v1 = vadd.f32 %v4973_v63, %v6134_v50  ;;  %5286 = vmatprep.mubr.msk.f32.mxu1 %vm242_vm1, %v4406_v26  ;;  %v1132_v28 = vpop.f32.mrf.mxu0  ;;  %v4412_v26 = vld [vmem:[%s5445_s26 + $0x270] sm:$0xff] }
 0x107   : > { %v773_v45 = vpop.f32.mrf.mxu1 }
 0x108   : > { %v6263_v34 = vadd.f32 %v5025_v58, %v779_v1  ;;  %v774_v2 = vadd.f32 %v773_v45, %v6145_v32  ;;  %v5028_v20 = vpop.f32.mrf.mxu0  ;;  %5339 = vmatmul.mubr.msk.f32.gmra.mxu0 %vm242_vm1, %v5679_v7  ;;  %v4413_v1 = vld [vmem:[%s5445_s26 + $0x278] sm:$0xff]  ;;  %v4414_v45 = vld [vmem:[%s5445_s26 + $0x288] sm:$0xff] }
 0x109   : > { %v4976_v3 = vpop.f32.mrf.mxu1  ;;  %5287 = vmatmul.mubr.msk.f32.gmra.mxu1 %vm242_vm1, %v4407_v55  ;;  %5341 = vmatprep.mubr.msk.f32.mxu0 %vm242_vm1, %v5685_v9 }
 0x10a   : > { %v6269_v50 = vadd.f32 %v1132_v28, %v774_v2  ;;  %v789_v5 = vadd.f32 %v4976_v3, %v6150_v60  ;;  %5289 = vmatprep.mubr.msk.f32.mxu1 %vm242_vm1, %v4408_v57  ;;  %v1142_v32 = vpop.f32.mrf.mxu0  ;;  %v4415_v3 = vld [vmem:[%s5445_s26 + $0x290] sm:$0xff] }
 0x10b   : > { %v783_v37 = vpop.f32.mrf.mxu1 }
 0x10c   : > { %v6277_v42 = vadd.f32 %v5028_v20, %v789_v5  ;;  %v784_v61 = vadd.f32 %v783_v37, %v6161_v36  ;;  %v5031_v51 = vpop.f32.mrf.mxu0  ;;  %5342 = vmatmul.mubr.msk.f32.gmra.mxu0 %vm242_vm1, %v5699_v11  ;;  %v4416_v5 = vld [vmem:[%s5445_s26 + $0x2a0] sm:$0xff] }
 0x10d   : > { %v4979_v7 = vpop.f32.mrf.mxu1  ;;  %5290 = vmatmul.mubr.msk.f32.gmra.mxu1 %vm242_vm1, %v4409_v4  ;;  %5344 = vmatprep.mubr.msk.f32.mxu0 %vm242_vm1, %v5705_v13 }
 0x10e   : > { %v6283_v60 = vadd.f32 %v1142_v32, %v784_v61  ;;  %v799_v9 = vadd.f32 %v4979_v7, %v6167_v6  ;;  %5292 = vmatprep.mubr.msk.f32.mxu1 %vm242_vm1, %v4410_v59  ;;  %v1152_v36 = vpop.f32.mrf.mxu0  ;;  %v4417_v59 = vld [vmem:[%s5445_s26 + $0x2a8] sm:$0xff]  ;;  %v4484_v61 = vld [vmem:[%s5445_s26 + $0x111] sm:$0xff] }
 0x10f   : > { %v793_v24 = vpop.f32.mrf.mxu1 }
 0x110   : > { %v6291_v53 = vadd.f32 %v5031_v51, %v799_v9  ;;  %v794_v63 = vadd.f32 %v793_v24, %v6178_v10  ;;  %v5034_v58 = vpop.f32.mrf.mxu0  ;;  %5345 = vmatmul.mubr.msk.f32.gmra.mxu0 %vm242_vm1, %v5719_v15  ;;  %v4418_v51 = vld [vmem:[%s5445_s26 + $0x2b8] sm:$0xff]  ;;  %v4485_v9 = vld [vmem:[%s5445_s26 + $0x121] sm:$0xff] }
 0x111   : > { %v4982_v11 = vpop.f32.mrf.mxu1  ;;  %5293 = vmatmul.mubr.msk.f32.gmra.mxu1 %vm242_vm1, %v4411_v33  ;;  %5347 = vmatprep.mubr.msk.f32.mxu0 %vm242_vm1, %v5725_v17 }
 0x112   : > { %v6297_v6 = vadd.f32 %v1152_v36, %v794_v63  ;;  %v809_v13 = vadd.f32 %v4982_v11, %v6183_v18  ;;  %5295 = vmatprep.mubr.msk.f32.mxu1 %vm242_vm1, %v4412_v26  ;;  %v1162_v10 = vpop.f32.mrf.mxu0  ;;  %v4419_v26 = vld [vmem:[%s5445_s26 + $0x2c0] sm:$0xff]  ;;  %v4486_v63 = vld [vmem:[%s5445_s26 + $0x129] sm:$0xff] }
 0x113   : > { %v803_v55 = vpop.f32.mrf.mxu1 }
 0x114   : > { %v6305_v28 = vadd.f32 %v5034_v58, %v809_v13  ;;  %v804_v57 = vadd.f32 %v803_v55, %v6193_v22  ;;  %v5037_v2 = vpop.f32.mrf.mxu0  ;;  %5348 = vmatmul.mubr.msk.f32.gmra.mxu0 %vm242_vm1, %v5739_v19  ;;  %v4420_v58 = vld [vmem:[%s5445_s26 + $0x2d0] sm:$0xff]  ;;  %v4487_v13 = vld [vmem:[%s5445_s26 + $0x139] sm:$0xff] }
 0x115   : > { %v4985_v15 = vpop.f32.mrf.mxu1  ;;  %5296 = vmatmul.mubr.msk.f32.gmra.mxu1 %vm242_vm1, %v4413_v1  ;;  %5350 = vmatprep.mubr.msk.f32.mxu0 %vm242_vm1, %v5745_v21 }
 0x116   : > { %v6311_v18 = vadd.f32 %v1162_v10, %v804_v57  ;;  %v819_v17 = vadd.f32 %v4985_v15, %v6072_v35  ;;  %5298 = vmatprep.mubr.msk.f32.mxu1 %vm242_vm1, %v4414_v45  ;;  %v1172_v20 = vpop.f32.mrf.mxu0  ;;  %v4421_v15 = vld [vmem:[%s5445_s26 + $0x2d8] sm:$0xff] }
 0x117   : > { %v813_v22 = vpop.f32.mrf.mxu1 }
 0x118   : > { %v6319_v4 = vadd.f32 %v5037_v2, %v819_v17  ;;  %v814_v19 = vadd.f32 %v813_v22, %v6083_v16  ;;  %v5040_v32 = vpop.f32.mrf.mxu0  ;;  %5351 = vmatmul.mubr.msk.f32.gmra.mxu0 %vm242_vm1, %v5759_v23  ;;  %v4488_v2 = vld [vmem:[%s5445_s26 + $0x141] sm:$0xff]  ;;  %v4489_v22 = vld [vmem:[%s5445_s26 + $0x151] sm:$0xff] }
 0x119   : > { %v4988_v37 = vpop.f32.mrf.mxu1  ;;  %5299 = vmatmul.mubr.msk.f32.gmra.mxu1 %vm242_vm1, %v4415_v3  ;;  %5353 = vmatprep.mubr.msk.f32.mxu0 %vm242_vm1, %v5765_v25  ;;  %v4422_v3 = vld [vmem:[%s5445_s26 + $0x2e8] sm:$0xff] }
 0x11a   : > { %v6325_v35 = vadd.f32 %v1172_v20, %v814_v19  ;;  %v829_v21 = vadd.f32 %v4988_v37, %v6088_v41  ;;  %5301 = vmatprep.mubr.msk.f32.mxu1 %vm242_vm1, %v4416_v5  ;;  %v1182_v7 = vpop.f32.mrf.mxu0 }
 0x11b   : > { %v823_v16 = vpop.f32.mrf.mxu1 }
 0x11c   : > { %v6335_v23 = vadd.f32 %v5040_v32, %v829_v21  ;;  %v824_v33 = vadd.f32 %v823_v16, %v6099_v43  ;;  %v5043_v24 = vpop.f32.mrf.mxu0  ;;  %5354 = vmatmul.mubr.msk.f32.gmra.mxu0 %vm242_vm1, %v4484_v61  ;;  %v4423_v21 = vld [vmem:[%s5445_s26 + $0x2f0] sm:$0xff]  ;;  %v4424_v16 = vld [vmem:[%s5445_s26 + $0x300] sm:$0xff] }
 0x11d   : > { %v4991_v41 = vpop.f32.mrf.mxu1  ;;  %5302 = vmatmul.mubr.msk.f32.gmra.mxu1 %vm242_vm1, %v4417_v59  ;;  %5356 = vmatprep.mubr.msk.f32.mxu0 %vm242_vm1, %v4485_v9  ;;  %v4490_v59 = vld [vmem:[%s5445_s26 + $0x159] sm:$0xff] }
 0x11e   : > { %v6340_v25 = vadd.f32 %v1182_v7, %v824_v33  ;;  %v839_v36 = vadd.f32 %v4991_v41, %v6104_v27  ;;  %5304 = vmatprep.mubr.msk.f32.mxu1 %vm242_vm1, %v4418_v51  ;;  %v1192_v43 = vpop.f32.mrf.mxu0  ;;  %v4491_v7 = vld [vmem:[%s5445_s26 + $0x169] sm:$0xff] }
 0x11f   : > { %v833_v11 = vpop.f32.mrf.mxu1 }
 0x120   : > { %v6349_v1 = vadd.f32 %v5043_v24, %v839_v36  ;;  %v834_v55 = vadd.f32 %v833_v11, %v6115_v29  ;;  %v5046_v27 = vpop.f32.mrf.mxu0  ;;  %5357 = vmatmul.mubr.msk.f32.gmra.mxu0 %vm242_vm1, %v4486_v63  ;;  %v4425_v36 = vld [vmem:[%s5445_s26 + $0x308] sm:$0xff]  ;;  %v4426_v11 = vld [vmem:[%s5445_s26 + $0x318] sm:$0xff] }
 0x121   : > { %v4994_v10 = vpop.f32.mrf.mxu1  ;;  %5305 = vmatmul.mubr.msk.f32.gmra.mxu1 %vm242_vm1, %v4419_v26  ;;  %5359 = vmatprep.mubr.msk.f32.mxu0 %vm242_vm1, %v4487_v13  ;;  %v4492_v26 = vld [vmem:[%s5445_s26 + $0x171] sm:$0xff] }
 0x122   : > { %v6354_v45 = vadd.f32 %v1192_v43, %v834_v55  ;;  %v849_v57 = vadd.f32 %v4994_v10, %v6120_v48  ;;  %5307 = vmatprep.mubr.msk.f32.mxu1 %vm242_vm1, %v4420_v58  ;;  %v1202_v29 = vpop.f32.mrf.mxu0  ;;  %v4493_v43 = vld [vmem:[%s5445_s26 + $0x181] sm:$0xff] }
 0x123   : > { %v843_v17 = vpop.f32.mrf.mxu1 }
 0x124   : > { %v6363_v20 = vadd.f32 %v5046_v27, %v849_v57  ;;  %v844_v5 = vadd.f32 %v843_v17, %v6131_v52  ;;  %v5049_v48 = vpop.f32.mrf.mxu0  ;;  %5360 = vmatmul.mubr.msk.f32.gmra.mxu0 %vm242_vm1, %v4488_v2  ;;  %v4427_v57 = vld [vmem:[%s5445_s26 + $0x320] sm:$0xff] }
 0x125   : > { %v4997_v19 = vpop.f32.mrf.mxu1  ;;  %5308 = vmatmul.mubr.msk.f32.gmra.mxu1 %vm242_vm1, %v4421_v15  ;;  %5362 = vmatprep.mubr.msk.f32.mxu0 %vm242_vm1, %v4489_v22  ;;  %v4494_v15 = vld [vmem:[%s5445_s26 + $0x189] sm:$0xff]  ;;  %s3991_s26 = sshll.u32 %s5418_s13, 5 }
 0x126   : > { %v6368_v37 = vadd.f32 %v1202_v29, %v844_v5  ;;  %v859_v32 = vadd.f32 %v4997_v19, %v6136_v54  ;;  %5310 = vmatprep.mubr.msk.f32.mxu1 %vm242_vm1, %v4422_v3  ;;  %v1212_v52 = vpop.f32.mrf.mxu0  ;;  %p6625_p4 = scmp.lt.s32.totalorder %s3991_s26, 63 }
 0x127   : > { %v853_v61 = vpop.f32.mrf.mxu1 }
 0x128   : > { %v6377_v51 = vadd.f32 %v5049_v48, %v859_v32  ;;  %v854_v9 = vadd.f32 %v853_v61, %v6147_v56  ;;  %v5052_v54 = vpop.f32.mrf.mxu0  ;;  %5363 = vmatmul.mubr.msk.f32.gmra.mxu0 %vm242_vm1, %v4490_v59  ;;  %s6964_s26 = smov (!%p6625_p4, %s3991_s26), 63 }
 0x129   : > { %v5000_v33 = vpop.f32.mrf.mxu1  ;;  %5311 = vmatmul.mubr.msk.f32.gmra.mxu1 %vm242_vm1, %v4423_v21  ;;  %5365 = vmatprep.mubr.msk.f32.mxu0 %vm242_vm1, %v4491_v7  ;;  %s3992_s6 = sshll.u32 %s6964_s26, 2 }
 0x12a   : > { %v6382_v41 = vadd.f32 %v1212_v52, %v854_v9  ;;  %v869_v24 = vadd.f32 %v5000_v33, %v6152_v62  ;;  %5313 = vmatprep.mubr.msk.f32.mxu1 %vm242_vm1, %v4424_v16  ;;  %v1222_v56 = vpop.f32.mrf.mxu0  ;;  %s6700_s9 = scalar_lea.vmem %s6885_s3, %s3992_s6 }
 0x12b   : > { %v863_v63 = vpop.f32.mrf.mxu1 }
 0x12c   : > { %v6391_v58 = vadd.f32 %v5052_v54, %v869_v24  ;;  %v864_v13 = vadd.f32 %v863_v63, %v6163_v0  ;;  %v5055_v10 = vpop.f32.mrf.mxu0  ;;  %5366 = vmatmul.mubr.msk.f32.gmra.mxu0 %vm242_vm1, %v4492_v26 }
 0x12d   : > { %v5003_v55 = vpop.f32.mrf.mxu1  ;;  %5314 = vmatmul.mubr.msk.f32.gmra.mxu1 %vm242_vm1, %v4425_v36  ;;  %5368 = vmatprep.mubr.msk.f32.mxu0 %vm242_vm1, %v4493_v43 }
 0x12e   : > { %v6396_v62 = vadd.f32 %v1222_v56, %v864_v13  ;;  %v879_v27 = vadd.f32 %v5003_v55, %v6169_v8  ;;  %5316 = vmatprep.mubr.msk.f32.mxu1 %vm242_vm1, %v4426_v11  ;;  %v1232_v17 = vpop.f32.mrf.mxu0 }
 0x12f   : > { %v873_v2 = vpop.f32.mrf.mxu1 }
 0x130   : > { %v6403_v29 = vadd.f32 %v5055_v10, %v879_v27  ;;  %v874_v0 = vadd.f32 %v873_v2, %v6180_v12  ;;  %v5058_v22 = vpop.f32.mrf.mxu0  ;;  %5369 = vmatmul.mubr.msk.f32.gmra.mxu0 %vm242_vm1, %v4494_v15 }
 0x131   : > { %v5006_v3 = vpop.f32.mrf.mxu1  ;;  %5317 = vmatmul.mubr.msk.f32.gmra.mxu1 %vm242_vm1, %v4427_v57 }
 0x132   : > { %v6408_v5 = vadd.f32 %v1232_v17, %v874_v0  ;;  %v889_v8 = vadd.f32 %v5006_v3, %v6185_v46  ;;  %v1242_v48 = vpop.f32.mrf.mxu0 }
 0x133   : > { %v883_v19 = vpop.f32.mrf.mxu1 }
 0x134   : > { %v6411_v32 = vadd.f32 %v5058_v22, %v889_v8  ;;  %v884_v21 = vadd.f32 %v883_v19, %v6195_v31  ;;  %v5117_v61 = vpop.f32.mrf.mxu0 }
 0x135   : > { %v5065_v59 = vpop.f32.mrf.mxu1 }
 0x136   : > { %v6414_v52 = vadd.f32 %v1242_v48, %v884_v21  ;;  %v1644_v12 = vadd.f32 %v5065_v59, %v6207_v38  ;;  %v1876_v7 = vpop.f32.mrf.mxu0 }
 0x137   : > { %v1484_v16 = vpop.f32.mrf.mxu1 }
 0x138   : > { %v6417_v9 = vadd.f32 %v5117_v61, %v1644_v12  ;;  %v1643_v33 = vadd.f32 %v1484_v16, %v6213_v49  ;;  %v5120_v46 = vpop.f32.mrf.mxu0 }
 0x139   : > { %v5068_v54 = vpop.f32.mrf.mxu1 }
 0x13a   : > { %v6420_v24 = vadd.f32 %v1876_v7, %v1643_v33  ;;  %v1646_v36 = vadd.f32 %v5068_v54, %v6221_v30  ;;  %v1886_v31 = vpop.f32.mrf.mxu0 }
 0x13b   : > { %v1494_v26 = vpop.f32.mrf.mxu1 }
 0x13c   : > { %v6423_v63 = vadd.f32 %v5120_v46, %v1646_v36  ;;  %v1645_v56 = vadd.f32 %v1494_v26, %v6227_v39  ;;  %v5123_v38 = vpop.f32.mrf.mxu0 }
 0x13d   : > { %v5071_v11 = vpop.f32.mrf.mxu1 }
 0x13e   : > { %v6426_v43 = vadd.f32 %v1886_v31, %v1645_v56  ;;  %v1648_v13 = vadd.f32 %v5071_v11, %v6235_v40  ;;  %v1896_v49 = vpop.f32.mrf.mxu0 }
 0x13f   : > { %v1504_v55 = vpop.f32.mrf.mxu1 }
 0x140   : > { %v6429_v10 = vadd.f32 %v5123_v38, %v1648_v13  ;;  %v1647_v27 = vadd.f32 %v1504_v55, %v6241_v47  ;;  %v5126_v30 = vpop.f32.mrf.mxu0 }
 0x141   : > { %v5074_v57 = vpop.f32.mrf.mxu1 }
 0x142   : > { %v6432_v15 = vadd.f32 %v1896_v49, %v1647_v27  ;;  %v1650_v2 = vadd.f32 %v5074_v57, %v6249_v14  ;;  %v1906_v39 = vpop.f32.mrf.mxu0 }
 0x143   : > { %v1514_v17 = vpop.f32.mrf.mxu1 }
 0x144   : > { %v6435_v0 = vadd.f32 %v5126_v30, %v1650_v2  ;;  %v1649_v3 = vadd.f32 %v1514_v17, %v6255_v44  ;;  %v5129_v40 = vpop.f32.mrf.mxu0 }
 0x145   : > { %v5077_v22 = vpop.f32.mrf.mxu1 }
 0x146   : > { %v6438_v8 = vadd.f32 %v1906_v39, %v1649_v3  ;;  %v1652_v19 = vadd.f32 %v5077_v22, %v6263_v34  ;;  %v1916_v47 = vpop.f32.mrf.mxu0 }
 0x147   : > { %v1524_v48 = vpop.f32.mrf.mxu1 }
 0x148   : > { %v6441_v21 = vadd.f32 %v5129_v40, %v1652_v19  ;;  %v1651_v59 = vadd.f32 %v1524_v48, %v6269_v50  ;;  %v5132_v14 = vpop.f32.mrf.mxu0 }
 0x149   : > { %v5080_v61 = vpop.f32.mrf.mxu1 }
 0x14a   : > { %v6444_v12 = vadd.f32 %v1916_v47, %v1651_v59  ;;  %v1654_v16 = vadd.f32 %v5080_v61, %v6277_v42  ;;  %v1926_v44 = vpop.f32.mrf.mxu0 }
 0x14b   : > { %v1534_v7 = vpop.f32.mrf.mxu1 }
 0x14c   : > { %v6447_v33 = vadd.f32 %v5132_v14, %v1654_v16  ;;  %v1653_v54 = vadd.f32 %v1534_v7, %v6283_v60  ;;  %v5135_v34 = vpop.f32.mrf.mxu0 }
 0x14d   : > { %v5083_v46 = vpop.f32.mrf.mxu1 }
 0x14e   : > { %v6450_v36 = vadd.f32 %v1926_v44, %v1653_v54  ;;  %v1656_v26 = vadd.f32 %v5083_v46, %v6291_v53  ;;  %v1936_v50 = vpop.f32.mrf.mxu0 }
 0x14f   : > { %v1544_v31 = vpop.f32.mrf.mxu1 }
 0x150   : > { %v6453_v56 = vadd.f32 %v5135_v34, %v1656_v26  ;;  %v1655_v11 = vadd.f32 %v1544_v31, %v6297_v6  ;;  %v5138_v42 = vpop.f32.mrf.mxu0 }
 0x151   : > { %v5086_v38 = vpop.f32.mrf.mxu1 }
 0x152   : > { %v6456_v13 = vadd.f32 %v1936_v50, %v1655_v11  ;;  %v1658_v55 = vadd.f32 %v5086_v38, %v6305_v28  ;;  %v1946_v60 = vpop.f32.mrf.mxu0 }
 0x153   : > { %v1554_v49 = vpop.f32.mrf.mxu1 }
 0x154   : > { %v6459_v27 = vadd.f32 %v5138_v42, %v1658_v55  ;;  %v1657_v57 = vadd.f32 %v1554_v49, %v6311_v18  ;;  %v5141_v53 = vpop.f32.mrf.mxu0 }
 0x155   : > { %v5089_v30 = vpop.f32.mrf.mxu1 }
 0x156   : > { %v6462_v2 = vadd.f32 %v1946_v60, %v1657_v57  ;;  %v1660_v17 = vadd.f32 %v5089_v30, %v6319_v4  ;;  %v1956_v6 = vpop.f32.mrf.mxu0 }
 0x157   : > { %v1564_v39 = vpop.f32.mrf.mxu1 }
 0x158   : > { %v6465_v3 = vadd.f32 %v5141_v53, %v1660_v17  ;;  %v1659_v22 = vadd.f32 %v1564_v39, %v6325_v35  ;;  %v5144_v28 = vpop.f32.mrf.mxu0 }
 0x159   : > { %v5092_v40 = vpop.f32.mrf.mxu1 }
 0x15a   : > { %v6468_v19 = vadd.f32 %v1956_v6, %v1659_v22  ;;  %v1662_v48 = vadd.f32 %v5092_v40, %v6335_v23  ;;  %v1966_v18 = vpop.f32.mrf.mxu0 }
 0x15b   : > { %v1574_v47 = vpop.f32.mrf.mxu1 }
 0x15c   : > { %v6471_v59 = vadd.f32 %v5144_v28, %v1662_v48  ;;  %v1661_v61 = vadd.f32 %v1574_v47, %v6340_v25  ;;  %v5147_v4 = vpop.f32.mrf.mxu0 }
 0x15d   : > { %v5095_v14 = vpop.f32.mrf.mxu1 }
 0x15e   : > { %6886 = vst [vmem:[#allocation2_spill] sm:$0xff] %v6471_v59  ;;  %v6474_v16 = vadd.f32 %v1966_v18, %v1661_v61  ;;  %v1664_v7 = vadd.f32 %v5095_v14, %v6349_v1  ;;  %v1976_v35 = vpop.f32.mrf.mxu0 }
 0x15f   : > { %v1584_v44 = vpop.f32.mrf.mxu1 }
 0x160   : > { %6887 = vst [vmem:[#allocation3_spill] sm:$0xff] %v6474_v16  ;;  %v6477_v54 = vadd.f32 %v5147_v4, %v1664_v7  ;;  %v1663_v46 = vadd.f32 %v1584_v44, %v6354_v45  ;;  %v5150_v23 = vpop.f32.mrf.mxu0 }
 0x161   : > { %v5098_v34 = vpop.f32.mrf.mxu1 }
 0x162   : > { %6888 = vst [vmem:[#allocation4_spill] sm:$0xff] %v6477_v54  ;;  %v6480_v26 = vadd.f32 %v1976_v35, %v1663_v46  ;;  %v1666_v31 = vadd.f32 %v5098_v34, %v6363_v20  ;;  %v1986_v25 = vpop.f32.mrf.mxu0 }
 0x163   : > { %v1594_v50 = vpop.f32.mrf.mxu1 }
 0x164   : > { %6889 = vst [vmem:[#allocation5_spill] sm:$0xff] %v6480_v26  ;;  %v6483_v11 = vadd.f32 %v5150_v23, %v1666_v31  ;;  %v1665_v38 = vadd.f32 %v1594_v50, %v6368_v37  ;;  %v5153_v1 = vpop.f32.mrf.mxu0 }
 0x165   : > { %v5101_v42 = vpop.f32.mrf.mxu1 }
 0x166   : > { %6890 = vst [vmem:[#allocation6_spill] sm:$0xff] %v6483_v11  ;;  %v6486_v55 = vadd.f32 %v1986_v25, %v1665_v38  ;;  %v1668_v49 = vadd.f32 %v5101_v42, %v6377_v51  ;;  %v1996_v45 = vpop.f32.mrf.mxu0 }
 0x167   : > { %v1604_v60 = vpop.f32.mrf.mxu1 }
 0x168   : > { %6891 = vst [vmem:[#allocation7_spill] sm:$0xff] %v6486_v55  ;;  %v6489_v57 = vadd.f32 %v5153_v1, %v1668_v49  ;;  %v1667_v30 = vadd.f32 %v1604_v60, %v6382_v41  ;;  %v5156_v20 = vpop.f32.mrf.mxu0 }
 0x169   : > { %v5104_v53 = vpop.f32.mrf.mxu1 }
 0x16a   : > { %6892 = vst [vmem:[#allocation8_spill] sm:$0xff] %v6489_v57  ;;  %v6492_v17 = vadd.f32 %v1996_v45, %v1667_v30  ;;  %v1670_v39 = vadd.f32 %v5104_v53, %v6391_v58  ;;  %v2006_v37 = vpop.f32.mrf.mxu0 }
 0x16b   : > { %v1614_v6 = vpop.f32.mrf.mxu1 }
 0x16c   : > { %6893 = vst [vmem:[#allocation9_spill] sm:$0xff] %v6492_v17  ;;  %v6495_v22 = vadd.f32 %v5156_v20, %v1670_v39  ;;  %v1669_v40 = vadd.f32 %v1614_v6, %v6396_v62  ;;  %v5159_v51 = vpop.f32.mrf.mxu0 }
 0x16d   : > { %v5107_v28 = vpop.f32.mrf.mxu1 }
 0x16e   : > { %6894 = vst [vmem:[#allocation10_spill] sm:$0xff] %v6495_v22  ;;  %v6498_v48 = vadd.f32 %v2006_v37, %v1669_v40  ;;  %v1672_v47 = vadd.f32 %v5107_v28, %v6403_v29  ;;  %v2016_v41 = vpop.f32.mrf.mxu0 }
 0x16f   : > { %v1624_v18 = vpop.f32.mrf.mxu1 }
 0x170   : > { %6895 = vst [vmem:[#allocation11_spill] sm:$0xff] %v6498_v48  ;;  %v6501_v61 = vadd.f32 %v5159_v51, %v1672_v47  ;;  %v1671_v14 = vadd.f32 %v1624_v18, %v6408_v5  ;;  %v5162_v58 = vpop.f32.mrf.mxu0 }
 0x171   : > { %v5110_v4 = vpop.f32.mrf.mxu1 }
 0x172   : > { %6896 = vst [vmem:[#allocation12_spill] sm:$0xff] %v6501_v61  ;;  %v6504_v7 = vadd.f32 %v2016_v41, %v1671_v14  ;;  %v1674_v44 = vadd.f32 %v5110_v4, %v6411_v32  ;;  %v2026_v62 = vpop.f32.mrf.mxu0 }
 0x173   : > { %v1634_v35 = vpop.f32.mrf.mxu1 }
 0x174   : > { %6897 = vst [vmem:[#allocation13_spill] sm:$0xff] %v6504_v7  ;;  %v6507_v46 = vadd.f32 %v5162_v58, %v1674_v44  ;;  %v1673_v34 = vadd.f32 %v1634_v35, %v6414_v52  ;;  %v6510_v29 = vpop.f32.mrf.mxu0 }
 0x175   : > { %v5169_v23 = vpop.f32.mrf.mxu1 }
 0x176   : > { %6898 = vst [vmem:[#allocation14_spill] sm:$0xff] %v6507_v46  ;;  %v6512_v31 = vadd.f32 %v2026_v62, %v1673_v34  ;;  %v6514_v25 = vpop.f32.mrf.mxu0 }
 0x177   : > { %v2267_v50 = vpop.f32.mrf.mxu1 }
 0x178   : > { %6899 = vst [vmem:[#allocation15_spill] sm:$0xff] %v6512_v31  ;;  %v6516_v38 = vpop.f32.mrf.mxu0 }
 0x179   : > { %v5172_v5 = vpop.f32.mrf.mxu1 }
 0x17a   : > { %v6518_v1 = vpop.f32.mrf.mxu0 }
 0x17b   : > { %v2277_v42 = vpop.f32.mrf.mxu1 }
 0x17c   : > { %v6520_v49 = vpop.f32.mrf.mxu0 }
 0x17d   : > { %v5175_v32 = vpop.f32.mrf.mxu1 }
 0x17e   : > { %v6522_v45 = vpop.f32.mrf.mxu0 }
 0x17f   : > { %v2287_v60 = vpop.f32.mrf.mxu1 }
 0x180   : > { %v6524_v30 = vpop.f32.mrf.mxu0 }
 0x181   : > { %v5178_v52 = vpop.f32.mrf.mxu1 }
 0x182   : > { %v6526_v20 = vpop.f32.mrf.mxu0 }
 0x183   : > { %v2297_v53 = vpop.f32.mrf.mxu1 }
 0x184   : > { %v6528_v6 = vpop.f32.mrf.mxu0 }
 0x185   : > { %v5181_v39 = vpop.f32.mrf.mxu1 }
 0x186   : > { %v6530_v40 = vpop.f32.mrf.mxu0 }
 0x187   : > { %v2307_v37 = vpop.f32.mrf.mxu1 }
 0x188   : > { %v6534_v51 = vpop.f32.mrf.mxu0 }
 0x189   : > { %v6532_v28 = vpop.f32.mrf.mxu1 }
 0x18a   : > { %v6538_v18 = vpop.f32.mrf.mxu0 }
 0x18b   : > { %v6536_v47 = vpop.f32.mrf.mxu1 }
 0x18c   : > { %v6542_v14 = vpop.f32.mrf.mxu0 }
 0x18d   : > { %v6540_v41 = vpop.f32.mrf.mxu1 }
 0x18e   : > { %v6546_v58 = vpop.f32.mrf.mxu0 }
 0x18f   : > { %v6544_v4 = vpop.f32.mrf.mxu1 }
 0x190   : > { %v6548_v35 = vpop.f32.mrf.mxu0 }
 0x191   : > { %v5190_v44 = vpop.f32.mrf.mxu1 }
 0x192   : > { %v6552_v34 = vpop.f32.mrf.mxu0 }
 0x193   : > { %v6550_v62 = vpop.f32.mrf.mxu1 }
 0x194   : > { %v6556_v46 = vpop.f32.mrf.mxu0 }
 0x195   : > { %v6554_v31 = vpop.f32.mrf.mxu1 }
 0x196   : > { %v6560_v61 = vpop.f32.mrf.mxu0 }
 0x197   : > { %v6558_v7 = vpop.f32.mrf.mxu1  ;;  %6900 = vst [vmem:[#allocation16_spill] sm:$0xff] %v6560_v61 }
 0x198   : > { %v6564_v22 = vpop.f32.mrf.mxu0 }
 0x199   : > { %v6562_v48 = vpop.f32.mrf.mxu1  ;;  %6902 = vst [vmem:[#allocation18_spill] sm:$0xff] %v6564_v22 }
 0x19a   : > { %6901 = vst [vmem:[#allocation17_spill] sm:$0xff] %v6562_v48  ;;  %v6568_v57 = vpop.f32.mrf.mxu0 }
 0x19b   : > { %v6566_v17 = vpop.f32.mrf.mxu1  ;;  %6904 = vst [vmem:[#allocation20_spill] sm:$0xff] %v6568_v57 }
 0x19c   : > { %6903 = vst [vmem:[#allocation19_spill] sm:$0xff] %v6566_v17  ;;  %v6572_v11 = vpop.f32.mrf.mxu0 }
 0x19d   : > { %v6570_v55 = vpop.f32.mrf.mxu1  ;;  %6906 = vst [vmem:[#allocation22_spill] sm:$0xff] %v6572_v11 }
 0x19e   : > { %6905 = vst [vmem:[#allocation21_spill] sm:$0xff] %v6570_v55  ;;  %v6576_v54 = vpop.f32.mrf.mxu0 }
 0x19f   : > { %v6574_v26 = vpop.f32.mrf.mxu1  ;;  %6908 = vst [vmem:[#allocation24_spill] sm:$0xff] %v6576_v54 }
 0x1a0   : > { %6907 = vst [vmem:[#allocation23_spill] sm:$0xff] %v6574_v26  ;;  %v6580_v59 = vpop.f32.mrf.mxu0 }
 0x1a1   : > { %v6578_v16 = vpop.f32.mrf.mxu1  ;;  %6910 = vst [vmem:[#allocation26_spill] sm:$0xff] %v6580_v59 }
 0x1a2   : > { %6909 = vst [vmem:[#allocation25_spill] sm:$0xff] %v6578_v16  ;;  %v6584_v22 = vpop.f32.mrf.mxu0 }
 0x1a3   : > { %v6582_v61 = vpop.f32.mrf.mxu1  ;;  %6912 = vst [vmem:[#allocation28_spill] sm:$0xff] %v6584_v22 }
 0x1a4   : > { %6911 = vst [vmem:[#allocation27_spill] sm:$0xff] %v6582_v61  ;;  %v6588_v57 = vpop.f32.mrf.mxu0 }
 0x1a5   : > { %v6586_v17 = vpop.f32.mrf.mxu1 }
 0x1a6   : > { %6913 = vst [vmem:[#allocation29_spill] sm:$0xff] %v6586_v17  ;;  %v6592_v11 = vpop.f32.mrf.mxu0 }
 0x1a7   : > { %v6590_v55 = vpop.f32.mrf.mxu1  ;;  %6915 = vst [vmem:[#allocation31_spill] sm:$0xff] %v6592_v11  ;;  %v2426_v11 = vadd.f32 %v2267_v50, %v6420_v24  ;;  %v2434_v50 = vadd.f32 %v2307_v37, %v6444_v12  ;;  %v2441_v12 = vadd.f32 %v5190_v44, %v6459_v27 }
 0x1a8   : > { %6914 = vst [vmem:[#allocation30_spill] sm:$0xff] %v6590_v55  ;;  %v6596_v54 = vpop.f32.mrf.mxu0  ;;  %v2427_v55 = vadd.f32 %v5169_v23, %v6417_v9  ;;  %v2435_v23 = vadd.f32 %v5181_v39, %v6441_v21  ;;  %v2438_v21 = vadd.f32 %v6544_v4, %v6456_v13 }
 0x1a9   : > { %v6594_v26 = vpop.f32.mrf.mxu1  ;;  %6917 = vst [vmem:[#allocation33_spill] sm:$0xff] %v6596_v54  ;;  %v2428_v54 = vadd.f32 %v2277_v42, %v6426_v43  ;;  %v2818_v24 = vadd.f32 %v6514_v25, %v2426_v11  ;;  %v2432_v43 = vadd.f32 %v2297_v53, %v6438_v8  ;;  %v2436_v8 = vadd.f32 %v6536_v47, %v6450_v36 }
 0x1aa   : > { %6916 = vst [vmem:[#allocation32_spill] sm:$0xff] %v6594_v26  ;;  %v6600_v59 = vpop.f32.mrf.mxu0  ;;  %v2429_v26 = vadd.f32 %v5172_v5, %v6423_v63  ;;  %v2819_v9 = vadd.f32 %v6510_v29, %v2427_v55  ;;  %v2433_v63 = vadd.f32 %v5178_v52, %v6435_v0  ;;  %v2437_v0 = vadd.f32 %v6532_v28, %v6447_v33  ;;  %v6655_v33 = vld [vmem:[%s6884_s2] ss:$0 sm:$0xff] }
 0x1ab   : > { %v6598_v16 = vpop.f32.mrf.mxu1  ;;  %6919 = vst [vmem:[#allocation35_spill] sm:$0xff] %v6600_v59  ;;  %v6662_v27 = vadd.f32 %v6528_v6, %v2435_v23  ;;  %v6665_v29 = vadd.f32 %v6530_v40, %v2434_v50  ;;  %v2440_v25 = vadd.f32 %v6550_v62, %v6462_v2  ;;  %v6676_v53 = vadd.f32 %v6538_v18, %v2436_v8  ;;  %v6928_v8 = vld [vmem:[#allocation3_spill] sm:$0xff] }
 0x1ac   : > { %6918 = vst [vmem:[#allocation34_spill] sm:$0xff] %v6598_v16  ;;  %v6604_v48 = vpop.f32.mrf.mxu0  ;;  %v2825_v36 = vadd.f32 %v6524_v30, %v2433_v63  ;;  %v6682_v2 = vadd.f32 %v6546_v58, %v2438_v21  ;;  %v2442_v47 = vadd.f32 %v6558_v7, %v6468_v19 }
 0x1ad   : > { %v6602_v61 = vpop.f32.mrf.mxu1  ;;  %6921 = vst [vmem:[#allocation37_spill] sm:$0xff] %v6604_v48  ;;  %v2430_v48 = vadd.f32 %v2287_v60, %v6432_v15  ;;  %v2820_v15 = vadd.f32 %v6518_v1, %v2428_v54  ;;  %v2439_v54 = vadd.f32 %v6540_v41, %v6453_v56  ;;  %v6672_v60 = vadd.f32 %v6534_v51, %v2437_v0 }
 0x1ae   : > { %6920 = vst [vmem:[#allocation36_spill] sm:$0xff] %v6602_v61  ;;  %v6608_v17 = vpop.f32.mrf.mxu0  ;;  %v2431_v61 = vadd.f32 %v5175_v32, %v6429_v10  ;;  %v2821_v10 = vadd.f32 %v6516_v38, %v2429_v26  ;;  %v2443_v38 = vadd.f32 %v6554_v31, %v6465_v3  ;;  %v6685_v3 = vadd.f32 %v6548_v35, %v2441_v12  ;;  %v6925_v35 = vld [vmem:[#allocation2_spill] sm:$0xff] }
 0x1af   : > { %v6606_v22 = vpop.f32.mrf.mxu1  ;;  %6923 = vst [vmem:[#allocation39_spill] sm:$0xff] %v6608_v17  ;;  %v2822_v55 = vadd.f32 %v6522_v45, %v2430_v48  ;;  %v6690_v28 = vadd.f32 %v6552_v34, %v2440_v25 }
 0x1b0   : > { %6922 = vst [vmem:[#allocation38_spill] sm:$0xff] %v6606_v22  ;;  %v6617_v59 = vpop.f32.mrf.mxu0  ;;  %v2823_v32 = vadd.f32 %v6520_v49, %v2431_v61  ;;  %v6659_v61 = vadd.f32 %v6526_v20, %v2432_v43  ;;  %v6679_v20 = vadd.f32 %v6542_v14, %v2439_v54  ;;  %v6693_v51 = vadd.f32 %v6556_v46, %v2443_v38  ;;  %v6926_v46 = vld [vmem:[#allocation17_spill] sm:$0xff]  ;;  %v6930_v38 = vld [vmem:[#allocation18_spill] sm:$0xff] }
 0x1b1   : > { %v6615_v16 = vpop.f32.mrf.mxu1  ;;  %v2445_v62 = vadd.f32 %v6926_v46, %v6925_v35 }
 0x1b2   : > { %v6623_v17 = vpop.f32.mrf.mxu0 }
 0x1b3   : > { %v6621_v22 = vpop.f32.mrf.mxu1 }
 0x1b4   : > { %v5325_v42 = vpop.f32.mrf.mxu0 }
 0x1b5   : > { %v5273_v5 = vpop.f32.mrf.mxu1 }
 0x1b6   : > { %v3211_v11 = vadd.f32 %v5273_v5, %v2819_v9  ;;  %v3442_v48 = vpop.f32.mrf.mxu0 }
 0x1b7   : > { %v3051_v26 = vpop.f32.mrf.mxu1 }
 0x1b8   : > { %v3602_v56 = vadd.f32 %v5325_v42, %v3211_v11  ;;  %v3210_v13 = vadd.f32 %v3051_v26, %v2818_v24  ;;  %v5328_v49 = vpop.f32.mrf.mxu0 }
 0x1b9   : > { %v5276_v1 = vpop.f32.mrf.mxu1 }
 0x1ba   : > { %v3641_v45 = vadd.f32 %v6655_v33, %v3602_v56  ;;  %v3601_v52 = vadd.f32 %v3442_v48, %v3210_v13  ;;  %v3213_v30 = vadd.f32 %v5276_v1, %v2821_v10  ;;  %v3452_v39 = vpop.f32.mrf.mxu0  ;;  %v6717_v1 = vadd.f32 %v6930_v38, %v2445_v62  ;;  %v6940_v38 = vld [vmem:[#allocation27_spill] sm:$0xff] }
 0x1bb   : > { %v3061_v31 = vpop.f32.mrf.mxu1 }
 0x1bc   : > { %vm3673_vm3 = vcmp.ge.f32.partialorder %v3641_v45, 0.0  ;;  %v3705_v6 = vmul.f32 0.2, %v3641_v45  ;;  %v3640_v37 = vadd.f32 %v6655_v33, %v3601_v52  ;;  %v3604_v40 = vadd.f32 %v5328_v49, %v3213_v30  ;;  %v5331_v14 = vpop.f32.mrf.mxu0  ;;  %v6931_v30 = vld [vmem:[#allocation4_spill] sm:$0xff] }
 0x1bd   : > { %v3212_v18 = vadd.f32 %v3061_v31, %v2820_v15  ;;  %v5279_v41 = vpop.f32.mrf.mxu1  ;;  %v6927_v15 = vld [vmem:[#allocation16_spill] sm:$0xff]  ;;  %v6932_v31 = vld [vmem:[#allocation21_spill] sm:$0xff] }
 0x1be   : > { %v3737_v4 = vsel %vm3673_vm3, %v3641_v45, %v3705_v6  ;;  %vm3672_vm4 = vcmp.ge.f32.partialorder %v3640_v37, 0.0  ;;  %v3704_v58 = vmul.f32 0.2, %v3640_v37  ;;  %v3643_v44 = vadd.f32 %v6655_v33, %v3604_v40  ;;  %v3462_v24 = vpop.f32.mrf.mxu0 }
 0x1bf   : > { %v4566_v34 = vpack.c.bf16 %v3737_v4, %v3737_v4  ;;  %v3603_v9 = vadd.f32 %v3452_v39, %v3212_v18  ;;  %v3215_v19 = vadd.f32 %v5279_v41, %v2823_v32  ;;  %v3071_v7 = vpop.f32.mrf.mxu1  ;;  %v6706_v23 = vadd.f32 %v6927_v15, %v2442_v47  ;;  %v6929_v32 = vld [vmem:[#allocation19_spill] sm:$0xff]  ;;  %v6934_v15 = vld [vmem:[#allocation22_spill] sm:$0xff] }
 0x1c0   : > { %v3736_v63 = vsel %vm3672_vm4, %v3640_v37, %v3704_v58  ;;  %vm3675_vm5 = vcmp.ge.f32.partialorder %v3643_v44, 0.0  ;;  %v3707_v43 = vmul.f32 0.2, %v3643_v44  ;;  %v3214_v10 = vadd.f32 %v3071_v7, %v2822_v55  ;;  %v5334_v11 = vpop.f32.mrf.mxu0 }
 0x1c1   : > { %3898 = vst.msk [vmem:[%s6700_s9 + $0x4] sm:$0xf] %vm3896_vm2, %v4566_v34  ;;  %v4565_v50 = vpack.c.bf16 %v3736_v63, %v3736_v63  ;;  %v3642_v5 = vadd.f32 %v6655_v33, %v3603_v9  ;;  %v3606_v42 = vadd.f32 %v5331_v14, %v3215_v19  ;;  %v5282_v0 = vpop.f32.mrf.mxu1  ;;  %v2444_v54 = vadd.f32 %v6929_v32, %v6928_v8  ;;  %v6933_v14 = vld [vmem:[#allocation20_spill] sm:$0xff] }
 0x1c2   : > { %v3739_v21 = vsel %vm3675_vm5, %v3643_v44, %v3707_v43  ;;  %v3605_v12 = vadd.f32 %v3462_v24, %v3214_v10  ;;  %v3217_v26 = vadd.f32 %v5282_v0, %v2825_v36  ;;  %v3472_v25 = vpop.f32.mrf.mxu0  ;;  %v2447_v36 = vadd.f32 %v6932_v31, %v6931_v30 }
 0x1c3   : > { %3897 = vst.msk [vmem:[%s6700_s9] sm:$0xf] %vm3896_vm2, %v4565_v50  ;;  %v4568_v55 = vpack.c.bf16 %v3739_v21, %v3739_v21  ;;  %vm3674_vm6 = vcmp.ge.f32.partialorder %v3642_v5, 0.0  ;;  %v3706_v48 = vmul.f32 0.2, %v3642_v5  ;;  %v3645_v56 = vadd.f32 %v6655_v33, %v3606_v42  ;;  %v3081_v13 = vpop.f32.mrf.mxu1  ;;  %v6935_v50 = vld [vmem:[#allocation5_spill] sm:$0xff] }
 0x1c4   : > { %v3644_v49 = vadd.f32 %v6655_v33, %v3605_v12  ;;  %v3608_v45 = vadd.f32 %v5334_v11, %v3217_v26  ;;  %v3216_v52 = vadd.f32 %v3081_v13, %v6659_v61  ;;  %v5337_v40 = vpop.f32.mrf.mxu0  ;;  %v6727_v4 = vadd.f32 %v6933_v14, %v2444_v54  ;;  %v6937_v12 = vld [vmem:[#allocation6_spill] sm:$0xff]  ;;  %v6938_v26 = vld [vmem:[#allocation25_spill] sm:$0xff] }
 0x1c5   : > { %3900 = vst.msk [vmem:[%s6700_s9 + $0xc] sm:$0xf] %vm3896_vm2, %v4568_v55  ;;  %v3738_v39 = vsel %vm3674_vm6, %v3642_v5, %v3706_v48  ;;  %vm3677_vm7 = vcmp.ge.f32.partialorder %v3645_v56, 0.0  ;;  %v3709_v6 = vmul.f32 0.2, %v3645_v56  ;;  %v5285_v37 = vpop.f32.mrf.mxu1  ;;  %v6936_v5 = vld [vmem:[#allocation23_spill] sm:$0xff]  ;;  %v2449_v55 = vadd.f32 %v6938_v26, %v6937_v12 }
 0x1c6   : > { %v4567_v47 = vpack.c.bf16 %v3738_v39, %v3738_v39  ;;  %vm3676_vm8 = vcmp.ge.f32.partialorder %v3644_v49, 0.0  ;;  %v3708_v18 = vmul.f32 0.2, %v3644_v49  ;;  %v3647_v41 = vadd.f32 %v6655_v33, %v3608_v45  ;;  %v3482_v46 = vpop.f32.mrf.mxu0  ;;  %v6947_v12 = vld [vmem:[#allocation30_spill] sm:$0xff] }
 0x1c7   : > { %v3741_v61 = vsel %vm3677_vm7, %v3645_v56, %v3709_v6  ;;  %v3607_v58 = vadd.f32 %v3472_v25, %v3216_v52  ;;  %v3219_v44 = vadd.f32 %v5285_v37, %v6662_v27  ;;  %v3091_v35 = vpop.f32.mrf.mxu1  ;;  %v6735_v27 = vadd.f32 %v6934_v15, %v2447_v36  ;;  %v6939_v25 = vld [vmem:[#allocation7_spill] sm:$0xff]  ;;  %v6941_v37 = vld [vmem:[#allocation24_spill] sm:$0xff] }
 0x1c8   : > { %3899 = vst.msk [vmem:[%s6700_s9 + $0x8] sm:$0xf] %vm3896_vm2, %v4567_v47  ;;  %v4570_v62 = vpack.c.bf16 %v3741_v61, %v3741_v61  ;;  %v3740_v34 = vsel %vm3676_vm8, %v3644_v49, %v3708_v18  ;;  %vm3679_vm9 = vcmp.ge.f32.partialorder %v3647_v41, 0.0  ;;  %v3711_v9 = vmul.f32 0.2, %v3647_v41  ;;  %v5340_v10 = vpop.f32.mrf.mxu0  ;;  %v6943_v47 = vld [vmem:[#allocation29_spill] sm:$0xff] }
 0x1c9   : > { %v4569_v19 = vpack.c.bf16 %v3740_v34, %v3740_v34  ;;  %v3646_v7 = vadd.f32 %v6655_v33, %v3607_v58  ;;  %v3610_v24 = vadd.f32 %v5337_v40, %v3219_v44  ;;  %v3218_v63 = vadd.f32 %v3091_v35, %v6665_v29  ;;  %v5288_v43 = vpop.f32.mrf.mxu1 }
 0x1ca   : > { %v2446_v42 = vadd.f32 %v6936_v5, %v6935_v50  ;;  %3902 = vst.msk [vmem:[%s6700_s9 + $0x14] sm:$0xf] %vm3896_vm2, %v4570_v62  ;;  %v3743_v0 = vsel %vm3679_vm9, %v3647_v41, %v3711_v9  ;;  %v3221_v11 = vadd.f32 %v5288_v43, %v6672_v60  ;;  %v3492_v21 = vpop.f32.mrf.mxu0  ;;  %v2448_v49 = vadd.f32 %v6940_v38, %v6939_v25 }
 0x1cb   : > { %3901 = vst.msk [vmem:[%s6700_s9 + $0x10] sm:$0xf] %vm3896_vm2, %v4569_v19  ;;  %v4572_v8 = vpack.c.bf16 %v3743_v0, %v3743_v0  ;;  %vm3678_vm10 = vcmp.ge.f32.partialorder %v3646_v7, 0.0  ;;  %v3710_v32 = vmul.f32 0.2, %v3646_v7  ;;  %v3649_v29 = vadd.f32 %v6655_v33, %v3610_v24  ;;  %v3101_v54 = vpop.f32.mrf.mxu1  ;;  %v6944_v24 = vld [vmem:[#allocation26_spill] sm:$0xff] }
 0x1cc   : > { %v3609_v48 = vadd.f32 %v3482_v46, %v3218_v63  ;;  %v3612_v56 = vadd.f32 %v5340_v10, %v3221_v11  ;;  %v3220_v13 = vadd.f32 %v3101_v54, %v6676_v53  ;;  %v5343_v30 = vpop.f32.mrf.mxu0  ;;  %v6755_v40 = vadd.f32 %v6941_v37, %v2446_v42  ;;  %v6942_v53 = vld [vmem:[#allocation8_spill] sm:$0xff] }
 0x1cd   : > { %3904 = vst.msk [vmem:[%s6700_s9 + $0x1c] sm:$0xf] %vm3896_vm2, %v4572_v8  ;;  %v3742_v60 = vsel %vm3678_vm10, %v3646_v7, %v3710_v32  ;;  %vm3681_vm11 = vcmp.ge.f32.partialorder %v3649_v29, 0.0  ;;  %v3713_v45 = vmul.f32 0.2, %v3649_v29  ;;  %v5291_v52 = vpop.f32.mrf.mxu1  ;;  %v2451_v18 = vadd.f32 %v6943_v47, %v6942_v53 }
 0x1ce   : > { %v4571_v31 = vpack.c.bf16 %v3742_v60, %v3742_v60  ;;  %v3648_v36 = vadd.f32 %v6655_v33, %v3609_v48  ;;  %v3651_v39 = vadd.f32 %v6655_v33, %v3612_v56  ;;  %v3611_v6 = vadd.f32 %v3492_v21, %v3220_v13  ;;  %v3502_v58 = vpop.f32.mrf.mxu0  ;;  %v6946_v21 = vld [vmem:[#allocation9_spill] sm:$0xff] }
 0x1cf   : > { %v3745_v41 = vsel %vm3681_vm11, %v3649_v29, %v3713_v45  ;;  %v3223_v14 = vadd.f32 %v5291_v52, %v6679_v20  ;;  %v3111_v61 = vpop.f32.mrf.mxu1  ;;  %v6765_v63 = vadd.f32 %v6944_v24, %v2449_v55  ;;  %v6945_v20 = vld [vmem:[#allocation28_spill] sm:$0xff]  ;;  %v6775_v54 = vadd.f32 %v6588_v57, %v2451_v18  ;;  %v6948_v57 = vld [vmem:[#allocation10_spill] sm:$0xff]  ;;  %v6950_v24 = vld [vmem:[#allocation11_spill] sm:$0xff] }
 0x1d0   : > { %3903 = vst.msk [vmem:[%s6700_s9 + $0x18] sm:$0xf] %vm3896_vm2, %v4571_v31  ;;  %v4574_v44 = vpack.c.bf16 %v3745_v41, %v3745_v41  ;;  %vm3680_vm12 = vcmp.ge.f32.partialorder %v3648_v36, 0.0  ;;  %v3712_v35 = vmul.f32 0.2, %v3648_v36  ;;  %vm3683_vm13 = vcmp.ge.f32.partialorder %v3651_v39, 0.0  ;;  %v5346_v7 = vpop.f32.mrf.mxu0 }
 0x1d1   : > { %v3715_v46 = vmul.f32 0.2, %v3651_v39  ;;  %v3650_v62 = vadd.f32 %v6655_v33, %v3611_v6  ;;  %v3614_v34 = vadd.f32 %v5343_v30, %v3223_v14  ;;  %v3222_v9 = vadd.f32 %v3111_v61, %v6682_v2  ;;  %v5294_v19 = vpop.f32.mrf.mxu1 }
 0x1d2   : > { %v6768_v43 = vadd.f32 %v6945_v20, %v2448_v49  ;;  %3906 = vst.msk [vmem:[%s6700_s9 + $0x24] sm:$0xf] %vm3896_vm2, %v4574_v44  ;;  %v3744_v10 = vsel %vm3680_vm12, %v3648_v36, %v3712_v35  ;;  %v3225_v15 = vadd.f32 %v5294_v19, %v6685_v3  ;;  %v3512_v0 = vpop.f32.mrf.mxu0  ;;  %v2450_v26 = vadd.f32 %v6947_v12, %v6946_v21  ;;  %v6949_v49 = vld [vmem:[#allocation32_spill] sm:$0xff]  ;;  %v6951_v20 = vld [vmem:[#allocation34_spill] sm:$0xff] }
 0x1d3   : > { %v4573_v50 = vpack.c.bf16 %v3744_v10, %v3744_v10  ;;  %v3747_v5 = vsel %vm3683_vm13, %v3651_v39, %v3715_v46  ;;  %vm3682_vm14 = vcmp.ge.f32.partialorder %v3650_v62, 0.0  ;;  %v3714_v42 = vmul.f32 0.2, %v3650_v62  ;;  %v3121_v2 = vpop.f32.mrf.mxu1 }
 0x1d4   : > { %v4576_v11 = vpack.c.bf16 %v3747_v5, %v3747_v5  ;;  %v3653_v8 = vadd.f32 %v6655_v33, %v3614_v34  ;;  %v3613_v32 = vadd.f32 %v3502_v58, %v3222_v9  ;;  %v3616_v29 = vadd.f32 %v5346_v7, %v3225_v15  ;;  %v5349_v56 = vpop.f32.mrf.mxu0  ;;  %v6952_v15 = vld [vmem:[#allocation12_spill] sm:$0xff] }
 0x1d5   : > { %3905 = vst.msk [vmem:[%s6700_s9 + $0x20] sm:$0xf] %vm3896_vm2, %v4573_v50  ;;  %v3746_v3 = vsel %vm3682_vm14, %v3650_v62, %v3714_v42  ;;  %v3224_v55 = vadd.f32 %v3121_v2, %v6690_v28  ;;  %v5297_v48 = vpop.f32.mrf.mxu1  ;;  %v2453_v60 = vadd.f32 %v6949_v49, %v6948_v57  ;;  %v2452_v10 = vadd.f32 %v6951_v20, %v6950_v24 }
 0x1d6   : > { %3908 = vst.msk [vmem:[%s6700_s9 + $0x2c] sm:$0xf] %vm3896_vm2, %v4576_v11  ;;  %v4575_v13 = vpack.c.bf16 %v3746_v3, %v3746_v3  ;;  %vm3685_vm15 = vcmp.ge.f32.partialorder %v3653_v8, 0.0  ;;  %v3717_v25 = vmul.f32 0.2, %v3653_v8  ;;  %v3652_v38 = vadd.f32 %v6655_v33, %v3613_v32  ;;  %v3522_v36 = vpop.f32.mrf.mxu0 }
 0x1d7   : > { %v3655_v45 = vadd.f32 %v6655_v33, %v3616_v29  ;;  %v3615_v52 = vadd.f32 %v3512_v0, %v3224_v55  ;;  %v3227_v30 = vadd.f32 %v5297_v48, %v6693_v51  ;;  %v3131_v31 = vpop.f32.mrf.mxu1  ;;  %v6954_v48 = vld [vmem:[#allocation31_spill] sm:$0xff] }
 0x1d8   : > { %3907 = vst.msk [vmem:[%s6700_s9 + $0x28] sm:$0xf] %vm3896_vm2, %v4575_v13  ;;  %v3749_v28 = vsel %vm3685_vm15, %v3653_v8, %v3717_v25  ;;  %vm3684_vm0 = vcmp.ge.f32.partialorder %v3652_v38, 0.0  ;;  %v3716_v39 = vmul.f32 0.2, %v3652_v38  ;;  %v3226_v6 = vadd.f32 %v3131_v31, %v6706_v23  ;;  %v5352_v41 = vpop.f32.mrf.mxu0 }
 0x1d9   : > { %v4578_v37 = vpack.c.bf16 %v3749_v28, %v3749_v28  ;;  %vm3687_vm1 = vcmp.ge.f32.partialorder %v3655_v45, 0.0  ;;  %v3719_v53 = vmul.f32 0.2, %v3655_v45  ;;  %v3654_v47 = vadd.f32 %v6655_v33, %v3615_v52  ;;  %v5300_v18 = vpop.f32.mrf.mxu1 }
 0x1da   : > { %v3748_v14 = vsel %vm3684_vm0, %v3652_v38, %v3716_v39  ;;  %v3618_v61 = vadd.f32 %v5349_v56, %v3227_v30  ;;  %v3617_v51 = vadd.f32 %v3522_v36, %v3226_v6  ;;  %v3229_v58 = vadd.f32 %v5300_v18, %v6717_v1  ;;  %v3532_v62 = vpop.f32.mrf.mxu0  ;;  %v6953_v1 = vld [vmem:[#allocation36_spill] sm:$0xff]  ;;  %v6957_v39 = vld [vmem:[#allocation37_spill] sm:$0xff] }
 0x1db   : > { %3910 = vst.msk [vmem:[%s6700_s9 + $0x34] sm:$0xf] %vm3896_vm2, %v4578_v37  ;;  %v4577_v44 = vpack.c.bf16 %v3748_v14, %v3748_v14  ;;  %v3751_v35 = vsel %vm3687_vm1, %v3655_v45, %v3719_v53  ;;  %vm3686_vm3 = vcmp.ge.f32.partialorder %v3654_v47, 0.0  ;;  %v3718_v23 = vmul.f32 0.2, %v3654_v47  ;;  %v3141_v46 = vpop.f32.mrf.mxu1 }
 0x1dc   : > { %v4580_v34 = vpack.c.bf16 %v3751_v35, %v3751_v35  ;;  %v3657_v9 = vadd.f32 %v6655_v33, %v3618_v61  ;;  %v3656_v19 = vadd.f32 %v6655_v33, %v3617_v51  ;;  %v3620_v7 = vadd.f32 %v5352_v41, %v3229_v58  ;;  %v5355_v0 = vpop.f32.mrf.mxu0  ;;  %v6958_v61 = vld [vmem:[#allocation13_spill] sm:$0xff]  ;;  %v6959_v51 = vld [vmem:[#allocation38_spill] sm:$0xff] }
 0x1dd   : > { %v2455_v50 = vadd.f32 %v6953_v1, %v6952_v15  ;;  %3909 = vst.msk [vmem:[%s6700_s9 + $0x30] sm:$0xf] %vm3896_vm2, %v4577_v44  ;;  %v3750_v5 = vsel %vm3686_vm3, %v3654_v47, %v3718_v23  ;;  %v3228_v42 = vadd.f32 %v3141_v46, %v6727_v4  ;;  %v5303_v2 = vpop.f32.mrf.mxu1  ;;  %v2842_v56 = vadd.f32 %v6954_v48, %v2450_v26  ;;  %v6955_v4 = vld [vmem:[#allocation33_spill] sm:$0xff] }
 0x1de   : > { %3912 = vst.msk [vmem:[%s6700_s9 + $0x3c] sm:$0xf] %vm3896_vm2, %v4580_v34  ;;  %v4579_v11 = vpack.c.bf16 %v3750_v5, %v3750_v5  ;;  %vm3689_vm4 = vcmp.ge.f32.partialorder %v3657_v9, 0.0  ;;  %v3721_v8 = vmul.f32 0.2, %v3657_v9  ;;  %vm3688_vm5 = vcmp.ge.f32.partialorder %v3656_v19, 0.0  ;;  %v3542_v55 = vpop.f32.mrf.mxu0 }
 0x1df   : > { %v3720_v32 = vmul.f32 0.2, %v3656_v19  ;;  %v3659_v29 = vadd.f32 %v6655_v33, %v3620_v7  ;;  %v3619_v21 = vadd.f32 %v3532_v62, %v3228_v42  ;;  %v3231_v12 = vadd.f32 %v5303_v2, %v6735_v27  ;;  %v3151_v3 = vpop.f32.mrf.mxu1 }
 0x1e0   : > { %v6811_v13 = vadd.f32 %v6955_v4, %v2453_v60  ;;  %3911 = vst.msk [vmem:[%s6700_s9 + $0x38] sm:$0xf] %vm3896_vm2, %v4579_v11  ;;  %v3753_v25 = vsel %vm3689_vm4, %v3657_v9, %v3721_v8  ;;  %v3230_v38 = vadd.f32 %v3151_v3, %v6755_v40  ;;  %v5358_v27 = vpop.f32.mrf.mxu0  ;;  %v6956_v60 = vld [vmem:[#allocation35_spill] sm:$0xff]  ;;  %v6819_v6 = vadd.f32 %v6957_v39, %v2455_v50 }
 0x1e1   : > { %v4582_v57 = vpack.c.bf16 %v3753_v25, %v3753_v25  ;;  %v3752_v49 = vsel %vm3688_vm5, %v3656_v19, %v3720_v32  ;;  %vm3691_vm6 = vcmp.ge.f32.partialorder %v3659_v29, 0.0  ;;  %v3723_v45 = vmul.f32 0.2, %v3659_v29  ;;  %v5306_v52 = vpop.f32.mrf.mxu1  ;;  %v6961_v3 = vld [vmem:[#allocation15_spill] sm:$0xff] }
 0x1e2   : > { %v4581_v30 = vpack.c.bf16 %v3752_v49, %v3752_v49  ;;  %v3658_v31 = vadd.f32 %v6655_v33, %v3619_v21  ;;  %v3622_v26 = vadd.f32 %v5355_v0, %v3231_v12  ;;  %v3621_v36 = vadd.f32 %v3542_v55, %v3230_v38  ;;  %v3552_v47 = vpop.f32.mrf.mxu0  ;;  %v6960_v21 = vld [vmem:[#allocation14_spill] sm:$0xff] }
 0x1e3   : > { %v2844_v28 = vadd.f32 %v6956_v60, %v2452_v10  ;;  %3914 = vst.msk [vmem:[%s6700_s9 + $0x44] sm:$0xf] %vm3896_vm2, %v4582_v57  ;;  %v3755_v40 = vsel %vm3691_vm6, %v3659_v29, %v3723_v45  ;;  %v3233_v37 = vadd.f32 %v5306_v52, %v6765_v63  ;;  %v3161_v53 = vpop.f32.mrf.mxu1  ;;  %v2454_v58 = vadd.f32 %v6959_v51, %v6958_v61 }
 0x1e4   : > { %3913 = vst.msk [vmem:[%s6700_s9 + $0x40] sm:$0xf] %vm3896_vm2, %v4581_v30  ;;  %v4584_v18 = vpack.c.bf16 %v3755_v40, %v3755_v40  ;;  %vm3690_vm7 = vcmp.ge.f32.partialorder %v3658_v31, 0.0  ;;  %v3722_v41 = vmul.f32 0.2, %v3658_v31  ;;  %v3661_v14 = vadd.f32 %v6655_v33, %v3622_v26  ;;  %v5361_v62 = vpop.f32.mrf.mxu0  ;;  %v6962_v30 = vld [vmem:[#allocation39_spill] sm:$0xff] }
 0x1e5   : > { %v3660_v44 = vadd.f32 %v6655_v33, %v3621_v36  ;;  %v3624_v35 = vadd.f32 %v5358_v27, %v3233_v37  ;;  %v3232_v23 = vadd.f32 %v3161_v53, %v6768_v43  ;;  %v5309_v46 = vpop.f32.mrf.mxu1  ;;  %v2457_v12 = vadd.f32 %v6615_v16, %v6960_v21 }
 0x1e6   : > { %3916 = vst.msk [vmem:[%s6700_s9 + $0x4c] sm:$0xf] %vm3896_vm2, %v4584_v18  ;;  %v3754_v63 = vsel %vm3690_vm7, %v3658_v31, %v3722_v41  ;;  %vm3693_vm8 = vcmp.ge.f32.partialorder %v3661_v14, 0.0  ;;  %v3725_v34 = vmul.f32 0.2, %v3661_v14  ;;  %v3235_v9 = vadd.f32 %v5309_v46, %v6775_v54  ;;  %v3562_v10 = vpop.f32.mrf.mxu0 }
 0x1e7   : > { %v4583_v19 = vpack.c.bf16 %v3754_v63, %v3754_v63  ;;  %vm3692_vm9 = vcmp.ge.f32.partialorder %v3660_v44, 0.0  ;;  %v3724_v7 = vmul.f32 0.2, %v3660_v44  ;;  %v3663_v24 = vadd.f32 %v6655_v33, %v3624_v35  ;;  %v3171_v20 = vpop.f32.mrf.mxu1 }
 0x1e8   : > { %v3757_v15 = vsel %vm3693_vm8, %v3661_v14, %v3725_v34  ;;  %v3623_v1 = vadd.f32 %v3552_v47, %v3232_v23  ;;  %v3626_v43 = vadd.f32 %v5361_v62, %v3235_v9  ;;  %v3234_v50 = vadd.f32 %v3171_v20, %v2842_v56  ;;  %v5364_v0 = vpop.f32.mrf.mxu0 }
 0x1e9   : > { %3915 = vst.msk [vmem:[%s6700_s9 + $0x48] sm:$0xf] %vm3896_vm2, %v4583_v19  ;;  %v4586_v5 = vpack.c.bf16 %v3757_v15, %v3757_v15  ;;  %v3756_v42 = vsel %vm3692_vm9, %v3660_v44, %v3724_v7  ;;  %vm3695_vm10 = vcmp.ge.f32.partialorder %v3663_v24, 0.0  ;;  %v3727_v2 = vmul.f32 0.2, %v3663_v24  ;;  %v5312_v54 = vpop.f32.mrf.mxu1 }
 0x1ea   : > { %v4585_v11 = vpack.c.bf16 %v3756_v42, %v3756_v42  ;;  %v3662_v8 = vadd.f32 %v6655_v33, %v3623_v1  ;;  %v3665_v32 = vadd.f32 %v6655_v33, %v3626_v43  ;;  %v3625_v29 = vadd.f32 %v3562_v10, %v3234_v50  ;;  %v3572_v25 = vpop.f32.mrf.mxu0 }
 0x1eb   : > { %v2456_v55 = vadd.f32 %v6621_v22, %v6961_v3  ;;  %3918 = vst.msk [vmem:[%s6700_s9 + $0x54] sm:$0xf] %vm3896_vm2, %v4586_v5  ;;  %v3759_v48 = vsel %vm3695_vm10, %v3663_v24, %v3727_v2  ;;  %v3237_v56 = vadd.f32 %v5312_v54, %v6811_v13  ;;  %v3181_v4 = vpop.f32.mrf.mxu1  ;;  %v2846_v31 = vadd.f32 %v6962_v30, %v2454_v58 }
 0x1ec   : > { %3917 = vst.msk [vmem:[%s6700_s9 + $0x50] sm:$0xf] %vm3896_vm2, %v4585_v11  ;;  %v4588_v38 = vpack.c.bf16 %v3759_v48, %v3759_v48  ;;  %vm3694_vm11 = vcmp.ge.f32.partialorder %v3662_v8, 0.0  ;;  %v3726_v57 = vmul.f32 0.2, %v3662_v8  ;;  %vm3697_vm12 = vcmp.ge.f32.partialorder %v3665_v32, 0.0  ;;  %v5367_v27 = vpop.f32.mrf.mxu0 }
 0x1ed   : > { %v3729_v49 = vmul.f32 0.2, %v3665_v32  ;;  %v3664_v16 = vadd.f32 %v6655_v33, %v3625_v29  ;;  %v3628_v45 = vadd.f32 %v5364_v0, %v3237_v56  ;;  %v3236_v52 = vadd.f32 %v3181_v4, %v2844_v28  ;;  %v5315_v22 = vpop.f32.mrf.mxu1 }
 0x1ee   : > { %3920 = vst.msk [vmem:[%s6700_s9 + $0x5c] sm:$0xf] %vm3896_vm2, %v4588_v38  ;;  %v3758_v13 = vsel %vm3694_vm11, %v3662_v8, %v3726_v57  ;;  %v3239_v26 = vadd.f32 %v5315_v22, %v6819_v6  ;;  %v3582_v37 = vpop.f32.mrf.mxu0  ;;  %v2849_v41 = vadd.f32 %v6617_v59, %v2457_v12  ;;  %v2848_v14 = vadd.f32 %v6623_v17, %v2456_v55 }
 0x1ef   : > { %v4587_v36 = vpack.c.bf16 %v3758_v13, %v3758_v13  ;;  %v3761_v60 = vsel %vm3697_vm12, %v3665_v32, %v3729_v49  ;;  %vm3696_vm13 = vcmp.ge.f32.partialorder %v3664_v16, 0.0  ;;  %v3728_v39 = vmul.f32 0.2, %v3664_v16  ;;  %v3191_v40 = vpop.f32.mrf.mxu1 }
 0x1f0   : > { %v4590_v53 = vpack.c.bf16 %v3761_v60, %v3761_v60  ;;  %v3667_v28 = vadd.f32 %v6655_v33, %v3628_v45  ;;  %v3627_v47 = vadd.f32 %v3572_v25, %v3236_v52  ;;  %v3630_v18 = vadd.f32 %v5367_v27, %v3239_v26  ;;  %v5370_v58 = vpop.f32.mrf.mxu0 }
 0x1f1   : > { %3919 = vst.msk [vmem:[%s6700_s9 + $0x58] sm:$0xf] %vm3896_vm2, %v4587_v36  ;;  %v3760_v6 = vsel %vm3696_vm13, %v3664_v16, %v3728_v39  ;;  %v3238_v61 = vadd.f32 %v3191_v40, %v2846_v31  ;;  %v5318_v51 = vpop.f32.mrf.mxu1 }
 0x1f2   : > { %3922 = vst.msk [vmem:[%s6700_s9 + $0x64] sm:$0xf] %vm3896_vm2, %v4590_v53  ;;  %v4589_v44 = vpack.c.bf16 %v3760_v6, %v3760_v6  ;;  %vm3699_vm14 = vcmp.ge.f32.partialorder %v3667_v28, 0.0  ;;  %v3731_v35 = vmul.f32 0.2, %v3667_v28  ;;  %v3666_v23 = vadd.f32 %v6655_v33, %v3627_v47  ;;  %v3592_v20 = vpop.f32.mrf.mxu0 }
 0x1f3   : > { %v3669_v46 = vadd.f32 %v6655_v33, %v3630_v18  ;;  %v3629_v62 = vadd.f32 %v3582_v37, %v3238_v61  ;;  %v3241_v59 = vadd.f32 %v5318_v51, %v2849_v41  ;;  %v3201_v63 = vpop.f32.mrf.mxu1 }
 0x1f4   : > { %3921 = vst.msk [vmem:[%s6700_s9 + $0x60] sm:$0xf] %vm3896_vm2, %v4589_v44  ;;  %v3763_v17 = vsel %vm3699_vm14, %v3667_v28, %v3731_v35  ;;  %vm3698_vm15 = vcmp.ge.f32.partialorder %v3666_v23, 0.0  ;;  %v3730_v34 = vmul.f32 0.2, %v3666_v23  ;;  %v3240_v9 = vadd.f32 %v3201_v63, %v2848_v14 }
 0x1f5   : > { %v4592_v19 = vpack.c.bf16 %v3763_v17, %v3763_v17  ;;  %vm3701_vm0 = vcmp.ge.f32.partialorder %v3669_v46, 0.0  ;;  %v3733_v7 = vmul.f32 0.2, %v3669_v46  ;;  %v3668_v24 = vadd.f32 %v6655_v33, %v3629_v62 }
 0x1f6   : > { %v3762_v10 = vsel %vm3698_vm15, %v3666_v23, %v3730_v34  ;;  %v3632_v15 = vadd.f32 %v5370_v58, %v3241_v59  ;;  %v3631_v1 = vadd.f32 %v3592_v20, %v3240_v9 }
 0x1f7   : > { %3924 = vst.msk [vmem:[%s6700_s9 + $0x6c] sm:$0xf] %vm3896_vm2, %v4592_v19  ;;  %v4591_v43 = vpack.c.bf16 %v3762_v10, %v3762_v10  ;;  %v3765_v50 = vsel %vm3701_vm0, %v3669_v46, %v3733_v7  ;;  %vm3700_vm1 = vcmp.ge.f32.partialorder %v3668_v24, 0.0  ;;  %v3732_v5 = vmul.f32 0.2, %v3668_v24 }
 0x1f8   : > { %v4594_v42 = vpack.c.bf16 %v3765_v50, %v3765_v50  ;;  %v3671_v2 = vadd.f32 %v6655_v33, %v3632_v15  ;;  %v3670_v54 = vadd.f32 %v6655_v33, %v3631_v1 }
 0x1f9   : > { %3923 = vst.msk [vmem:[%s6700_s9 + $0x68] sm:$0xf] %vm3896_vm2, %v4591_v43  ;;  %v3764_v0 = vsel %vm3700_vm1, %v3668_v24, %v3732_v5 }
 0x1fa   : > { %3926 = vst.msk [vmem:[%s6700_s9 + $0x74] sm:$0xf] %vm3896_vm2, %v4594_v42  ;;  %v4593_v11 = vpack.c.bf16 %v3764_v0, %v3764_v0  ;;  %vm3703_vm3 = vcmp.ge.f32.partialorder %v3671_v2, 0.0  ;;  %v3735_v8 = vmul.f32 0.2, %v3671_v2  ;;  %vm3702_vm4 = vcmp.ge.f32.partialorder %v3670_v54, 0.0 }
 0x1fb   : > { %v3734_v32 = vmul.f32 0.2, %v3670_v54 }
 0x1fc   : > { %3925 = vst.msk [vmem:[%s6700_s9 + $0x70] sm:$0xf] %vm3896_vm2, %v4593_v11  ;;  %v3767_v29 = vsel %vm3703_vm3, %v3671_v2, %v3735_v8 }
 0x1fd   : > { %v4596_v21 = vpack.c.bf16 %v3767_v29, %v3767_v29  ;;  %v3766_v12 = vsel %vm3702_vm4, %v3670_v54, %v3734_v32 }
 0x1fe   : > { %v4595_v3 = vpack.c.bf16 %v3766_v12, %v3766_v12 }
 0x1ff   : > { %3928 = vst.msk [vmem:[%s6700_s9 + $0x7c] sm:$0xf] %vm3896_vm2, %v4596_v21 }
 0x200   : > { %3927 = vst.msk [vmem:[%s6700_s9 + $0x78] sm:$0xf] %vm3896_vm2, %v4595_v3 }
 0x201 PF: > { %s13_s12 = sadd.s32 1, %s5390_s12  }
 0x202   : > { %p10_p5 = scmp.ge.s32.totalorder %s13_s12, 4  }
 0x204   :  { %12 = sbr.rel (!%p10_p5) target bundleno = 1 (0x1), region = 75 }

// kernel: discriminator_pallas.5
= control target key start
LH: loop header
LB: loop body
LE: loop exit
PB: predicated region body
PF: predicated region fallthrough
CT: control target
= control target key end

     0   :  { %s2468_s15 = smov 0   ;;  %s2956_s0 = inlined_call_operand.vmem [shape: f32[2,4,9,9,64], index: 0, kind: input, shape index: {}]   ;;  %s2957_s1 = inlined_call_operand.vmem [shape: f32[9,64,128], index: 1, kind: input, shape index: {}]   ;;  %s2958_s2 = inlined_call_operand.vmem [shape: bf16[128,128], index: 2, kind: output, shape index: {0}]   ;;  %s2959_s3 = inlined_call_operand.vmem [shape: f32[2,1,128], index: 3, kind: output, shape index: {1}]   ;;  %s2960_s4 = inlined_call_operand.vmem [shape: f32[2,1,128], index: 4, kind: output, shape index: {2}]  }
   0x1 LB: > { %s2474_s16 = sadd.s32 4294967295, %s2441_s15   ;;  %p1777_p0 = scmp.ge.s32.totalorder %s2441_s15, 1  ;;  %s2441_s15 = sphi %s2468_s15, %s15_s15  }
   0x2   : > { %p167_p1 = scmp.lt.s32.totalorder %s2441_s15, 3 }
   0x4   : > { %p168_p2 = pnand %p1777_p0, %p167_p1 }
   0x6   : > { %171 = sbr.rel (%p168_p2) target bundleno = 353 (0x161), region = 28 }
   0xb   : > { %v1796_v0 = vld [vmem:[%s2957_s1 + $0x78] sm:$0xff]  ;;  %v1795_v2 = vld [vmem:[%s2957_s1 + $0x70] sm:$0xff]  ;;  %p199_p3 = scmp.lt.s32.totalorder %s2474_s16, 1  ;;  %v1794_v4 = vld [vmem:[%s2957_s1 + $0x68] sm:$0xff]  ;;  %vm250_vm0 = vcmask 523264  }
   0xc   : > { %v231_v1 = vld [vmem:[%s2957_s1 + $0x38] sm:$0xff]  ;;  %2158 = vmatprep.subr.mxu0 %v1796_v0  ;;  %v230_v3 = vld [vmem:[%s2957_s1 + $0x30] sm:$0xff]  ;;  %v229_v5 = vld [vmem:[%s2957_s1 + $0x28] sm:$0xff] }
   0xd   : > { %2186 = vmatprep.subr.mxu1 %v231_v1  ;;  %2159 = vmatpush3.msra.mxu0 %v1796_v0  ;;  %s2498_s29 = scalar_select %p199_p3, %s2474_s16, 1  ;;  %v1793_v6 = vld [vmem:[%s2957_s1 + $0x60] sm:$0xff]  ;;  %v1792_v8 = vld [vmem:[%s2957_s1 + $0x58] sm:$0xff]  ;;  %v1791_v10 = vld [vmem:[%s2957_s1 + $0x50] sm:$0xff] }
   0xe   : > { %2187 = vmatpush3.msra.mxu1 %v231_v1  ;;  %2160 = vmatprep.subr.mxu0 %v1795_v2  ;;  %v228_v7 = vld [vmem:[%s2957_s1 + $0x20] sm:$0xff]  ;;  %v227_v9 = vld [vmem:[%s2957_s1 + $0x18] sm:$0xff]  ;;  %v226_v11 = vld [vmem:[%s2957_s1 + $0x10] sm:$0xff] }
   0xf   : > { %2188 = vmatprep.subr.mxu1 %v230_v3  ;;  %2161 = vmatpush3.msra.mxu0 %v1795_v2  ;;  %s2426_s12 = smul.u32 576, %s2498_s29  ;;  %v1790_v12 = vld [vmem:[%s2957_s1 + $0x48] sm:$0xff]  ;;  %v1789_v14 = vld [vmem:[%s2957_s1 + $0x40] sm:$0xff]  ;;  %v1820_v20 = vld [vmem:[%s2957_s1 + $0xb8] sm:$0xff]  ;;  %s212_s13 = scalar_lea.vmem %s2959_s3, %s2498_s29 }
  0x10   : > { %2189 = vmatpush3.msra.mxu1 %v230_v3  ;;  %2162 = vmatprep.subr.mxu0 %v1794_v4  ;;  %v225_v13 = vld [vmem:[%s2957_s1 + $0x8] sm:$0xff]  ;;  %v224_v15 = vld [vmem:[%s2957_s1] sm:$0xff]  ;;  %v1844_v21 = vld [vmem:[%s2957_s1 + $0xf8] sm:$0xff]  ;;  %s215_s18 = scalar_lea.vmem %s2960_s4, %s2498_s29 }
  0x11   : > { %2190 = vmatprep.subr.mxu1 %v229_v5  ;;  %2163 = vmatpush3.msra.mxu0 %v1794_v4  ;;  %s2528_s25 = scalar_lea.vmem %s2956_s0, %s2426_s12  ;;  %v1819_v22 = vld [vmem:[%s2957_s1 + $0xb0] sm:$0xff]  ;;  %v1818_v28 = vld [vmem:[%s2957_s1 + $0xa8] sm:$0xff]  ;;  %v1817_v30 = vld [vmem:[%s2957_s1 + $0xa0] sm:$0xff] }
  0x12   : > { %2191 = vmatpush3.msra.mxu1 %v229_v5  ;;  %2164 = vmatprep.subr.mxu0 %v1793_v6  ;;  %v1781_v16 = vld [vmem:[%s2528_s25 + $0x90] sm:$0xff]  ;;  %v216_v17 = vld [vmem:[%s2528_s25] sm:$0xff]  ;;  %v1842_v29 = vld [vmem:[%s2957_s1 + $0xe8] sm:$0xff] }
  0x13   : > { %2192 = vmatprep.subr.mxu1 %v228_v7  ;;  %2165 = vmatpush3.msra.mxu0 %v1793_v6  ;;  %v2539_v18 = vld [vmem:[%s2528_s25 + $0xa0] sm:$0xff]  ;;  %v2542_v19 = vld [vmem:[%s2528_s25 + $0x10] sm:$0xff]  ;;  %v1816_v36 = vld [vmem:[%s2957_s1 + $0x98] sm:$0xff] }
  0x14   : > { %2193 = vmatpush3.msra.mxu1 %v228_v7  ;;  %2166 = vmatprep.subr.mxu0 %v1792_v8  ;;  %v1843_v23 = vld [vmem:[%s2957_s1 + $0xf0] sm:$0xff]  ;;  %v2566_v25 = vld [vmem:[%s2528_s25 + $0x20] sm:$0xff]  ;;  %v1840_v37 = vld [vmem:[%s2957_s1 + $0xd8] sm:$0xff] }
  0x15   : > { %2194 = vmatprep.subr.mxu1 %v227_v9  ;;  %2167 = vmatpush3.msra.mxu0 %v1792_v8  ;;  %v2563_v24 = vld [vmem:[%s2528_s25 + $0xb0] sm:$0xff]  ;;  %v2569_v26 = vld [vmem:[%s2528_s25 + $0xc0] sm:$0xff]  ;;  %v1814_v44 = vld [vmem:[%s2957_s1 + $0x88] sm:$0xff] }
  0x16   : > { %2195 = vmatpush3.msra.mxu1 %v227_v9  ;;  %2168 = vmatprep.subr.mxu0 %v1791_v10  ;;  %v2572_v27 = vld [vmem:[%s2528_s25 + $0x30] sm:$0xff]  ;;  %v1841_v31 = vld [vmem:[%s2957_s1 + $0xe0] sm:$0xff]  ;;  %v1838_v45 = vld [vmem:[%s2957_s1 + $0xc8] sm:$0xff] }
  0x17   : > { %2196 = vmatprep.subr.mxu1 %v226_v11  ;;  %2169 = vmatpush3.msra.mxu0 %v1791_v10  ;;  %v2595_v32 = vld [vmem:[%s2528_s25 + $0xd0] sm:$0xff]  ;;  %v2598_v33 = vld [vmem:[%s2528_s25 + $0x40] sm:$0xff]  ;;  %v1868_v52 = vld [vmem:[%s2957_s1 + $0x138] sm:$0xff] }
  0x18   : > { %2197 = vmatpush3.msra.mxu1 %v226_v11  ;;  %2170 = vmatprep.subr.mxu0 %v1790_v12  ;;  %v2601_v34 = vld [vmem:[%s2528_s25 + $0xe0] sm:$0xff]  ;;  %v2604_v35 = vld [vmem:[%s2528_s25 + $0x50] sm:$0xff]  ;;  %v1892_v53 = vld [vmem:[%s2957_s1 + $0x178] sm:$0xff] }
  0x19   : > { %2198 = vmatprep.subr.mxu1 %v225_v13  ;;  %2171 = vmatpush3.msra.mxu0 %v1790_v12  ;;  %v1815_v38 = vld [vmem:[%s2957_s1 + $0x90] sm:$0xff]  ;;  %v2630_v41 = vld [vmem:[%s2528_s25 + $0x60] sm:$0xff]  ;;  %v1866_v60 = vld [vmem:[%s2957_s1 + $0x128] sm:$0xff] }
  0x1a   : > { %2199 = vmatpush3.msra.mxu1 %v225_v13  ;;  %2172 = vmatprep.subr.mxu0 %v1789_v14  ;;  %v1839_v39 = vld [vmem:[%s2957_s1 + $0xd0] sm:$0xff]  ;;  %v2633_v42 = vld [vmem:[%s2528_s25 + $0x100] sm:$0xff]  ;;  %v1890_v61 = vld [vmem:[%s2957_s1 + $0x168] sm:$0xff] }
  0x1b   : > { %2200 = vmatprep.subr.mxu1 %v224_v15  ;;  %2173 = vmatpush3.msra.mxu0 %v1789_v14  ;;  %v2627_v40 = vld [vmem:[%s2528_s25 + $0xf0] sm:$0xff]  ;;  %v1813_v46 = vld [vmem:[%s2957_s1 + $0x80] sm:$0xff]  ;;  %v1864_v4 = vld [vmem:[%s2957_s1 + $0x118] sm:$0xff] }
  0x1c   : > { %2174 = vmatprep.mubr.msk.f32.mxu0 %vm250_vm0, %v1781_v16  ;;  %2201 = vmatpush3.msra.mxu1 %v224_v15  ;;  %v2636_v43 = vld [vmem:[%s2528_s25 + $0x70] sm:$0xff]  ;;  %v1837_v47 = vld [vmem:[%s2957_s1 + $0xc0] sm:$0xff]  ;;  %v1888_v5 = vld [vmem:[%s2957_s1 + $0x158] sm:$0xff] }
  0x1d   : > { %2202 = vmatprep.mubr.msk.f32.mxu1 %vm250_vm0, %v216_v17  ;;  %2175 = vmatmul.mubr.msk.f32.vlgmr.msra.gmra.mxu0 %vm250_vm0, %v2539_v18  ;;  %v509_v48 = vld [vmem:[%s2528_s25 + $0x1] sm:$0xff]  ;;  %v2661_v50 = vld [vmem:[%s2528_s25 + $0x11] sm:$0xff] }
  0x1e   : > { %2203 = vmatmul.mubr.msk.f32.vlgmr.msra.gmra.mxu1 %vm250_vm0, %v2542_v19  ;;  %2214 = vmatprep.subr.mxu0 %v1820_v20  ;;  %v1829_v49 = vld [vmem:[%s2528_s25 + $0x120] sm:$0xff]  ;;  %v1830_v51 = vld [vmem:[%s2528_s25 + $0x130] sm:$0xff]  ;;  %v1862_v12 = vld [vmem:[%s2957_s1 + $0x108] sm:$0xff] }
  0x1f   : > { %2242 = vmatprep.subr.mxu1 %v1844_v21  ;;  %2215 = vmatpush3.msra.mxu0 %v1820_v20  ;;  %v1867_v54 = vld [vmem:[%s2957_s1 + $0x130] sm:$0xff]  ;;  %v2682_v56 = vld [vmem:[%s2528_s25 + $0x21] sm:$0xff] }
  0x20   : > { %2243 = vmatpush3.msra.mxu1 %v1844_v21  ;;  %2216 = vmatprep.subr.mxu0 %v1819_v22  ;;  %v1891_v55 = vld [vmem:[%s2957_s1 + $0x170] sm:$0xff]  ;;  %v1831_v57 = vld [vmem:[%s2528_s25 + $0x140] sm:$0xff]  ;;  %v1886_v13 = vld [vmem:[%s2957_s1 + $0x148] sm:$0xff] }
  0x21   : > { %2244 = vmatprep.subr.mxu1 %v1843_v23  ;;  %2177 = vmatprep.mubr.msk.f32.mxu0 %vm250_vm0, %v2563_v24  ;;  %v2686_v58 = vld [vmem:[%s2528_s25 + $0x31] sm:$0xff]  ;;  %v1865_v62 = vld [vmem:[%s2957_s1 + $0x120] sm:$0xff] }
  0x22   : > { %2205 = vmatprep.mubr.msk.f32.mxu1 %vm250_vm0, %v2566_v25  ;;  %2217 = vmatpush3.msra.mxu0 %v1819_v22  ;;  %v1832_v59 = vld [vmem:[%s2528_s25 + $0x150] sm:$0xff]  ;;  %v1889_v63 = vld [vmem:[%s2957_s1 + $0x160] sm:$0xff]  ;;  %v1916_v22 = vld [vmem:[%s2957_s1 + $0x1b8] sm:$0xff] }
  0x23   : > { %2245 = vmatpush3.msra.mxu1 %v1843_v23  ;;  %2178 = vmatmul.mubr.msk.f32.gmra.mxu0 %vm250_vm0, %v2569_v26  ;;  %v2708_v0 = vld [vmem:[%s2528_s25 + $0x41] sm:$0xff]  ;;  %v2712_v2 = vld [vmem:[%s2528_s25 + $0x51] sm:$0xff] }
  0x24   : > { %2206 = vmatmul.mubr.msk.f32.gmra.mxu1 %vm250_vm0, %v2572_v27  ;;  %2218 = vmatprep.subr.mxu0 %v1818_v28  ;;  %v1833_v1 = vld [vmem:[%s2528_s25 + $0x160] sm:$0xff]  ;;  %v1834_v3 = vld [vmem:[%s2528_s25 + $0x170] sm:$0xff]  ;;  %v1940_v23 = vld [vmem:[%s2957_s1 + $0x1f8] sm:$0xff] }
  0x25   : > { %2246 = vmatprep.subr.mxu1 %v1842_v29  ;;  %2219 = vmatpush3.msra.mxu0 %v1818_v28  ;;  %v1863_v6 = vld [vmem:[%s2957_s1 + $0x110] sm:$0xff]  ;;  %v2734_v8 = vld [vmem:[%s2528_s25 + $0x61] sm:$0xff] }
  0x26   : > { %2247 = vmatpush3.msra.mxu1 %v1842_v29  ;;  %2220 = vmatprep.subr.mxu0 %v1817_v30  ;;  %v1887_v7 = vld [vmem:[%s2957_s1 + $0x150] sm:$0xff]  ;;  %v1835_v9 = vld [vmem:[%s2528_s25 + $0x180] sm:$0xff] }
  0x27   : > { %2248 = vmatprep.subr.mxu1 %v1841_v31  ;;  %2180 = vmatprep.mubr.msk.f32.mxu0 %vm250_vm0, %v2595_v32  ;;  %v2738_v10 = vld [vmem:[%s2528_s25 + $0x71] sm:$0xff]  ;;  %v1861_v14 = vld [vmem:[%s2957_s1 + $0x100] sm:$0xff] }
  0x28   : > { %2208 = vmatprep.mubr.msk.f32.mxu1 %vm250_vm0, %v2598_v33  ;;  %2221 = vmatpush3.msra.mxu0 %v1817_v30  ;;  %v1836_v11 = vld [vmem:[%s2528_s25 + $0x190] sm:$0xff]  ;;  %v1885_v15 = vld [vmem:[%s2957_s1 + $0x140] sm:$0xff] }
  0x29   : > { %2249 = vmatpush3.msra.mxu1 %v1841_v31  ;;  %2181 = vmatmul.mubr.msk.f32.gmra.mxu0 %vm250_vm0, %v2601_v34  ;;  %v1853_v16 = vld [vmem:[%s2528_s25 + $0x1b0] sm:$0xff]  ;;  %v1877_v17 = vld [vmem:[%s2528_s25 + $0x121] sm:$0xff] }
  0x2a   : > { %2209 = vmatmul.mubr.msk.f32.gmra.mxu1 %vm250_vm0, %v2604_v35  ;;  %2222 = vmatprep.subr.mxu0 %v1816_v36  ;;  %v1854_v20 = vld [vmem:[%s2528_s25 + $0x1c0] sm:$0xff]  ;;  %v1878_v21 = vld [vmem:[%s2528_s25 + $0x131] sm:$0xff] }
  0x2b   : > { %2250 = vmatprep.subr.mxu1 %v1840_v37  ;;  %2223 = vmatpush3.msra.mxu0 %v1816_v36  ;;  %v1915_v28 = vld [vmem:[%s2957_s1 + $0x1b0] sm:$0xff]  ;;  %v1879_v31 = vld [vmem:[%s2528_s25 + $0x141] sm:$0xff] }
  0x2c   : > { %2251 = vmatpush3.msra.mxu1 %v1840_v37  ;;  %2224 = vmatprep.subr.mxu0 %v1815_v38  ;;  %v1939_v29 = vld [vmem:[%s2957_s1 + $0x1f0] sm:$0xff]  ;;  %v1856_v36 = vld [vmem:[%s2528_s25 + $0x1e0] sm:$0xff] }
  0x2d   : > { %2252 = vmatprep.subr.mxu1 %v1839_v39  ;;  %2183 = vmatprep.mubr.msk.f32.mxu0 %vm250_vm0, %v2627_v40  ;;  %v1855_v30 = vld [vmem:[%s2528_s25 + $0x1d0] sm:$0xff] }
  0x2e   : > { %2211 = vmatprep.mubr.msk.f32.mxu1 %vm250_vm0, %v2630_v41  ;;  %2225 = vmatpush3.msra.mxu0 %v1815_v38  ;;  %v1880_v37 = vld [vmem:[%s2528_s25 + $0x151] sm:$0xff]  ;;  %v1914_v38 = vld [vmem:[%s2957_s1 + $0x1a8] sm:$0xff] }
  0x2f   : > { %2253 = vmatpush3.msra.mxu1 %v1839_v39  ;;  %2184 = vmatmul.mubr.msk.f32.gmra.mxu0 %vm250_vm0, %v2633_v42  ;;  %v1938_v39 = vld [vmem:[%s2957_s1 + $0x1e8] sm:$0xff] }
  0x30   : > { %2212 = vmatmul.mubr.msk.f32.gmra.mxu1 %vm250_vm0, %v2636_v43  ;;  %2226 = vmatprep.subr.mxu0 %v1814_v44 }
  0x31   : > { %2254 = vmatprep.subr.mxu1 %v1838_v45  ;;  %2227 = vmatpush3.msra.mxu0 %v1814_v44  ;;  %v1913_v44 = vld [vmem:[%s2957_s1 + $0x1a0] sm:$0xff] }
  0x32   : > { %2255 = vmatpush3.msra.mxu1 %v1838_v45  ;;  %2228 = vmatprep.subr.mxu0 %v1813_v46  ;;  %v1937_v45 = vld [vmem:[%s2957_s1 + $0x1e0] sm:$0xff] }
  0x33   : > { %2256 = vmatprep.subr.mxu1 %v1837_v47  ;;  %2229 = vmatpush3.msra.mxu0 %v1813_v46  ;;  %v1857_v46 = vld [vmem:[%s2528_s25 + $0x1f0] sm:$0xff] }
  0x34   : > { %2230 = vmatprep.mubr.msk.f32.mxu0 %vm250_vm0, %v509_v48  ;;  %2257 = vmatpush3.msra.mxu1 %v1837_v47  ;;  %v1881_v47 = vld [vmem:[%s2528_s25 + $0x161] sm:$0xff] }
  0x35   : > { %2258 = vmatprep.mubr.msk.f32.mxu1 %vm250_vm0, %v1829_v49  ;;  %2231 = vmatmul.mubr.msk.f32.vlgmr.msra.gmra.mxu0 %vm250_vm0, %v2661_v50  ;;  %v1858_v48 = vld [vmem:[%s2528_s25 + $0x200] sm:$0xff]  ;;  %v1882_v49 = vld [vmem:[%s2528_s25 + $0x171] sm:$0xff] }
  0x36   : > { %2259 = vmatmul.mubr.msk.f32.vlgmr.msra.gmra.mxu1 %vm250_vm0, %v1830_v51  ;;  %2270 = vmatprep.subr.mxu0 %v1868_v52  ;;  %v1912_v51 = vld [vmem:[%s2957_s1 + $0x198] sm:$0xff] }
  0x37   : > { %2298 = vmatprep.subr.mxu1 %v1892_v53  ;;  %2271 = vmatpush3.msra.mxu0 %v1868_v52  ;;  %v1936_v52 = vld [vmem:[%s2957_s1 + $0x1d8] sm:$0xff] }
  0x38   : > { %2299 = vmatpush3.msra.mxu1 %v1892_v53  ;;  %2272 = vmatprep.subr.mxu0 %v1867_v54  ;;  %v1911_v53 = vld [vmem:[%s2957_s1 + $0x190] sm:$0xff] }
  0x39   : > { %2300 = vmatprep.subr.mxu1 %v1891_v55  ;;  %2233 = vmatprep.mubr.msk.f32.mxu0 %vm250_vm0, %v2682_v56 }
  0x3a   : > { %2261 = vmatprep.mubr.msk.f32.mxu1 %vm250_vm0, %v1831_v57  ;;  %2273 = vmatpush3.msra.mxu0 %v1867_v54  ;;  %v1935_v54 = vld [vmem:[%s2957_s1 + $0x1d0] sm:$0xff]  ;;  %v1883_v57 = vld [vmem:[%s2528_s25 + $0x181] sm:$0xff] }
  0x3b   : > { %2301 = vmatpush3.msra.mxu1 %v1891_v55  ;;  %2234 = vmatmul.mubr.msk.f32.gmra.mxu0 %vm250_vm0, %v2686_v58  ;;  %v1859_v55 = vld [vmem:[%s2528_s25 + $0x210] sm:$0xff] }
  0x3c   : > { %2262 = vmatmul.mubr.msk.f32.gmra.mxu1 %vm250_vm0, %v1832_v59  ;;  %2274 = vmatprep.subr.mxu0 %v1866_v60  ;;  %v1860_v59 = vld [vmem:[%s2528_s25 + $0x220] sm:$0xff] }
  0x3d   : > { %2302 = vmatprep.subr.mxu1 %v1890_v61  ;;  %2275 = vmatpush3.msra.mxu0 %v1866_v60  ;;  %v1884_v60 = vld [vmem:[%s2528_s25 + $0x191] sm:$0xff] }
  0x3e   : > { %2303 = vmatpush3.msra.mxu1 %v1890_v61  ;;  %2276 = vmatprep.subr.mxu0 %v1865_v62  ;;  %v1910_v61 = vld [vmem:[%s2957_s1 + $0x188] sm:$0xff] }
  0x3f   : > { %2304 = vmatprep.subr.mxu1 %v1889_v63  ;;  %2236 = vmatprep.mubr.msk.f32.mxu0 %vm250_vm0, %v2708_v0 }
  0x40   : > { %2264 = vmatprep.mubr.msk.f32.mxu1 %vm250_vm0, %v1833_v1  ;;  %2277 = vmatpush3.msra.mxu0 %v1865_v62  ;;  %v1934_v62 = vld [vmem:[%s2957_s1 + $0x1c8] sm:$0xff]  ;;  %v1933_v1 = vld [vmem:[%s2957_s1 + $0x1c0] sm:$0xff] }
  0x41   : > { %2305 = vmatpush3.msra.mxu1 %v1889_v63  ;;  %2237 = vmatmul.mubr.msk.f32.gmra.mxu0 %vm250_vm0, %v2712_v2  ;;  %v1909_v63 = vld [vmem:[%s2957_s1 + $0x180] sm:$0xff] }
  0x42   : > { %2265 = vmatmul.mubr.msk.f32.gmra.mxu1 %vm250_vm0, %v1834_v3  ;;  %2278 = vmatprep.subr.mxu0 %v1864_v4  ;;  %v1964_v3 = vld [vmem:[%s2957_s1 + $0x238] sm:$0xff] }
  0x43   : > { %2306 = vmatprep.subr.mxu1 %v1888_v5  ;;  %2279 = vmatpush3.msra.mxu0 %v1864_v4  ;;  %v1963_v4 = vld [vmem:[%s2957_s1 + $0x230] sm:$0xff] }
  0x44   : > { %2307 = vmatpush3.msra.mxu1 %v1888_v5  ;;  %2280 = vmatprep.subr.mxu0 %v1863_v6 }
  0x45   : > { %2308 = vmatprep.subr.mxu1 %v1887_v7  ;;  %2239 = vmatprep.mubr.msk.f32.mxu0 %vm250_vm0, %v2734_v8 }
  0x46   : > { %2267 = vmatprep.mubr.msk.f32.mxu1 %vm250_vm0, %v1835_v9  ;;  %2281 = vmatpush3.msra.mxu0 %v1863_v6 }
  0x47   : > { %2309 = vmatpush3.msra.mxu1 %v1887_v7  ;;  %2240 = vmatmul.mubr.msk.f32.gmra.mxu0 %vm250_vm0, %v2738_v10 }
  0x48   : > { %2268 = vmatmul.mubr.msk.f32.gmra.mxu1 %vm250_vm0, %v1836_v11  ;;  %2282 = vmatprep.subr.mxu0 %v1862_v12 }
  0x49   : > { %2310 = vmatprep.subr.mxu1 %v1886_v13  ;;  %2283 = vmatpush3.msra.mxu0 %v1862_v12 }
  0x4a   : > { %2311 = vmatpush3.msra.mxu1 %v1886_v13  ;;  %2284 = vmatprep.subr.mxu0 %v1861_v14 }
  0x4b   : > { %2312 = vmatprep.subr.mxu1 %v1885_v15  ;;  %2285 = vmatpush3.msra.mxu0 %v1861_v14 }
  0x4c   : > { %2286 = vmatprep.mubr.msk.f32.mxu0 %vm250_vm0, %v1853_v16  ;;  %2313 = vmatpush3.msra.mxu1 %v1885_v15 }
  0x4d   : > { %2314 = vmatprep.mubr.msk.f32.mxu1 %vm250_vm0, %v1877_v17  ;;  %2287 = vmatmul.mubr.msk.f32.vlgmr.msra.gmra.mxu0 %vm250_vm0, %v1854_v20 }
  0x4e   : > { %2315 = vmatmul.mubr.msk.f32.vlgmr.msra.gmra.mxu1 %vm250_vm0, %v1878_v21  ;;  %2326 = vmatprep.subr.mxu0 %v1916_v22 }
  0x4f   : > { %2354 = vmatprep.subr.mxu1 %v1940_v23  ;;  %2327 = vmatpush3.msra.mxu0 %v1916_v22 }
  0x50   : > { %2355 = vmatpush3.msra.mxu1 %v1940_v23  ;;  %2328 = vmatprep.subr.mxu0 %v1915_v28 }
  0x51   : > { %2356 = vmatprep.subr.mxu1 %v1939_v29  ;;  %2289 = vmatprep.mubr.msk.f32.mxu0 %vm250_vm0, %v1855_v30 }
  0x52   : > { %2317 = vmatprep.mubr.msk.f32.mxu1 %vm250_vm0, %v1879_v31  ;;  %2329 = vmatpush3.msra.mxu0 %v1915_v28 }
  0x53   : > { %2357 = vmatpush3.msra.mxu1 %v1939_v29  ;;  %2290 = vmatmul.mubr.msk.f32.gmra.mxu0 %vm250_vm0, %v1856_v36 }
  0x54   : > { %2318 = vmatmul.mubr.msk.f32.gmra.mxu1 %vm250_vm0, %v1880_v37  ;;  %2330 = vmatprep.subr.mxu0 %v1914_v38 }
  0x55   : > { %2358 = vmatprep.subr.mxu1 %v1938_v39  ;;  %2331 = vmatpush3.msra.mxu0 %v1914_v38 }
  0x56   : > { %2359 = vmatpush3.msra.mxu1 %v1938_v39  ;;  %2332 = vmatprep.subr.mxu0 %v1913_v44 }
  0x57   : > { %2360 = vmatprep.subr.mxu1 %v1937_v45  ;;  %2292 = vmatprep.mubr.msk.f32.mxu0 %vm250_vm0, %v1857_v46 }
  0x58   : > { %2320 = vmatprep.mubr.msk.f32.mxu1 %vm250_vm0, %v1881_v47  ;;  %2333 = vmatpush3.msra.mxu0 %v1913_v44 }
  0x59   : > { %2361 = vmatpush3.msra.mxu1 %v1937_v45  ;;  %2293 = vmatmul.mubr.msk.f32.gmra.mxu0 %vm250_vm0, %v1858_v48 }
  0x5a   : > { %2321 = vmatmul.mubr.msk.f32.gmra.mxu1 %vm250_vm0, %v1882_v49  ;;  %2334 = vmatprep.subr.mxu0 %v1912_v51 }
  0x5b   : > { %2362 = vmatprep.subr.mxu1 %v1936_v52  ;;  %2335 = vmatpush3.msra.mxu0 %v1912_v51 }
  0x5c   : > { %2363 = vmatpush3.msra.mxu1 %v1936_v52  ;;  %2336 = vmatprep.subr.mxu0 %v1911_v53 }
  0x5d   : > { %2364 = vmatprep.subr.mxu1 %v1935_v54  ;;  %2295 = vmatprep.mubr.msk.f32.mxu0 %vm250_vm0, %v1859_v55 }
  0x5e   : > { %2323 = vmatprep.mubr.msk.f32.mxu1 %vm250_vm0, %v1883_v57  ;;  %2337 = vmatpush3.msra.mxu0 %v1911_v53 }
  0x5f   : > { %2365 = vmatpush3.msra.mxu1 %v1935_v54  ;;  %2296 = vmatmul.mubr.msk.f32.gmra.mxu0 %vm250_vm0, %v1860_v59 }
  0x60   : > { %2324 = vmatmul.mubr.msk.f32.gmra.mxu1 %vm250_vm0, %v1884_v60  ;;  %2338 = vmatprep.subr.mxu0 %v1910_v61 }
  0x61   : > { %2366 = vmatprep.subr.mxu1 %v1934_v62  ;;  %2339 = vmatpush3.msra.mxu0 %v1910_v61 }
  0x62   : > { %2367 = vmatpush3.msra.mxu1 %v1934_v62  ;;  %2340 = vmatprep.subr.mxu0 %v1909_v63 }
  0x63   : > { %2368 = vmatprep.subr.mxu1 %v1933_v1  ;;  %2341 = vmatpush3.msra.mxu0 %v1909_v63 }
  0x64   : > { %2342 = vmatprep.mubr.msk.f32.mxu0 %vm250_vm0, %v2542_v19  ;;  %2369 = vmatpush3.msra.mxu1 %v1933_v1  ;;  %v1961_v19 = vld [vmem:[%s2957_s1 + $0x220] sm:$0xff] }
  0x65   : > { %2370 = vmatprep.mubr.msk.f32.mxu1 %vm250_vm0, %v2539_v18  ;;  %2343 = vmatmul.mubr.msk.f32.vlgmr.msra.gmra.mxu0 %vm250_vm0, %v2566_v25  ;;  %v1962_v18 = vld [vmem:[%s2957_s1 + $0x228] sm:$0xff]  ;;  %v1959_v25 = vld [vmem:[%s2957_s1 + $0x210] sm:$0xff] }
  0x66   : > { %2371 = vmatmul.mubr.msk.f32.vlgmr.msra.gmra.mxu1 %vm250_vm0, %v2563_v24  ;;  %2382 = vmatprep.subr.mxu0 %v1964_v3  ;;  %v1960_v24 = vld [vmem:[%s2957_s1 + $0x218] sm:$0xff] }
  0x67   : > { %2410 = vmatprep.subr.mxu1 %v1964_v3  ;;  %2383 = vmatpush3.msra.mxu0 %v1964_v3 }
  0x68   : > { %2418 = vmatpush3.msra.mxu1 %v1964_v3  ;;  %2384 = vmatprep.subr.mxu0 %v1963_v4 }
  0x69   : > { %2411 = vmatprep.subr.mxu1 %v1963_v4  ;;  %2345 = vmatprep.mubr.msk.f32.mxu0 %vm250_vm0, %v2572_v27  ;;  %v1932_v27 = vld [vmem:[%s2528_s25 + $0x110] sm:$0xff] }
  0x6a   : > { %2373 = vmatprep.mubr.msk.f32.mxu1 %vm250_vm0, %v2569_v26  ;;  %2385 = vmatpush3.msra.mxu0 %v1963_v4  ;;  %v1908_v26 = vld [vmem:[%s2528_s25 + $0x80] sm:$0xff] }
  0x6b   : > { %2419 = vmatpush3.msra.mxu1 %v1963_v4  ;;  %2346 = vmatmul.mubr.msk.f32.gmra.mxu0 %vm250_vm0, %v2598_v33  ;;  %v1957_v33 = vld [vmem:[%s2957_s1 + $0x200] sm:$0xff] }
  0x6c   : > { %2374 = vmatmul.mubr.msk.f32.gmra.mxu1 %vm250_vm0, %v2595_v32  ;;  %2386 = vmatprep.subr.mxu0 %v1962_v18  ;;  %v1958_v32 = vld [vmem:[%s2957_s1 + $0x208] sm:$0xff] }
  0x6d   : > { %2412 = vmatprep.subr.mxu1 %v1962_v18  ;;  %2387 = vmatpush3.msra.mxu0 %v1962_v18 }
  0x6e   : > { %2420 = vmatpush3.msra.mxu1 %v1962_v18  ;;  %2388 = vmatprep.subr.mxu0 %v1961_v19 }
  0x6f   : > { %2413 = vmatprep.subr.mxu1 %v1961_v19  ;;  %2348 = vmatprep.mubr.msk.f32.mxu0 %vm250_vm0, %v2604_v35 }
  0x70   : > { %2376 = vmatprep.mubr.msk.f32.mxu1 %vm250_vm0, %v2601_v34  ;;  %2389 = vmatpush3.msra.mxu0 %v1961_v19  ;;  %v1956_v34 = vld [vmem:[%s2528_s25 + $0x81] sm:$0xff]  ;;  %s1779_s25 = sshll.u32 %s2474_s16, 3 }
  0x71   : > { %2421 = vmatpush3.msra.mxu1 %v1961_v19  ;;  %2349 = vmatmul.mubr.msk.f32.gmra.mxu0 %vm250_vm0, %v2630_v41  ;;  %p2930_p4 = scmp.lt.s32.totalorder %s1779_s25, 15 }
  0x72   : > { %2377 = vmatmul.mubr.msk.f32.gmra.mxu1 %vm250_vm0, %v2627_v40  ;;  %2390 = vmatprep.subr.mxu0 %v1960_v24 }
  0x73   : > { %2414 = vmatprep.subr.mxu1 %v1960_v24  ;;  %2391 = vmatpush3.msra.mxu0 %v1960_v24  ;;  %s2977_s25 = smov (!%p2930_p4, %s1779_s25), 15 }
  0x74   : > { %2422 = vmatpush3.msra.mxu1 %v1960_v24  ;;  %2392 = vmatprep.subr.mxu0 %v1959_v25  ;;  %s1780_s16 = sshll.u32 %s2977_s25, 2 }
  0x75   : > { %2415 = vmatprep.subr.mxu1 %v1959_v25  ;;  %2351 = vmatprep.mubr.msk.f32.mxu0 %vm250_vm0, %v2636_v43  ;;  %s208_s10 = scalar_lea.vmem %s2958_s2, %s1780_s16 }
  0x76   : > { %2379 = vmatprep.mubr.msk.f32.mxu1 %vm250_vm0, %v2633_v42  ;;  %2393 = vmatpush3.msra.mxu0 %v1959_v25 }
  0x77   : > { %2423 = vmatpush3.msra.mxu1 %v1959_v25  ;;  %2352 = vmatmul.mubr.msk.f32.gmra.mxu0 %vm250_vm0, %v1908_v26 }
  0x78   : > { %2380 = vmatmul.mubr.msk.f32.gmra.mxu1 %vm250_vm0, %v1932_v27  ;;  %2394 = vmatprep.subr.mxu0 %v1958_v32 }
  0x79   : > { %2416 = vmatprep.subr.mxu1 %v1958_v32  ;;  %2395 = vmatpush3.msra.mxu0 %v1958_v32 }
  0x7a   : > { %2424 = vmatpush3.msra.mxu1 %v1958_v32  ;;  %2396 = vmatprep.subr.mxu0 %v1957_v33 }
  0x7b   : > { %2417 = vmatprep.subr.mxu1 %v1957_v33  ;;  %2397 = vmatpush3.msra.mxu0 %v1957_v33 }
  0x7c   : > { %2425 = vmatpush3.msra.mxu1 %v1957_v33  ;;  %2398 = vmatprep.mubr.msk.f32.mxu0 %vm250_vm0, %v2661_v50 }
  0x7d   : > { %2404 = vmatprep.mubr.msk.f32.mxu1 %vm250_vm0, %v2712_v2  ;;  %2399 = vmatmul.mubr.msk.f32.vlgmr.msra.gmra.mxu0 %vm250_vm0, %v2682_v56 }
  0x7e   : > { %2405 = vmatmul.mubr.msk.f32.vlgmr.msra.gmra.mxu1 %vm250_vm0, %v2734_v8  ;;  %2401 = vmatprep.mubr.msk.f32.mxu0 %vm250_vm0, %v2686_v58 }
  0x7f   : > { %2407 = vmatprep.mubr.msk.f32.mxu1 %vm250_vm0, %v2738_v10 }
  0x81   : > { %2402 = vmatmul.mubr.msk.f32.gmra.mxu0 %vm250_vm0, %v2708_v0 }
  0x82   : > { %2408 = vmatmul.mubr.msk.f32.gmra.mxu1 %vm250_vm0, %v1956_v34 }
  0xdd   : > { %v2176_v35 = vpop.f32.mrf.mxu0 }
  0xde   : > { %v2204_v40 = vpop.f32.mrf.mxu1 }
  0xdf   : > { %v341_v41 = vpop.f32.mrf.mxu0  ;;  %v476_v1 = vadd.f32 %v2204_v40, %v2176_v35 }
  0xe0   : > { %v470_v42 = vpop.f32.mrf.mxu1 }
  0xe1   : > { %v471_v18 = vadd.f32 %v470_v42, %v341_v41 }
  0xe3   : > { %v2179_v43 = vpop.f32.mrf.mxu0 }
  0xe4   : > { %v2207_v50 = vpop.f32.mrf.mxu1 }
  0xe5   : > { %v351_v56 = vpop.f32.mrf.mxu0  ;;  %v486_v34 = vadd.f32 %v2207_v50, %v2179_v43 }
  0xe6   : > { %v480_v2 = vpop.f32.mrf.mxu1 }
  0xe9   : > { %v2182_v5 = vpop.f32.mrf.mxu0 }
  0xea   : > { %v2210_v6 = vpop.f32.mrf.mxu1 }
  0xeb   : > { %v361_v58 = vpop.f32.mrf.mxu0  ;;  %v496_v24 = vadd.f32 %v2210_v6, %v2182_v5 }
  0xec   : > { %v490_v7 = vpop.f32.mrf.mxu1 }
  0xed   : > { %v491_v19 = vadd.f32 %v490_v7, %v361_v58 }
  0xef   : > { %v2185_v8 = vpop.f32.mrf.mxu0 }
  0xf0   : > { %v2213_v9 = vpop.f32.mrf.mxu1 }
  0xf1   : > { %v371_v10 = vpop.f32.mrf.mxu0 }
  0xf2   : > { %v500_v11 = vpop.f32.mrf.mxu1 }
  0xf5   : > { %v2232_v12 = vpop.f32.mrf.mxu0 }
  0xf6   : > { %v2260_v0 = vpop.f32.mrf.mxu1  ;;  %v656_v25 = vadd.f32 %v2232_v12, %v476_v1 }
  0xf7   : > { %v616_v13 = vpop.f32.mrf.mxu0 }
  0xf8   : > { %v771_v14 = vpop.f32.mrf.mxu1  ;;  %v655_v32 = vadd.f32 %v616_v13, %v471_v18 }
  0xfb   : > { %v2235_v15 = vpop.f32.mrf.mxu0 }
  0xfc   : > { %v2911_v16 = vpop.f32.mrf.mxu1  ;;  %v658_v35 = vadd.f32 %v2235_v15, %v486_v34 }
  0xfd   : > { %2961 = vst [vmem:[#allocation2_spill] sm:$0xff] %v2911_v16  ;;  %v626_v17 = vpop.f32.mrf.mxu0 }
  0xfe   : > { %v2913_v20 = vpop.f32.mrf.mxu1 }
  0xff   : > { %2962 = vst [vmem:[#allocation3_spill] sm:$0xff] %v2913_v20  ;;  %v506_v20 = vadd.f32 %v2213_v9, %v2185_v8 }
 0x101   : > { %v2238_v21 = vpop.f32.mrf.mxu0 }
 0x102   : > { %v2266_v22 = vpop.f32.mrf.mxu1 }
 0x103   : > { %v636_v23 = vpop.f32.mrf.mxu0 }
 0x104   : > { %v791_v28 = vpop.f32.mrf.mxu1  ;;  %v659_v33 = vadd.f32 %v636_v23, %v491_v19 }
 0x106   : > { %v814_v42 = vadd.f32 %v791_v28, %v659_v33  ;;  %v2969_v8 = vld [vmem:[#allocation3_spill] sm:$0xff] }
 0x107   : > { %v2241_v29 = vpop.f32.mrf.mxu0 }
 0x108   : > { %v2269_v30 = vpop.f32.mrf.mxu1  ;;  %v662_v58 = vadd.f32 %v2241_v29, %v506_v20 }
 0x109   : > { %v646_v31 = vpop.f32.mrf.mxu0 }
 0x10a   : > { %v801_v36 = vpop.f32.mrf.mxu1 }
 0x10d   : > { %v2288_v37 = vpop.f32.mrf.mxu0 }
 0x10e   : > { %v2316_v38 = vpop.f32.mrf.mxu1 }
 0x10f   : > { %v926_v39 = vpop.f32.mrf.mxu0 }
 0x110   : > { %v1080_v44 = vpop.f32.mrf.mxu1 }
 0x113   : > { %v2291_v45 = vpop.f32.mrf.mxu0 }
 0x114   : > { %v2915_v46 = vpop.f32.mrf.mxu1 }
 0x115   : > { %2963 = vst [vmem:[#allocation4_spill] sm:$0xff] %v2915_v46  ;;  %v936_v47 = vpop.f32.mrf.mxu0  ;;  %v501_v46 = vadd.f32 %v500_v11, %v371_v10 }
 0x116   : > { %v2917_v48 = vpop.f32.mrf.mxu1 }
 0x117   : > { %2964 = vst [vmem:[#allocation5_spill] sm:$0xff] %v2917_v48  ;;  %v481_v48 = vadd.f32 %v480_v2, %v351_v56  ;;  %v661_v5 = vadd.f32 %v646_v31, %v501_v46  ;;  %v2968_v56 = vld [vmem:[#allocation2_spill] sm:$0xff] }
 0x118   : > { %v813_v2 = vadd.f32 %v2968_v56, %v658_v35 }
 0x119   : > { %v2294_v49 = vpop.f32.mrf.mxu0  ;;  %v657_v41 = vadd.f32 %v626_v17, %v481_v48  ;;  %v816_v11 = vadd.f32 %v801_v36, %v661_v5 }
 0x11a   : > { %v2322_v51 = vpop.f32.mrf.mxu1  ;;  %v968_v15 = vadd.f32 %v2291_v45, %v813_v2 }
 0x11b   : > { %v946_v52 = vpop.f32.mrf.mxu0  ;;  %v812_v9 = vadd.f32 %v2969_v8, %v657_v41 }
 0x11c   : > { %v1100_v53 = vpop.f32.mrf.mxu1  ;;  %v969_v50 = vadd.f32 %v946_v52, %v814_v42 }
 0x11e   : > { %v1123_v23 = vadd.f32 %v1100_v53, %v969_v50 }
 0x11f   : > { %v2297_v54 = vpop.f32.mrf.mxu0 }
 0x120   : > { %v2919_v55 = vpop.f32.mrf.mxu1 }
 0x121   : > { %2965 = vst [vmem:[#allocation6_spill] sm:$0xff] %v2919_v55  ;;  %v956_v57 = vpop.f32.mrf.mxu0  ;;  %v660_v55 = vadd.f32 %v2238_v21, %v496_v24 }
 0x122   : > { %v1110_v59 = vpop.f32.mrf.mxu1  ;;  %v971_v28 = vadd.f32 %v956_v57, %v816_v11 }
 0x123   : > { %v815_v6 = vadd.f32 %v2266_v22, %v660_v55  ;;  %v967_v22 = vadd.f32 %v936_v47, %v812_v9 }
 0x124   : > { %v1125_v55 = vadd.f32 %v1110_v59, %v971_v28 }
 0x125   : > { %v2344_v60 = vpop.f32.mrf.mxu0  ;;  %v970_v10 = vadd.f32 %v2294_v49, %v815_v6  ;;  %v2971_v49 = vld [vmem:[#allocation4_spill] sm:$0xff] }
 0x126   : > { %v2372_v61 = vpop.f32.mrf.mxu1 }
 0x127   : > { %v1235_v62 = vpop.f32.mrf.mxu0  ;;  %v1124_v29 = vadd.f32 %v2322_v51, %v970_v10 }
 0x128   : > { %v2921_v63 = vpop.f32.mrf.mxu1 }
 0x129   : > { %2966 = vst [vmem:[#allocation7_spill] sm:$0xff] %v2921_v63  ;;  %v811_v63 = vadd.f32 %v2260_v0, %v656_v25  ;;  %v817_v0 = vadd.f32 %v2269_v30, %v662_v58  ;;  %v1122_v30 = vadd.f32 %v2971_v49, %v968_v15 }
 0x12b   : > { %v2347_v3 = vpop.f32.mrf.mxu0  ;;  %v966_v7 = vadd.f32 %v2288_v37, %v811_v63  ;;  %v972_v31 = vadd.f32 %v2297_v54, %v817_v0  ;;  %v2973_v63 = vld [vmem:[#allocation6_spill] sm:$0xff] }
 0x12c   : > { %v2923_v4 = vpop.f32.mrf.mxu1  ;;  %v1277_v53 = vadd.f32 %v2347_v3, %v1122_v30 }
 0x12d   : > { %2967 = vst [vmem:[#allocation8_spill] sm:$0xff] %v2923_v4  ;;  %v1245_v26 = vpop.f32.mrf.mxu0  ;;  %v810_v4 = vadd.f32 %v771_v14, %v655_v32  ;;  %v1120_v14 = vadd.f32 %v2316_v38, %v966_v7  ;;  %v2972_v38 = vld [vmem:[#allocation5_spill] sm:$0xff] }
 0x12e   : > { %v2925_v27 = vpop.f32.mrf.mxu1  ;;  %v1121_v45 = vadd.f32 %v2972_v38, %v967_v22 }
 0x12f   : > { %v965_v43 = vadd.f32 %v926_v39, %v810_v4  ;;  %v1275_v37 = vadd.f32 %v2344_v60, %v1120_v14 }
 0x130   : > { %v2974_v54 = vld [vmem:[#allocation7_spill] sm:$0xff]  ;;  %v1276_v1 = vadd.f32 %v1245_v26, %v1121_v45 }
 0x131   : > { %v2350_v40 = vpop.f32.mrf.mxu0  ;;  %v1119_v21 = vadd.f32 %v1080_v44, %v965_v43  ;;  %v1126_v44 = vadd.f32 %v2973_v63, %v972_v31  ;;  %v1430_v47 = vadd.f32 %v2372_v61, %v1275_v37 }
 0x132   : > { %v2378_v16 = vpop.f32.mrf.mxu1  ;;  %v1279_v52 = vadd.f32 %v2350_v40, %v1124_v29  ;;  %v1431_v26 = vadd.f32 %v2925_v27, %v1276_v1 }
 0x133   : > { %v1255_v12 = vpop.f32.mrf.mxu0  ;;  %v1274_v36 = vadd.f32 %v1235_v62, %v1119_v21 }
 0x134   : > { %v1410_v13 = vpop.f32.mrf.mxu1  ;;  %v1278_v48 = vadd.f32 %v1255_v12, %v1123_v23  ;;  %v1434_v18 = vadd.f32 %v2378_v16, %v1279_v52  ;;  %v2975_v59 = vld [vmem:[#allocation8_spill] sm:$0xff] }
 0x135   : > { %v1429_v60 = vadd.f32 %v2974_v54, %v1274_v36  ;;  %v1432_v35 = vadd.f32 %v2975_v59, %v1277_v53 }
 0x136   : > { %v1433_v4 = vadd.f32 %v1410_v13, %v1278_v48 }
 0x137   : > { %v2353_v17 = vpop.f32.mrf.mxu0 }
 0x138   : > { %v2381_v20 = vpop.f32.mrf.mxu1  ;;  %v1281_v19 = vadd.f32 %v2353_v17, %v1126_v44 }
 0x139   : > { %v1265_v39 = vpop.f32.mrf.mxu0 }
 0x13a   : > { %v1420_v46 = vpop.f32.mrf.mxu1  ;;  %v1280_v62 = vadd.f32 %v1265_v39, %v1125_v55  ;;  %v1436_v5 = vadd.f32 %v2381_v20, %v1281_v19 }
 0x13c   : > { %v1435_v41 = vadd.f32 %v1420_v46, %v1280_v62 }
 0x13d   : > { %v2400_v57 = vpop.f32.mrf.mxu0 }
 0x13e   : > { %v2406_v51 = vpop.f32.mrf.mxu1  ;;  %v1584_v24 = vadd.f32 %v2400_v57, %v1430_v47 }
 0x13f   : > { %v1544_v25 = vpop.f32.mrf.mxu0  ;;  %v1588_v40 = vadd.f32 %v2406_v51, %v1434_v18 }
 0x140   : > { %v1564_v32 = vpop.f32.mrf.mxu1  ;;  %v1583_v33 = vadd.f32 %v1544_v25, %v1429_v60  ;;  %v1606_v6 = vmul.f32 %v1584_v24, %v1584_v24 }
 0x141   : > { %v1587_v34 = vadd.f32 %v1564_v32, %v1433_v4  ;;  %v2403_v61 = vpop.f32.mrf.mxu0  ;;  %v1610_v22 = vmul.f32 %v1588_v40, %v1588_v40 }
 0x142   : > { %v2409_v3 = vpop.f32.mrf.mxu1  ;;  %v1605_v42 = vmul.f32 %v1583_v33, %v1583_v33  ;;  %v1994_v16 = vpack.c.bf16 %v1584_v24, %v1583_v33  ;;  %v1591_v13 = vadd.f32 %v1584_v24, %v1583_v33  ;;  %v1586_v43 = vadd.f32 %v2403_v61, %v1432_v35 }
 0x143   : > { %v2004_v58 = vpack.c.bf16 %v1588_v40, %v1587_v34  ;;  %v1554_v7 = vpop.f32.mrf.mxu0  ;;  %v1590_v2 = vadd.f32 %v2409_v3, %v1436_v5  ;;  %v1609_v17 = vmul.f32 %v1587_v34, %v1587_v34 }
 0x144   : > { %v1574_v12 = vpop.f32.mrf.mxu1  ;;  %1995 = vst [vmem:[%s208_s10] sm:$0xff] %v1994_v16   ;;  %v1585_v50 = vadd.f32 %v1554_v7, %v1431_v26  ;;  %v1613_v10 = vadd.f32 %v1606_v6, %v1605_v42  ;;  %v1608_v0 = vmul.f32 %v1586_v43, %v1586_v43 }
 0x145   : > { %v1589_v56 = vadd.f32 %v1574_v12, %v1435_v41  ;;  %2012 = vst [vmem:[%s208_s10 + $0x10] sm:$0xff] %v2004_v58   ;;  %v1612_v39 = vmul.f32 %v1590_v2, %v1590_v2 }
 0x146   : > { %v1592_v8 = vadd.f32 %v1591_v13, %v1585_v50  ;;  %v1607_v9 = vmul.f32 %v1585_v50, %v1585_v50  ;;  %v1999_v11 = vpack.c.bf16 %v1586_v43, %v1585_v50 }
 0x147   : > { %v2009_v27 = vpack.c.bf16 %v1590_v2, %v1589_v56  ;;  %v1611_v31 = vmul.f32 %v1589_v56, %v1589_v56 }
 0x148   : > { %v1593_v14 = vadd.f32 %v1592_v8, %v1586_v43  ;;  %v1614_v15 = vadd.f32 %v1613_v10, %v1607_v9  ;;  %2011 = vst [vmem:[%s208_s10 + $0x8] sm:$0xff] %v1999_v11  }
 0x149   : > { %2013 = vst [vmem:[%s208_s10 + $0x18] sm:$0xff] %v2009_v27  }
 0x14a   : > { %v1615_v20 = vadd.f32 %v1614_v15, %v1608_v0  ;;  %v1594_v21 = vadd.f32 %v1593_v14, %v1587_v34 }
 0x14c   : > { %v1595_v23 = vadd.f32 %v1594_v21, %v1588_v40  ;;  %v1616_v28 = vadd.f32 %v1615_v20, %v1609_v17 }
 0x14e   : > { %v1596_v29 = vadd.f32 %v1595_v23, %v1589_v56  ;;  %v1617_v37 = vadd.f32 %v1616_v28, %v1610_v22 }
 0x150   : > { %v1597_v46 = vadd.f32 %v1596_v29, %v1590_v2  ;;  %v1618_v36 = vadd.f32 %v1617_v37, %v1611_v31 }
 0x152   : > { %v1598_v48 = vrot.slane %v1597_v46, 4  ;;  %v1619_v49 = vadd.f32 %v1618_v36, %v1612_v39 }
 0x154   : > { %v1599_v30 = vadd.f32 %v1598_v48, %v1597_v46  ;;  %v1620_v52 = vrot.slane %v1619_v49, 4 }
 0x156   : > { %v1600_v38 = vrot.slane %v1599_v30, 2  ;;  %v1621_v45 = vadd.f32 %v1620_v52, %v1619_v49 }
 0x158   : > { %v1601_v55 = vadd.f32 %v1600_v38, %v1599_v30  ;;  %v1622_v63 = vrot.slane %v1621_v45, 2 }
 0x15a   : > { %v1602_v44 = vrot.slane %v1601_v55, 1  ;;  %v1623_v47 = vadd.f32 %v1622_v63, %v1621_v45 }
 0x15c   : > { %v1603_v53 = vadd.f32 %v1602_v44, %v1601_v55  ;;  %v1624_v57 = vrot.slane %v1623_v47, 1 }
 0x15e   : > { %1604 = vst [vmem:[%s212_s13] sm:$0x1] %v1603_v53  ;;  %v1625_v51 = vadd.f32 %v1624_v57, %v1623_v47 }
 0x160   : > { %1626 = vst [vmem:[%s215_s18] sm:$0x1] %v1625_v51 }
 0x161 PF: > { %s15_s15 = sadd.s32 1, %s2441_s15  }
 0x162   : > { %p12_p5 = scmp.ge.s32.totalorder %s15_s15, 4  }
 0x164   :  { %14 = sbr.rel (!%p12_p5) target bundleno = 1 (0x1), region = 95 }

// kernel: discriminator_pallas.6
= control target key start
LH: loop header
LB: loop body
LE: loop exit
PB: predicated region body
PF: predicated region fallthrough
CT: control target
= control target key end

     0   :  { %s2018_s15 = smov 0   ;;  %s2493_s0 = inlined_call_operand.vmem [shape: bf16[32,1152], index: 0, kind: input, shape index: {}]   ;;  %s2494_s1 = inlined_call_operand.vmem [shape: bf16[1152,256], index: 1, kind: input, shape index: {}]   ;;  %s2495_s2 = inlined_call_operand.vmem [shape: bf16[32,256], index: 2, kind: output, shape index: {0}]   ;;  %s2496_s3 = inlined_call_operand.vmem [shape: f32[2,1,256], index: 3, kind: output, shape index: {1}]   ;;  %s2497_s4 = inlined_call_operand.vmem [shape: f32[2,1,256], index: 4, kind: output, shape index: {2}]  }
   0x1 LB: > { %s2024_s16 = sadd.s32 4294967295, %s1989_s15   ;;  %p1575_p0 = scmp.ge.s32.totalorder %s1989_s15, 1  ;;  %s1989_s15 = sphi %s2018_s15, %s15_s15  }
   0x2   : > { %p169_p1 = scmp.lt.s32.totalorder %s1989_s15, 3 }
   0x4   : > { %p170_p2 = pnand %p1575_p0, %p169_p1 }
   0x5   : > { %s1576_s29 = sshll.u32 (!%p170_p2), %s2024_s16, 1  ;;  %p219_p4 = scmp.lt.s32.totalorder (!%p170_p2), %s2024_s16, 1 }
   0x6   : > { %173 = sbr.rel (%p170_p2) target bundleno = 396 (0x18c), region = 28  ;;  %p206_p3 = scmp.lt.s32.totalorder (!%p170_p2), %s1576_s29, 3 }
   0xb   : > { %v1754_v0 = vld [vmem:[%s2494_s1 + $0x74] ss:$8 sps:$4 sm:$0xff]   ;;  %v1758_v2 = vld [vmem:[%s2494_s1 + $0x70] ss:$8 sps:$4 sm:$0xff]   ;;  %v1760_v4 = vld [vmem:[%s2494_s1 + $0x64] ss:$8 sps:$4 sm:$0xff]  }
   0xc   : > { %v1756_v1 = vld [vmem:[%s2494_s1 + $0x174] ss:$8 sps:$4 sm:$0xff]   ;;  %1148 = vmatprep.subr.bf16.mxu0 %v1754_v0  ;;  %v1759_v3 = vld [vmem:[%s2494_s1 + $0x170] ss:$8 sps:$4 sm:$0xff]   ;;  %v1762_v5 = vld [vmem:[%s2494_s1 + $0x164] ss:$8 sps:$4 sm:$0xff]  }
   0xd   : > { %1191 = vmatprep.subr.bf16.mxu1 %v1756_v1  ;;  %1149 = vmatpush1.bf16.msra.mxu0 %v1758_v2  ;;  %v1764_v6 = vld [vmem:[%s2494_s1 + $0x60] ss:$8 sps:$4 sm:$0xff]   ;;  %v1766_v8 = vld [vmem:[%s2494_s1 + $0x54] ss:$8 sps:$4 sm:$0xff]   ;;  %v1770_v10 = vld [vmem:[%s2494_s1 + $0x50] ss:$8 sps:$4 sm:$0xff]  }
   0xe   : > { %1192 = vmatpush1.bf16.msra.mxu1 %v1759_v3  ;;  %1150 = vmatprep.subr.bf16.mxu0 %v1760_v4  ;;  %v1765_v7 = vld [vmem:[%s2494_s1 + $0x160] ss:$8 sps:$4 sm:$0xff]   ;;  %v1768_v9 = vld [vmem:[%s2494_s1 + $0x154] ss:$8 sps:$4 sm:$0xff]   ;;  %v1771_v11 = vld [vmem:[%s2494_s1 + $0x150] ss:$8 sps:$4 sm:$0xff]  }
   0xf   : > { %1193 = vmatprep.subr.bf16.mxu1 %v1762_v5  ;;  %v1772_v12 = vld [vmem:[%s2494_s1 + $0x44] ss:$8 sps:$4 sm:$0xff]   ;;  %v1776_v14 = vld [vmem:[%s2494_s1 + $0x40] ss:$8 sps:$4 sm:$0xff]   ;;  %v1778_v16 = vld [vmem:[%s2494_s1 + $0x34] ss:$8 sps:$4 sm:$0xff]  }
  0x10   : > { %v1774_v13 = vld [vmem:[%s2494_s1 + $0x144] ss:$8 sps:$4 sm:$0xff]   ;;  %v1777_v15 = vld [vmem:[%s2494_s1 + $0x140] ss:$8 sps:$4 sm:$0xff]   ;;  %v1780_v17 = vld [vmem:[%s2494_s1 + $0x134] ss:$8 sps:$4 sm:$0xff]  }
  0x11   : > { %1151 = vmatpush1.bf16.msra.mxu0 %v1764_v6  ;;  %v1782_v18 = vld [vmem:[%s2494_s1 + $0x30] ss:$8 sps:$4 sm:$0xff]   ;;  %v1784_v20 = vld [vmem:[%s2494_s1 + $0x24] ss:$8 sps:$4 sm:$0xff]   ;;  %v1788_v22 = vld [vmem:[%s2494_s1 + $0x20] ss:$8 sps:$4 sm:$0xff]  }
  0x12   : > { %1194 = vmatpush1.bf16.msra.mxu1 %v1765_v7  ;;  %1152 = vmatprep.subr.bf16.mxu0 %v1766_v8  ;;  %v1783_v19 = vld [vmem:[%s2494_s1 + $0x130] ss:$8 sps:$4 sm:$0xff]   ;;  %v1786_v21 = vld [vmem:[%s2494_s1 + $0x124] ss:$8 sps:$4 sm:$0xff]   ;;  %v1789_v23 = vld [vmem:[%s2494_s1 + $0x120] ss:$8 sps:$4 sm:$0xff]  }
  0x13   : > { %1195 = vmatprep.subr.bf16.mxu1 %v1768_v9  ;;  %v1790_v24 = vld [vmem:[%s2494_s1 + $0x14] ss:$8 sps:$4 sm:$0xff]   ;;  %v1794_v26 = vld [vmem:[%s2494_s1 + $0x10] ss:$8 sps:$4 sm:$0xff]   ;;  %v1796_v28 = vld [vmem:[%s2494_s1 + $0x4] ss:$8 sps:$4 sm:$0xff]  }
  0x14   : > { %v1792_v25 = vld [vmem:[%s2494_s1 + $0x114] ss:$8 sps:$4 sm:$0xff]   ;;  %v1795_v27 = vld [vmem:[%s2494_s1 + $0x110] ss:$8 sps:$4 sm:$0xff]   ;;  %v1798_v29 = vld [vmem:[%s2494_s1 + $0x104] ss:$8 sps:$4 sm:$0xff]  }
  0x15   : > { %1153 = vmatpush1.bf16.msra.mxu0 %v1770_v10  ;;  %v1800_v30 = vld [vmem:[%s2494_s1] ss:$8 sps:$4 sm:$0xff]   ;;  %v1802_v32 = vld [vmem:[%s2494_s1 + $0xf4] ss:$8 sps:$4 sm:$0xff]   ;;  %v1806_v34 = vld [vmem:[%s2494_s1 + $0xf0] ss:$8 sps:$4 sm:$0xff]  }
  0x16   : > { %1196 = vmatpush1.bf16.msra.mxu1 %v1771_v11  ;;  %1154 = vmatprep.subr.bf16.mxu0 %v1772_v12  ;;  %v1801_v31 = vld [vmem:[%s2494_s1 + $0x100] ss:$8 sps:$4 sm:$0xff]   ;;  %v1804_v33 = vld [vmem:[%s2494_s1 + $0x1f4] ss:$8 sps:$4 sm:$0xff]   ;;  %v1807_v35 = vld [vmem:[%s2494_s1 + $0x1f0] ss:$8 sps:$4 sm:$0xff]  }
  0x17   : > { %1197 = vmatprep.subr.bf16.mxu1 %v1774_v13  ;;  %v1808_v36 = vld [vmem:[%s2494_s1 + $0xe4] ss:$8 sps:$4 sm:$0xff]   ;;  %s2499_s29 = smov (!%p206_p3, %s1576_s29), 3  ;;  %v1812_v38 = vld [vmem:[%s2494_s1 + $0xe0] ss:$8 sps:$4 sm:$0xff]   ;;  %s2501_s16 = smov (!%p219_p4, %s2024_s16), 1 }
  0x18   : > { %v1810_v37 = vld [vmem:[%s2494_s1 + $0x1e4] ss:$8 sps:$4 sm:$0xff]   ;;  %v1813_v39 = vld [vmem:[%s2494_s1 + $0x1e0] ss:$8 sps:$4 sm:$0xff]   ;;  %v1814_v40 = vld [vmem:[%s2494_s1 + $0xd4] ss:$8 sps:$4 sm:$0xff]  }
  0x19   : > { %1155 = vmatpush1.bf16.msra.mxu0 %v1776_v14  ;;  %s1743_s28 = smul.u32 36, %s2499_s29  ;;  %v1816_v41 = vld [vmem:[%s2494_s1 + $0x1d4] ss:$8 sps:$4 sm:$0xff]   ;;  %v1818_v42 = vld [vmem:[%s2494_s1 + $0xd0] ss:$8 sps:$4 sm:$0xff]  }
  0x1a   : > { %1198 = vmatpush1.bf16.msra.mxu1 %v1777_v15  ;;  %1156 = vmatprep.subr.bf16.mxu0 %v1778_v16  ;;  %v1819_v43 = vld [vmem:[%s2494_s1 + $0x1d0] ss:$8 sps:$4 sm:$0xff]   ;;  %v1820_v44 = vld [vmem:[%s2494_s1 + $0xc4] ss:$8 sps:$4 sm:$0xff]   ;;  %v1824_v46 = vld [vmem:[%s2494_s1 + $0xc0] ss:$8 sps:$4 sm:$0xff]  }
  0x1b   : > { %1199 = vmatprep.subr.bf16.mxu1 %v1780_v17  ;;  %s2170_s14 = scalar_lea.vmem %s2493_s0, %s1743_s28  ;;  %v1822_v45 = vld [vmem:[%s2494_s1 + $0x1c4] ss:$8 sps:$4 sm:$0xff]   ;;  %v1825_v47 = vld [vmem:[%s2494_s1 + $0x1c0] ss:$8 sps:$4 sm:$0xff]   ;;  %v1826_v48 = vld [vmem:[%s2494_s1 + $0xb4] ss:$8 sps:$4 sm:$0xff]  }
  0x1c   : > { %v1852_v49 = vld [vmem:[%s2170_s14 + $0x4] ss:$36 sps:$4 sm:$0xff]   ;;  %v1828_v50 = vld [vmem:[%s2494_s1 + $0x1b4] ss:$8 sps:$4 sm:$0xff]   ;;  %v1855_v51 = vld [vmem:[%s2170_s14 + $0xc] ss:$36 sps:$4 sm:$0xff]  }
  0x1d   : > { %1157 = vmatpush1.bf16.msra.mxu0 %v1782_v18  ;;  %1180 = vmatprep.mubr.bf16.mxu0 %v1852_v49  ;;  %v1830_v52 = vld [vmem:[%s2494_s1 + $0xb0] ss:$8 sps:$4 sm:$0xff]   ;;  %v1832_v54 = vld [vmem:[%s2494_s1 + $0xa4] ss:$8 sps:$4 sm:$0xff]   ;;  %v1836_v56 = vld [vmem:[%s2494_s1 + $0xa0] ss:$8 sps:$4 sm:$0xff]  }
  0x1e   : > { %1200 = vmatpush1.bf16.msra.mxu1 %v1783_v19  ;;  %1158 = vmatprep.subr.bf16.mxu0 %v1784_v20  ;;  %v1831_v53 = vld [vmem:[%s2494_s1 + $0x1b0] ss:$8 sps:$4 sm:$0xff]   ;;  %v1834_v55 = vld [vmem:[%s2494_s1 + $0x1a4] ss:$8 sps:$4 sm:$0xff]   ;;  %v1837_v57 = vld [vmem:[%s2494_s1 + $0x1a0] ss:$8 sps:$4 sm:$0xff]  }
  0x1f   : > { %1201 = vmatprep.subr.bf16.mxu1 %v1786_v21  ;;  %1223 = vmatprep.mubr.bf16.mxu1 %v1855_v51  ;;  %v1838_v58 = vld [vmem:[%s2494_s1 + $0x94] ss:$8 sps:$4 sm:$0xff]   ;;  %v1842_v60 = vld [vmem:[%s2494_s1 + $0x90] ss:$8 sps:$4 sm:$0xff]   ;;  %v1844_v62 = vld [vmem:[%s2494_s1 + $0x84] ss:$8 sps:$4 sm:$0xff]  }
  0x20   : > { %v1840_v59 = vld [vmem:[%s2494_s1 + $0x194] ss:$8 sps:$4 sm:$0xff]   ;;  %v1843_v61 = vld [vmem:[%s2494_s1 + $0x190] ss:$8 sps:$4 sm:$0xff]   ;;  %v1846_v63 = vld [vmem:[%s2494_s1 + $0x184] ss:$8 sps:$4 sm:$0xff]  }
  0x21   : > { %1159 = vmatpush1.bf16.msra.mxu0 %v1788_v22  ;;  %v1848_v0 = vld [vmem:[%s2494_s1 + $0x80] ss:$8 sps:$4 sm:$0xff]   ;;  %v1858_v2 = vld [vmem:[%s2494_s1 + $0x274] ss:$8 sps:$4 sm:$0xff]   ;;  %v1856_v6 = vld [vmem:[%s2494_s1 + $0x270] ss:$8 sps:$4 sm:$0xff]  }
  0x22   : > { %1202 = vmatpush1.bf16.msra.mxu1 %v1789_v23  ;;  %1160 = vmatprep.subr.bf16.mxu0 %v1790_v24  ;;  %v1849_v1 = vld [vmem:[%s2494_s1 + $0x180] ss:$8 sps:$4 sm:$0xff]   ;;  %v1861_v3 = vld [vmem:[%s2494_s1 + $0x374] ss:$8 sps:$4 sm:$0xff]   ;;  %v1859_v7 = vld [vmem:[%s2494_s1 + $0x370] ss:$8 sps:$4 sm:$0xff]  }
  0x23   : > { %1203 = vmatprep.subr.bf16.mxu1 %v1792_v25  ;;  %v1850_v4 = vld [vmem:[%s2170_s14] ss:$36 sps:$4 sm:$0xff]   ;;  %v1853_v5 = vld [vmem:[%s2170_s14 + $0x8] ss:$36 sps:$4 sm:$0xff]   ;;  %v1870_v12 = vld [vmem:[%s2494_s1 + $0x254] ss:$8 sps:$4 sm:$0xff]  }
  0x24   : > { %v1864_v8 = vld [vmem:[%s2494_s1 + $0x264] ss:$8 sps:$4 sm:$0xff]   ;;  %v1862_v10 = vld [vmem:[%s2494_s1 + $0x260] ss:$8 sps:$4 sm:$0xff]   ;;  %v1873_v13 = vld [vmem:[%s2494_s1 + $0x354] ss:$8 sps:$4 sm:$0xff]  }
  0x25   : > { %1161 = vmatpush1.bf16.msra.mxu0 %v1794_v26  ;;  %v1867_v9 = vld [vmem:[%s2494_s1 + $0x364] ss:$8 sps:$4 sm:$0xff]   ;;  %v1865_v11 = vld [vmem:[%s2494_s1 + $0x360] ss:$8 sps:$4 sm:$0xff]   ;;  %v1868_v14 = vld [vmem:[%s2494_s1 + $0x250] ss:$8 sps:$4 sm:$0xff]  }
  0x26   : > { %1204 = vmatpush1.bf16.msra.mxu1 %v1795_v27  ;;  %1162 = vmatprep.subr.bf16.mxu0 %v1796_v28  ;;  %v1871_v15 = vld [vmem:[%s2494_s1 + $0x350] ss:$8 sps:$4 sm:$0xff]   ;;  %v1876_v16 = vld [vmem:[%s2494_s1 + $0x244] ss:$8 sps:$4 sm:$0xff]   ;;  %v1874_v18 = vld [vmem:[%s2494_s1 + $0x240] ss:$8 sps:$4 sm:$0xff]  }
  0x27   : > { %1205 = vmatprep.subr.bf16.mxu1 %v1798_v29  ;;  %v1879_v17 = vld [vmem:[%s2494_s1 + $0x344] ss:$8 sps:$4 sm:$0xff]   ;;  %v1877_v19 = vld [vmem:[%s2494_s1 + $0x340] ss:$8 sps:$4 sm:$0xff]   ;;  %v1882_v20 = vld [vmem:[%s2494_s1 + $0x234] ss:$8 sps:$4 sm:$0xff]  }
  0x28   : > { %v1885_v21 = vld [vmem:[%s2494_s1 + $0x334] ss:$8 sps:$4 sm:$0xff]   ;;  %v1880_v22 = vld [vmem:[%s2494_s1 + $0x230] ss:$8 sps:$4 sm:$0xff]   ;;  %v1888_v24 = vld [vmem:[%s2494_s1 + $0x224] ss:$8 sps:$4 sm:$0xff]  }
  0x29   : > { %1163 = vmatpush1.bf16.msra.mxu0 %v1800_v30  ;;  %v1883_v23 = vld [vmem:[%s2494_s1 + $0x330] ss:$8 sps:$4 sm:$0xff]   ;;  %v1891_v25 = vld [vmem:[%s2494_s1 + $0x324] ss:$8 sps:$4 sm:$0xff]   ;;  %v1886_v26 = vld [vmem:[%s2494_s1 + $0x220] ss:$8 sps:$4 sm:$0xff]  }
  0x2a   : > { %1206 = vmatpush1.bf16.msra.mxu1 %v1801_v31  ;;  %1164 = vmatprep.subr.bf16.mxu0 %v1802_v32  ;;  %v1889_v27 = vld [vmem:[%s2494_s1 + $0x320] ss:$8 sps:$4 sm:$0xff]   ;;  %v1894_v28 = vld [vmem:[%s2494_s1 + $0x214] ss:$8 sps:$4 sm:$0xff]   ;;  %v1892_v30 = vld [vmem:[%s2494_s1 + $0x210] ss:$8 sps:$4 sm:$0xff]  }
  0x2b   : > { %1207 = vmatprep.subr.bf16.mxu1 %v1804_v33  ;;  %v1897_v29 = vld [vmem:[%s2494_s1 + $0x314] ss:$8 sps:$4 sm:$0xff]   ;;  %v1895_v31 = vld [vmem:[%s2494_s1 + $0x310] ss:$8 sps:$4 sm:$0xff]   ;;  %v1900_v32 = vld [vmem:[%s2494_s1 + $0x204] ss:$8 sps:$4 sm:$0xff]  }
  0x2c   : > { %v1903_v33 = vld [vmem:[%s2494_s1 + $0x304] ss:$8 sps:$4 sm:$0xff]   ;;  %v1919_v49 = vld [vmem:[%s2494_s1 + $0x3d0] ss:$8 sps:$4 sm:$0xff]  }
  0x2d   : > { %1165 = vmatpush2.bf16.msra.mxu0 %v1806_v34  ;;  %v1954_v34 = vld [vmem:[%s2170_s14 + $0x14] ss:$36 sps:$4 sm:$0xff]   ;;  %v1927_v51 = vld [vmem:[%s2494_s1 + $0x3c4] ss:$8 sps:$4 sm:$0xff]  }
  0x2e   : > { %1208 = vmatpush2.bf16.msra.mxu1 %v1807_v35  ;;  %1166 = vmatprep.subr.bf16.mxu0 %v1808_v36  ;;  %v1898_v35 = vld [vmem:[%s2494_s1 + $0x200] ss:$8 sps:$4 sm:$0xff]  }
  0x2f   : > { %1209 = vmatprep.subr.bf16.mxu1 %v1810_v37  ;;  %v1901_v36 = vld [vmem:[%s2494_s1 + $0x300] ss:$8 sps:$4 sm:$0xff]  }
  0x30   : > { %v1960_v37 = vld [vmem:[%s2170_s14 + $0x1c] ss:$36 sps:$4 sm:$0xff]  }
  0x31   : > { %1167 = vmatpush2.bf16.msra.mxu0 %v1812_v38  ;;  %v1906_v38 = vld [vmem:[%s2494_s1 + $0x2f4] ss:$8 sps:$4 sm:$0xff]  }
  0x32   : > { %1210 = vmatpush2.bf16.msra.mxu1 %v1813_v39  ;;  %1168 = vmatprep.subr.bf16.mxu0 %v1814_v40  ;;  %v1909_v39 = vld [vmem:[%s2494_s1 + $0x3f4] ss:$8 sps:$4 sm:$0xff]   ;;  %v1904_v40 = vld [vmem:[%s2494_s1 + $0x2f0] ss:$8 sps:$4 sm:$0xff]  }
  0x33   : > { %1211 = vmatprep.subr.bf16.mxu1 %v1816_v41  ;;  %v1907_v41 = vld [vmem:[%s2494_s1 + $0x3f0] ss:$8 sps:$4 sm:$0xff]  }
  0x35   : > { %1169 = vmatpush2.bf16.msra.mxu0 %v1818_v42  ;;  %v1912_v42 = vld [vmem:[%s2494_s1 + $0x2e4] ss:$8 sps:$4 sm:$0xff]  }
  0x36   : > { %1212 = vmatpush2.bf16.msra.mxu1 %v1819_v43  ;;  %1170 = vmatprep.subr.bf16.mxu0 %v1820_v44  ;;  %v1915_v43 = vld [vmem:[%s2494_s1 + $0x3e4] ss:$8 sps:$4 sm:$0xff]   ;;  %v1910_v44 = vld [vmem:[%s2494_s1 + $0x2e0] ss:$8 sps:$4 sm:$0xff]  }
  0x37   : > { %1213 = vmatprep.subr.bf16.mxu1 %v1822_v45  ;;  %v1913_v45 = vld [vmem:[%s2494_s1 + $0x3e0] ss:$8 sps:$4 sm:$0xff]  }
  0x39   : > { %1171 = vmatpush2.bf16.msra.mxu0 %v1824_v46  ;;  %v1918_v46 = vld [vmem:[%s2494_s1 + $0x2d4] ss:$8 sps:$4 sm:$0xff]  }
  0x3a   : > { %1214 = vmatpush2.bf16.msra.mxu1 %v1825_v47  ;;  %1172 = vmatprep.subr.bf16.mxu0 %v1826_v48  ;;  %v1921_v47 = vld [vmem:[%s2494_s1 + $0x3d4] ss:$8 sps:$4 sm:$0xff]   ;;  %v1916_v48 = vld [vmem:[%s2494_s1 + $0x2d0] ss:$8 sps:$4 sm:$0xff]  }
  0x3b   : > { %1215 = vmatprep.subr.bf16.mxu1 %v1828_v50  ;;  %v1924_v50 = vld [vmem:[%s2494_s1 + $0x2c4] ss:$8 sps:$4 sm:$0xff]  }
  0x3d   : > { %1173 = vmatpush2.bf16.msra.mxu0 %v1830_v52  ;;  %v1922_v52 = vld [vmem:[%s2494_s1 + $0x2c0] ss:$8 sps:$4 sm:$0xff]  }
  0x3e   : > { %1216 = vmatpush2.bf16.msra.mxu1 %v1831_v53  ;;  %1174 = vmatprep.subr.bf16.mxu0 %v1832_v54  ;;  %v1925_v53 = vld [vmem:[%s2494_s1 + $0x3c0] ss:$8 sps:$4 sm:$0xff]   ;;  %v1930_v54 = vld [vmem:[%s2494_s1 + $0x2b4] ss:$8 sps:$4 sm:$0xff]  }
  0x3f   : > { %1217 = vmatprep.subr.bf16.mxu1 %v1834_v55  ;;  %v1933_v55 = vld [vmem:[%s2494_s1 + $0x3b4] ss:$8 sps:$4 sm:$0xff]  }
  0x41   : > { %1175 = vmatpush2.bf16.msra.mxu0 %v1836_v56  ;;  %v1928_v56 = vld [vmem:[%s2494_s1 + $0x2b0] ss:$8 sps:$4 sm:$0xff]  }
  0x42   : > { %1218 = vmatpush2.bf16.msra.mxu1 %v1837_v57  ;;  %1176 = vmatprep.subr.bf16.mxu0 %v1838_v58  ;;  %v1931_v57 = vld [vmem:[%s2494_s1 + $0x3b0] ss:$8 sps:$4 sm:$0xff]   ;;  %v1936_v58 = vld [vmem:[%s2494_s1 + $0x2a4] ss:$8 sps:$4 sm:$0xff]  }
  0x43   : > { %1219 = vmatprep.subr.bf16.mxu1 %v1840_v59  ;;  %v1939_v59 = vld [vmem:[%s2494_s1 + $0x3a4] ss:$8 sps:$4 sm:$0xff]  }
  0x45   : > { %1177 = vmatpush2.bf16.msra.mxu0 %v1842_v60  ;;  %v1934_v60 = vld [vmem:[%s2494_s1 + $0x2a0] ss:$8 sps:$4 sm:$0xff]  }
  0x46   : > { %1220 = vmatpush2.bf16.msra.mxu1 %v1843_v61  ;;  %1178 = vmatprep.subr.bf16.mxu0 %v1844_v62  ;;  %v1937_v61 = vld [vmem:[%s2494_s1 + $0x3a0] ss:$8 sps:$4 sm:$0xff]   ;;  %v1942_v62 = vld [vmem:[%s2494_s1 + $0x294] ss:$8 sps:$4 sm:$0xff]  }
  0x47   : > { %1221 = vmatprep.subr.bf16.mxu1 %v1846_v63  ;;  %v1945_v63 = vld [vmem:[%s2494_s1 + $0x394] ss:$8 sps:$4 sm:$0xff]  }
  0x49   : > { %1179 = vmatpush2.bf16.msra.mxu0 %v1848_v0  ;;  %v1940_v0 = vld [vmem:[%s2494_s1 + $0x290] ss:$8 sps:$4 sm:$0xff]  }
  0x4a   : > { %1222 = vmatpush2.bf16.msra.mxu1 %v1849_v1  ;;  %1234 = vmatprep.subr.bf16.mxu0 %v1858_v2  ;;  %v1943_v1 = vld [vmem:[%s2494_s1 + $0x390] ss:$8 sps:$4 sm:$0xff]   ;;  %v1948_v2 = vld [vmem:[%s2494_s1 + $0x284] ss:$8 sps:$4 sm:$0xff]  }
  0x4b   : > { %1277 = vmatprep.subr.bf16.mxu1 %v1861_v3  ;;  %v1951_v3 = vld [vmem:[%s2494_s1 + $0x384] ss:$8 sps:$4 sm:$0xff]  }
  0x4c   : > { %1181 = vmatmul.mubr.bf16.vlgmr.msra.gmra.mxu0 %v1850_v4  ;;  %v1946_v4 = vld [vmem:[%s2494_s1 + $0x280] ss:$8 sps:$4 sm:$0xff]  }
  0x4d   : > { %1224 = vmatmul.mubr.bf16.vlgmr.msra.gmra.mxu1 %v1853_v5  ;;  %1235 = vmatpush1.bf16.msra.mxu0 %v1856_v6  ;;  %v1949_v5 = vld [vmem:[%s2494_s1 + $0x380] ss:$8 sps:$4 sm:$0xff]   ;;  %v1957_v6 = vld [vmem:[%s2494_s1 + $0x474] ss:$8 sps:$4 sm:$0xff]  }
  0x4e   : > { %1278 = vmatpush1.bf16.msra.mxu1 %v1859_v7  ;;  %1236 = vmatprep.subr.bf16.mxu0 %v1864_v8  ;;  %v1952_v7 = vld [vmem:[%s2170_s14 + $0x10] ss:$36 sps:$4 sm:$0xff]   ;;  %v1958_v8 = vld [vmem:[%s2170_s14 + $0x18] ss:$36 sps:$4 sm:$0xff]  }
  0x4f   : > { %1279 = vmatprep.subr.bf16.mxu1 %v1867_v9  ;;  %1266 = vmatprep.mubr.bf16.mxu0 %v1954_v34  ;;  %v1955_v9 = vld [vmem:[%s2494_s1 + $0x470] ss:$8 sps:$4 sm:$0xff]  }
  0x50   : > { %1309 = vmatprep.mubr.bf16.mxu1 %v1960_v37 }
  0x51   : > { %1237 = vmatpush1.bf16.msra.mxu0 %v1862_v10  ;;  %v1963_v10 = vld [vmem:[%s2494_s1 + $0x464] ss:$8 sps:$4 sm:$0xff]  }
  0x52   : > { %1280 = vmatpush1.bf16.msra.mxu1 %v1865_v11  ;;  %1238 = vmatprep.subr.bf16.mxu0 %v1870_v12  ;;  %v1961_v11 = vld [vmem:[%s2494_s1 + $0x460] ss:$8 sps:$4 sm:$0xff]   ;;  %v1991_v12 = vmov 0  }
  0x53   : > { %1281 = vmatprep.subr.bf16.mxu1 %v1873_v13  ;;  %v1966_v13 = vld [vmem:[%s2494_s1 + $0x454] ss:$8 sps:$4 sm:$0xff]  }
  0x55   : > { %1239 = vmatpush1.bf16.msra.mxu0 %v1868_v14  ;;  %v1964_v14 = vld [vmem:[%s2494_s1 + $0x450] ss:$8 sps:$4 sm:$0xff]  }
  0x56   : > { %1282 = vmatpush1.bf16.msra.mxu1 %v1871_v15  ;;  %1240 = vmatprep.subr.bf16.mxu0 %v1876_v16  ;;  %v1969_v15 = vld [vmem:[%s2494_s1 + $0x444] ss:$8 sps:$4 sm:$0xff]   ;;  %v1967_v16 = vld [vmem:[%s2494_s1 + $0x440] ss:$8 sps:$4 sm:$0xff]  }
  0x57   : > { %1283 = vmatprep.subr.bf16.mxu1 %v1879_v17  ;;  %v1972_v17 = vld [vmem:[%s2494_s1 + $0x434] ss:$8 sps:$4 sm:$0xff]  }
  0x59   : > { %1241 = vmatpush1.bf16.msra.mxu0 %v1874_v18  ;;  %v1970_v18 = vld [vmem:[%s2494_s1 + $0x430] ss:$8 sps:$4 sm:$0xff]  }
  0x5a   : > { %1284 = vmatpush1.bf16.msra.mxu1 %v1877_v19  ;;  %1242 = vmatprep.subr.bf16.mxu0 %v1882_v20  ;;  %v1975_v19 = vld [vmem:[%s2494_s1 + $0x424] ss:$8 sps:$4 sm:$0xff]   ;;  %v1973_v20 = vld [vmem:[%s2494_s1 + $0x420] ss:$8 sps:$4 sm:$0xff]  }
  0x5b   : > { %1285 = vmatprep.subr.bf16.mxu1 %v1885_v21  ;;  %v1978_v21 = vld [vmem:[%s2494_s1 + $0x414] ss:$8 sps:$4 sm:$0xff]  }
  0x5d   : > { %1243 = vmatpush1.bf16.msra.mxu0 %v1880_v22  ;;  %v1976_v22 = vld [vmem:[%s2494_s1 + $0x410] ss:$8 sps:$4 sm:$0xff]  }
  0x5e   : > { %1286 = vmatpush1.bf16.msra.mxu1 %v1883_v23  ;;  %1244 = vmatprep.subr.bf16.mxu0 %v1888_v24  ;;  %v1981_v23 = vld [vmem:[%s2494_s1 + $0x404] ss:$8 sps:$4 sm:$0xff]   ;;  %v1979_v24 = vld [vmem:[%s2494_s1 + $0x400] ss:$8 sps:$4 sm:$0xff]  }
  0x5f   : > { %1287 = vmatprep.subr.bf16.mxu1 %v1891_v25  ;;  %v1982_v25 = vld [vmem:[%s2170_s14 + $0x20] ss:$36 sps:$4 sm:$0xff]   ;;  %s1740_s14 = sshll.u32 %s2499_s29, 3  ;;  %s1581_s29 = sshll.u32 %s2501_s16, 1 }
  0x60   : > { %s217_s19 = scalar_lea.vmem %s2495_s2, %s1740_s14  ;;  %s222_s22 = scalar_lea.vmem %s2496_s3, %s1581_s29 }
  0x61   : > { %1245 = vmatpush1.bf16.msra.mxu0 %v1886_v26  ;;  %s226_s25 = scalar_lea.vmem %s2497_s4, %s1581_s29 }
  0x62   : > { %1288 = vmatpush1.bf16.msra.mxu1 %v1889_v27  ;;  %1246 = vmatprep.subr.bf16.mxu0 %v1894_v28 }
  0x63   : > { %1289 = vmatprep.subr.bf16.mxu1 %v1897_v29 }
  0x65   : > { %1247 = vmatpush1.bf16.msra.mxu0 %v1892_v30 }
  0x66   : > { %1290 = vmatpush1.bf16.msra.mxu1 %v1895_v31  ;;  %1248 = vmatprep.subr.bf16.mxu0 %v1900_v32 }
  0x67   : > { %1291 = vmatprep.subr.bf16.mxu1 %v1903_v33 }
  0x69   : > { %1249 = vmatpush1.bf16.msra.mxu0 %v1898_v35 }
  0x6a   : > { %1292 = vmatpush1.bf16.msra.mxu1 %v1901_v36  ;;  %1250 = vmatprep.subr.bf16.mxu0 %v1906_v38 }
  0x6b   : > { %1293 = vmatprep.subr.bf16.mxu1 %v1909_v39 }
  0x6d   : > { %1251 = vmatpush2.bf16.msra.mxu0 %v1904_v40 }
  0x6e   : > { %1294 = vmatpush2.bf16.msra.mxu1 %v1907_v41  ;;  %1252 = vmatprep.subr.bf16.mxu0 %v1912_v42 }
  0x6f   : > { %1295 = vmatprep.subr.bf16.mxu1 %v1915_v43 }
  0x71   : > { %1253 = vmatpush2.bf16.msra.mxu0 %v1910_v44 }
  0x72   : > { %1296 = vmatpush2.bf16.msra.mxu1 %v1913_v45  ;;  %1254 = vmatprep.subr.bf16.mxu0 %v1918_v46 }
  0x73   : > { %1297 = vmatprep.subr.bf16.mxu1 %v1921_v47 }
  0x75   : > { %1255 = vmatpush2.bf16.msra.mxu0 %v1916_v48 }
  0x76   : > { %1298 = vmatpush2.bf16.msra.mxu1 %v1919_v49  ;;  %1256 = vmatprep.subr.bf16.mxu0 %v1924_v50 }
  0x77   : > { %1299 = vmatprep.subr.bf16.mxu1 %v1927_v51 }
  0x79   : > { %1257 = vmatpush2.bf16.msra.mxu0 %v1922_v52 }
  0x7a   : > { %1300 = vmatpush2.bf16.msra.mxu1 %v1925_v53  ;;  %1258 = vmatprep.subr.bf16.mxu0 %v1930_v54 }
  0x7b   : > { %1301 = vmatprep.subr.bf16.mxu1 %v1933_v55 }
  0x7d   : > { %1259 = vmatpush2.bf16.msra.mxu0 %v1928_v56 }
  0x7e   : > { %1302 = vmatpush2.bf16.msra.mxu1 %v1931_v57  ;;  %1260 = vmatprep.subr.bf16.mxu0 %v1936_v58 }
  0x7f   : > { %1303 = vmatprep.subr.bf16.mxu1 %v1939_v59 }
  0x81   : > { %1261 = vmatpush2.bf16.msra.mxu0 %v1934_v60 }
  0x82   : > { %1304 = vmatpush2.bf16.msra.mxu1 %v1937_v61  ;;  %1262 = vmatprep.subr.bf16.mxu0 %v1942_v62 }
  0x83   : > { %1305 = vmatprep.subr.bf16.mxu1 %v1945_v63 }
  0x85   : > { %1263 = vmatpush2.bf16.msra.mxu0 %v1940_v0 }
  0x86   : > { %1306 = vmatpush2.bf16.msra.mxu1 %v1943_v1  ;;  %1264 = vmatprep.subr.bf16.mxu0 %v1948_v2 }
  0x87   : > { %1307 = vmatprep.subr.bf16.mxu1 %v1951_v3 }
  0x89   : > { %1265 = vmatpush2.bf16.msra.mxu0 %v1946_v4 }
  0x8a   : > { %1308 = vmatpush2.bf16.msra.mxu1 %v1949_v5  ;;  %1320 = vmatprep.subr.bf16.mxu0 %v1957_v6 }
  0x8c   : > { %1267 = vmatmul.mubr.bf16.vlgmr.msra.gmra.mxu0 %v1952_v7 }
  0x8d   : > { %1310 = vmatmul.mubr.bf16.vlgmr.msra.gmra.mxu1 %v1958_v8  ;;  %1321 = vmatpush1.bf16.msra.mxu0 %v1955_v9 }
  0x8e   : > { %1352 = vmatprep.mubr.bf16.mxu0 %v1991_v12  ;;  %1322 = vmatprep.subr.bf16.mxu0 %v1963_v10  ;;  %v1992_v12 = vmov 1966171168  }
  0x91   : > { %1323 = vmatpush1.bf16.msra.mxu0 %v1961_v11 }
  0x92   : > { %1324 = vmatprep.subr.bf16.mxu0 %v1966_v13  ;;  %v1381_v13 = vunpack.c.l.s4 %v1992_v12 }
  0x95   : > { %1325 = vmatpush1.bf16.msra.mxu0 %v1964_v14  ;;  %v1383_v14 = vlaneseq }
  0x96   : > { %1326 = vmatprep.subr.bf16.mxu0 %v1969_v15 }
  0x97   : > { %vm1397_vm0 = vcmp.lt.s32.totalorder %v1383_v14, 256 }
  0x99   : > { %1327 = vmatpush1.bf16.msra.mxu0 %v1967_v16 }
  0x9a   : > { %1328 = vmatprep.subr.bf16.mxu0 %v1972_v17 }
  0x9d   : > { %1329 = vmatpush1.bf16.msra.mxu0 %v1970_v18 }
  0x9e   : > { %1330 = vmatprep.subr.bf16.mxu0 %v1975_v19 }
  0xa1   : > { %1331 = vmatpush1.bf16.msra.mxu0 %v1973_v20 }
  0xa2   : > { %1332 = vmatprep.subr.bf16.mxu0 %v1978_v21 }
  0xa5   : > { %1333 = vmatpush1.bf16.msra.mxu0 %v1976_v22 }
  0xa6   : > { %1334 = vmatprep.subr.bf16.mxu0 %v1981_v23  ;;  %v1382_v23 = vunpack.c.0.s8 %v1381_v13 }
  0xa9   : > { %1335 = vmatpush1.bf16.msra.mxu0 %v1979_v24  ;;  %v1384_v24 = vshrl.u32 %v1383_v14, 7 }
  0xac   : > { %1353 = vmatmul.mubr.bf16.vlgmr.msra.gmra.mxu0 %v1982_v25 }
 0x10c   : > { %v1182_v26 = vpop.f32.mrf.mxu0 }
 0x10d   : > { %v1225_v27 = vpop.f32.mrf.mxu1 }
 0x10e   : > { %v1184_v28 = vpop.f32.mrf.mxu0  ;;  %v1226_v39 = vadd.f32 %v1225_v27, %v1182_v26 }
 0x10f   : > { %v1227_v29 = vpop.f32.mrf.mxu1 }
 0x110   : > { %v1186_v30 = vpop.f32.mrf.mxu0  ;;  %v1228_v40 = vadd.f32 %v1227_v29, %v1184_v28 }
 0x111   : > { %v1229_v31 = vpop.f32.mrf.mxu1 }
 0x112   : > { %v1188_v32 = vpop.f32.mrf.mxu0  ;;  %v1230_v41 = vadd.f32 %v1229_v31, %v1186_v30 }
 0x113   : > { %v1231_v34 = vpop.f32.mrf.mxu1 }
 0x114   : > { %v1232_v46 = vadd.f32 %v1231_v34, %v1188_v32  ;;  %v1385_v34 = vsub.s32 %v1382_v23, %v1384_v24 }
 0x14c   : > { %v1268_v33 = vpop.f32.mrf.mxu0 }
 0x14d   : > { %v1311_v36 = vpop.f32.mrf.mxu1  ;;  %v1269_v42 = vadd.f32 %v1268_v33, %v1226_v39 }
 0x14e   : > { %v1270_v35 = vpop.f32.mrf.mxu0 }
 0x14f   : > { %v1313_v38 = vpop.f32.mrf.mxu1  ;;  %v1271_v43 = vadd.f32 %v1270_v35, %v1228_v40  ;;  %v1312_v49 = vadd.f32 %v1311_v36, %v1269_v42 }
 0x150   : > { %v1272_v37 = vpop.f32.mrf.mxu0 }
 0x151   : > { %v1315_v45 = vpop.f32.mrf.mxu1  ;;  %v1273_v47 = vadd.f32 %v1272_v37, %v1230_v41  ;;  %v1314_v50 = vadd.f32 %v1313_v38, %v1271_v43 }
 0x152   : > { %v1274_v44 = vpop.f32.mrf.mxu0 }
 0x153   : > { %v1275_v51 = vadd.f32 %v1274_v44, %v1232_v46  ;;  %v1317_v52 = vpop.f32.mrf.mxu1  ;;  %v1316_v54 = vadd.f32 %v1315_v45, %v1273_v47 }
 0x155   : > { %v1318_v58 = vadd.f32 %v1317_v52, %v1275_v51 }
 0x16c   : > { %v1354_v48 = vpop.f32.mrf.mxu0 }
 0x16d   : > { %v1355_v55 = vadd.f32 %v1354_v48, %v1312_v49 }
 0x16e   : > { %v1356_v53 = vpop.f32.mrf.mxu0 }
 0x16f   : > { %v1357_v56 = vadd.f32 %v1356_v53, %v1314_v50  ;;  %v1400_v62 = vmul.f32 %v1355_v55, %v1355_v55 }
 0x170   : > { %v1358_v57 = vpop.f32.mrf.mxu0 }
 0x171   : > { %v1741_v59 = vpack.c.bf16 %v1357_v56, %v1355_v55  ;;  %v1359_v60 = vadd.f32 %v1358_v57, %v1316_v54  ;;  %v1401_v2 = vmul.f32 %v1357_v56, %v1357_v56 }
 0x172   : > { %v1360_v61 = vpop.f32.mrf.mxu0 }
 0x173   : > { %1449 = vst [vmem:[%s217_s19] sm:$0xff] %v1741_v59  ;;  %v1363_v63 = vadd.f32 %v1359_v60, %v1355_v55  ;;  %v1402_v0 = vmul.f32 %v1359_v60, %v1359_v60  ;;  %v1361_v1 = vadd.f32 %v1360_v61, %v1318_v58 }
 0x175   : > { %v1364_v3 = vrot.slane %v1363_v63, 4  ;;  %v1404_v4 = vadd.f32 %v1402_v0, %v1400_v62  ;;  %v1370_v5 = vadd.f32 %v1361_v1, %v1357_v56  ;;  %v1403_v6 = vmul.f32 %v1361_v1, %v1361_v1 }
 0x176   : > { %v1742_v7 = vpack.c.bf16 %v1361_v1, %v1359_v60 }
 0x177   : > { %v1365_v8 = vadd.f32 %v1364_v3, %v1363_v63  ;;  %v1405_v9 = vrot.slane %v1404_v4, 4  ;;  %v1371_v10 = vrot.slane %v1370_v5, 4  ;;  %v1411_v11 = vadd.f32 %v1403_v6, %v1401_v2 }
 0x178   : > { %1450 = vst [vmem:[%s217_s19 + $0x8] sm:$0xff] %v1742_v7 }
 0x179   : > { %v1366_v15 = vrot.slane %v1365_v8, 2  ;;  %v1406_v16 = vadd.f32 %v1405_v9, %v1404_v4  ;;  %v1372_v17 = vadd.f32 %v1371_v10, %v1370_v5  ;;  %v1412_v18 = vrot.slane %v1411_v11, 4 }
 0x17b   : > { %v1367_v19 = vadd.f32 %v1366_v15, %v1365_v8  ;;  %v1407_v20 = vrot.slane %v1406_v16, 2  ;;  %v1373_v21 = vrot.slane %v1372_v17, 2  ;;  %v1413_v22 = vadd.f32 %v1412_v18, %v1411_v11 }
 0x17d   : > { %v1368_v25 = vrot.slane %v1367_v19, 1  ;;  %v1408_v26 = vadd.f32 %v1407_v20, %v1406_v16  ;;  %v1374_v27 = vadd.f32 %v1373_v21, %v1372_v17  ;;  %v1414_v28 = vrot.slane %v1413_v22, 2 }
 0x17f   : > { %v1409_v29 = vrot.slane %v1408_v26, 1  ;;  %v1375_v30 = vrot.slane %v1374_v27, 1  ;;  %v1415_v31 = vadd.f32 %v1414_v28, %v1413_v22  ;;  %v1369_v32 = vadd.f32 %v1368_v25, %v1367_v19 }
 0x181   : > { %v1376_v33 = vadd.f32 %v1375_v30, %v1374_v27  ;;  %v1416_v35 = vrot.slane %v1415_v31, 1  ;;  %v1410_v36 = vadd.f32 %v1409_v29, %v1408_v26 }
 0x183   : > { %v1379_v37 = vcombine.low %v1369_v32, %v1376_v33  ;;  %v1417_v38 = vadd.f32 %v1416_v35, %v1415_v31 }
 0x185   : > { %v1386_v39 = vrot.slane %v1379_v37, %v1385_v34  ;;  %v1420_v40 = vcombine.low %v1410_v36, %v1417_v38 }
 0x187   : > { %v1393_v41 = vrot.slane %v1386_v39, %v1385_v34  ;;  %v1427_v42 = vrot.slane %v1420_v40, %v1385_v34 }
 0x189   : > { %1399 = vst.msk [vmem:[%s222_s22] sm:$0x3] %vm1397_vm0, %v1393_v41  ;;  %v1434_v43 = vrot.slane %v1427_v42, %v1385_v34 }
 0x18b   : > { %1436 = vst.msk [vmem:[%s226_s25] sm:$0x3] %vm1397_vm0, %v1434_v43 }
 0x18c PF: > { %s15_s15 = sadd.s32 1, %s1989_s15  }
 0x18d   : > { %p12_p5 = scmp.ge.s32.totalorder %s15_s15, 4  }
 0x18f   :  { %14 = sbr.rel (!%p12_p5) target bundleno = 1 (0x1), region = 82 }

// kernel: discriminator_pallas.7
= control target key start
LH: loop header
LB: loop body
LE: loop exit
PB: predicated region body
PF: predicated region fallthrough
CT: control target
= control target key end

     0   :  { %v41_v20 = vlaneseq  ;;  %v4417_v28 = vmov 1983009808   ;;  %s5433_s3 = inlined_call_operand.vmem [shape: bf16[4096,128], index: 3, kind: input, shape index: {}]   ;;  %s5434_s1 = inlined_call_operand.vmem [shape: f32[1,4096], index: 1, kind: input, shape index: {}]   ;;  %s5435_s2 = inlined_call_operand.vmem [shape: f32[1,4096], index: 2, kind: input, shape index: {}]   ;;  %s5436_s0 = inlined_call_operand.vmem [shape: bf16[2,4096], index: 0, kind: input, shape index: {}]   ;;  %s5437_s4 = inlined_call_operand.vmem [shape: f32[1,128], index: 4, kind: input, shape index: {}]   ;;  %s5438_s5 = inlined_call_operand.vmem [shape: f32[2,128], index: 5, kind: output, shape index: {}]  }
   0x1   :  { %v4157_v0 = vld [vmem:[%s5433_s3 + $0x78] sm:$0xff]   ;;  %v4161_v4 = vld [vmem:[%s5433_s3 + $0x70] sm:$0xff]   ;;  %v4165_v8 = vld [vmem:[%s5433_s3 + $0x68] sm:$0xff]   ;;  %v172_v29 = vunpack.c.l.s4 %v4417_v28 }
   0x2   :  { %v4158_v1 = vld [vmem:[%s5433_s3 + $0xf8] sm:$0xff]   ;;  %3804 = vmatprep.subr.bf16.mxu0 %v4157_v0  ;;  %v4162_v5 = vld [vmem:[%s5433_s3 + $0xf0] sm:$0xff]   ;;  %v4166_v9 = vld [vmem:[%s5433_s3 + $0xe8] sm:$0xff]   ;;  %v42_v25 = vshrl.u32 %v41_v20, 7 }
   0x3   :  { %v4159_v2 = vld [vmem:[%s5433_s3 + $0x38] sm:$0xff]   ;;  %3826 = vmatprep.subr.bf16.mxu1 %v4158_v1  ;;  %v4163_v6 = vld [vmem:[%s5433_s3 + $0x30] sm:$0xff]   ;;  %v4167_v10 = vld [vmem:[%s5433_s3 + $0x28] sm:$0xff]   ;;  %v173_v37 = vunpack.c.0.s8 %v172_v29 }
   0x4   :  { %v4160_v3 = vld [vmem:[%s5433_s3 + $0xb8] sm:$0xff]   ;;  %3805 = vmatpush3.bf16.msra.mxu0 %v4159_v2  ;;  %v4164_v7 = vld [vmem:[%s5433_s3 + $0xb0] sm:$0xff]   ;;  %v4168_v11 = vld [vmem:[%s5433_s3 + $0xa8] sm:$0xff]   ;;  %v4532_v32 = vsub.s32 0, %v42_v25  ;;  %v4537_v34 = vsub.s32 1, %v42_v25  ;;  %v4542_v36 = vsub.s32 2, %v42_v25 }
   0x5   :  { %3827 = vmatpush3.bf16.msra.mxu1 %v4160_v3  ;;  %3806 = vmatprep.subr.bf16.mxu0 %v4161_v4  ;;  %v4169_v12 = vld [vmem:[%s5433_s3 + $0x60] sm:$0xff]   ;;  %v4173_v16 = vld [vmem:[%s5433_s3 + $0x58] sm:$0xff]   ;;  %v4177_v21 = vld [vmem:[%s5433_s3 + $0x50] sm:$0xff]   ;;  %v4547_v39 = vsub.s32 3, %v42_v25  ;;  %v4560_v45 = vsub.s32 %v173_v37, %v42_v25  ;;  %v4565_v47 = vsub.s32 4, %v42_v25  ;;  %v4579_v57 = vsub.s32 5, %v42_v25 }
   0x6   :  { %3828 = vmatprep.subr.bf16.mxu1 %v4162_v5  ;;  %v4170_v13 = vld [vmem:[%s5433_s3 + $0xe0] sm:$0xff]   ;;  %v4174_v17 = vld [vmem:[%s5433_s3 + $0xd8] sm:$0xff]   ;;  %v4178_v22 = vld [vmem:[%s5433_s3 + $0xd0] sm:$0xff]   ;;  %v4581_v60 = vsub.s32 6, %v42_v25  ;;  %v4583_v61 = vsub.s32 7, %v42_v25 }
   0x7   :  { %v4171_v14 = vld [vmem:[%s5433_s3 + $0x20] sm:$0xff]   ;;  %v4175_v18 = vld [vmem:[%s5433_s3 + $0x18] sm:$0xff]   ;;  %v4179_v23 = vld [vmem:[%s5433_s3 + $0x10] sm:$0xff]  }
   0x8   :  { %3807 = vmatpush3.bf16.msra.mxu0 %v4163_v6  ;;  %v4172_v15 = vld [vmem:[%s5433_s3 + $0xa0] sm:$0xff]   ;;  %v4176_v19 = vld [vmem:[%s5433_s3 + $0x98] sm:$0xff]   ;;  %v4180_v24 = vld [vmem:[%s5433_s3 + $0x90] sm:$0xff]  }
   0x9   :  { %3829 = vmatpush3.bf16.msra.mxu1 %v4164_v7  ;;  %3808 = vmatprep.subr.bf16.mxu0 %v4165_v8  ;;  %v4181_v26 = vld [vmem:[%s5433_s3 + $0x48] sm:$0xff]   ;;  %v4185_v33 = vld [vmem:[%s5433_s3 + $0x40] sm:$0xff]   ;;  %v4189_v46 = vld [vmem:[%s5433_s3 + $0x178] sm:$0xff]  }
   0xa   :  { %3830 = vmatprep.subr.bf16.mxu1 %v4166_v9  ;;  %v4182_v27 = vld [vmem:[%s5433_s3 + $0xc8] sm:$0xff]   ;;  %v4186_v35 = vld [vmem:[%s5433_s3 + $0xc0] sm:$0xff]   ;;  %v4190_v52 = vld [vmem:[%s5433_s3 + $0x1f8] sm:$0xff]  }
   0xb   :  { %v4183_v30 = vld [vmem:[%s5433_s3 + $0x8] sm:$0xff]   ;;  %v4187_v38 = vld [vmem:[%s5433_s3] sm:$0xff]  }
   0xc   :  { %3809 = vmatpush3.bf16.msra.mxu0 %v4167_v10  ;;  %v4184_v31 = vld [vmem:[%s5433_s3 + $0x88] sm:$0xff]   ;;  %v4188_v40 = vld [vmem:[%s5433_s3 + $0x80] sm:$0xff]  }
   0xd   :  { %3831 = vmatpush3.bf16.msra.mxu1 %v4168_v11  ;;  %3810 = vmatprep.subr.bf16.mxu0 %v4169_v12  ;;  %v33_v41 = vld [vmem:[%s5434_s1] sm:$0xff] }
   0xe   :  { %3832 = vmatprep.subr.bf16.mxu1 %v4170_v13  ;;  %v321_v42 = vld [vmem:[%s5435_s2] sm:$0xff]  ;;  %v44_v43 = vrot.slane %v33_v41, %v4532_v32  ;;  %v48_v44 = vrot.slane %v33_v41, %v4537_v34  ;;  %v52_v48 = vrot.slane %v33_v41, %v4542_v36  ;;  %v56_v49 = vrot.slane %v33_v41, %v4547_v39 }
   0xf   :  { %v332_v50 = vrot.slane %v321_v42, %v4532_v32  ;;  %v336_v51 = vrot.slane %v321_v42, %v4537_v34  ;;  %v21_v53 = vld [vmem:[%s5436_s0] sm:$0xff]  ;;  %v340_v55 = vrot.slane %v321_v42, %v4542_v36  ;;  %v344_v56 = vrot.slane %v321_v42, %v4547_v39 }
  0x10   :  { %3811 = vmatpush3.bf16.msra.mxu0 %v4171_v14  ;;  %v169_v54 = vcombine.low %v44_v43, %v48_v44  ;;  %v170_v58 = vcombine.low %v52_v48, %v56_v49  ;;  %v25_v0 = vunpack.c.l.bf16 %v21_v53  ;;  %v60_v4 = vrot.slane %v33_v41, %v4565_v47  ;;  %v4194_v44 = vld [vmem:[%s5433_s3 + $0x1f0] sm:$0xff]  }
  0x11   :  { %3833 = vmatpush3.bf16.msra.mxu1 %v4172_v15  ;;  %3812 = vmatprep.subr.bf16.mxu0 %v4173_v16  ;;  %v457_v59 = vcombine.low %v332_v50, %v336_v51  ;;  %v458_v63 = vcombine.low %v340_v55, %v344_v56  ;;  %v64_v5 = vrot.slane %v33_v41, %v4579_v57  ;;  %v4196_v50 = vld [vmem:[%s5433_s3 + $0x1b0] sm:$0xff]   ;;  %v4197_v51 = vld [vmem:[%s5433_s3 + $0x168] sm:$0xff]   ;;  %v4201_v56 = vld [vmem:[%s5433_s3 + $0x160] sm:$0xff]  }
  0x12   :  { %3834 = vmatprep.subr.bf16.mxu1 %v4174_v17  ;;  %v177_v62 = vrot.slane %v169_v54, %v4560_v45  ;;  %v184_v1 = vrot.slane %v170_v58, %v4560_v45  ;;  %v68_v7 = vrot.slane %v33_v41, %v4581_v60  ;;  %v72_v8 = vrot.slane %v33_v41, %v4583_v61  ;;  %v4200_v55 = vld [vmem:[%s5433_s3 + $0x1a8] sm:$0xff]   ;;  %v4202_v58 = vld [vmem:[%s5433_s3 + $0x1e0] sm:$0xff]  }
  0x13   :  { %v465_v2 = vrot.slane %v457_v59, %v4560_v45  ;;  %v472_v3 = vrot.slane %v458_v63, %v4560_v45  ;;  %v186_v11 = vcombine.low %v60_v4, %v64_v5  ;;  %v348_v12 = vrot.slane %v321_v42, %v4565_v47  ;;  %v4203_v59 = vld [vmem:[%s5433_s3 + $0x120] sm:$0xff]   ;;  %v4205_v63 = vld [vmem:[%s5433_s3 + $0x158] sm:$0xff]  }
  0x14   :  { %3813 = vmatpush3.bf16.msra.mxu0 %v4175_v18  ;;  %v185_v6 = vcombine.low %v177_v62, %v184_v1  ;;  %v352_v13 = vrot.slane %v321_v42, %v4579_v57  ;;  %v187_v15 = vcombine.low %v68_v7, %v72_v8  ;;  %v356_v16 = vrot.slane %v321_v42, %v4581_v60  ;;  %v4204_v62 = vld [vmem:[%s5433_s3 + $0x1a0] sm:$0xff]   ;;  %v4206_v1 = vld [vmem:[%s5433_s3 + $0x1d8] sm:$0xff]   ;;  %v4209_v7 = vld [vmem:[%s5433_s3 + $0x150] sm:$0xff]  }
  0x15   :  { %3835 = vmatpush3.bf16.msra.mxu1 %v4176_v19  ;;  %3814 = vmatprep.subr.bf16.mxu0 %v4177_v21  ;;  %v473_v9 = vcombine.low %v465_v2, %v472_v3  ;;  %v360_v17 = vrot.slane %v321_v42, %v4583_v61  ;;  %v194_v19 = vrot.slane %v186_v11, %v4560_v45  ;;  %v4193_v42 = vld [vmem:[%s5433_s3 + $0x170] sm:$0xff]   ;;  %v4207_v3 = vld [vmem:[%s5433_s3 + $0x118] sm:$0xff]  }
  0x16   :  { %3836 = vmatprep.subr.bf16.mxu1 %v4178_v22  ;;  %v313_v10 = vmul.f32 %v185_v6, %v25_v0  ;;  %v201_v21 = vrot.slane %v187_v15, %v4560_v45  ;;  %v474_v22 = vcombine.low %v348_v12, %v352_v13  ;;  %v4208_v6 = vld [vmem:[%s5433_s3 + $0x198] sm:$0xff]   ;;  %v4211_v11 = vld [vmem:[%s5433_s3 + $0x110] sm:$0xff]   ;;  %v4213_v15 = vld [vmem:[%s5433_s3 + $0x148] sm:$0xff]  }
  0x18   :  { %3815 = vmatpush3.bf16.msra.mxu0 %v4179_v23  ;;  %v601_v14 = vadd.f32 %v473_v9, %v313_v10  ;;  %v475_v23 = vcombine.low %v356_v16, %v360_v17  ;;  %v4210_v10 = vld [vmem:[%s5433_s3 + $0x1d0] sm:$0xff]   ;;  %v4214_v17 = vld [vmem:[%s5433_s3 + $0x1c8] sm:$0xff]  }
  0x19   :  { %3837 = vmatpush3.bf16.msra.mxu1 %v4180_v24  ;;  %3816 = vmatprep.subr.bf16.mxu0 %v4181_v26  ;;  %v26_v26 = vunpack.c.h.bf16 %v21_v53  ;;  %v4199_v53 = vld [vmem:[%s5433_s3 + $0x128] sm:$0xff]  }
  0x1a   :  { %3838 = vmatprep.subr.bf16.mxu1 %v4182_v27  ;;  %vm609_vm0 = vcmp.ge.f32.partialorder %v601_v14, 0.0  ;;  %v617_v18 = vmul.f32 0.2, %v601_v14 }
  0x1c   :  { %3817 = vmatpush3.bf16.msra.mxu0 %v4183_v30  ;;  %v625_v20 = vsel %vm609_vm0, %v601_v14, %v617_v18  ;;  %v4191_v30 = vld [vmem:[%s5433_s3 + $0x138] sm:$0xff]   ;;  %v4212_v14 = vld [vmem:[%s5433_s3 + $0x190] sm:$0xff]   ;;  %v4215_v18 = vld [vmem:[%s5433_s3 + $0x108] sm:$0xff]  }
  0x1d   :  { %3839 = vmatpush3.bf16.msra.mxu1 %v4184_v31  ;;  %3818 = vmatprep.subr.bf16.mxu0 %v4185_v33  ;;  %v648_v24 = vrot.slane %v625_v20, %v4560_v45  ;;  %v641_v25 = vcombine.high %v625_v20, %v625_v20  ;;  %v202_v31 = vcombine.low %v194_v19, %v201_v21  ;;  %v4216_v19 = vld [vmem:[%s5433_s3 + $0x188] sm:$0xff]   ;;  %v4217_v20 = vld [vmem:[%s5433_s3 + $0x140] sm:$0xff]  }
  0x1e   :  { %3840 = vmatprep.subr.bf16.mxu1 %v4186_v35  ;;  %v482_v33 = vrot.slane %v474_v22, %v4560_v45  ;;  %v489_v35 = vrot.slane %v475_v23, %v4560_v45  ;;  %v4218_v21 = vld [vmem:[%s5433_s3 + $0x1c0] sm:$0xff]  }
  0x1f   :  { %v656_v27 = vcombine.high %v648_v24, %v648_v24  ;;  %v655_v28 = vrot.slane %v641_v25, %v4560_v45  ;;  %v809_v29 = vpack.c.bf16 %v648_v24, %v648_v24  ;;  %v314_v48 = vmul.f32 %v202_v31, %v26_v26  ;;  %v4219_v22 = vld [vmem:[%s5433_s3 + $0x100] sm:$0xff]   ;;  %v4221_v24 = vld [vmem:[%s5433_s3 + $0x278] sm:$0xff]   ;;  %v4226_v31 = vld [vmem:[%s5433_s3 + $0x2f0] sm:$0xff]  }
  0x20   :  { %3819 = vmatpush3.bf16.msra.mxu0 %v4187_v38  ;;  %v490_v49 = vcombine.low %v482_v33, %v489_v35  ;;  %v4220_v23 = vld [vmem:[%s5433_s3 + $0x180] sm:$0xff]   ;;  %v4222_v25 = vld [vmem:[%s5433_s3 + $0x2f8] sm:$0xff]   ;;  %v4227_v33 = vld [vmem:[%s5433_s3 + $0x230] sm:$0xff]  }
  0x21   :  { %3841 = vmatpush3.bf16.msra.mxu1 %v4188_v40  ;;  %3848 = vmatprep.subr.bf16.mxu0 %v4189_v46  ;;  %v810_v37 = vpack.c.bf16 %v656_v27, %v656_v27  ;;  %v657_v38 = vcombine.high %v655_v28, %v655_v28  ;;  %v4192_v40 = vld [vmem:[%s5433_s3 + $0x1b8] sm:$0xff]   ;;  %v811_v41 = vpack.c.bf16 %v655_v28, %v655_v28  ;;  %v4195_v46 = vld [vmem:[%s5433_s3 + $0x130] sm:$0xff]  }
  0x22   :  { %3870 = vmatprep.subr.bf16.mxu1 %v4190_v52  ;;  %v4198_v52 = vld [vmem:[%s5433_s3 + $0x1e8] sm:$0xff]   ;;  %v602_v54 = vadd.f32 %v490_v49, %v314_v48  ;;  %v4223_v27 = vld [vmem:[%s5433_s3 + $0x238] sm:$0xff]   ;;  %v4228_v35 = vld [vmem:[%s5433_s3 + $0x2b0] sm:$0xff]  }
  0x23   :  { %2928 = vmatprep.mubr.bf16.mxu0 %v810_v37  ;;  %v812_v43 = vpack.c.bf16 %v657_v38, %v657_v38  ;;  %v4224_v28 = vld [vmem:[%s5433_s3 + $0x2b8] sm:$0xff]   ;;  %v4229_v37 = vld [vmem:[%s5433_s3 + $0x268] sm:$0xff]  }
  0x24   :  { %2929 = vmatmul.mubr.bf16.vlgmr.msra.gmra.mxu0 %v809_v29  ;;  %vm610_vm1 = vcmp.ge.f32.partialorder %v602_v54, 0.0  ;;  %v618_v0 = vmul.f32 0.2, %v602_v54  ;;  %v4230_v38 = vld [vmem:[%s5433_s3 + $0x2e8] sm:$0xff]   ;;  %v4237_v48 = vld [vmem:[%s5433_s3 + $0x258] sm:$0xff]  }
  0x25   :  { %2968 = vmatprep.mubr.bf16.mxu1 %v812_v43  ;;  %3849 = vmatpush3.bf16.msra.mxu0 %v4191_v30  ;;  %v4225_v30 = vld [vmem:[%s5433_s3 + $0x270] sm:$0xff]   ;;  %v4234_v43 = vld [vmem:[%s5433_s3 + $0x2e0] sm:$0xff]   ;;  %v34_v49 = vld [vmem:[%s5434_s1 + $0x8] sm:$0xff] }
  0x26   :  { %2969 = vmatmul.mubr.bf16.vlgmr.msra.gmra.mxu1 %v811_v41  ;;  %3850 = vmatprep.subr.bf16.mxu0 %v4193_v42  ;;  %v626_v2 = vsel %vm610_vm1, %v602_v54, %v618_v0  ;;  %v4232_v41 = vld [vmem:[%s5433_s3 + $0x2a8] sm:$0xff]   ;;  %v4233_v42 = vld [vmem:[%s5433_s3 + $0x260] sm:$0xff]   ;;  %v4238_v54 = vld [vmem:[%s5433_s3 + $0x2d8] sm:$0xff]  }
  0x27   :  { %3871 = vmatpush3.bf16.msra.mxu1 %v4192_v40  ;;  %v665_v4 = vrot.slane %v626_v2, %v4560_v45  ;;  %v658_v5 = vcombine.high %v626_v2, %v626_v2  ;;  %v4231_v40 = vld [vmem:[%s5433_s3 + $0x228] sm:$0xff]  }
  0x28   :  { %3872 = vmatprep.subr.bf16.mxu1 %v4194_v44  ;;  %v4235_v44 = vld [vmem:[%s5433_s3 + $0x220] sm:$0xff]  }
  0x29   :  { %3851 = vmatpush3.bf16.msra.mxu0 %v4195_v46  ;;  %v673_v8 = vcombine.high %v665_v4, %v665_v4  ;;  %v672_v9 = vrot.slane %v658_v5, %v4560_v45  ;;  %v813_v26 = vpack.c.bf16 %v665_v4, %v665_v4  ;;  %v4236_v46 = vld [vmem:[%s5433_s3 + $0x2a0] sm:$0xff]   ;;  %v4241_v4 = vld [vmem:[%s5433_s3 + $0x250] sm:$0xff]  }
  0x2a   :  { %3852 = vmatprep.subr.bf16.mxu0 %v4197_v51  ;;  %v80_v51 = vrot.slane %v34_v49, %v4537_v34 }
  0x2b   :  { %3873 = vmatpush3.bf16.msra.mxu1 %v4196_v50  ;;  %v814_v12 = vpack.c.bf16 %v673_v8, %v673_v8  ;;  %v674_v13 = vcombine.high %v672_v9, %v672_v9  ;;  %v815_v29 = vpack.c.bf16 %v672_v9, %v672_v9  ;;  %v76_v50 = vrot.slane %v34_v49, %v4532_v32 }
  0x2c   :  { %3874 = vmatprep.subr.bf16.mxu1 %v4198_v52  ;;  %v84_v52 = vrot.slane %v34_v49, %v4542_v36 }
  0x2d   :  { %3853 = vmatpush3.bf16.msra.mxu0 %v4199_v53  ;;  %3008 = vmatprep.mubr.bf16.mxu0 %v814_v12  ;;  %v816_v16 = vpack.c.bf16 %v674_v13, %v674_v13  ;;  %v4755_v53 = vld [vmem:[%s5435_s2 + $0x8] sm:$0xff]  ;;  %v92_v13 = vrot.slane %v34_v49, %v4565_v47 }
  0x2e   :  { %3854 = vmatprep.subr.bf16.mxu0 %v4201_v56  ;;  %v364_v56 = vrot.slane %v4755_v53, %v4532_v32  ;;  %v376_v0 = vrot.slane %v4755_v53, %v4547_v39 }
  0x2f   :  { %3875 = vmatpush3.bf16.msra.mxu1 %v4200_v55  ;;  %3048 = vmatprep.mubr.bf16.mxu1 %v816_v16  ;;  %v88_v55 = vrot.slane %v34_v49, %v4547_v39 }
  0x30   :  { %3876 = vmatprep.subr.bf16.mxu1 %v4202_v58  ;;  %v368_v58 = vrot.slane %v4755_v53, %v4537_v34 }
  0x31   :  { %3855 = vmatpush3.bf16.msra.mxu0 %v4203_v59  ;;  %v372_v59 = vrot.slane %v4755_v53, %v4542_v36  ;;  %v204_v2 = vcombine.low %v84_v52, %v88_v55 }
  0x32   :  { %3856 = vmatprep.subr.bf16.mxu0 %v4205_v63  ;;  %v203_v63 = vcombine.low %v76_v50, %v80_v51  ;;  %v4253_v50 = vld [vmem:[%s5433_s3 + $0x378] sm:$0xff]   ;;  %v4252_v51 = vld [vmem:[%s5433_s3 + $0x280] sm:$0xff]  }
  0x33   :  { %3877 = vmatpush3.bf16.msra.mxu1 %v4204_v62  ;;  %v4770_v62 = vld [vmem:[%s5436_s0 + $0x8] sm:$0xff]  ;;  %v218_v9 = vrot.slane %v204_v2, %v4560_v45 }
  0x34   :  { %3878 = vmatprep.subr.bf16.mxu1 %v4206_v1  ;;  %v4239_v1 = vld [vmem:[%s5433_s3 + $0x218] sm:$0xff]   ;;  %v211_v5 = vrot.slane %v203_v63, %v4560_v45  ;;  %v27_v8 = vunpack.c.l.bf16 %v4770_v62  ;;  %v28_v55 = vunpack.c.h.bf16 %v4770_v62 }
  0x35   :  { %3857 = vmatpush3.bf16.msra.mxu0 %v4207_v3  ;;  %v491_v3 = vcombine.low %v364_v56, %v368_v58  ;;  %v4255_v58 = vld [vmem:[%s5433_s3 + $0x338] sm:$0xff]  }
  0x36   :  { %3858 = vmatprep.subr.bf16.mxu0 %v4209_v7  ;;  %v4240_v7 = vld [vmem:[%s5433_s3 + $0x298] sm:$0xff]   ;;  %v219_v16 = vcombine.low %v211_v5, %v218_v9 }
  0x37   :  { %3879 = vmatpush3.bf16.msra.mxu1 %v4208_v6  ;;  %v492_v6 = vcombine.low %v372_v59, %v376_v0 }
  0x38   :  { %3880 = vmatprep.subr.bf16.mxu1 %v4210_v10  ;;  %v499_v10 = vrot.slane %v491_v3, %v4560_v45  ;;  %v4256_v3 = vld [vmem:[%s5433_s3 + $0x3b8] sm:$0xff]  }
  0x39   :  { %3859 = vmatpush3.bf16.msra.mxu0 %v4211_v11  ;;  %v4242_v11 = vld [vmem:[%s5433_s3 + $0x2d0] sm:$0xff]   ;;  %v506_v12 = vrot.slane %v492_v6, %v4560_v45 }
  0x3a   :  { %3860 = vmatprep.subr.bf16.mxu0 %v4213_v15  ;;  %v4243_v15 = vld [vmem:[%s5433_s3 + $0x210] sm:$0xff]  }
  0x3b   :  { %3881 = vmatpush3.bf16.msra.mxu1 %v4212_v14  ;;  %v96_v14 = vrot.slane %v34_v49, %v4579_v57  ;;  %v4258_v6 = vld [vmem:[%s5433_s3 + $0x3f0] sm:$0xff]  }
  0x3c   :  { %3882 = vmatprep.subr.bf16.mxu1 %v4214_v17  ;;  %v100_v17 = vrot.slane %v34_v49, %v4581_v60 }
  0x3d   :  { %3861 = vmatpush3.bf16.msra.mxu0 %v4215_v18  ;;  %v104_v18 = vrot.slane %v34_v49, %v4583_v61 }
  0x3e   :  { %3862 = vmatprep.subr.bf16.mxu0 %v4217_v20  ;;  %v507_v20 = vcombine.low %v499_v10, %v506_v12  ;;  %v4260_v10 = vld [vmem:[%s5433_s3 + $0x3b0] sm:$0xff]   ;;  %v4262_v12 = vld [vmem:[%s5433_s3 + $0x3e8] sm:$0xff]  }
  0x3f   :  { %3883 = vmatpush3.bf16.msra.mxu1 %v4216_v19  ;;  %v4245_v19 = vld [vmem:[%s5433_s3 + $0x248] sm:$0xff]  }
  0x40   :  { %3884 = vmatprep.subr.bf16.mxu1 %v4218_v21  ;;  %v4244_v21 = vld [vmem:[%s5433_s3 + $0x290] sm:$0xff]  }
  0x41   :  { %3863 = vmatpush3.bf16.msra.mxu0 %v4219_v22  ;;  %v315_v22 = vmul.f32 %v219_v16, %v27_v8  ;;  %v4265_v16 = vld [vmem:[%s5433_s3 + $0x360] sm:$0xff]  }
  0x42   :  { %3892 = vmatprep.subr.bf16.mxu0 %v4221_v24  ;;  %v220_v24 = vcombine.low %v92_v13, %v96_v14  ;;  %v4263_v13 = vld [vmem:[%s5433_s3 + $0x328] sm:$0xff]  }
  0x43   :  { %3885 = vmatpush3.bf16.msra.mxu1 %v4220_v23  ;;  %v4246_v23 = vld [vmem:[%s5433_s3 + $0x2c8] sm:$0xff]  }
  0x44   :  { %3009 = vmatmul.mubr.bf16.vlgmr.msra.gmra.mxu0 %v813_v26  ;;  %3914 = vmatprep.subr.bf16.mxu1 %v4222_v25  ;;  %v380_v25 = vrot.slane %v4755_v53, %v4565_v47  ;;  %v384_v26 = vrot.slane %v4755_v53, %v4579_v57 }
  0x45   :  { %3893 = vmatpush3.bf16.msra.mxu0 %v4223_v27  ;;  %v4247_v27 = vld [vmem:[%s5433_s3 + $0x208] sm:$0xff]  }
  0x46   :  { %3049 = vmatmul.mubr.bf16.vlgmr.msra.gmra.mxu1 %v815_v29  ;;  %3894 = vmatprep.subr.bf16.mxu0 %v4225_v30  ;;  %v221_v29 = vcombine.low %v100_v17, %v104_v18  ;;  %v388_v30 = vrot.slane %v4755_v53, %v4581_v60  ;;  %v4266_v17 = vld [vmem:[%s5433_s3 + $0x3e0] sm:$0xff]  }
  0x47   :  { %3915 = vmatpush3.bf16.msra.mxu1 %v4224_v28  ;;  %v603_v28 = vadd.f32 %v507_v20, %v315_v22  ;;  %v4267_v18 = vld [vmem:[%s5433_s3 + $0x320] sm:$0xff]   ;;  %v4269_v20 = vld [vmem:[%s5433_s3 + $0x358] sm:$0xff]  }
  0x48   :  { %3916 = vmatprep.subr.bf16.mxu1 %v4226_v31  ;;  %v392_v31 = vrot.slane %v4755_v53, %v4583_v61  ;;  %v4270_v22 = vld [vmem:[%s5433_s3 + $0x3d8] sm:$0xff]  }
  0x49   :  { %3895 = vmatpush3.bf16.msra.mxu0 %v4227_v33  ;;  %v4249_v33 = vld [vmem:[%s5433_s3 + $0x240] sm:$0xff]   ;;  %vm611_vm2 = vcmp.ge.f32.partialorder %v603_v28, 0.0 }
  0x4a   :  { %3896 = vmatprep.subr.bf16.mxu0 %v4229_v37  ;;  %v619_v37 = vmul.f32 0.2, %v603_v28 }
  0x4b   :  { %3917 = vmatpush3.bf16.msra.mxu1 %v4228_v35  ;;  %v4248_v35 = vld [vmem:[%s5433_s3 + $0x288] sm:$0xff]  }
  0x4c   :  { %3918 = vmatprep.subr.bf16.mxu1 %v4230_v38  ;;  %v4250_v38 = vld [vmem:[%s5433_s3 + $0x2c0] sm:$0xff]  }
  0x4d   :  { %3897 = vmatpush3.bf16.msra.mxu0 %v4231_v40  ;;  %v228_v40 = vrot.slane %v220_v24, %v4560_v45  ;;  %v4271_v24 = vld [vmem:[%s5433_s3 + $0x318] sm:$0xff]  }
  0x4e   :  { %3898 = vmatprep.subr.bf16.mxu0 %v4233_v42  ;;  %v627_v42 = vsel %vm611_vm2, %v603_v28, %v619_v37  ;;  %v4273_v28 = vld [vmem:[%s5433_s3 + $0x350] sm:$0xff]  }
  0x4f   :  { %3919 = vmatpush3.bf16.msra.mxu1 %v4232_v41  ;;  %v4251_v41 = vld [vmem:[%s5433_s3 + $0x200] sm:$0xff]   ;;  %v675_v49 = vcombine.high %v627_v42, %v627_v42 }
  0x50   :  { %3920 = vmatprep.subr.bf16.mxu1 %v4234_v43  ;;  %v235_v43 = vrot.slane %v221_v29, %v4560_v45 }
  0x51   :  { %3899 = vmatpush3.bf16.msra.mxu0 %v4235_v44  ;;  %v508_v44 = vcombine.low %v380_v25, %v384_v26  ;;  %v689_v53 = vrot.slane %v675_v49, %v4560_v45  ;;  %v4283_v49 = vld [vmem:[%s5433_s3 + $0x300] sm:$0xff]  }
  0x52   :  { %3900 = vmatprep.subr.bf16.mxu0 %v4237_v48  ;;  %v682_v48 = vrot.slane %v627_v42, %v4560_v45  ;;  %v236_v59 = vcombine.low %v228_v40, %v235_v43  ;;  %v4277_v40 = vld [vmem:[%s5433_s3 + $0x348] sm:$0xff]  }
  0x53   :  { %3921 = vmatpush3.bf16.msra.mxu1 %v4236_v46  ;;  %v509_v46 = vcombine.low %v388_v30, %v392_v31  ;;  %v516_v63 = vrot.slane %v508_v44, %v4560_v45  ;;  %v691_v2 = vcombine.high %v689_v53, %v689_v53  ;;  %v819_v62 = vpack.c.bf16 %v689_v53, %v689_v53  ;;  %v4274_v31 = vld [vmem:[%s5433_s3 + $0x3d0] sm:$0xff]   ;;  %v4278_v42 = vld [vmem:[%s5433_s3 + $0x3c8] sm:$0xff]  }
  0x54   :  { %3922 = vmatprep.subr.bf16.mxu1 %v4238_v54  ;;  %v690_v52 = vcombine.high %v682_v48, %v682_v48  ;;  %v4254_v54 = vld [vmem:[%s5433_s3 + $0x3f8] sm:$0xff]   ;;  %v817_v56 = vpack.c.bf16 %v682_v48, %v682_v48  ;;  %v316_v8 = vmul.f32 %v236_v59, %v28_v55  ;;  %v4279_v43 = vld [vmem:[%s5433_s3 + $0x308] sm:$0xff]   ;;  %v4282_v48 = vld [vmem:[%s5433_s3 + $0x3c0] sm:$0xff]  }
  0x55   :  { %3901 = vmatpush3.bf16.msra.mxu0 %v4239_v1  ;;  %v523_v0 = vrot.slane %v509_v46, %v4560_v45  ;;  %v820_v5 = vpack.c.bf16 %v691_v2, %v691_v2  ;;  %v4280_v44 = vld [vmem:[%s5433_s3 + $0x388] sm:$0xff]   ;;  %v4281_v46 = vld [vmem:[%s5433_s3 + $0x340] sm:$0xff]   ;;  %v4288_v55 = vld [vmem:[%s5433_s3 + $0x4b8] sm:$0xff]  }
  0x56   :  { %3902 = vmatprep.subr.bf16.mxu0 %v4241_v4  ;;  %v818_v1 = vpack.c.bf16 %v690_v52, %v690_v52  ;;  %v4257_v4 = vld [vmem:[%s5433_s3 + $0x370] sm:$0xff]   ;;  %v4286_v52 = vld [vmem:[%s5433_s3 + $0x4f8] sm:$0xff]   ;;  %v4294_v2 = vld [vmem:[%s5433_s3 + $0x4e8] sm:$0xff]  }
  0x57   :  { %3923 = vmatpush3.bf16.msra.mxu1 %v4240_v7  ;;  %v4259_v7 = vld [vmem:[%s5433_s3 + $0x330] sm:$0xff]   ;;  %v524_v9 = vcombine.low %v516_v63, %v523_v0  ;;  %3128 = vmatprep.mubr.bf16.mxu1 %v820_v5  ;;  %v4298_v5 = vld [vmem:[%s5433_s3 + $0x4e0] sm:$0xff]  }
  0x58   :  { %3924 = vmatprep.subr.bf16.mxu1 %v4242_v11  ;;  %3088 = vmatprep.mubr.bf16.mxu0 %v818_v1  ;;  %v4261_v11 = vld [vmem:[%s5433_s3 + $0x368] sm:$0xff]   ;;  %v4290_v59 = vld [vmem:[%s5433_s3 + $0x4f0] sm:$0xff]  }
  0x59   :  { %3903 = vmatpush3.bf16.msra.mxu0 %v4243_v15  ;;  %v604_v14 = vadd.f32 %v524_v9, %v316_v8  ;;  %v4264_v15 = vld [vmem:[%s5433_s3 + $0x3a8] sm:$0xff]   ;;  %v4291_v63 = vld [vmem:[%s5433_s3 + $0x430] sm:$0xff]   ;;  %v4301_v8 = vld [vmem:[%s5433_s3 + $0x458] sm:$0xff]  }
  0x5a   :  { %3904 = vmatprep.subr.bf16.mxu0 %v4245_v19  ;;  %v4268_v19 = vld [vmem:[%s5433_s3 + $0x3a0] sm:$0xff]   ;;  %v4292_v0 = vld [vmem:[%s5433_s3 + $0x4b0] sm:$0xff]   ;;  %v4293_v1 = vld [vmem:[%s5433_s3 + $0x468] sm:$0xff]  }
  0x5b   :  { %3925 = vmatpush3.bf16.msra.mxu1 %v4244_v21  ;;  %vm612_vm3 = vcmp.ge.f32.partialorder %v604_v14, 0.0  ;;  %v620_v21 = vmul.f32 0.2, %v604_v14  ;;  %v35_v9 = vld [vmem:[%s5434_s1 + $0x10] sm:$0xff] }
  0x5c   :  { %3926 = vmatprep.subr.bf16.mxu1 %v4246_v23 }
  0x5d   :  { %3905 = vmatpush3.bf16.msra.mxu0 %v4247_v27  ;;  %v628_v23 = vsel %vm612_vm3, %v604_v14, %v620_v21  ;;  %v4272_v27 = vld [vmem:[%s5433_s3 + $0x398] sm:$0xff]   ;;  %v116_v14 = vrot.slane %v35_v9, %v4542_v36 }
  0x5e   :  { %3906 = vmatprep.subr.bf16.mxu0 %v4249_v33  ;;  %v699_v25 = vrot.slane %v628_v23, %v4560_v45  ;;  %v692_v26 = vcombine.high %v628_v23, %v628_v23  ;;  %v4275_v33 = vld [vmem:[%s5433_s3 + $0x310] sm:$0xff]   ;;  %v4303_v21 = vld [vmem:[%s5433_s3 + $0x418] sm:$0xff]  }
  0x5f   :  { %3927 = vmatpush3.bf16.msra.mxu1 %v4248_v35 }
  0x60   :  { %3928 = vmatprep.subr.bf16.mxu1 %v4250_v38  ;;  %v707_v29 = vcombine.high %v699_v25, %v699_v25  ;;  %v706_v30 = vrot.slane %v692_v26, %v4560_v45  ;;  %v4276_v38 = vld [vmem:[%s5433_s3 + $0x390] sm:$0xff]   ;;  %v821_v53 = vpack.c.bf16 %v699_v25, %v699_v25 }
  0x61   :  { %3907 = vmatpush3.bf16.msra.mxu0 %v4251_v41 }
  0x62   :  { %3936 = vmatprep.subr.bf16.mxu0 %v4253_v50  ;;  %v822_v35 = vpack.c.bf16 %v707_v29, %v707_v29  ;;  %v708_v37 = vcombine.high %v706_v30, %v706_v30  ;;  %v4284_v50 = vld [vmem:[%s5433_s3 + $0x380] sm:$0xff]  }
  0x63   :  { %3929 = vmatpush3.bf16.msra.mxu1 %v4252_v51  ;;  %v4285_v51 = vld [vmem:[%s5433_s3 + $0x478] sm:$0xff]  }
  0x64   :  { %3958 = vmatprep.subr.bf16.mxu1 %v4254_v54  ;;  %3089 = vmatmul.mubr.bf16.vlgmr.msra.gmra.mxu0 %v817_v56  ;;  %v824_v41 = vpack.c.bf16 %v708_v37, %v708_v37  ;;  %v4287_v54 = vld [vmem:[%s5433_s3 + $0x438] sm:$0xff]   ;;  %v823_v56 = vpack.c.bf16 %v706_v30, %v706_v30  ;;  %v124_v37 = vrot.slane %v35_v9, %v4565_v47 }
  0x65   :  { %3937 = vmatpush3.bf16.msra.mxu0 %v4255_v58  ;;  %3168 = vmatprep.mubr.bf16.mxu0 %v822_v35  ;;  %v4289_v58 = vld [vmem:[%s5433_s3 + $0x470] sm:$0xff]  }
  0x66   :  { %3129 = vmatmul.mubr.bf16.vlgmr.msra.gmra.mxu1 %v819_v62  ;;  %3938 = vmatprep.subr.bf16.mxu0 %v4257_v4  ;;  %v4296_v62 = vld [vmem:[%s5433_s3 + $0x4a8] sm:$0xff]   ;;  %v4297_v4 = vld [vmem:[%s5433_s3 + $0x460] sm:$0xff]  }
  0x67   :  { %3959 = vmatpush3.bf16.msra.mxu1 %v4256_v3  ;;  %3208 = vmatprep.mubr.bf16.mxu1 %v824_v41  ;;  %v4295_v3 = vld [vmem:[%s5433_s3 + $0x428] sm:$0xff]   ;;  %v128_v41 = vrot.slane %v35_v9, %v4579_v57 }
  0x68   :  { %3960 = vmatprep.subr.bf16.mxu1 %v4258_v6  ;;  %v4299_v6 = vld [vmem:[%s5433_s3 + $0x420] sm:$0xff]  }
  0x69   :  { %3939 = vmatpush3.bf16.msra.mxu0 %v4259_v7  ;;  %v4300_v7 = vld [vmem:[%s5433_s3 + $0x4a0] sm:$0xff]  }
  0x6a   :  { %3940 = vmatprep.subr.bf16.mxu0 %v4261_v11  ;;  %v4302_v11 = vld [vmem:[%s5433_s3 + $0x4d8] sm:$0xff]  }
  0x6b   :  { %3961 = vmatpush3.bf16.msra.mxu1 %v4260_v10  ;;  %v4995_v10 = vld [vmem:[%s5435_s2 + $0x10] sm:$0xff] }
  0x6c   :  { %3962 = vmatprep.subr.bf16.mxu1 %v4262_v12  ;;  %v108_v12 = vrot.slane %v35_v9, %v4532_v32 }
  0x6d   :  { %3941 = vmatpush3.bf16.msra.mxu0 %v4263_v13  ;;  %v112_v13 = vrot.slane %v35_v9, %v4537_v34 }
  0x6e   :  { %3942 = vmatprep.subr.bf16.mxu0 %v4265_v16  ;;  %v5007_v16 = vld [vmem:[%s5436_s0 + $0x10] sm:$0xff] }
  0x6f   :  { %3963 = vmatpush3.bf16.msra.mxu1 %v4264_v15  ;;  %v120_v15 = vrot.slane %v35_v9, %v4547_v39 }
  0x70   :  { %3964 = vmatprep.subr.bf16.mxu1 %v4266_v17  ;;  %v396_v17 = vrot.slane %v4995_v10, %v4532_v32 }
  0x71   :  { %3943 = vmatpush3.bf16.msra.mxu0 %v4267_v18  ;;  %v400_v18 = vrot.slane %v4995_v10, %v4537_v34  ;;  %v238_v23 = vcombine.low %v116_v14, %v120_v15  ;;  %v4318_v14 = vld [vmem:[%s5433_s3 + $0x5f8] sm:$0xff]  }
  0x72   :  { %3944 = vmatprep.subr.bf16.mxu0 %v4269_v20  ;;  %v408_v20 = vrot.slane %v4995_v10, %v4547_v39 }
  0x73   :  { %3965 = vmatpush3.bf16.msra.mxu1 %v4268_v19  ;;  %v404_v19 = vrot.slane %v4995_v10, %v4542_v36  ;;  %v525_v25 = vcombine.low %v396_v17, %v400_v18  ;;  %v252_v30 = vrot.slane %v238_v23, %v4560_v45  ;;  %v4319_v17 = vld [vmem:[%s5433_s3 + $0x538] sm:$0xff]   ;;  %v30_v18 = vunpack.c.h.bf16 %v5007_v16 }
  0x74   :  { %3966 = vmatprep.subr.bf16.mxu1 %v4270_v22  ;;  %v237_v22 = vcombine.low %v108_v12, %v112_v13 }
  0x75   :  { %3945 = vmatpush3.bf16.msra.mxu0 %v4271_v24  ;;  %v4305_v24 = vld [vmem:[%s5433_s3 + $0x450] sm:$0xff]   ;;  %v526_v26 = vcombine.low %v404_v19, %v408_v20 }
  0x76   :  { %3946 = vmatprep.subr.bf16.mxu0 %v4273_v28  ;;  %v29_v28 = vunpack.c.l.bf16 %v5007_v16  ;;  %v245_v29 = vrot.slane %v237_v22, %v4560_v45  ;;  %v4320_v22 = vld [vmem:[%s5433_s3 + $0x5b8] sm:$0xff]  }
  0x77   :  { %3967 = vmatpush3.bf16.msra.mxu1 %v4272_v27  ;;  %v4304_v27 = vld [vmem:[%s5433_s3 + $0x498] sm:$0xff]   ;;  %v540_v35 = vrot.slane %v526_v26, %v4560_v45  ;;  %v4321_v26 = vld [vmem:[%s5433_s3 + $0x570] sm:$0xff]  }
  0x78   :  { %3968 = vmatprep.subr.bf16.mxu1 %v4274_v31  ;;  %v4306_v31 = vld [vmem:[%s5433_s3 + $0x4d0] sm:$0xff]  }
  0x79   :  { %3947 = vmatpush3.bf16.msra.mxu0 %v4275_v33  ;;  %v533_v33 = vrot.slane %v525_v25, %v4560_v45 }
  0x7a   :  { %3948 = vmatprep.subr.bf16.mxu0 %v4277_v40  ;;  %v253_v40 = vcombine.low %v245_v29, %v252_v30  ;;  %v4324_v29 = vld [vmem:[%s5433_s3 + $0x5b0] sm:$0xff]  }
  0x7b   :  { %3969 = vmatpush3.bf16.msra.mxu1 %v4276_v38  ;;  %v4307_v38 = vld [vmem:[%s5433_s3 + $0x410] sm:$0xff]  }
  0x7c   :  { %3970 = vmatprep.subr.bf16.mxu1 %v4278_v42  ;;  %v132_v42 = vrot.slane %v35_v9, %v4581_v60 }
  0x7d   :  { %3949 = vmatpush3.bf16.msra.mxu0 %v4279_v43  ;;  %v136_v43 = vrot.slane %v35_v9, %v4583_v61 }
  0x7e   :  { %3950 = vmatprep.subr.bf16.mxu0 %v4281_v46  ;;  %v541_v46 = vcombine.low %v533_v33, %v540_v35  ;;  %v4325_v33 = vld [vmem:[%s5433_s3 + $0x568] sm:$0xff]  }
  0x7f   :  { %3971 = vmatpush3.bf16.msra.mxu1 %v4280_v44  ;;  %v4309_v44 = vld [vmem:[%s5433_s3 + $0x448] sm:$0xff]  }
  0x80   :  { %3972 = vmatprep.subr.bf16.mxu1 %v4282_v48  ;;  %v4308_v48 = vld [vmem:[%s5433_s3 + $0x490] sm:$0xff]   ;;  %v4326_v35 = vld [vmem:[%s5433_s3 + $0x5e8] sm:$0xff]  }
  0x81   :  { %3951 = vmatpush3.bf16.msra.mxu0 %v4283_v49  ;;  %v317_v49 = vmul.f32 %v253_v40, %v29_v28  ;;  %v4323_v28 = vld [vmem:[%s5433_s3 + $0x530] sm:$0xff]  }
  0x82   :  { %3980 = vmatprep.subr.bf16.mxu0 %v4285_v51  ;;  %v4311_v51 = vld [vmem:[%s5433_s3 + $0x408] sm:$0xff]  }
  0x83   :  { %3973 = vmatpush3.bf16.msra.mxu1 %v4284_v50  ;;  %v4310_v50 = vld [vmem:[%s5433_s3 + $0x4c8] sm:$0xff]  }
  0x84   :  { %3169 = vmatmul.mubr.bf16.vlgmr.msra.gmra.mxu0 %v821_v53  ;;  %4002 = vmatprep.subr.bf16.mxu1 %v4286_v52  ;;  %v605_v52 = vadd.f32 %v541_v46, %v317_v49  ;;  %v254_v53 = vcombine.low %v124_v37, %v128_v41  ;;  %v4327_v37 = vld [vmem:[%s5433_s3 + $0x528] sm:$0xff]   ;;  %v4329_v41 = vld [vmem:[%s5433_s3 + $0x560] sm:$0xff]   ;;  %v4333_v46 = vld [vmem:[%s5433_s3 + $0x558] sm:$0xff]  }
  0x85   :  { %3981 = vmatpush3.bf16.msra.mxu0 %v4287_v54  ;;  %v255_v54 = vcombine.low %v132_v42, %v136_v43  ;;  %v4330_v42 = vld [vmem:[%s5433_s3 + $0x5e0] sm:$0xff]   ;;  %v4334_v49 = vld [vmem:[%s5433_s3 + $0x5d8] sm:$0xff]  }
  0x86   :  { %3209 = vmatmul.mubr.bf16.vlgmr.msra.gmra.mxu1 %v823_v56  ;;  %3982 = vmatprep.subr.bf16.mxu0 %v4289_v58  ;;  %v412_v56 = vrot.slane %v4995_v10, %v4565_v47  ;;  %v416_v58 = vrot.slane %v4995_v10, %v4579_v57  ;;  %vm613_vm4 = vcmp.ge.f32.partialorder %v605_v52, 0.0  ;;  %v4331_v43 = vld [vmem:[%s5433_s3 + $0x520] sm:$0xff]  }
  0x87   :  { %4003 = vmatpush3.bf16.msra.mxu1 %v4288_v55  ;;  %v4313_v55 = vld [vmem:[%s5433_s3 + $0x440] sm:$0xff]  }
  0x88   :  { %4004 = vmatprep.subr.bf16.mxu1 %v4290_v59  ;;  %v420_v59 = vrot.slane %v4995_v10, %v4581_v60  ;;  %v542_v9 = vcombine.low %v412_v56, %v416_v58  ;;  %v4338_v56 = vld [vmem:[%s5433_s3 + $0x5d0] sm:$0xff]  }
  0x89   :  { %3983 = vmatpush3.bf16.msra.mxu0 %v4291_v63  ;;  %v424_v63 = vrot.slane %v4995_v10, %v4583_v61 }
  0x8a   :  { %3984 = vmatprep.subr.bf16.mxu0 %v4293_v1  ;;  %v621_v1 = vmul.f32 0.2, %v605_v52  ;;  %v550_v23 = vrot.slane %v542_v9, %v4560_v45  ;;  %v4347_v9 = vld [vmem:[%s5433_s3 + $0x500] sm:$0xff]  }
  0x8b   :  { %4005 = vmatpush3.bf16.msra.mxu1 %v4292_v0  ;;  %v4312_v0 = vld [vmem:[%s5433_s3 + $0x488] sm:$0xff]   ;;  %v543_v10 = vcombine.low %v420_v59, %v424_v63  ;;  %v4339_v63 = vld [vmem:[%s5433_s3 + $0x510] sm:$0xff]  }
  0x8c   :  { %4006 = vmatprep.subr.bf16.mxu1 %v4294_v2  ;;  %v4314_v2 = vld [vmem:[%s5433_s3 + $0x4c0] sm:$0xff]  }
  0x8d   :  { %3985 = vmatpush3.bf16.msra.mxu0 %v4295_v3  ;;  %v4315_v3 = vld [vmem:[%s5433_s3 + $0x400] sm:$0xff]  }
  0x8e   :  { %3986 = vmatprep.subr.bf16.mxu0 %v4297_v4  ;;  %v262_v4 = vrot.slane %v254_v53, %v4560_v45 }
  0x8f   :  { %4007 = vmatpush3.bf16.msra.mxu1 %v4296_v62  ;;  %v629_v62 = vsel %vm613_vm4, %v605_v52, %v621_v1  ;;  %v4336_v52 = vld [vmem:[%s5433_s3 + $0x598] sm:$0xff]  }
  0x90   :  { %4008 = vmatprep.subr.bf16.mxu1 %v4298_v5  ;;  %v269_v5 = vrot.slane %v255_v54, %v4560_v45 }
  0x91   :  { %3987 = vmatpush3.bf16.msra.mxu0 %v4299_v6  ;;  %v716_v6 = vrot.slane %v629_v62, %v4560_v45 }
  0x92   :  { %3988 = vmatprep.subr.bf16.mxu0 %v4301_v8  ;;  %v4317_v8 = vld [vmem:[%s5433_s3 + $0x578] sm:$0xff]   ;;  %v270_v19 = vcombine.low %v262_v4, %v269_v5  ;;  %v4343_v5 = vld [vmem:[%s5433_s3 + $0x508] sm:$0xff]  }
  0x93   :  { %4009 = vmatpush3.bf16.msra.mxu1 %v4300_v7  ;;  %v709_v7 = vcombine.high %v629_v62, %v629_v62  ;;  %v724_v12 = vcombine.high %v716_v6, %v716_v6  ;;  %v825_v15 = vpack.c.bf16 %v716_v6, %v716_v6  ;;  %v4342_v62 = vld [vmem:[%s5433_s3 + $0x5c8] sm:$0xff]  }
  0x94   :  { %4010 = vmatprep.subr.bf16.mxu1 %v4302_v11  ;;  %v4316_v11 = vld [vmem:[%s5433_s3 + $0x480] sm:$0xff]   ;;  %v318_v30 = vmul.f32 %v270_v19, %v30_v18  ;;  %v4344_v6 = vld [vmem:[%s5433_s3 + $0x588] sm:$0xff]   ;;  %v4353_v18 = vld [vmem:[%s5433_s3 + $0x670] sm:$0xff]  }
  0x95   :  { %3989 = vmatpush3.bf16.msra.mxu0 %v4303_v21  ;;  %v723_v13 = vrot.slane %v709_v7, %v4560_v45  ;;  %v826_v20 = vpack.c.bf16 %v724_v12, %v724_v12  ;;  %v4345_v7 = vld [vmem:[%s5433_s3 + $0x540] sm:$0xff]   ;;  %v4350_v12 = vld [vmem:[%s5433_s3 + $0x6f8] sm:$0xff]   ;;  %v4354_v19 = vld [vmem:[%s5433_s3 + $0x6f0] sm:$0xff]  }
  0x96   :  { %3990 = vmatprep.subr.bf16.mxu0 %v4305_v24  ;;  %v557_v24 = vrot.slane %v543_v10, %v4560_v45  ;;  %v4348_v10 = vld [vmem:[%s5433_s3 + $0x580] sm:$0xff]  }
  0x97   :  { %4011 = vmatpush3.bf16.msra.mxu1 %v4304_v27  ;;  %v725_v21 = vcombine.high %v723_v13, %v723_v13  ;;  %v827_v25 = vpack.c.bf16 %v723_v13, %v723_v13  ;;  %3248 = vmatprep.mubr.bf16.mxu0 %v826_v20  ;;  %v4322_v27 = vld [vmem:[%s5433_s3 + $0x5f0] sm:$0xff]  }
  0x98   :  { %4012 = vmatprep.subr.bf16.mxu1 %v4306_v31  ;;  %v558_v31 = vcombine.low %v550_v23, %v557_v24  ;;  %v4355_v20 = vld [vmem:[%s5433_s3 + $0x630] sm:$0xff]   ;;  %v4358_v23 = vld [vmem:[%s5433_s3 + $0x6e8] sm:$0xff]  }
  0x99   :  { %3991 = vmatpush3.bf16.msra.mxu0 %v4307_v38  ;;  %v828_v16 = vpack.c.bf16 %v725_v21, %v725_v21  ;;  %v4328_v38 = vld [vmem:[%s5433_s3 + $0x5a8] sm:$0xff]   ;;  %v4356_v21 = vld [vmem:[%s5433_s3 + $0x6b0] sm:$0xff]  }
  0x9a   :  { %3992 = vmatprep.subr.bf16.mxu0 %v4309_v44  ;;  %v606_v40 = vadd.f32 %v558_v31, %v318_v30  ;;  %v4332_v44 = vld [vmem:[%s5433_s3 + $0x5a0] sm:$0xff]   ;;  %v4359_v24 = vld [vmem:[%s5433_s3 + $0x628] sm:$0xff]   ;;  %v4366_v30 = vld [vmem:[%s5433_s3 + $0x6d8] sm:$0xff]  }
  0x9b   :  { %4013 = vmatpush3.bf16.msra.mxu1 %v4308_v48  ;;  %3288 = vmatprep.mubr.bf16.mxu1 %v828_v16  ;;  %v4362_v16 = vld [vmem:[%s5433_s3 + $0x6e0] sm:$0xff]   ;;  %v36_v31 = vld [vmem:[%s5434_s1 + $0x18] sm:$0xff] }
  0x9c   :  { %4014 = vmatprep.subr.bf16.mxu1 %v4310_v50  ;;  %vm614_vm5 = vcmp.ge.f32.partialorder %v606_v40, 0.0  ;;  %v622_v48 = vmul.f32 0.2, %v606_v40  ;;  %v4335_v50 = vld [vmem:[%s5433_s3 + $0x518] sm:$0xff]  }
  0x9d   :  { %3993 = vmatpush3.bf16.msra.mxu0 %v4311_v51 }
  0x9e   :  { %3994 = vmatprep.subr.bf16.mxu0 %v4313_v55  ;;  %v630_v51 = vsel %vm614_vm5, %v606_v40, %v622_v48  ;;  %v4337_v55 = vld [vmem:[%s5433_s3 + $0x550] sm:$0xff]   ;;  %v4367_v40 = vld [vmem:[%s5433_s3 + $0x618] sm:$0xff]  }
  0x9f   :  { %4015 = vmatpush3.bf16.msra.mxu1 %v4312_v0  ;;  %v733_v53 = vrot.slane %v630_v51, %v4560_v45  ;;  %v726_v54 = vcombine.high %v630_v51, %v630_v51  ;;  %v4340_v0 = vld [vmem:[%s5433_s3 + $0x590] sm:$0xff]  }
  0xa0   :  { %4016 = vmatprep.subr.bf16.mxu1 %v4314_v2 }
  0xa1   :  { %3995 = vmatpush3.bf16.msra.mxu0 %v4315_v3  ;;  %v741_v58 = vcombine.high %v733_v53, %v733_v53  ;;  %v740_v59 = vrot.slane %v726_v54, %v4560_v45  ;;  %v4341_v3 = vld [vmem:[%s5433_s3 + $0x548] sm:$0xff]   ;;  %v829_v13 = vpack.c.bf16 %v733_v53, %v733_v53 }
  0xa2   :  { %4024 = vmatprep.subr.bf16.mxu0 %v4317_v8  ;;  %v4346_v8 = vld [vmem:[%s5433_s3 + $0x5c0] sm:$0xff]  }
  0xa3   :  { %4017 = vmatpush3.bf16.msra.mxu1 %v4316_v11  ;;  %v830_v1 = vpack.c.bf16 %v741_v58, %v741_v58  ;;  %v742_v2 = vcombine.high %v740_v59, %v740_v59  ;;  %v4349_v11 = vld [vmem:[%s5433_s3 + $0x678] sm:$0xff]  }
  0xa4   :  { %4046 = vmatprep.subr.bf16.mxu1 %v4318_v14  ;;  %3249 = vmatmul.mubr.bf16.vlgmr.msra.gmra.mxu0 %v825_v15  ;;  %v4351_v14 = vld [vmem:[%s5433_s3 + $0x638] sm:$0xff]  }
  0xa5   :  { %4025 = vmatpush3.bf16.msra.mxu0 %v4319_v17  ;;  %3328 = vmatprep.mubr.bf16.mxu0 %v830_v1  ;;  %v832_v4 = vpack.c.bf16 %v742_v2, %v742_v2  ;;  %v4352_v15 = vld [vmem:[%s5433_s3 + $0x6b8] sm:$0xff]   ;;  %v831_v17 = vpack.c.bf16 %v740_v59, %v740_v59  ;;  %v156_v59 = vrot.slane %v36_v31, %v4565_v47 }
  0xa6   :  { %3289 = vmatmul.mubr.bf16.vlgmr.msra.gmra.mxu1 %v827_v25  ;;  %4026 = vmatprep.subr.bf16.mxu0 %v4321_v26  ;;  %v4360_v25 = vld [vmem:[%s5433_s3 + $0x6a8] sm:$0xff]   ;;  %v4361_v26 = vld [vmem:[%s5433_s3 + $0x660] sm:$0xff]   ;;  %v160_v1 = vrot.slane %v36_v31, %v4579_v57  ;;  %v164_v2 = vrot.slane %v36_v31, %v4581_v60 }
  0xa7   :  { %4047 = vmatpush3.bf16.msra.mxu1 %v4320_v22  ;;  %3368 = vmatprep.mubr.bf16.mxu1 %v832_v4  ;;  %v4357_v22 = vld [vmem:[%s5433_s3 + $0x668] sm:$0xff]  }
  0xa8   :  { %4048 = vmatprep.subr.bf16.mxu1 %v4322_v27  ;;  %v4363_v27 = vld [vmem:[%s5433_s3 + $0x620] sm:$0xff]  }
  0xa9   :  { %4027 = vmatpush3.bf16.msra.mxu0 %v4323_v28  ;;  %v4364_v28 = vld [vmem:[%s5433_s3 + $0x6a0] sm:$0xff]  }
  0xaa   :  { %4028 = vmatprep.subr.bf16.mxu0 %v4325_v33  ;;  %v140_v33 = vrot.slane %v36_v31, %v4532_v32 }
  0xab   :  { %4049 = vmatpush3.bf16.msra.mxu1 %v4324_v29  ;;  %v4365_v29 = vld [vmem:[%s5433_s3 + $0x658] sm:$0xff]  }
  0xac   :  { %4050 = vmatprep.subr.bf16.mxu1 %v4326_v35  ;;  %v144_v35 = vrot.slane %v36_v31, %v4537_v34 }
  0xad   :  { %4029 = vmatpush3.bf16.msra.mxu0 %v4327_v37  ;;  %v148_v37 = vrot.slane %v36_v31, %v4542_v36 }
  0xae   :  { %4030 = vmatprep.subr.bf16.mxu0 %v4329_v41  ;;  %v152_v41 = vrot.slane %v36_v31, %v4547_v39  ;;  %v271_v48 = vcombine.low %v140_v33, %v144_v35 }
  0xaf   :  { %4051 = vmatpush3.bf16.msra.mxu1 %v4328_v38  ;;  %v5244_v38 = vld [vmem:[%s5435_s2 + $0x18] sm:$0xff] }
  0xb0   :  { %4052 = vmatprep.subr.bf16.mxu1 %v4330_v42  ;;  %v428_v42 = vrot.slane %v5244_v38, %v4532_v32  ;;  %v4369_v32 = vld [vmem:[%s5433_s3 + $0x650] sm:$0xff]   ;;  %v279_v51 = vrot.slane %v271_v48, %v4560_v45 }
  0xb1   :  { %4031 = vmatpush3.bf16.msra.mxu0 %v4331_v43  ;;  %v432_v43 = vrot.slane %v5244_v38, %v4537_v34 }
  0xb2   :  { %4032 = vmatprep.subr.bf16.mxu0 %v4333_v46  ;;  %v5259_v46 = vld [vmem:[%s5436_s0 + $0x18] sm:$0xff] }
  0xb3   :  { %4053 = vmatpush3.bf16.msra.mxu1 %v4332_v44  ;;  %v436_v44 = vrot.slane %v5244_v38, %v4542_v36  ;;  %v559_v34 = vcombine.low %v428_v42, %v432_v43  ;;  %v4368_v36 = vld [vmem:[%s5433_s3 + $0x698] sm:$0xff]   ;;  %v31_v53 = vunpack.c.l.bf16 %v5259_v46 }
  0xb4   :  { %4054 = vmatprep.subr.bf16.mxu1 %v4334_v49  ;;  %v440_v49 = vrot.slane %v5244_v38, %v4547_v39  ;;  %v4370_v39 = vld [vmem:[%s5433_s3 + $0x6d0] sm:$0xff]  }
  0xb5   :  { %4033 = vmatpush3.bf16.msra.mxu0 %v4335_v50  ;;  %v272_v50 = vcombine.low %v148_v37, %v152_v41 }
  0xb6   :  { %4034 = vmatprep.subr.bf16.mxu0 %v4337_v55  ;;  %v567_v55 = vrot.slane %v559_v34, %v4560_v45 }
  0xb7   :  { %4055 = vmatpush3.bf16.msra.mxu1 %v4336_v52  ;;  %v560_v52 = vcombine.low %v436_v44, %v440_v49  ;;  %v286_v54 = vrot.slane %v272_v50, %v4560_v45  ;;  %v4384_v49 = vld [vmem:[%s5433_s3 + $0x7b8] sm:$0xff]  }
  0xb8   :  { %4056 = vmatprep.subr.bf16.mxu1 %v4338_v56  ;;  %v4371_v56 = vld [vmem:[%s5433_s3 + $0x610] sm:$0xff]  }
  0xb9   :  { %4035 = vmatpush3.bf16.msra.mxu0 %v4339_v63  ;;  %v574_v58 = vrot.slane %v560_v52, %v4560_v45  ;;  %v4373_v63 = vld [vmem:[%s5433_s3 + $0x648] sm:$0xff]  }
  0xba   :  { %4036 = vmatprep.subr.bf16.mxu0 %v4341_v3  ;;  %v168_v3 = vrot.slane %v36_v31, %v4583_v61  ;;  %v32_v31 = vunpack.c.h.bf16 %v5259_v46  ;;  %v4385_v46 = vld [vmem:[%s5433_s3 + $0x770] sm:$0xff]  }
  0xbb   :  { %4057 = vmatpush3.bf16.msra.mxu1 %v4340_v0  ;;  %v287_v0 = vcombine.low %v279_v51, %v286_v54  ;;  %v575_v4 = vcombine.low %v567_v55, %v574_v58  ;;  %v4389_v58 = vld [vmem:[%s5433_s3 + $0x768] sm:$0xff]  }
  0xbc   :  { %4058 = vmatprep.subr.bf16.mxu1 %v4342_v62  ;;  %v4372_v62 = vld [vmem:[%s5433_s3 + $0x690] sm:$0xff]  }
  0xbd   :  { %4037 = vmatpush3.bf16.msra.mxu0 %v4343_v5  ;;  %v4374_v5 = vld [vmem:[%s5433_s3 + $0x6c8] sm:$0xff]  }
  0xbe   :  { %4038 = vmatprep.subr.bf16.mxu0 %v4345_v7  ;;  %v4375_v7 = vld [vmem:[%s5433_s3 + $0x608] sm:$0xff]  }
  0xbf   :  { %4059 = vmatpush3.bf16.msra.mxu1 %v4344_v6  ;;  %v319_v6 = vmul.f32 %v287_v0, %v31_v53  ;;  %v4387_v53 = vld [vmem:[%s5433_s3 + $0x730] sm:$0xff]  }
  0xc0   :  { %4060 = vmatprep.subr.bf16.mxu1 %v4346_v8  ;;  %v4377_v8 = vld [vmem:[%s5433_s3 + $0x640] sm:$0xff]  }
  0xc1   :  { %4039 = vmatpush3.bf16.msra.mxu0 %v4347_v9  ;;  %v607_v9 = vadd.f32 %v575_v4, %v319_v6  ;;  %v4392_v4 = vld [vmem:[%s5433_s3 + $0x7a8] sm:$0xff]   ;;  %v4395_v6 = vld [vmem:[%s5433_s3 + $0x720] sm:$0xff]  }
  0xc2   :  { %4068 = vmatprep.subr.bf16.mxu0 %v4349_v11  ;;  %v289_v11 = vcombine.low %v164_v2, %v168_v3  ;;  %v4391_v2 = vld [vmem:[%s5433_s3 + $0x728] sm:$0xff]  }
  0xc3   :  { %4061 = vmatpush3.bf16.msra.mxu1 %v4348_v10  ;;  %v288_v10 = vcombine.low %v156_v59, %v160_v1  ;;  %vm615_vm6 = vcmp.ge.f32.partialorder %v607_v9, 0.0  ;;  %v4390_v1 = vld [vmem:[%s5433_s3 + $0x7e8] sm:$0xff]  }
  0xc4   :  { %3329 = vmatmul.mubr.bf16.vlgmr.msra.gmra.mxu0 %v829_v13  ;;  %4090 = vmatprep.subr.bf16.mxu1 %v4350_v12  ;;  %v4376_v12 = vld [vmem:[%s5433_s3 + $0x688] sm:$0xff]   ;;  %v444_v13 = vrot.slane %v5244_v38, %v4565_v47  ;;  %v4379_v47 = vld [vmem:[%s5433_s3 + $0x600] sm:$0xff]  }
  0xc5   :  { %4069 = vmatpush3.bf16.msra.mxu0 %v4351_v14  ;;  %v448_v14 = vrot.slane %v5244_v38, %v4579_v57 }
  0xc6   :  { %3369 = vmatmul.mubr.bf16.vlgmr.msra.gmra.mxu1 %v831_v17  ;;  %4070 = vmatprep.subr.bf16.mxu0 %v4353_v18  ;;  %v456_v17 = vrot.slane %v5244_v38, %v4583_v61  ;;  %v4378_v18 = vld [vmem:[%s5433_s3 + $0x6c0] sm:$0xff]   ;;  %v296_v61 = vrot.slane %v288_v10, %v4560_v45  ;;  %v4398_v10 = vld [vmem:[%s5433_s3 + $0x7d8] sm:$0xff]  }
  0xc7   :  { %4091 = vmatpush3.bf16.msra.mxu1 %v4352_v15  ;;  %v452_v15 = vrot.slane %v5244_v38, %v4581_v60  ;;  %v4381_v60 = vld [vmem:[%s5433_s3 + $0x778] sm:$0xff]   ;;  %v3547_v38 = vld [vmem:[%s5437_s4] ss:$0 sm:$0xff] }
  0xc8   :  { %4092 = vmatprep.subr.bf16.mxu1 %v4354_v19  ;;  %v623_v19 = vmul.f32 0.2, %v607_v9 }
  0xc9   :  { %4071 = vmatpush3.bf16.msra.mxu0 %v4355_v20  ;;  %v303_v20 = vrot.slane %v289_v11, %v4560_v45 }
  0xca   :  { %4072 = vmatprep.subr.bf16.mxu0 %v4357_v22  ;;  %v631_v57 = vsel %vm615_vm6, %v607_v9, %v623_v19  ;;  %v4396_v9 = vld [vmem:[%s5433_s3 + $0x7a0] sm:$0xff]  }
  0xcb   :  { %4093 = vmatpush3.bf16.msra.mxu1 %v4356_v21  ;;  %v4380_v21 = vld [vmem:[%s5433_s3 + $0x680] sm:$0xff]   ;;  %v750_v22 = vrot.slane %v631_v57, %v4560_v45  ;;  %v304_v33 = vcombine.low %v296_v61, %v303_v20  ;;  %v4405_v20 = vld [vmem:[%s5433_s3 + $0x748] sm:$0xff]  }
  0xcc   :  { %4094 = vmatprep.subr.bf16.mxu1 %v4358_v23  ;;  %v743_v23 = vcombine.high %v631_v57, %v631_v57  ;;  %v4403_v57 = vld [vmem:[%s5433_s3 + $0x710] sm:$0xff]  }
  0xcd   :  { %4073 = vmatpush3.bf16.msra.mxu0 %v4359_v24  ;;  %v576_v24 = vcombine.low %v444_v13, %v448_v14  ;;  %v320_v51 = vmul.f32 %v304_v33, %v32_v31 }
  0xce   :  { %4074 = vmatprep.subr.bf16.mxu0 %v4361_v26  ;;  %v4382_v26 = vld [vmem:[%s5433_s3 + $0x7f8] sm:$0xff]  }
  0xcf   :  { %4095 = vmatpush3.bf16.msra.mxu1 %v4360_v25  ;;  %v577_v25 = vcombine.low %v452_v15, %v456_v17  ;;  %v4401_v15 = vld [vmem:[%s5433_s3 + $0x750] sm:$0xff]   ;;  %v4400_v17 = vld [vmem:[%s5433_s3 + $0x798] sm:$0xff]  }
  0xd0   :  { %4096 = vmatprep.subr.bf16.mxu1 %v4362_v16  ;;  %v758_v16 = vcombine.high %v750_v22, %v750_v22 }
  0xd1   :  { %4075 = vmatpush3.bf16.msra.mxu0 %v4363_v27  ;;  %v757_v27 = vrot.slane %v743_v23, %v4560_v45  ;;  %v591_v41 = vrot.slane %v577_v25, %v4560_v45  ;;  %v4407_v23 = vld [vmem:[%s5433_s3 + $0x708] sm:$0xff]  }
  0xd2   :  { %4076 = vmatprep.subr.bf16.mxu0 %v4365_v29  ;;  %v833_v29 = vpack.c.bf16 %v750_v22, %v750_v22  ;;  %v834_v35 = vpack.c.bf16 %v758_v16, %v758_v16  ;;  %v4406_v22 = vld [vmem:[%s5433_s3 + $0x7c8] sm:$0xff]   ;;  %v4411_v16 = vld [vmem:[%s5433_s3 + $0x700] sm:$0xff]  }
  0xd3   :  { %4097 = vmatpush3.bf16.msra.mxu1 %v4364_v28  ;;  %v759_v37 = vcombine.high %v757_v27, %v757_v27  ;;  %v835_v43 = vpack.c.bf16 %v757_v27, %v757_v27  ;;  %v4408_v25 = vld [vmem:[%s5433_s3 + $0x788] sm:$0xff]   ;;  %v4412_v27 = vld [vmem:[%s5433_s3 + $0x780] sm:$0xff]  }
  0xd4   :  { %4098 = vmatprep.subr.bf16.mxu1 %v4366_v30  ;;  %v4383_v30 = vld [vmem:[%s5433_s3 + $0x738] sm:$0xff]   ;;  %3408 = vmatprep.mubr.bf16.mxu0 %v834_v35 }
  0xd5   :  { %4077 = vmatpush3.bf16.msra.mxu0 %v4367_v40  ;;  %v584_v40 = vrot.slane %v576_v24, %v4560_v45  ;;  %v836_v48 = vpack.c.bf16 %v759_v37, %v759_v37  ;;  %v4409_v24 = vld [vmem:[%s5433_s3 + $0x740] sm:$0xff]  }
  0xd6   :  { %4078 = vmatprep.subr.bf16.mxu0 %v4369_v32 }
  0xd7   :  { %4099 = vmatpush3.bf16.msra.mxu1 %v4368_v36  ;;  %v4386_v36 = vld [vmem:[%s5433_s3 + $0x7f0] sm:$0xff]   ;;  %3448 = vmatprep.mubr.bf16.mxu1 %v836_v48  ;;  %v592_v54 = vcombine.low %v584_v40, %v591_v41 }
  0xd8   :  { %4100 = vmatprep.subr.bf16.mxu1 %v4370_v39 }
  0xd9   :  { %4079 = vmatpush3.bf16.msra.mxu0 %v4371_v56  ;;  %v608_v3 = vadd.f32 %v592_v54, %v320_v51 }
  0xda   :  { %4080 = vmatprep.subr.bf16.mxu0 %v4373_v63  ;;  %v4388_v63 = vld [vmem:[%s5433_s3 + $0x7b0] sm:$0xff]  }
  0xdb   :  { %4101 = vmatpush3.bf16.msra.mxu1 %v4372_v62  ;;  %v4393_v62 = vld [vmem:[%s5433_s3 + $0x760] sm:$0xff]   ;;  %vm616_vm7 = vcmp.ge.f32.partialorder %v608_v3, 0.0 }
  0xdc   :  { %4102 = vmatprep.subr.bf16.mxu1 %v4374_v5  ;;  %v4394_v5 = vld [vmem:[%s5433_s3 + $0x7e0] sm:$0xff]  }
  0xdd   :  { %4081 = vmatpush3.bf16.msra.mxu0 %v4375_v7  ;;  %v4397_v7 = vld [vmem:[%s5433_s3 + $0x758] sm:$0xff]  }
  0xde   :  { %4082 = vmatprep.subr.bf16.mxu0 %v4377_v8  ;;  %v624_v8 = vmul.f32 0.2, %v608_v3 }
  0xdf   :  { %4103 = vmatpush3.bf16.msra.mxu1 %v4376_v12  ;;  %v4399_v12 = vld [vmem:[%s5433_s3 + $0x718] sm:$0xff]  }
  0xe0   :  { %4104 = vmatprep.subr.bf16.mxu1 %v4378_v18  ;;  %v632_v11 = vsel %vm616_vm7, %v608_v3, %v624_v8 }
  0xe1   :  { %4083 = vmatpush3.bf16.msra.mxu0 %v4379_v47  ;;  %v767_v13 = vrot.slane %v632_v11, %v4560_v45  ;;  %v760_v14 = vcombine.high %v632_v11, %v632_v11  ;;  %v4402_v47 = vld [vmem:[%s5433_s3 + $0x7d0] sm:$0xff]  }
  0xe2   :  { %4112 = vmatprep.subr.bf16.mxu0 %v4381_v60 }
  0xe3   :  { %4105 = vmatpush3.bf16.msra.mxu1 %v4380_v21  ;;  %v775_v18 = vcombine.high %v767_v13, %v767_v13  ;;  %v774_v19 = vrot.slane %v760_v14, %v4560_v45  ;;  %v4404_v45 = vld [vmem:[%s5433_s3 + $0x790] sm:$0xff]  }
  0xe4   :  { %v3820_v28 = vpop.f32.mrf.mxu0  ;;  %4134 = vmatprep.subr.bf16.mxu1 %v4382_v26  ;;  %3409 = vmatmul.mubr.bf16.vlgmr.msra.gmra.mxu0 %v833_v29  ;;  %v4410_v26 = vld [vmem:[%s5433_s3 + $0x7c0] sm:$0xff]   ;;  %v837_v29 = vpack.c.bf16 %v767_v13, %v767_v13 }
  0xe5   :  { %4113 = vmatpush3.bf16.msra.mxu0 %v4383_v30  ;;  %v838_v60 = vpack.c.bf16 %v775_v18, %v775_v18  ;;  %v776_v61 = vcombine.high %v774_v19, %v774_v19  ;;  %v839_v31 = vpack.c.bf16 %v774_v19, %v774_v19 }
  0xe6   :  { %v3842_v42 = vpop.f32.mrf.mxu1  ;;  %v3821_v44 = vpop.f32.mrf.mxu0  ;;  %3449 = vmatmul.mubr.bf16.vlgmr.msra.gmra.mxu1 %v835_v43  ;;  %4114 = vmatprep.subr.bf16.mxu0 %v4385_v46 }
  0xe7   :  { %v3822_v32 = vadd.f32 %v3821_v44, %v3820_v28  ;;  %4135 = vmatpush3.bf16.msra.mxu1 %v4384_v49  ;;  %3488 = vmatprep.mubr.bf16.mxu0 %v838_v60  ;;  %v840_v21 = vpack.c.bf16 %v776_v61, %v776_v61 }
  0xe8   :  { %v3843_v50 = vpop.f32.mrf.mxu1  ;;  %v3823_v34 = vpop.f32.mrf.mxu0  ;;  %4136 = vmatprep.subr.bf16.mxu1 %v4386_v36 }
  0xe9   :  { %v2931_v52 = vadd.f32 %v3822_v32, %v3547_v38  ;;  %v3844_v39 = vadd.f32 %v3843_v50, %v3842_v42  ;;  %4115 = vmatpush3.bf16.msra.mxu0 %v4387_v53  ;;  %3528 = vmatprep.mubr.bf16.mxu1 %v840_v21 }
  0xea   :  { %v3845_v55 = vpop.f32.mrf.mxu1  ;;  %v3824_v56 = vpop.f32.mrf.mxu0  ;;  %4116 = vmatprep.subr.bf16.mxu0 %v4389_v58 }
  0xeb   :  { %v5353_v59 = vadd.f32 %v3844_v39, %v2931_v52  ;;  %4137 = vmatpush3.bf16.msra.mxu1 %v4388_v63 }
  0xec   :  { %v3846_v0 = vpop.f32.mrf.mxu1  ;;  %4138 = vmatprep.subr.bf16.mxu1 %v4390_v1 }
  0xed   :  { %4117 = vmatpush3.bf16.msra.mxu0 %v4391_v2 }
  0xee   :  { %4118 = vmatprep.subr.bf16.mxu0 %v4393_v62 }
  0xef   :  { %4139 = vmatpush3.bf16.msra.mxu1 %v4392_v4 }
  0xf0   :  { %4140 = vmatprep.subr.bf16.mxu1 %v4394_v5 }
  0xf1   :  { %4119 = vmatpush3.bf16.msra.mxu0 %v4395_v6 }
  0xf2   :  { %4120 = vmatprep.subr.bf16.mxu0 %v4397_v7 }
  0xf3   :  { %4141 = vmatpush3.bf16.msra.mxu1 %v4396_v9 }
  0xf4   :  { %4142 = vmatprep.subr.bf16.mxu1 %v4398_v10 }
  0xf5   :  { %4121 = vmatpush3.bf16.msra.mxu0 %v4399_v12 }
  0xf6   :  { %4122 = vmatprep.subr.bf16.mxu0 %v4401_v15 }
  0xf7   :  { %4143 = vmatpush3.bf16.msra.mxu1 %v4400_v17 }
  0xf8   :  { %4144 = vmatprep.subr.bf16.mxu1 %v4402_v47 }
  0xf9   :  { %4123 = vmatpush3.bf16.msra.mxu0 %v4403_v57 }
  0xfa   :  { %4124 = vmatprep.subr.bf16.mxu0 %v4405_v20 }
  0xfb   :  { %4145 = vmatpush3.bf16.msra.mxu1 %v4404_v45 }
  0xfc   :  { %4146 = vmatprep.subr.bf16.mxu1 %v4406_v22 }
  0xfd   :  { %4125 = vmatpush3.bf16.msra.mxu0 %v4407_v23 }
  0xfe   :  { %4126 = vmatprep.subr.bf16.mxu0 %v4409_v24 }
  0xff   :  { %4147 = vmatpush3.bf16.msra.mxu1 %v4408_v25 }
 0x100   :  { %4148 = vmatprep.subr.bf16.mxu1 %v4410_v26 }
 0x101   :  { %4127 = vmatpush3.bf16.msra.mxu0 %v4411_v16 }
 0x103   :  { %4149 = vmatpush3.bf16.msra.mxu1 %v4412_v27 }
 0x104   :  { %v3864_v28 = vpop.f32.mrf.mxu0  ;;  %3489 = vmatmul.mubr.bf16.vlgmr.msra.gmra.mxu0 %v837_v29 }
 0x106   :  { %v3886_v30 = vpop.f32.mrf.mxu1  ;;  %v3865_v33 = vpop.f32.mrf.mxu0  ;;  %3529 = vmatmul.mubr.bf16.vlgmr.msra.gmra.mxu1 %v839_v31 }
 0x107   :  { %v3866_v35 = vadd.f32 %v3865_v33, %v3864_v28 }
 0x108   :  { %v3887_v37 = vpop.f32.mrf.mxu1  ;;  %v3867_v38 = vpop.f32.mrf.mxu0 }
 0x109   :  { %v3011_v40 = vadd.f32 %v3866_v35, %v5353_v59  ;;  %v3888_v41 = vadd.f32 %v3887_v37, %v3886_v30 }
 0x10a   :  { %v3889_v42 = vpop.f32.mrf.mxu1  ;;  %v3868_v43 = vpop.f32.mrf.mxu0 }
 0x10b   :  { %v3051_v44 = vadd.f32 %v3888_v41, %v3011_v40 }
 0x10c   :  { %v3890_v46 = vpop.f32.mrf.mxu1 }
 0x124   :  { %v3908_v48 = vpop.f32.mrf.mxu0 }
 0x126   :  { %v3930_v49 = vpop.f32.mrf.mxu1  ;;  %v3909_v32 = vpop.f32.mrf.mxu0 }
 0x127   :  { %v3910_v50 = vadd.f32 %v3909_v32, %v3908_v48 }
 0x128   :  { %v3931_v34 = vpop.f32.mrf.mxu1  ;;  %v3911_v36 = vpop.f32.mrf.mxu0 }
 0x129   :  { %v3091_v51 = vadd.f32 %v3910_v50, %v3051_v44  ;;  %v3932_v52 = vadd.f32 %v3931_v34, %v3930_v49 }
 0x12a   :  { %v3933_v39 = vpop.f32.mrf.mxu1  ;;  %v3912_v53 = vpop.f32.mrf.mxu0 }
 0x12b   :  { %v3131_v54 = vadd.f32 %v3932_v52, %v3091_v51 }
 0x12c   :  { %v3934_v55 = vpop.f32.mrf.mxu1 }
 0x144   :  { %v3952_v56 = vpop.f32.mrf.mxu0 }
 0x146   :  { %v3974_v58 = vpop.f32.mrf.mxu1  ;;  %v3953_v59 = vpop.f32.mrf.mxu0 }
 0x147   :  { %v3954_v63 = vadd.f32 %v3953_v59, %v3952_v56 }
 0x148   :  { %v3975_v0 = vpop.f32.mrf.mxu1  ;;  %v3955_v1 = vpop.f32.mrf.mxu0 }
 0x149   :  { %v3171_v2 = vadd.f32 %v3954_v63, %v3131_v54  ;;  %v3976_v3 = vadd.f32 %v3975_v0, %v3974_v58 }
 0x14a   :  { %v3977_v62 = vpop.f32.mrf.mxu1  ;;  %v3956_v4 = vpop.f32.mrf.mxu0 }
 0x14b   :  { %v3211_v5 = vadd.f32 %v3976_v3, %v3171_v2 }
 0x14c   :  { %v3978_v6 = vpop.f32.mrf.mxu1 }
 0x164   :  { %v3996_v7 = vpop.f32.mrf.mxu0 }
 0x166   :  { %v4018_v8 = vpop.f32.mrf.mxu1  ;;  %v3997_v9 = vpop.f32.mrf.mxu0 }
 0x167   :  { %v3998_v10 = vadd.f32 %v3997_v9, %v3996_v7 }
 0x168   :  { %v4019_v11 = vpop.f32.mrf.mxu1  ;;  %v3999_v12 = vpop.f32.mrf.mxu0 }
 0x169   :  { %v3251_v13 = vadd.f32 %v3998_v10, %v3211_v5  ;;  %v4020_v14 = vadd.f32 %v4019_v11, %v4018_v8 }
 0x16a   :  { %v4021_v15 = vpop.f32.mrf.mxu1  ;;  %v4000_v17 = vpop.f32.mrf.mxu0 }
 0x16b   :  { %v3291_v18 = vadd.f32 %v4020_v14, %v3251_v13 }
 0x16c   :  { %v4022_v19 = vpop.f32.mrf.mxu1 }
 0x184   :  { %v4040_v47 = vpop.f32.mrf.mxu0 }
 0x186   :  { %v4062_v57 = vpop.f32.mrf.mxu1  ;;  %v4041_v60 = vpop.f32.mrf.mxu0 }
 0x187   :  { %v4042_v30 = vadd.f32 %v4041_v60, %v4040_v47 }
 0x188   :  { %v4063_v61 = vpop.f32.mrf.mxu1  ;;  %v4043_v20 = vpop.f32.mrf.mxu0 }
 0x189   :  { %v3331_v31 = vadd.f32 %v4042_v30, %v3291_v18  ;;  %v4064_v33 = vadd.f32 %v4063_v61, %v4062_v57 }
 0x18a   :  { %v4065_v45 = vpop.f32.mrf.mxu1  ;;  %v4044_v21 = vpop.f32.mrf.mxu0 }
 0x18b   :  { %v3371_v37 = vadd.f32 %v4064_v33, %v3331_v31 }
 0x18c   :  { %v4066_v22 = vpop.f32.mrf.mxu1 }
 0x1a4   :  { %v4084_v23 = vpop.f32.mrf.mxu0 }
 0x1a6   :  { %v4106_v24 = vpop.f32.mrf.mxu1  ;;  %v4085_v25 = vpop.f32.mrf.mxu0 }
 0x1a7   :  { %v4086_v35 = vadd.f32 %v4085_v25, %v4084_v23 }
 0x1a8   :  { %v4107_v26 = vpop.f32.mrf.mxu1  ;;  %v4087_v16 = vpop.f32.mrf.mxu0 }
 0x1a9   :  { %v3411_v38 = vadd.f32 %v4086_v35, %v3371_v37  ;;  %v4108_v40 = vadd.f32 %v4107_v26, %v4106_v24 }
 0x1aa   :  { %v4109_v27 = vpop.f32.mrf.mxu1  ;;  %v4088_v28 = vpop.f32.mrf.mxu0 }
 0x1ab   :  { %v3451_v44 = vadd.f32 %v4108_v40, %v3411_v38 }
 0x1ac   :  { %v4110_v29 = vpop.f32.mrf.mxu1 }
 0x1c4   :  { %v4128_v41 = vpop.f32.mrf.mxu0 }
 0x1c6   :  { %v4150_v42 = vpop.f32.mrf.mxu1  ;;  %v4129_v43 = vpop.f32.mrf.mxu0 }
 0x1c7   :  { %v4130_v46 = vadd.f32 %v4129_v43, %v4128_v41 }
 0x1c8   :  { %v4151_v48 = vpop.f32.mrf.mxu1  ;;  %v4131_v49 = vpop.f32.mrf.mxu0 }
 0x1c9   :  { %v3491_v32 = vadd.f32 %v4130_v46, %v3451_v44  ;;  %v4152_v50 = vadd.f32 %v4151_v48, %v4150_v42 }
 0x1ca   :  { %v4153_v34 = vpop.f32.mrf.mxu1  ;;  %v4132_v36 = vpop.f32.mrf.mxu0 }
 0x1cb   :  { %v3531_v51 = vadd.f32 %v4152_v50, %v3491_v32 }
 0x1cc   :  { %v4154_v52 = vpop.f32.mrf.mxu1 }
 0x1cd   :  { %v3536_v39 = vsub.f32 0.0, %v3531_v51 }
 0x1cf   :  { %v3537_v53 = vmul.f32 1.442695, %v3536_v39 }
 0x1d1   :  { %4413 = vpow2.f32 %v3537_v53 }
 0x1de   :  { %v4414_v54 = vpop.eup %4413 }
 0x1df   :  { %v3539_v55 = vadd.f32 1.0, %v4414_v54 }
 0x1e1   :  { %4415 = vrcp.f32 %v3539_v55 }
 0x1ee   :  { %v4416_v56 = vpop.eup %4415 }
 0x1ef   :  { %3542 = vst [vmem:[%s5438_s5] sm:$0x3] %v4416_v56 }

</bundles_post_ra>
